<compile_context>
chip_gen: v7x
topology: tpu7x:2x2x1
jax: 0.10.0
libtpu: 0.0.40
codegen_flags: <defaults>
</compile_context>

<pallas_src>
import jax
import jax.numpy as jnp
from jax import lax
from jax.experimental import pallas as pl
from jax.experimental.pallas import tpu as pltpu

BN_EPS = 1e-5
PAD_L = 8   # sublane-aligned left offset of the data inside the padded scratch


def _fill_padded(dst_ref, v):
    """Write v (B,H,W,C) into dst_ref (B,H+2,WPAD,C) at [1:H+1, PAD_L:PAD_L+W].

    Only the 1-pixel halo actually read by the 3x3 taps is zeroed (rows 0 and
    H+1, columns PAD_L-1 and PAD_L+W); the interior store is sublane-aligned.
    """
    B, H, W, C = v.shape
    WPAD = dst_ref.shape[2]
    dst_ref[:, 0:1, :, :] = jnp.zeros((B, 1, WPAD, C), dst_ref.dtype)
    dst_ref[:, H + 1:H + 2, :, :] = jnp.zeros((B, 1, WPAD, C), dst_ref.dtype)
    dst_ref[:, :, PAD_L - 1:PAD_L, :] = jnp.zeros((B, H + 2, 1, C), dst_ref.dtype)
    dst_ref[:, :, PAD_L + W:PAD_L + W + 1, :] = jnp.zeros((B, H + 2, 1, C), dst_ref.dtype)
    dst_ref[:, 1:H + 1, PAD_L:PAD_L + W, :] = v.astype(dst_ref.dtype)


def _conv3x3_mxu(pad_ref, w_ref, out_hw, batch):
    """3x3 / stride-1 / pad-1 conv as 9 MXU matmuls into one f32 accumulator.

    pad_ref: (B, H+2, WPAD, Cin) zero-haloed input, data at [1:H+1, PAD_L:PAD_L+W].
    w_ref:   (9, Cin, Cout), tap-major (ky*3 + kx).
    Returns the flattened (B*H*W, Cout) f32 conv output.
    """
    H, W = out_hw
    Cin = pad_ref.shape[-1]
    Cout = w_ref.shape[-1]
    M = batch * H * W
    acc = jnp.zeros((M, Cout), jnp.float32)
    for ky in range(3):
        for kx in range(3):
            col = PAD_L - 1 + kx
            tap = pad_ref[:, ky:ky + H, col:col + W, :]        # (B, H, W, Cin)
            acc = acc + jnp.dot(
                tap.astype(jnp.float32).reshape(M, Cin),
                w_ref[ky * 3 + kx].astype(jnp.float32),
                preferred_element_type=jnp.float32)
    return acc


def _batchnorm(x2d, g_ref, b_ref):
    """BatchNorm2d forward (training-mode batch stats, biased variance) on the
    flattened (B*H*W, C) activation; per-channel statistics over axis 0."""
    m = x2d.shape[0]
    mean = jnp.sum(x2d, axis=0, keepdims=True) * (1.0 / m)
    d = x2d - mean
    var = jnp.sum(d * d, axis=0, keepdims=True) * (1.0 / m)
    return d * lax.rsqrt(var + BN_EPS) * g_ref[...] + b_ref[...]


def basic_block_kernel(x_ref, w1_ref, g1_ref, b1_ref, w2_ref, g2_ref, b2_ref,
                       out_ref, pad1_ref, pad2_ref):
    B, H, W, Cin = x_ref.shape
    Cout = out_ref.shape[-1]
    M = B * H * W

    x = x_ref[...].astype(jnp.float32)

    # conv1 (MXU) -> bn1 -> relu
    _fill_padded(pad1_ref, x)
    h = _conv3x3_mxu(pad1_ref, w1_ref, (H, W), B)
    h = jnp.maximum(_batchnorm(h, g1_ref, b1_ref), 0.0)

    # conv2 (MXU) -> bn2
    _fill_padded(pad2_ref, h.reshape(B, H, W, Cout))
    h = _conv3x3_mxu(pad2_ref, w2_ref, (H, W), B)
    h = _batchnorm(h, g2_ref, b2_ref)

    # residual add (downsample is None -> identity = aligned unpadded x) + relu
    out = jnp.maximum(h + x.reshape(M, Cin), 0.0)
    out_ref[...] = out.reshape(B, H, W, Cout).astype(out_ref.dtype)


def basic_block_forward(x_nchw, params):
    w1, g1, b1, w2, g2, b2 = params
    x = jnp.transpose(x_nchw, (0, 2, 3, 1))            # NCHW -> NHWC
    B, H, W, Cin = x.shape
    Cout = w1.shape[-1]
    assert Cin == Cout, "identity residual requires inplanes == planes"

    w1_p = w1.reshape(9, Cin, Cout)                    # (3,3,Ci,Co) -> (9,Ci,Co)
    w2_p = w2.reshape(9, Cout, Cout)
    g1_p = g1.reshape(1, Cout)
    b1_p = b1.reshape(1, Cout)
    g2_p = g2.reshape(1, Cout)
    b2_p = b2.reshape(1, Cout)

    wpad = PAD_L + W + 8                               # halo cols at PAD_L-1, PAD_L+W
    vmem = pl.BlockSpec(memory_space=pltpu.MemorySpace.VMEM)
    out_nhwc = pl.pallas_call(
        basic_block_kernel,
        out_shape=jax.ShapeDtypeStruct((B, H, W, Cout), x.dtype),
        in_specs=[vmem] * 7,
        out_specs=vmem,
        scratch_shapes=[
            pltpu.VMEM((B, H + 2, wpad, Cin), jnp.float32),   # haloed x
            pltpu.VMEM((B, H + 2, wpad, Cout), jnp.float32),  # haloed conv1 output
        ],
    )(x, w1_p, g1_p, b1_p, w2_p, g2_p, b2_p)
    return jnp.transpose(out_nhwc, (0, 3, 1, 2))       # NHWC -> NCHW


def basic_block_reference(x_nchw, params):
    """Pure-JAX reference (same semantics) for a correctness check."""
    w1, g1, b1, w2, g2, b2 = params
    x = jnp.transpose(x_nchw, (0, 2, 3, 1))

    def conv(h, w):
        return lax.conv_general_dilated(
            h, w, window_strides=(1, 1), padding=((1, 1), (1, 1)),
            dimension_numbers=('NHWC', 'HWIO', 'NHWC'),
            precision=lax.Precision.HIGHEST)

    def bn(h, g, b):
        mean = jnp.mean(h, axis=(0, 1, 2), keepdims=True)
        var = jnp.mean((h - mean) ** 2, axis=(0, 1, 2), keepdims=True)
        return (h - mean) * lax.rsqrt(var + BN_EPS) * g + b

    out = jnp.maximum(bn(conv(x, w1), g1, b1), 0.0)
    out = bn(conv(out, w2), g2, b2)
    out = jnp.maximum(out + x, 0.0)
    return jnp.transpose(out, (0, 3, 1, 2))


if __name__ == "__main__":
    key = jax.random.PRNGKey(0)
    # inplanes = planes = 4, stride = 1, downsample = None
    B, C, H, W = 2, 4, 16, 16
    k = jax.random.split(key, 7)
    x = jax.random.normal(k[0], (B, C, H, W), jnp.float32)

    fan_in = 9 * C
    w1 = jax.random.normal(k[1], (3, 3, C, C), jnp.float32) * (2.0 / fan_in) ** 0.5
    w2 = jax.random.normal(k[2], (3, 3, C, C), jnp.float32) * (2.0 / fan_in) ** 0.5
    g1 = 1.0 + 0.1 * jax.random.normal(k[3], (1, 1, 1, C), jnp.float32)
    b1 = 0.1 * jax.random.normal(k[4], (1, 1, 1, C), jnp.float32)
    g2 = 1.0 + 0.1 * jax.random.normal(k[5], (1, 1, 1, C), jnp.float32)
    b2 = 0.1 * jax.random.normal(k[6], (1, 1, 1, C), jnp.float32)
    params = (w1, g1, b1, w2, g2, b2)

    out = jax.block_until_ready(basic_block_forward(x, params))
    ref = jax.block_until_ready(basic_block_reference(x, params))

    assert out.shape == (B, C, H, W), out.shape
    max_err = float(jnp.max(jnp.abs(out - ref)))
    # Tolerance covers the MXU's multi-pass f32 matmul rounding; any semantic
    # error (wrong tap, missing BN/ReLU/residual) produces O(0.1..1) errors.
    if max_err > 2e-2:
        raise AssertionError(f"mismatch vs reference: max abs err {max_err}")
    print("KERNEL_OK")
</pallas_src>

<mosaic_0001>
module attributes {stable_mosaic.version = 11 : i64} {
  func.func @basic_block_kernel(%arg0: memref<2x16x16x4xf32, #tpu.memory_space<vmem>>, %arg1: memref<9x4x4xf32, #tpu.memory_space<vmem>>, %arg2: memref<1x4xf32, #tpu.memory_space<vmem>>, %arg3: memref<1x4xf32, #tpu.memory_space<vmem>>, %arg4: memref<9x4x4xf32, #tpu.memory_space<vmem>>, %arg5: memref<1x4xf32, #tpu.memory_space<vmem>>, %arg6: memref<1x4xf32, #tpu.memory_space<vmem>>, %arg7: memref<2x16x16x4xf32, #tpu.memory_space<vmem>>, %arg8: memref<2x18x32x4xf32, #tpu.memory_space<vmem>>, %arg9: memref<2x18x32x4xf32, #tpu.memory_space<vmem>>) attributes {dimension_semantics = [], scalar_prefetch = 0 : i64, scratch_operands = 2 : i64, tpu.core_type = #tpu.core_type<tc>} {
    %c0 = arith.constant 0 : index
    %c0_0 = arith.constant 0 : index
    %c0_1 = arith.constant 0 : index
    %c0_2 = arith.constant 0 : index
    %0 = vector.load %arg0[%c0, %c0_0, %c0_1, %c0_2] : memref<2x16x16x4xf32, #tpu.memory_space<vmem>>, vector<2x16x16x4xf32>
    %cst = arith.constant 0.000000e+00 : f32
    %1 = vector.broadcast %cst : f32 to vector<2x1x32x4xf32>
    %c0_3 = arith.constant 0 : index
    %c0_4 = arith.constant 0 : index
    %c0_5 = arith.constant 0 : index
    %c0_6 = arith.constant 0 : index
    %2 = vector.load %arg8[%c0_3, %c0_4, %c0_5, %c0_6] : memref<2x18x32x4xf32, #tpu.memory_space<vmem>>, vector<2x1x32x4xf32>
    tpu.vector_store %arg8[%c0_3, %c0_4, %c0_5, %c0_6], %1 {strides = array<i32>} : memref<2x18x32x4xf32, #tpu.memory_space<vmem>>, vector<2x1x32x4xf32>,
    %cst_7 = arith.constant 0.000000e+00 : f32
    %3 = vector.broadcast %cst_7 : f32 to vector<2x1x32x4xf32>
    %c0_8 = arith.constant 0 : index
    %c17 = arith.constant 17 : index
    %c0_9 = arith.constant 0 : index
    %c0_10 = arith.constant 0 : index
    %4 = vector.load %arg8[%c0_8, %c17, %c0_9, %c0_10] : memref<2x18x32x4xf32, #tpu.memory_space<vmem>>, vector<2x1x32x4xf32>
    tpu.vector_store %arg8[%c0_8, %c17, %c0_9, %c0_10], %3 {strides = array<i32>} : memref<2x18x32x4xf32, #tpu.memory_space<vmem>>, vector<2x1x32x4xf32>,
    %cst_11 = arith.constant 0.000000e+00 : f32
    %5 = vector.broadcast %cst_11 : f32 to vector<2x18x1x4xf32>
    %c0_12 = arith.constant 0 : index
    %c0_13 = arith.constant 0 : index
    %c7 = arith.constant 7 : index
    %c0_14 = arith.constant 0 : index
    %6 = vector.load %arg8[%c0_12, %c0_13, %c7, %c0_14] : memref<2x18x32x4xf32, #tpu.memory_space<vmem>>, vector<2x18x1x4xf32>
    tpu.vector_store %arg8[%c0_12, %c0_13, %c7, %c0_14], %5 {strides = array<i32>} : memref<2x18x32x4xf32, #tpu.memory_space<vmem>>, vector<2x18x1x4xf32>,
    %cst_15 = arith.constant 0.000000e+00 : f32
    %7 = vector.broadcast %cst_15 : f32 to vector<2x18x1x4xf32>
    %c0_16 = arith.constant 0 : index
    %c0_17 = arith.constant 0 : index
    %c24 = arith.constant 24 : index
    %c0_18 = arith.constant 0 : index
    %8 = vector.load %arg8[%c0_16, %c0_17, %c24, %c0_18] : memref<2x18x32x4xf32, #tpu.memory_space<vmem>>, vector<2x18x1x4xf32>
    tpu.vector_store %arg8[%c0_16, %c0_17, %c24, %c0_18], %7 {strides = array<i32>} : memref<2x18x32x4xf32, #tpu.memory_space<vmem>>, vector<2x18x1x4xf32>,
    %c0_19 = arith.constant 0 : index
    %c1 = arith.constant 1 : index
    %c8 = arith.constant 8 : index
    %c0_20 = arith.constant 0 : index
    %9 = vector.load %arg8[%c0_19, %c1, %c8, %c0_20] : memref<2x18x32x4xf32, #tpu.memory_space<vmem>>, vector<2x16x16x4xf32>
    tpu.vector_store %arg8[%c0_19, %c1, %c8, %c0_20], %0 {strides = array<i32>} : memref<2x18x32x4xf32, #tpu.memory_space<vmem>>, vector<2x16x16x4xf32>,
    %cst_21 = arith.constant 0.000000e+00 : f32
    %10 = vector.broadcast %cst_21 : f32 to vector<512x4xf32>
    %c0_22 = arith.constant 0 : index
    %c0_23 = arith.constant 0 : index
    %c7_24 = arith.constant 7 : index
    %c0_25 = arith.constant 0 : index
    %11 = vector.load %arg8[%c0_22, %c0_23, %c7_24, %c0_25] : memref<2x18x32x4xf32, #tpu.memory_space<vmem>>, vector<2x16x16x4xf32>
    %12 = vector.shape_cast %11 : vector<2x16x16x4xf32> to vector<512x4xf32>
    %c0_26 = arith.constant 0 : index
    %c0_27 = arith.constant 0 : index
    %c0_28 = arith.constant 0 : index
    %13 = vector.load %arg1[%c0_26, %c0_27, %c0_28] : memref<9x4x4xf32, #tpu.memory_space<vmem>>, vector<1x4x4xf32>
    %14 = vector.shape_cast %13 : vector<1x4x4xf32> to vector<4x4xf32>
    %cst_29 = arith.constant dense<0.000000e+00> : vector<512x4xf32>
    %15 = tpu.matmul %12, %14, %cst_29 {dimension_numbers = #tpu.dot_dimension_numbers<[1], [0], [0], [1], [0, 0, 1, 1], [], []>} : vector<512x4xf32>, vector<4x4xf32>, vector<512x4xf32> -> vector<512x4xf32>
    %16 = arith.addf %10, %15 : vector<512x4xf32>
    %c0_30 = arith.constant 0 : index
    %c0_31 = arith.constant 0 : index
    %c8_32 = arith.constant 8 : index
    %c0_33 = arith.constant 0 : index
    %17 = vector.load %arg8[%c0_30, %c0_31, %c8_32, %c0_33] : memref<2x18x32x4xf32, #tpu.memory_space<vmem>>, vector<2x16x16x4xf32>
    %18 = vector.shape_cast %17 : vector<2x16x16x4xf32> to vector<512x4xf32>
    %c1_34 = arith.constant 1 : index
    %c0_35 = arith.constant 0 : index
    %c0_36 = arith.constant 0 : index
    %19 = vector.load %arg1[%c1_34, %c0_35, %c0_36] : memref<9x4x4xf32, #tpu.memory_space<vmem>>, vector<1x4x4xf32>
    %20 = vector.shape_cast %19 : vector<1x4x4xf32> to vector<4x4xf32>
    %cst_37 = arith.constant dense<0.000000e+00> : vector<512x4xf32>
    %21 = tpu.matmul %18, %20, %cst_37 {dimension_numbers = #tpu.dot_dimension_numbers<[1], [0], [0], [1], [0, 0, 1, 1], [], []>} : vector<512x4xf32>, vector<4x4xf32>, vector<512x4xf32> -> vector<512x4xf32>
    %22 = arith.addf %16, %21 : vector<512x4xf32>
    %c0_38 = arith.constant 0 : index
    %c0_39 = arith.constant 0 : index
    %c9 = arith.constant 9 : index
    %c0_40 = arith.constant 0 : index
    %23 = vector.load %arg8[%c0_38, %c0_39, %c9, %c0_40] : memref<2x18x32x4xf32, #tpu.memory_space<vmem>>, vector<2x16x16x4xf32>
    %24 = vector.shape_cast %23 : vector<2x16x16x4xf32> to vector<512x4xf32>
    %c2 = arith.constant 2 : index
    %c0_41 = arith.constant 0 : index
    %c0_42 = arith.constant 0 : index
    %25 = vector.load %arg1[%c2, %c0_41, %c0_42] : memref<9x4x4xf32, #tpu.memory_space<vmem>>, vector<1x4x4xf32>
    %26 = vector.shape_cast %25 : vector<1x4x4xf32> to vector<4x4xf32>
    %cst_43 = arith.constant dense<0.000000e+00> : vector<512x4xf32>
    %27 = tpu.matmul %24, %26, %cst_43 {dimension_numbers = #tpu.dot_dimension_numbers<[1], [0], [0], [1], [0, 0, 1, 1], [], []>} : vector<512x4xf32>, vector<4x4xf32>, vector<512x4xf32> -> vector<512x4xf32>
    %28 = arith.addf %22, %27 : vector<512x4xf32>
    %c0_44 = arith.constant 0 : index
    %c1_45 = arith.constant 1 : index
    %c7_46 = arith.constant 7 : index
    %c0_47 = arith.constant 0 : index
    %29 = vector.load %arg8[%c0_44, %c1_45, %c7_46, %c0_47] : memref<2x18x32x4xf32, #tpu.memory_space<vmem>>, vector<2x16x16x4xf32>
    %30 = vector.shape_cast %29 : vector<2x16x16x4xf32> to vector<512x4xf32>
    %c3 = arith.constant 3 : index
    %c0_48 = arith.constant 0 : index
    %c0_49 = arith.constant 0 : index
    %31 = vector.load %arg1[%c3, %c0_48, %c0_49] : memref<9x4x4xf32, #tpu.memory_space<vmem>>, vector<1x4x4xf32>
    %32 = vector.shape_cast %31 : vector<1x4x4xf32> to vector<4x4xf32>
    %cst_50 = arith.constant dense<0.000000e+00> : vector<512x4xf32>
    %33 = tpu.matmul %30, %32, %cst_50 {dimension_numbers = #tpu.dot_dimension_numbers<[1], [0], [0], [1], [0, 0, 1, 1], [], []>} : vector<512x4xf32>, vector<4x4xf32>, vector<512x4xf32> -> vector<512x4xf32>
    %34 = arith.addf %28, %33 : vector<512x4xf32>
    %c0_51 = arith.constant 0 : index
    %c1_52 = arith.constant 1 : index
    %c8_53 = arith.constant 8 : index
    %c0_54 = arith.constant 0 : index
    %35 = vector.load %arg8[%c0_51, %c1_52, %c8_53, %c0_54] : memref<2x18x32x4xf32, #tpu.memory_space<vmem>>, vector<2x16x16x4xf32>
    %36 = vector.shape_cast %35 : vector<2x16x16x4xf32> to vector<512x4xf32>
    %c4 = arith.constant 4 : index
    %c0_55 = arith.constant 0 : index
    %c0_56 = arith.constant 0 : index
    %37 = vector.load %arg1[%c4, %c0_55, %c0_56] : memref<9x4x4xf32, #tpu.memory_space<vmem>>, vector<1x4x4xf32>
    %38 = vector.shape_cast %37 : vector<1x4x4xf32> to vector<4x4xf32>
    %cst_57 = arith.constant dense<0.000000e+00> : vector<512x4xf32>
    %39 = tpu.matmul %36, %38, %cst_57 {dimension_numbers = #tpu.dot_dimension_numbers<[1], [0], [0], [1], [0, 0, 1, 1], [], []>} : vector<512x4xf32>, vector<4x4xf32>, vector<512x4xf32> -> vector<512x4xf32>
    %40 = arith.addf %34, %39 : vector<512x4xf32>
    %c0_58 = arith.constant 0 : index
    %c1_59 = arith.constant 1 : index
    %c9_60 = arith.constant 9 : index
    %c0_61 = arith.constant 0 : index
    %41 = vector.load %arg8[%c0_58, %c1_59, %c9_60, %c0_61] : memref<2x18x32x4xf32, #tpu.memory_space<vmem>>, vector<2x16x16x4xf32>
    %42 = vector.shape_cast %41 : vector<2x16x16x4xf32> to vector<512x4xf32>
    %c5 = arith.constant 5 : index
    %c0_62 = arith.constant 0 : index
    %c0_63 = arith.constant 0 : index
    %43 = vector.load %arg1[%c5, %c0_62, %c0_63] : memref<9x4x4xf32, #tpu.memory_space<vmem>>, vector<1x4x4xf32>
    %44 = vector.shape_cast %43 : vector<1x4x4xf32> to vector<4x4xf32>
    %cst_64 = arith.constant dense<0.000000e+00> : vector<512x4xf32>
    %45 = tpu.matmul %42, %44, %cst_64 {dimension_numbers = #tpu.dot_dimension_numbers<[1], [0], [0], [1], [0, 0, 1, 1], [], []>} : vector<512x4xf32>, vector<4x4xf32>, vector<512x4xf32> -> vector<512x4xf32>
    %46 = arith.addf %40, %45 : vector<512x4xf32>
    %c0_65 = arith.constant 0 : index
    %c2_66 = arith.constant 2 : index
    %c7_67 = arith.constant 7 : index
    %c0_68 = arith.constant 0 : index
    %47 = vector.load %arg8[%c0_65, %c2_66, %c7_67, %c0_68] : memref<2x18x32x4xf32, #tpu.memory_space<vmem>>, vector<2x16x16x4xf32>
    %48 = vector.shape_cast %47 : vector<2x16x16x4xf32> to vector<512x4xf32>
    %c6 = arith.constant 6 : index
    %c0_69 = arith.constant 0 : index
    %c0_70 = arith.constant 0 : index
    %49 = vector.load %arg1[%c6, %c0_69, %c0_70] : memref<9x4x4xf32, #tpu.memory_space<vmem>>, vector<1x4x4xf32>
    %50 = vector.shape_cast %49 : vector<1x4x4xf32> to vector<4x4xf32>
    %cst_71 = arith.constant dense<0.000000e+00> : vector<512x4xf32>
    %51 = tpu.matmul %48, %50, %cst_71 {dimension_numbers = #tpu.dot_dimension_numbers<[1], [0], [0], [1], [0, 0, 1, 1], [], []>} : vector<512x4xf32>, vector<4x4xf32>, vector<512x4xf32> -> vector<512x4xf32>
    %52 = arith.addf %46, %51 : vector<512x4xf32>
    %c0_72 = arith.constant 0 : index
    %c2_73 = arith.constant 2 : index
    %c8_74 = arith.constant 8 : index
    %c0_75 = arith.constant 0 : index
    %53 = vector.load %arg8[%c0_72, %c2_73, %c8_74, %c0_75] : memref<2x18x32x4xf32, #tpu.memory_space<vmem>>, vector<2x16x16x4xf32>
    %54 = vector.shape_cast %53 : vector<2x16x16x4xf32> to vector<512x4xf32>
    %c7_76 = arith.constant 7 : index
    %c0_77 = arith.constant 0 : index
    %c0_78 = arith.constant 0 : index
    %55 = vector.load %arg1[%c7_76, %c0_77, %c0_78] : memref<9x4x4xf32, #tpu.memory_space<vmem>>, vector<1x4x4xf32>
    %56 = vector.shape_cast %55 : vector<1x4x4xf32> to vector<4x4xf32>
    %cst_79 = arith.constant dense<0.000000e+00> : vector<512x4xf32>
    %57 = tpu.matmul %54, %56, %cst_79 {dimension_numbers = #tpu.dot_dimension_numbers<[1], [0], [0], [1], [0, 0, 1, 1], [], []>} : vector<512x4xf32>, vector<4x4xf32>, vector<512x4xf32> -> vector<512x4xf32>
    %58 = arith.addf %52, %57 : vector<512x4xf32>
    %c0_80 = arith.constant 0 : index
    %c2_81 = arith.constant 2 : index
    %c9_82 = arith.constant 9 : index
    %c0_83 = arith.constant 0 : index
    %59 = vector.load %arg8[%c0_80, %c2_81, %c9_82, %c0_83] : memref<2x18x32x4xf32, #tpu.memory_space<vmem>>, vector<2x16x16x4xf32>
    %60 = vector.shape_cast %59 : vector<2x16x16x4xf32> to vector<512x4xf32>
    %c8_84 = arith.constant 8 : index
    %c0_85 = arith.constant 0 : index
    %c0_86 = arith.constant 0 : index
    %61 = vector.load %arg1[%c8_84, %c0_85, %c0_86] : memref<9x4x4xf32, #tpu.memory_space<vmem>>, vector<1x4x4xf32>
    %62 = vector.shape_cast %61 : vector<1x4x4xf32> to vector<4x4xf32>
    %cst_87 = arith.constant dense<0.000000e+00> : vector<512x4xf32>
    %63 = tpu.matmul %60, %62, %cst_87 {dimension_numbers = #tpu.dot_dimension_numbers<[1], [0], [0], [1], [0, 0, 1, 1], [], []>} : vector<512x4xf32>, vector<4x4xf32>, vector<512x4xf32> -> vector<512x4xf32>
    %64 = arith.addf %58, %63 : vector<512x4xf32>
    %cst_88 = arith.constant dense<0.000000e+00> : vector<4xf32>
    %65 = vector.multi_reduction <add>, %64, %cst_88 [0] : vector<512x4xf32> to vector<4xf32>
    %66 = vector.shape_cast %65 : vector<4xf32> to vector<1x4xf32>
    %cst_89 = arith.constant 0.001953125 : f32
    %67 = vector.broadcast %cst_89 : f32 to vector<1x4xf32>
    %68 = arith.mulf %66, %67 : vector<1x4xf32>
    %69 = vector.broadcast %68 : vector<1x4xf32> to vector<512x4xf32>
    %70 = arith.subf %64, %69 : vector<512x4xf32>
    %71 = arith.mulf %70, %70 : vector<512x4xf32>
    %cst_90 = arith.constant dense<0.000000e+00> : vector<4xf32>
    %72 = vector.multi_reduction <add>, %71, %cst_90 [0] : vector<512x4xf32> to vector<4xf32>
    %73 = vector.shape_cast %72 : vector<4xf32> to vector<1x4xf32>
    %cst_91 = arith.constant 0.001953125 : f32
    %74 = vector.broadcast %cst_91 : f32 to vector<1x4xf32>
    %75 = arith.mulf %73, %74 : vector<1x4xf32>
    %cst_92 = arith.constant 9.99999974E-6 : f32
    %76 = vector.broadcast %cst_92 : f32 to vector<1x4xf32>
    %77 = arith.addf %75, %76 : vector<1x4xf32>
    %78 = math.rsqrt %77 : vector<1x4xf32>
    %79 = vector.broadcast %78 : vector<1x4xf32> to vector<512x4xf32>
    %80 = arith.mulf %70, %79 : vector<512x4xf32>
    %c0_93 = arith.constant 0 : index
    %c0_94 = arith.constant 0 : index
    %81 = vector.load %arg2[%c0_93, %c0_94] : memref<1x4xf32, #tpu.memory_space<vmem>>, vector<1x4xf32>
    %82 = vector.broadcast %81 : vector<1x4xf32> to vector<512x4xf32>
    %83 = arith.mulf %80, %82 : vector<512x4xf32>
    %c0_95 = arith.constant 0 : index
    %c0_96 = arith.constant 0 : index
    %84 = vector.load %arg3[%c0_95, %c0_96] : memref<1x4xf32, #tpu.memory_space<vmem>>, vector<1x4xf32>
    %85 = vector.broadcast %84 : vector<1x4xf32> to vector<512x4xf32>
    %86 = arith.addf %83, %85 : vector<512x4xf32>
    %cst_97 = arith.constant 0.000000e+00 : f32
    %87 = vector.broadcast %cst_97 : f32 to vector<512x4xf32>
    %88 = arith.maximumf %86, %87 : vector<512x4xf32>
    %89 = vector.shape_cast %88 : vector<512x4xf32> to vector<2x16x16x4xf32>
    %cst_98 = arith.constant 0.000000e+00 : f32
    %90 = vector.broadcast %cst_98 : f32 to vector<2x1x32x4xf32>
    %c0_99 = arith.constant 0 : index
    %c0_100 = arith.constant 0 : index
    %c0_101 = arith.constant 0 : index
    %c0_102 = arith.constant 0 : index
    %91 = vector.load %arg9[%c0_99, %c0_100, %c0_101, %c0_102] : memref<2x18x32x4xf32, #tpu.memory_space<vmem>>, vector<2x1x32x4xf32>
    tpu.vector_store %arg9[%c0_99, %c0_100, %c0_101, %c0_102], %90 {strides = array<i32>} : memref<2x18x32x4xf32, #tpu.memory_space<vmem>>, vector<2x1x32x4xf32>,
    %cst_103 = arith.constant 0.000000e+00 : f32
    %92 = vector.broadcast %cst_103 : f32 to vector<2x1x32x4xf32>
    %c0_104 = arith.constant 0 : index
    %c17_105 = arith.constant 17 : index
    %c0_106 = arith.constant 0 : index
    %c0_107 = arith.constant 0 : index
    %93 = vector.load %arg9[%c0_104, %c17_105, %c0_106, %c0_107] : memref<2x18x32x4xf32, #tpu.memory_space<vmem>>, vector<2x1x32x4xf32>
    tpu.vector_store %arg9[%c0_104, %c17_105, %c0_106, %c0_107], %92 {strides = array<i32>} : memref<2x18x32x4xf32, #tpu.memory_space<vmem>>, vector<2x1x32x4xf32>,
    %cst_108 = arith.constant 0.000000e+00 : f32
    %94 = vector.broadcast %cst_108 : f32 to vector<2x18x1x4xf32>
    %c0_109 = arith.constant 0 : index
    %c0_110 = arith.constant 0 : index
    %c7_111 = arith.constant 7 : index
    %c0_112 = arith.constant 0 : index
    %95 = vector.load %arg9[%c0_109, %c0_110, %c7_111, %c0_112] : memref<2x18x32x4xf32, #tpu.memory_space<vmem>>, vector<2x18x1x4xf32>
    tpu.vector_store %arg9[%c0_109, %c0_110, %c7_111, %c0_112], %94 {strides = array<i32>} : memref<2x18x32x4xf32, #tpu.memory_space<vmem>>, vector<2x18x1x4xf32>,
    %cst_113 = arith.constant 0.000000e+00 : f32
    %96 = vector.broadcast %cst_113 : f32 to vector<2x18x1x4xf32>
    %c0_114 = arith.constant 0 : index
    %c0_115 = arith.constant 0 : index
    %c24_116 = arith.constant 24 : index
    %c0_117 = arith.constant 0 : index
    %97 = vector.load %arg9[%c0_114, %c0_115, %c24_116, %c0_117] : memref<2x18x32x4xf32, #tpu.memory_space<vmem>>, vector<2x18x1x4xf32>
    tpu.vector_store %arg9[%c0_114, %c0_115, %c24_116, %c0_117], %96 {strides = array<i32>} : memref<2x18x32x4xf32, #tpu.memory_space<vmem>>, vector<2x18x1x4xf32>,
    %c0_118 = arith.constant 0 : index
    %c1_119 = arith.constant 1 : index
    %c8_120 = arith.constant 8 : index
    %c0_121 = arith.constant 0 : index
    %98 = vector.load %arg9[%c0_118, %c1_119, %c8_120, %c0_121] : memref<2x18x32x4xf32, #tpu.memory_space<vmem>>, vector<2x16x16x4xf32>
    tpu.vector_store %arg9[%c0_118, %c1_119, %c8_120, %c0_121], %89 {strides = array<i32>} : memref<2x18x32x4xf32, #tpu.memory_space<vmem>>, vector<2x16x16x4xf32>,
    %cst_122 = arith.constant 0.000000e+00 : f32
    %99 = vector.broadcast %cst_122 : f32 to vector<512x4xf32>
    %c0_123 = arith.constant 0 : index
    %c0_124 = arith.constant 0 : index
    %c7_125 = arith.constant 7 : index
    %c0_126 = arith.constant 0 : index
    %100 = vector.load %arg9[%c0_123, %c0_124, %c7_125, %c0_126] : memref<2x18x32x4xf32, #tpu.memory_space<vmem>>, vector<2x16x16x4xf32>
    %101 = vector.shape_cast %100 : vector<2x16x16x4xf32> to vector<512x4xf32>
    %c0_127 = arith.constant 0 : index
    %c0_128 = arith.constant 0 : index
    %c0_129 = arith.constant 0 : index
    %102 = vector.load %arg4[%c0_127, %c0_128, %c0_129] : memref<9x4x4xf32, #tpu.memory_space<vmem>>, vector<1x4x4xf32>
    %103 = vector.shape_cast %102 : vector<1x4x4xf32> to vector<4x4xf32>
    %cst_130 = arith.constant dense<0.000000e+00> : vector<512x4xf32>
    %104 = tpu.matmul %101, %103, %cst_130 {dimension_numbers = #tpu.dot_dimension_numbers<[1], [0], [0], [1], [0, 0, 1, 1], [], []>} : vector<512x4xf32>, vector<4x4xf32>, vector<512x4xf32> -> vector<512x4xf32>
    %105 = arith.addf %99, %104 : vector<512x4xf32>
    %c0_131 = arith.constant 0 : index
    %c0_132 = arith.constant 0 : index
    %c8_133 = arith.constant 8 : index
    %c0_134 = arith.constant 0 : index
    %106 = vector.load %arg9[%c0_131, %c0_132, %c8_133, %c0_134] : memref<2x18x32x4xf32, #tpu.memory_space<vmem>>, vector<2x16x16x4xf32>
    %107 = vector.shape_cast %106 : vector<2x16x16x4xf32> to vector<512x4xf32>
    %c1_135 = arith.constant 1 : index
    %c0_136 = arith.constant 0 : index
    %c0_137 = arith.constant 0 : index
    %108 = vector.load %arg4[%c1_135, %c0_136, %c0_137] : memref<9x4x4xf32, #tpu.memory_space<vmem>>, vector<1x4x4xf32>
    %109 = vector.shape_cast %108 : vector<1x4x4xf32> to vector<4x4xf32>
    %cst_138 = arith.constant dense<0.000000e+00> : vector<512x4xf32>
    %110 = tpu.matmul %107, %109, %cst_138 {dimension_numbers = #tpu.dot_dimension_numbers<[1], [0], [0], [1], [0, 0, 1, 1], [], []>} : vector<512x4xf32>, vector<4x4xf32>, vector<512x4xf32> -> vector<512x4xf32>
    %111 = arith.addf %105, %110 : vector<512x4xf32>
    %c0_139 = arith.constant 0 : index
    %c0_140 = arith.constant 0 : index
    %c9_141 = arith.constant 9 : index
    %c0_142 = arith.constant 0 : index
    %112 = vector.load %arg9[%c0_139, %c0_140, %c9_141, %c0_142] : memref<2x18x32x4xf32, #tpu.memory_space<vmem>>, vector<2x16x16x4xf32>
    %113 = vector.shape_cast %112 : vector<2x16x16x4xf32> to vector<512x4xf32>
    %c2_143 = arith.constant 2 : index
    %c0_144 = arith.constant 0 : index
    %c0_145 = arith.constant 0 : index
    %114 = vector.load %arg4[%c2_143, %c0_144, %c0_145] : memref<9x4x4xf32, #tpu.memory_space<vmem>>, vector<1x4x4xf32>
    %115 = vector.shape_cast %114 : vector<1x4x4xf32> to vector<4x4xf32>
    %cst_146 = arith.constant dense<0.000000e+00> : vector<512x4xf32>
    %116 = tpu.matmul %113, %115, %cst_146 {dimension_numbers = #tpu.dot_dimension_numbers<[1], [0], [0], [1], [0, 0, 1, 1], [], []>} : vector<512x4xf32>, vector<4x4xf32>, vector<512x4xf32> -> vector<512x4xf32>
    %117 = arith.addf %111, %116 : vector<512x4xf32>
    %c0_147 = arith.constant 0 : index
    %c1_148 = arith.constant 1 : index
    %c7_149 = arith.constant 7 : index
    %c0_150 = arith.constant 0 : index
    %118 = vector.load %arg9[%c0_147, %c1_148, %c7_149, %c0_150] : memref<2x18x32x4xf32, #tpu.memory_space<vmem>>, vector<2x16x16x4xf32>
    %119 = vector.shape_cast %118 : vector<2x16x16x4xf32> to vector<512x4xf32>
    %c3_151 = arith.constant 3 : index
    %c0_152 = arith.constant 0 : index
    %c0_153 = arith.constant 0 : index
    %120 = vector.load %arg4[%c3_151, %c0_152, %c0_153] : memref<9x4x4xf32, #tpu.memory_space<vmem>>, vector<1x4x4xf32>
    %121 = vector.shape_cast %120 : vector<1x4x4xf32> to vector<4x4xf32>
    %cst_154 = arith.constant dense<0.000000e+00> : vector<512x4xf32>
    %122 = tpu.matmul %119, %121, %cst_154 {dimension_numbers = #tpu.dot_dimension_numbers<[1], [0], [0], [1], [0, 0, 1, 1], [], []>} : vector<512x4xf32>, vector<4x4xf32>, vector<512x4xf32> -> vector<512x4xf32>
    %123 = arith.addf %117, %122 : vector<512x4xf32>
    %c0_155 = arith.constant 0 : index
    %c1_156 = arith.constant 1 : index
    %c8_157 = arith.constant 8 : index
    %c0_158 = arith.constant 0 : index
    %124 = vector.load %arg9[%c0_155, %c1_156, %c8_157, %c0_158] : memref<2x18x32x4xf32, #tpu.memory_space<vmem>>, vector<2x16x16x4xf32>
    %125 = vector.shape_cast %124 : vector<2x16x16x4xf32> to vector<512x4xf32>
    %c4_159 = arith.constant 4 : index
    %c0_160 = arith.constant 0 : index
    %c0_161 = arith.constant 0 : index
    %126 = vector.load %arg4[%c4_159, %c0_160, %c0_161] : memref<9x4x4xf32, #tpu.memory_space<vmem>>, vector<1x4x4xf32>
    %127 = vector.shape_cast %126 : vector<1x4x4xf32> to vector<4x4xf32>
    %cst_162 = arith.constant dense<0.000000e+00> : vector<512x4xf32>
    %128 = tpu.matmul %125, %127, %cst_162 {dimension_numbers = #tpu.dot_dimension_numbers<[1], [0], [0], [1], [0, 0, 1, 1], [], []>} : vector<512x4xf32>, vector<4x4xf32>, vector<512x4xf32> -> vector<512x4xf32>
    %129 = arith.addf %123, %128 : vector<512x4xf32>
    %c0_163 = arith.constant 0 : index
    %c1_164 = arith.constant 1 : index
    %c9_165 = arith.constant 9 : index
    %c0_166 = arith.constant 0 : index
    %130 = vector.load %arg9[%c0_163, %c1_164, %c9_165, %c0_166] : memref<2x18x32x4xf32, #tpu.memory_space<vmem>>, vector<2x16x16x4xf32>
    %131 = vector.shape_cast %130 : vector<2x16x16x4xf32> to vector<512x4xf32>
    %c5_167 = arith.constant 5 : index
    %c0_168 = arith.constant 0 : index
    %c0_169 = arith.constant 0 : index
    %132 = vector.load %arg4[%c5_167, %c0_168, %c0_169] : memref<9x4x4xf32, #tpu.memory_space<vmem>>, vector<1x4x4xf32>
    %133 = vector.shape_cast %132 : vector<1x4x4xf32> to vector<4x4xf32>
    %cst_170 = arith.constant dense<0.000000e+00> : vector<512x4xf32>
    %134 = tpu.matmul %131, %133, %cst_170 {dimension_numbers = #tpu.dot_dimension_numbers<[1], [0], [0], [1], [0, 0, 1, 1], [], []>} : vector<512x4xf32>, vector<4x4xf32>, vector<512x4xf32> -> vector<512x4xf32>
    %135 = arith.addf %129, %134 : vector<512x4xf32>
    %c0_171 = arith.constant 0 : index
    %c2_172 = arith.constant 2 : index
    %c7_173 = arith.constant 7 : index
    %c0_174 = arith.constant 0 : index
    %136 = vector.load %arg9[%c0_171, %c2_172, %c7_173, %c0_174] : memref<2x18x32x4xf32, #tpu.memory_space<vmem>>, vector<2x16x16x4xf32>
    %137 = vector.shape_cast %136 : vector<2x16x16x4xf32> to vector<512x4xf32>
    %c6_175 = arith.constant 6 : index
    %c0_176 = arith.constant 0 : index
    %c0_177 = arith.constant 0 : index
    %138 = vector.load %arg4[%c6_175, %c0_176, %c0_177] : memref<9x4x4xf32, #tpu.memory_space<vmem>>, vector<1x4x4xf32>
    %139 = vector.shape_cast %138 : vector<1x4x4xf32> to vector<4x4xf32>
    %cst_178 = arith.constant dense<0.000000e+00> : vector<512x4xf32>
    %140 = tpu.matmul %137, %139, %cst_178 {dimension_numbers = #tpu.dot_dimension_numbers<[1], [0], [0], [1], [0, 0, 1, 1], [], []>} : vector<512x4xf32>, vector<4x4xf32>, vector<512x4xf32> -> vector<512x4xf32>
    %141 = arith.addf %135, %140 : vector<512x4xf32>
    %c0_179 = arith.constant 0 : index
    %c2_180 = arith.constant 2 : index
    %c8_181 = arith.constant 8 : index
    %c0_182 = arith.constant 0 : index
    %142 = vector.load %arg9[%c0_179, %c2_180, %c8_181, %c0_182] : memref<2x18x32x4xf32, #tpu.memory_space<vmem>>, vector<2x16x16x4xf32>
    %143 = vector.shape_cast %142 : vector<2x16x16x4xf32> to vector<512x4xf32>
    %c7_183 = arith.constant 7 : index
    %c0_184 = arith.constant 0 : index
    %c0_185 = arith.constant 0 : index
    %144 = vector.load %arg4[%c7_183, %c0_184, %c0_185] : memref<9x4x4xf32, #tpu.memory_space<vmem>>, vector<1x4x4xf32>
    %145 = vector.shape_cast %144 : vector<1x4x4xf32> to vector<4x4xf32>
    %cst_186 = arith.constant dense<0.000000e+00> : vector<512x4xf32>
    %146 = tpu.matmul %143, %145, %cst_186 {dimension_numbers = #tpu.dot_dimension_numbers<[1], [0], [0], [1], [0, 0, 1, 1], [], []>} : vector<512x4xf32>, vector<4x4xf32>, vector<512x4xf32> -> vector<512x4xf32>
    %147 = arith.addf %141, %146 : vector<512x4xf32>
    %c0_187 = arith.constant 0 : index
    %c2_188 = arith.constant 2 : index
    %c9_189 = arith.constant 9 : index
    %c0_190 = arith.constant 0 : index
    %148 = vector.load %arg9[%c0_187, %c2_188, %c9_189, %c0_190] : memref<2x18x32x4xf32, #tpu.memory_space<vmem>>, vector<2x16x16x4xf32>
    %149 = vector.shape_cast %148 : vector<2x16x16x4xf32> to vector<512x4xf32>
    %c8_191 = arith.constant 8 : index
    %c0_192 = arith.constant 0 : index
    %c0_193 = arith.constant 0 : index
    %150 = vector.load %arg4[%c8_191, %c0_192, %c0_193] : memref<9x4x4xf32, #tpu.memory_space<vmem>>, vector<1x4x4xf32>
    %151 = vector.shape_cast %150 : vector<1x4x4xf32> to vector<4x4xf32>
    %cst_194 = arith.constant dense<0.000000e+00> : vector<512x4xf32>
    %152 = tpu.matmul %149, %151, %cst_194 {dimension_numbers = #tpu.dot_dimension_numbers<[1], [0], [0], [1], [0, 0, 1, 1], [], []>} : vector<512x4xf32>, vector<4x4xf32>, vector<512x4xf32> -> vector<512x4xf32>
    %153 = arith.addf %147, %152 : vector<512x4xf32>
    %cst_195 = arith.constant dense<0.000000e+00> : vector<4xf32>
    %154 = vector.multi_reduction <add>, %153, %cst_195 [0] : vector<512x4xf32> to vector<4xf32>
    %155 = vector.shape_cast %154 : vector<4xf32> to vector<1x4xf32>
    %cst_196 = arith.constant 0.001953125 : f32
    %156 = vector.broadcast %cst_196 : f32 to vector<1x4xf32>
    %157 = arith.mulf %155, %156 : vector<1x4xf32>
    %158 = vector.broadcast %157 : vector<1x4xf32> to vector<512x4xf32>
    %159 = arith.subf %153, %158 : vector<512x4xf32>
    %160 = arith.mulf %159, %159 : vector<512x4xf32>
    %cst_197 = arith.constant dense<0.000000e+00> : vector<4xf32>
    %161 = vector.multi_reduction <add>, %160, %cst_197 [0] : vector<512x4xf32> to vector<4xf32>
    %162 = vector.shape_cast %161 : vector<4xf32> to vector<1x4xf32>
    %cst_198 = arith.constant 0.001953125 : f32
    %163 = vector.broadcast %cst_198 : f32 to vector<1x4xf32>
    %164 = arith.mulf %162, %163 : vector<1x4xf32>
    %cst_199 = arith.constant 9.99999974E-6 : f32
    %165 = vector.broadcast %cst_199 : f32 to vector<1x4xf32>
    %166 = arith.addf %164, %165 : vector<1x4xf32>
    %167 = math.rsqrt %166 : vector<1x4xf32>
    %168 = vector.broadcast %167 : vector<1x4xf32> to vector<512x4xf32>
    %169 = arith.mulf %159, %168 : vector<512x4xf32>
    %c0_200 = arith.constant 0 : index
    %c0_201 = arith.constant 0 : index
    %170 = vector.load %arg5[%c0_200, %c0_201] : memref<1x4xf32, #tpu.memory_space<vmem>>, vector<1x4xf32>
    %171 = vector.broadcast %170 : vector<1x4xf32> to vector<512x4xf32>
    %172 = arith.mulf %169, %171 : vector<512x4xf32>
    %c0_202 = arith.constant 0 : index
    %c0_203 = arith.constant 0 : index
    %173 = vector.load %arg6[%c0_202, %c0_203] : memref<1x4xf32, #tpu.memory_space<vmem>>, vector<1x4xf32>
    %174 = vector.broadcast %173 : vector<1x4xf32> to vector<512x4xf32>
    %175 = arith.addf %172, %174 : vector<512x4xf32>
    %176 = vector.shape_cast %0 : vector<2x16x16x4xf32> to vector<512x4xf32>
    %177 = arith.addf %175, %176 : vector<512x4xf32>
    %cst_204 = arith.constant 0.000000e+00 : f32
    %178 = vector.broadcast %cst_204 : f32 to vector<512x4xf32>
    %179 = arith.maximumf %177, %178 : vector<512x4xf32>
    %180 = vector.shape_cast %179 : vector<512x4xf32> to vector<2x16x16x4xf32>
    %c0_205 = arith.constant 0 : index
    %c0_206 = arith.constant 0 : index
    %c0_207 = arith.constant 0 : index
    %c0_208 = arith.constant 0 : index
    %181 = vector.load %arg7[%c0_205, %c0_206, %c0_207, %c0_208] : memref<2x16x16x4xf32, #tpu.memory_space<vmem>>, vector<2x16x16x4xf32>
    tpu.vector_store %arg7[%c0_205, %c0_206, %c0_207, %c0_208], %180 {strides = array<i32>} : memref<2x16x16x4xf32, #tpu.memory_space<vmem>>, vector<2x16x16x4xf32>,
    return
  }
}

</mosaic_0001>

<bundles_post_ra>
// kernel: tpu_custom_call.1
= control target key start
LH: loop header
LB: loop body
LE: loop exit
PB: predicated region body
PF: predicated region fallthrough
CT: control target
= control target key end

     0   :  { %vm569_vm0 = vcmask 1043456   ;;  %vm90_vm1 = vcmask 31744   ;;  %vm108_vm2 = vcmask 24576   ;;  %v19546_v1 = vmov 0.0   ;;  %s26864_s1 = inlined_call_operand.vmem [shape: f32[9,4,4], index: 1, kind: input, shape index: {}]   ;;  %s26865_s0 = inlined_call_operand.vmem [shape: f32[2,16,16,4], index: 0, kind: input, shape index: {}]   ;;  %s26866_s4 = inlined_call_operand.vmem [shape: f32[9,4,4], index: 4, kind: input, shape index: {}]   ;;  %s26867_s2 = inlined_call_operand.vmem [shape: f32[1,4], index: 2, kind: input, shape index: {}]   ;;  %s26868_s3 = inlined_call_operand.vmem [shape: f32[1,4], index: 3, kind: input, shape index: {}]   ;;  %s26869_s5 = inlined_call_operand.vmem [shape: f32[1,4], index: 5, kind: input, shape index: {}]   ;;  %s26870_s6 = inlined_call_operand.vmem [shape: f32[1,4], index: 6, kind: input, shape index: {}]   ;;  %s26871_s7 = inlined_call_operand.vmem [shape: f32[2,16,16,4], index: 7, kind: output, shape index: {}]  }
   0x1   :  { %v19590_v0 = vld [vmem:[%s26864_s1 + $0x4] sm:$0xf]  ;;  %92 = vst.msk [vmem:[#allocation2 + $0x8] sm:$0xff] %vm90_vm1, %v19546_v1  ;;  %91 = vst.msk [vmem:[#allocation2] sm:$0xff] %vm90_vm1, %v19546_v1  ;;  %v19659_v2 = vld [vmem:[%s26864_s1] sm:$0xf] }
   0x2   :  { %93 = vst.msk [vmem:[#allocation2 + $0x10] sm:$0xff] %vm90_vm1, %v19546_v1  ;;  %94 = vst.msk [vmem:[#allocation2 + $0x18] sm:$0xff] %vm90_vm1, %v19546_v1  ;;  %v19664_v3 = vld [vmem:[%s26865_s0] sm:$0xff]  ;;  %16753 = vmatprep.subr.msk.mxu0 %vm569_vm0, %v19590_v0  ;;  %v19929_v4 = vld [vmem:[%s26865_s0 + $0x8] sm:$0xff] }
   0x3   :  { %95 = vst.msk [vmem:[#allocation2 + $0x240] sm:$0xff] %vm90_vm1, %v19546_v1  ;;  %96 = vst.msk [vmem:[#allocation2 + $0x248] sm:$0xff] %vm90_vm1, %v19546_v1  ;;  %v19934_v5 = vld [vmem:[%s26865_s0 + $0x10] sm:$0xff]  ;;  %v19939_v6 = vld [vmem:[%s26865_s0 + $0x18] sm:$0xff]  ;;  %16754 = vmatpush3.msk.msra.mxu0 %vm569_vm0, %v19590_v0 }
   0x4   :  { %97 = vst.msk [vmem:[#allocation2 + $0x250] sm:$0xff] %vm90_vm1, %v19546_v1  ;;  %98 = vst.msk [vmem:[#allocation2 + $0x258] sm:$0xff] %vm90_vm1, %v19546_v1  ;;  %v19984_v7 = vld [vmem:[%s26865_s0 + $0x20] sm:$0xff]  ;;  %v19989_v8 = vld [vmem:[%s26865_s0 + $0x28] sm:$0xff]  ;;  %16851 = vmatprep.subr.msk.mxu0 %vm569_vm0, %v19659_v2 }
   0x5   :  { %100 = vst.msk [vmem:[#allocation2 + $0x220] sm:$0xff] %vm90_vm1, %v19546_v1  ;;  %101 = vst.msk [vmem:[#allocation2 + $0x228] sm:$0xff] %vm90_vm1, %v19546_v1  ;;  %v19994_v9 = vld [vmem:[%s26865_s0 + $0x30] sm:$0xff]  ;;  %v20007_v10 = vld [vmem:[%s26865_s0 + $0x38] sm:$0xff] }
   0x6   :  { %102 = vst.msk [vmem:[#allocation2 + $0x230] sm:$0xff] %vm90_vm1, %v19546_v1  ;;  %103 = vst.msk [vmem:[#allocation2 + $0x238] sm:$0xff] %vm90_vm1, %v19546_v1  ;;  %v20012_v11 = vld [vmem:[%s26865_s0 + $0x40] sm:$0xff]  ;;  %v20017_v12 = vld [vmem:[%s26865_s0 + $0x48] sm:$0xff] }
   0x7   :  { %104 = vst.msk [vmem:[#allocation2 + $0x460] sm:$0xff] %vm90_vm1, %v19546_v1  ;;  %105 = vst.msk [vmem:[#allocation2 + $0x468] sm:$0xff] %vm90_vm1, %v19546_v1  ;;  %v20028_v13 = vld [vmem:[%s26865_s0 + $0x50] sm:$0xff]  ;;  %v20033_v14 = vld [vmem:[%s26865_s0 + $0x58] sm:$0xff] }
   0x8   :  { %106 = vst.msk [vmem:[#allocation2 + $0x470] sm:$0xff] %vm90_vm1, %v19546_v1  ;;  %107 = vst.msk [vmem:[#allocation2 + $0x478] sm:$0xff] %vm90_vm1, %v19546_v1  ;;  %v20038_v15 = vld [vmem:[%s26865_s0 + $0x60] sm:$0xff]  ;;  %v20049_v16 = vld [vmem:[%s26865_s0 + $0x68] sm:$0xff] }
   0x9   :  { %7177 = vst.msk [vmem:[#allocation3] sm:$0xff] %vm90_vm1, %v19546_v1  ;;  %7178 = vst.msk [vmem:[#allocation3 + $0x8] sm:$0xff] %vm90_vm1, %v19546_v1  ;;  %v20054_v17 = vld [vmem:[%s26865_s0 + $0x70] sm:$0xff]  ;;  %v20059_v18 = vld [vmem:[%s26865_s0 + $0x78] sm:$0xff] }
   0xa   :  { %7179 = vst.msk [vmem:[#allocation3 + $0x10] sm:$0xff] %vm90_vm1, %v19546_v1  ;;  %7180 = vst.msk [vmem:[#allocation3 + $0x18] sm:$0xff] %vm90_vm1, %v19546_v1  ;;  %v20070_v19 = vld [vmem:[%s26865_s0 + $0x80] sm:$0xff]  ;;  %v20075_v20 = vld [vmem:[%s26865_s0 + $0x88] sm:$0xff] }
   0xb   :  { %7181 = vst.msk [vmem:[#allocation3 + $0x240] sm:$0xff] %vm90_vm1, %v19546_v1  ;;  %7182 = vst.msk [vmem:[#allocation3 + $0x248] sm:$0xff] %vm90_vm1, %v19546_v1  ;;  %v20080_v21 = vld [vmem:[%s26865_s0 + $0x90] sm:$0xff]  ;;  %v311_v22 = vld [vmem:[#allocation2 + $0x8] sm:$0xff] }
   0xc   :  { %7183 = vst.msk [vmem:[#allocation3 + $0x250] sm:$0xff] %vm90_vm1, %v19546_v1  ;;  %7184 = vst.msk [vmem:[#allocation3 + $0x258] sm:$0xff] %vm90_vm1, %v19546_v1  ;;  %v312_v23 = vld [vmem:[#allocation2 + $0x10] sm:$0xff]  ;;  %v20091_v24 = vld [vmem:[%s26865_s0 + $0x98] sm:$0xff]  ;;  %16755 = vmatprep.mubr.msk.f32.mxu0 %vm90_vm1, %v311_v22 }
   0xd   :  { %7186 = vst.msk [vmem:[#allocation3 + $0x220] sm:$0xff] %vm90_vm1, %v19546_v1  ;;  %7187 = vst.msk [vmem:[#allocation3 + $0x228] sm:$0xff] %vm90_vm1, %v19546_v1  ;;  %v20099_v26 = vld [vmem:[%s26865_s0 + $0xa0] sm:$0xff]  ;;  %v20104_v27 = vld [vmem:[%s26865_s0 + $0xa8] sm:$0xff]  ;;  %16756 = vmatmul.mubr.msk.f32.vlgmr.msra.gmra.mrb[0].mxu0 %vm90_vm1, %v312_v23 }
   0xe   :  { %7188 = vst.msk [vmem:[#allocation3 + $0x230] sm:$0xff] %vm90_vm1, %v19546_v1  ;;  %7189 = vst.msk [vmem:[#allocation3 + $0x238] sm:$0xff] %vm90_vm1, %v19546_v1  ;;  %16852 = vmatpush3.msk.msra.mxu0 %vm569_vm0, %v19659_v2  ;;  %v20119_v32 = vld [vmem:[%s26865_s0 + $0xb0] sm:$0xff]  ;;  %v20124_v33 = vld [vmem:[%s26865_s0 + $0xb8] sm:$0xff] }
   0xf   :  { %7190 = vst.msk [vmem:[#allocation3 + $0x460] sm:$0xff] %vm90_vm1, %v19546_v1  ;;  %7191 = vst.msk [vmem:[#allocation3 + $0x468] sm:$0xff] %vm90_vm1, %v19546_v1  ;;  %v20133_v34 = vld [vmem:[%s26865_s0 + $0xc0] sm:$0xff]  ;;  %v20141_v35 = vld [vmem:[%s26865_s0 + $0xc8] sm:$0xff] }
  0x10   :  { %7192 = vst.msk [vmem:[#allocation3 + $0x470] sm:$0xff] %vm90_vm1, %v19546_v1  ;;  %7193 = vst.msk [vmem:[#allocation3 + $0x478] sm:$0xff] %vm90_vm1, %v19546_v1  ;;  %v20146_v36 = vld [vmem:[%s26865_s0 + $0xd0] sm:$0xff]  ;;  %v20151_v37 = vld [vmem:[%s26865_s0 + $0xd8] sm:$0xff] }
  0x11   :  { %27157 = vst [vmem:[#allocation4_spill] sm:$0xff] %v19664_v3  ;;  %110 = vst.msk [vmem:[#allocation2 + $0x27] sm:$0x1] %vm108_vm2, %v19546_v1  ;;  %v20163_v39 = vld [vmem:[%s26865_s0 + $0xe0] sm:$0xff]  ;;  %v20168_v40 = vld [vmem:[%s26865_s0 + $0xe8] sm:$0xff] }
  0x12   :  { %111 = vst.msk [vmem:[#allocation2 + $0x47] sm:$0x1] %vm108_vm2, %v19546_v1  ;;  %112 = vst.msk [vmem:[#allocation2 + $0x67] sm:$0x1] %vm108_vm2, %v19546_v1  ;;  %v20177_v42 = vld [vmem:[%s26865_s0 + $0x100] sm:$0xff]  ;;  %v20182_v43 = vld [vmem:[%s26865_s0 + $0x108] sm:$0xff] }
  0x13   :  { %113 = vst.msk [vmem:[#allocation2 + $0x87] sm:$0x1] %vm108_vm2, %v19546_v1  ;;  %114 = vst.msk [vmem:[#allocation2 + $0xa7] sm:$0x1] %vm108_vm2, %v19546_v1  ;;  %v20191_v45 = vld [vmem:[%s26865_s0 + $0x110] sm:$0xff]  ;;  %v20196_v46 = vld [vmem:[%s26865_s0 + $0x118] sm:$0xff] }
  0x14   :  { %115 = vst.msk [vmem:[#allocation2 + $0xc7] sm:$0x1] %vm108_vm2, %v19546_v1  ;;  %116 = vst.msk [vmem:[#allocation2 + $0xe7] sm:$0x1] %vm108_vm2, %v19546_v1  ;;  %v20201_v47 = vld [vmem:[%s26865_s0 + $0x120] sm:$0xff]  ;;  %v20213_v48 = vld [vmem:[%s26865_s0 + $0x128] sm:$0xff] }
  0x15   :  { %117 = vst.msk [vmem:[#allocation2 + $0x107] sm:$0x1] %vm108_vm2, %v19546_v1  ;;  %118 = vst.msk [vmem:[#allocation2 + $0x127] sm:$0x1] %vm108_vm2, %v19546_v1  ;;  %v20218_v49 = vld [vmem:[%s26865_s0 + $0x130] sm:$0xff]  ;;  %v20223_v50 = vld [vmem:[%s26865_s0 + $0x138] sm:$0xff] }
  0x16   :  { %119 = vst.msk [vmem:[#allocation2 + $0x147] sm:$0x1] %vm108_vm2, %v19546_v1  ;;  %120 = vst.msk [vmem:[#allocation2 + $0x167] sm:$0x1] %vm108_vm2, %v19546_v1  ;;  %v20235_v51 = vld [vmem:[%s26865_s0 + $0x140] sm:$0xff]  ;;  %v20240_v52 = vld [vmem:[%s26865_s0 + $0x148] sm:$0xff] }
  0x17   :  { %121 = vst.msk [vmem:[#allocation2 + $0x187] sm:$0x1] %vm108_vm2, %v19546_v1  ;;  %122 = vst.msk [vmem:[#allocation2 + $0x1a7] sm:$0x1] %vm108_vm2, %v19546_v1  ;;  %v20245_v53 = vld [vmem:[%s26865_s0 + $0x150] sm:$0xff]  ;;  %v20256_v55 = vld [vmem:[%s26865_s0 + $0x158] sm:$0xff] }
  0x18   :  { %123 = vst.msk [vmem:[#allocation2 + $0x1c7] sm:$0x1] %vm108_vm2, %v19546_v1  ;;  %124 = vst.msk [vmem:[#allocation2 + $0x1e7] sm:$0x1] %vm108_vm2, %v19546_v1  ;;  %v20263_v56 = vld [vmem:[%s26865_s0 + $0x160] sm:$0xff]  ;;  %v20268_v57 = vld [vmem:[%s26865_s0 + $0x168] sm:$0xff] }
  0x19   :  { %125 = vst.msk [vmem:[#allocation2 + $0x207] sm:$0x1] %vm108_vm2, %v19546_v1  ;;  %128 = vst.msk [vmem:[#allocation2 + $0x267] sm:$0x1] %vm108_vm2, %v19546_v1  ;;  %v20279_v59 = vld [vmem:[%s26865_s0 + $0x170] sm:$0xff]  ;;  %v20286_v61 = vld [vmem:[%s26865_s0 + $0x178] sm:$0xff] }
  0x1a   :  { %129 = vst.msk [vmem:[#allocation2 + $0x287] sm:$0x1] %vm108_vm2, %v19546_v1  ;;  %130 = vst.msk [vmem:[#allocation2 + $0x2a7] sm:$0x1] %vm108_vm2, %v19546_v1  ;;  %v20295_v0 = vld [vmem:[%s26865_s0 + $0x180] sm:$0xff]  ;;  %v20309_v2 = vld [vmem:[%s26865_s0 + $0x190] sm:$0xff] }
  0x1b   :  { %131 = vst.msk [vmem:[#allocation2 + $0x2c7] sm:$0x1] %vm108_vm2, %v19546_v1  ;;  %132 = vst.msk [vmem:[#allocation2 + $0x2e7] sm:$0x1] %vm108_vm2, %v19546_v1  ;;  %v20317_v22 = vld [vmem:[%s26865_s0 + $0x198] sm:$0xff]  ;;  %v20322_v23 = vld [vmem:[%s26865_s0 + $0x1a0] sm:$0xff] }
  0x1c   :  { %133 = vst.msk [vmem:[#allocation2 + $0x307] sm:$0x1] %vm108_vm2, %v19546_v1  ;;  %134 = vst.msk [vmem:[#allocation2 + $0x327] sm:$0x1] %vm108_vm2, %v19546_v1 }
  0x1d   :  { %135 = vst.msk [vmem:[#allocation2 + $0x347] sm:$0x1] %vm108_vm2, %v19546_v1  ;;  %136 = vst.msk [vmem:[#allocation2 + $0x367] sm:$0x1] %vm108_vm2, %v19546_v1 }
  0x1e   :  { %137 = vst.msk [vmem:[#allocation2 + $0x387] sm:$0x1] %vm108_vm2, %v19546_v1  ;;  %138 = vst.msk [vmem:[#allocation2 + $0x3a7] sm:$0x1] %vm108_vm2, %v19546_v1 }
  0x1f   :  { %139 = vst.msk [vmem:[#allocation2 + $0x3c7] sm:$0x1] %vm108_vm2, %v19546_v1  ;;  %140 = vst.msk [vmem:[#allocation2 + $0x3e7] sm:$0x1] %vm108_vm2, %v19546_v1 }
  0x20   :  { %141 = vst.msk [vmem:[#allocation2 + $0x407] sm:$0x1] %vm108_vm2, %v19546_v1  ;;  %142 = vst.msk [vmem:[#allocation2 + $0x427] sm:$0x1] %vm108_vm2, %v19546_v1 }
  0x21   :  { %143 = vst.msk [vmem:[#allocation2 + $0x447] sm:$0x1] %vm108_vm2, %v19546_v1  ;;  %146 = vst.msk [vmem:[#allocation2 + $0x38] sm:$0x1] %vm108_vm2, %v19546_v1 }
  0x22   :  { %147 = vst.msk [vmem:[#allocation2 + $0x58] sm:$0x1] %vm108_vm2, %v19546_v1  ;;  %148 = vst.msk [vmem:[#allocation2 + $0x78] sm:$0x1] %vm108_vm2, %v19546_v1 }
  0x23   :  { %149 = vst.msk [vmem:[#allocation2 + $0x98] sm:$0x1] %vm108_vm2, %v19546_v1  ;;  %150 = vst.msk [vmem:[#allocation2 + $0xb8] sm:$0x1] %vm108_vm2, %v19546_v1 }
  0x24   :  { %151 = vst.msk [vmem:[#allocation2 + $0xd8] sm:$0x1] %vm108_vm2, %v19546_v1  ;;  %152 = vst.msk [vmem:[#allocation2 + $0xf8] sm:$0x1] %vm108_vm2, %v19546_v1 }
  0x25   :  { %153 = vst.msk [vmem:[#allocation2 + $0x118] sm:$0x1] %vm108_vm2, %v19546_v1  ;;  %154 = vst.msk [vmem:[#allocation2 + $0x138] sm:$0x1] %vm108_vm2, %v19546_v1 }
  0x26   :  { %155 = vst.msk [vmem:[#allocation2 + $0x158] sm:$0x1] %vm108_vm2, %v19546_v1  ;;  %156 = vst.msk [vmem:[#allocation2 + $0x178] sm:$0x1] %vm108_vm2, %v19546_v1 }
  0x27   :  { %157 = vst.msk [vmem:[#allocation2 + $0x198] sm:$0x1] %vm108_vm2, %v19546_v1  ;;  %158 = vst.msk [vmem:[#allocation2 + $0x1b8] sm:$0x1] %vm108_vm2, %v19546_v1 }
  0x28   :  { %159 = vst.msk [vmem:[#allocation2 + $0x1d8] sm:$0x1] %vm108_vm2, %v19546_v1  ;;  %160 = vst.msk [vmem:[#allocation2 + $0x1f8] sm:$0x1] %vm108_vm2, %v19546_v1 }
  0x29   :  { %161 = vst.msk [vmem:[#allocation2 + $0x218] sm:$0x1] %vm108_vm2, %v19546_v1  ;;  %164 = vst.msk [vmem:[#allocation2 + $0x278] sm:$0x1] %vm108_vm2, %v19546_v1 }
  0x2a   :  { %165 = vst.msk [vmem:[#allocation2 + $0x298] sm:$0x1] %vm108_vm2, %v19546_v1  ;;  %166 = vst.msk [vmem:[#allocation2 + $0x2b8] sm:$0x1] %vm108_vm2, %v19546_v1 }
  0x2b   :  { %167 = vst.msk [vmem:[#allocation2 + $0x2d8] sm:$0x1] %vm108_vm2, %v19546_v1  ;;  %168 = vst.msk [vmem:[#allocation2 + $0x2f8] sm:$0x1] %vm108_vm2, %v19546_v1 }
  0x2c   :  { %169 = vst.msk [vmem:[#allocation2 + $0x318] sm:$0x1] %vm108_vm2, %v19546_v1  ;;  %170 = vst.msk [vmem:[#allocation2 + $0x338] sm:$0x1] %vm108_vm2, %v19546_v1 }
  0x2d   :  { %171 = vst.msk [vmem:[#allocation2 + $0x358] sm:$0x1] %vm108_vm2, %v19546_v1  ;;  %172 = vst.msk [vmem:[#allocation2 + $0x378] sm:$0x1] %vm108_vm2, %v19546_v1 }
  0x2e   :  { %173 = vst.msk [vmem:[#allocation2 + $0x398] sm:$0x1] %vm108_vm2, %v19546_v1  ;;  %174 = vst.msk [vmem:[#allocation2 + $0x3b8] sm:$0x1] %vm108_vm2, %v19546_v1 }
  0x2f   :  { %175 = vst.msk [vmem:[#allocation2 + $0x3d8] sm:$0x1] %vm108_vm2, %v19546_v1  ;;  %176 = vst.msk [vmem:[#allocation2 + $0x3f8] sm:$0x1] %vm108_vm2, %v19546_v1 }
  0x30   :  { %177 = vst.msk [vmem:[#allocation2 + $0x418] sm:$0x1] %vm108_vm2, %v19546_v1  ;;  %178 = vst.msk [vmem:[#allocation2 + $0x438] sm:$0x1] %vm108_vm2, %v19546_v1 }
  0x31   :  { %179 = vst.msk [vmem:[#allocation2 + $0x458] sm:$0x1] %vm108_vm2, %v19546_v1  ;;  %7195 = vst.msk [vmem:[#allocation3 + $0x27] sm:$0x1] %vm108_vm2, %v19546_v1 }
  0x32   :  { %7196 = vst.msk [vmem:[#allocation3 + $0x47] sm:$0x1] %vm108_vm2, %v19546_v1  ;;  %7197 = vst.msk [vmem:[#allocation3 + $0x67] sm:$0x1] %vm108_vm2, %v19546_v1 }
  0x33   :  { %7198 = vst.msk [vmem:[#allocation3 + $0x87] sm:$0x1] %vm108_vm2, %v19546_v1  ;;  %7199 = vst.msk [vmem:[#allocation3 + $0xa7] sm:$0x1] %vm108_vm2, %v19546_v1 }
  0x34   :  { %7200 = vst.msk [vmem:[#allocation3 + $0xc7] sm:$0x1] %vm108_vm2, %v19546_v1  ;;  %7201 = vst.msk [vmem:[#allocation3 + $0xe7] sm:$0x1] %vm108_vm2, %v19546_v1 }
  0x35   :  { %7202 = vst.msk [vmem:[#allocation3 + $0x107] sm:$0x1] %vm108_vm2, %v19546_v1  ;;  %7203 = vst.msk [vmem:[#allocation3 + $0x127] sm:$0x1] %vm108_vm2, %v19546_v1 }
  0x36   :  { %7204 = vst.msk [vmem:[#allocation3 + $0x147] sm:$0x1] %vm108_vm2, %v19546_v1  ;;  %7205 = vst.msk [vmem:[#allocation3 + $0x167] sm:$0x1] %vm108_vm2, %v19546_v1 }
  0x37   :  { %7206 = vst.msk [vmem:[#allocation3 + $0x187] sm:$0x1] %vm108_vm2, %v19546_v1  ;;  %7207 = vst.msk [vmem:[#allocation3 + $0x1a7] sm:$0x1] %vm108_vm2, %v19546_v1 }
  0x38   :  { %7208 = vst.msk [vmem:[#allocation3 + $0x1c7] sm:$0x1] %vm108_vm2, %v19546_v1  ;;  %7209 = vst.msk [vmem:[#allocation3 + $0x1e7] sm:$0x1] %vm108_vm2, %v19546_v1 }
  0x39   :  { %7210 = vst.msk [vmem:[#allocation3 + $0x207] sm:$0x1] %vm108_vm2, %v19546_v1  ;;  %7213 = vst.msk [vmem:[#allocation3 + $0x267] sm:$0x1] %vm108_vm2, %v19546_v1 }
  0x3a   :  { %7214 = vst.msk [vmem:[#allocation3 + $0x287] sm:$0x1] %vm108_vm2, %v19546_v1  ;;  %7215 = vst.msk [vmem:[#allocation3 + $0x2a7] sm:$0x1] %vm108_vm2, %v19546_v1 }
  0x3b   :  { %7216 = vst.msk [vmem:[#allocation3 + $0x2c7] sm:$0x1] %vm108_vm2, %v19546_v1  ;;  %7217 = vst.msk [vmem:[#allocation3 + $0x2e7] sm:$0x1] %vm108_vm2, %v19546_v1 }
  0x3c   :  { %7218 = vst.msk [vmem:[#allocation3 + $0x307] sm:$0x1] %vm108_vm2, %v19546_v1  ;;  %7219 = vst.msk [vmem:[#allocation3 + $0x327] sm:$0x1] %vm108_vm2, %v19546_v1 }
  0x3d   :  { %7220 = vst.msk [vmem:[#allocation3 + $0x347] sm:$0x1] %vm108_vm2, %v19546_v1  ;;  %7221 = vst.msk [vmem:[#allocation3 + $0x367] sm:$0x1] %vm108_vm2, %v19546_v1 }
  0x3e   :  { %7222 = vst.msk [vmem:[#allocation3 + $0x387] sm:$0x1] %vm108_vm2, %v19546_v1  ;;  %7223 = vst.msk [vmem:[#allocation3 + $0x3a7] sm:$0x1] %vm108_vm2, %v19546_v1 }
  0x3f   :  { %7224 = vst.msk [vmem:[#allocation3 + $0x3c7] sm:$0x1] %vm108_vm2, %v19546_v1  ;;  %7225 = vst.msk [vmem:[#allocation3 + $0x3e7] sm:$0x1] %vm108_vm2, %v19546_v1 }
  0x40   :  { %7226 = vst.msk [vmem:[#allocation3 + $0x407] sm:$0x1] %vm108_vm2, %v19546_v1  ;;  %7227 = vst.msk [vmem:[#allocation3 + $0x427] sm:$0x1] %vm108_vm2, %v19546_v1 }
  0x41   :  { %7228 = vst.msk [vmem:[#allocation3 + $0x447] sm:$0x1] %vm108_vm2, %v19546_v1  ;;  %7231 = vst.msk [vmem:[#allocation3 + $0x38] sm:$0x1] %vm108_vm2, %v19546_v1 }
  0x42   :  { %7232 = vst.msk [vmem:[#allocation3 + $0x58] sm:$0x1] %vm108_vm2, %v19546_v1  ;;  %7233 = vst.msk [vmem:[#allocation3 + $0x78] sm:$0x1] %vm108_vm2, %v19546_v1 }
  0x43   :  { %7234 = vst.msk [vmem:[#allocation3 + $0x98] sm:$0x1] %vm108_vm2, %v19546_v1  ;;  %7235 = vst.msk [vmem:[#allocation3 + $0xb8] sm:$0x1] %vm108_vm2, %v19546_v1 }
  0x44   :  { %7236 = vst.msk [vmem:[#allocation3 + $0xd8] sm:$0x1] %vm108_vm2, %v19546_v1  ;;  %7237 = vst.msk [vmem:[#allocation3 + $0xf8] sm:$0x1] %vm108_vm2, %v19546_v1 }
  0x45   :  { %7238 = vst.msk [vmem:[#allocation3 + $0x118] sm:$0x1] %vm108_vm2, %v19546_v1  ;;  %7239 = vst.msk [vmem:[#allocation3 + $0x138] sm:$0x1] %vm108_vm2, %v19546_v1 }
  0x46   :  { %7240 = vst.msk [vmem:[#allocation3 + $0x158] sm:$0x1] %vm108_vm2, %v19546_v1  ;;  %7241 = vst.msk [vmem:[#allocation3 + $0x178] sm:$0x1] %vm108_vm2, %v19546_v1 }
  0x47   :  { %7242 = vst.msk [vmem:[#allocation3 + $0x198] sm:$0x1] %vm108_vm2, %v19546_v1  ;;  %7243 = vst.msk [vmem:[#allocation3 + $0x1b8] sm:$0x1] %vm108_vm2, %v19546_v1 }
  0x48   :  { %7244 = vst.msk [vmem:[#allocation3 + $0x1d8] sm:$0x1] %vm108_vm2, %v19546_v1  ;;  %7245 = vst.msk [vmem:[#allocation3 + $0x1f8] sm:$0x1] %vm108_vm2, %v19546_v1 }
  0x49   :  { %7246 = vst.msk [vmem:[#allocation3 + $0x218] sm:$0x1] %vm108_vm2, %v19546_v1  ;;  %7249 = vst.msk [vmem:[#allocation3 + $0x278] sm:$0x1] %vm108_vm2, %v19546_v1 }
  0x4a   :  { %7250 = vst.msk [vmem:[#allocation3 + $0x298] sm:$0x1] %vm108_vm2, %v19546_v1  ;;  %7251 = vst.msk [vmem:[#allocation3 + $0x2b8] sm:$0x1] %vm108_vm2, %v19546_v1 }
  0x4b   :  { %7252 = vst.msk [vmem:[#allocation3 + $0x2d8] sm:$0x1] %vm108_vm2, %v19546_v1  ;;  %7253 = vst.msk [vmem:[#allocation3 + $0x2f8] sm:$0x1] %vm108_vm2, %v19546_v1 }
  0x4c   :  { %7254 = vst.msk [vmem:[#allocation3 + $0x318] sm:$0x1] %vm108_vm2, %v19546_v1  ;;  %7255 = vst.msk [vmem:[#allocation3 + $0x338] sm:$0x1] %vm108_vm2, %v19546_v1 }
  0x4d   :  { %7256 = vst.msk [vmem:[#allocation3 + $0x358] sm:$0x1] %vm108_vm2, %v19546_v1  ;;  %7257 = vst.msk [vmem:[#allocation3 + $0x378] sm:$0x1] %vm108_vm2, %v19546_v1 }
  0x4e   :  { %7258 = vst.msk [vmem:[#allocation3 + $0x398] sm:$0x1] %vm108_vm2, %v19546_v1  ;;  %7259 = vst.msk [vmem:[#allocation3 + $0x3b8] sm:$0x1] %vm108_vm2, %v19546_v1 }
  0x4f   :  { %7260 = vst.msk [vmem:[#allocation3 + $0x3d8] sm:$0x1] %vm108_vm2, %v19546_v1  ;;  %7261 = vst.msk [vmem:[#allocation3 + $0x3f8] sm:$0x1] %vm108_vm2, %v19546_v1 }
  0x50   :  { %7262 = vst.msk [vmem:[#allocation3 + $0x418] sm:$0x1] %vm108_vm2, %v19546_v1  ;;  %7263 = vst.msk [vmem:[#allocation3 + $0x438] sm:$0x1] %vm108_vm2, %v19546_v1 }
  0x51   :  { %7264 = vst.msk [vmem:[#allocation3 + $0x458] sm:$0x1] %vm108_vm2, %v19546_v1  ;;  %27158 = vst [vmem:[#allocation5_spill] sm:$0xff] %v19929_v4 }
  0x52   :  { %182 = vst.msk [vmem:[#allocation2 + $0x28] sm:$0xff] %vm90_vm1, %v19664_v3  ;;  %27159 = vst [vmem:[#allocation6_spill] sm:$0xff] %v19934_v5 }
  0x53   :  { %27160 = vst [vmem:[#allocation7_spill] sm:$0xff] %v19939_v6  ;;  %109 = vst.msk [vmem:[#allocation2 + $0x7] sm:$0x1] %vm108_vm2, %v19546_v1 }
  0x54   :  { %126 = vst.msk [vmem:[#allocation2 + $0x227] sm:$0x1] %vm108_vm2, %v19546_v1  ;;  %127 = vst.msk [vmem:[#allocation2 + $0x247] sm:$0x1] %vm108_vm2, %v19546_v1 }
  0x55   :  { %144 = vst.msk [vmem:[#allocation2 + $0x467] sm:$0x1] %vm108_vm2, %v19546_v1  ;;  %145 = vst.msk [vmem:[#allocation2 + $0x18] sm:$0x1] %vm108_vm2, %v19546_v1 }
  0x56   :  { %162 = vst.msk [vmem:[#allocation2 + $0x238] sm:$0x1] %vm108_vm2, %v19546_v1  ;;  %163 = vst.msk [vmem:[#allocation2 + $0x258] sm:$0x1] %vm108_vm2, %v19546_v1 }
  0x57   :  { %180 = vst.msk [vmem:[#allocation2 + $0x478] sm:$0x1] %vm108_vm2, %v19546_v1  ;;  %7194 = vst.msk [vmem:[#allocation3 + $0x7] sm:$0x1] %vm108_vm2, %v19546_v1 }
  0x58   :  { %7211 = vst.msk [vmem:[#allocation3 + $0x227] sm:$0x1] %vm108_vm2, %v19546_v1  ;;  %7212 = vst.msk [vmem:[#allocation3 + $0x247] sm:$0x1] %vm108_vm2, %v19546_v1 }
  0x59   :  { %7229 = vst.msk [vmem:[#allocation3 + $0x467] sm:$0x1] %vm108_vm2, %v19546_v1  ;;  %7230 = vst.msk [vmem:[#allocation3 + $0x18] sm:$0x1] %vm108_vm2, %v19546_v1  ;;  %v313_v25 = vld [vmem:[#allocation2 + $0x28] sm:$0xff] }
  0x5a   :  { %7247 = vst.msk [vmem:[#allocation3 + $0x238] sm:$0x1] %vm108_vm2, %v19546_v1  ;;  %7248 = vst.msk [vmem:[#allocation3 + $0x258] sm:$0x1] %vm108_vm2, %v19546_v1  ;;  %16758 = vmatprep.mubr.msk.f32.mxu0 %vm90_vm1, %v313_v25  ;;  %v20327_v25 = vld [vmem:[%s26865_s0 + $0x1a8] sm:$0xff] }
  0x5b   :  { %7265 = vst.msk [vmem:[#allocation3 + $0x478] sm:$0x1] %vm108_vm2, %v19546_v1  ;;  %27161 = vst [vmem:[#allocation8_spill] sm:$0xff] %v19984_v7  ;;  %v20300_v1 = vld [vmem:[%s26865_s0 + $0x188] sm:$0xff] }
  0x5c   :  { %183 = vst.msk [vmem:[#allocation2 + $0x30] sm:$0xff] %vm90_vm1, %v19929_v4  ;;  %184 = vst.msk [vmem:[#allocation2 + $0x48] sm:$0xff] %vm90_vm1, %v19934_v5  ;;  %v1538_v5 = vld [vmem:[#allocation2 + $0x9] sm:$0xff]  ;;  %v1539_v4 = vld [vmem:[#allocation2 + $0x11] sm:$0xff] }
  0x5d   :  { %185 = vst.msk [vmem:[#allocation2 + $0x50] sm:$0xff] %vm90_vm1, %v19939_v6  ;;  %27162 = vst [vmem:[#allocation9_spill] sm:$0xff] %v19989_v8 }
  0x5e   :  { %27163 = vst [vmem:[#allocation10_spill] sm:$0xff] %v19994_v9  ;;  %186 = vst.msk [vmem:[#allocation2 + $0x68] sm:$0xff] %vm90_vm1, %v19984_v7 }
  0x5f   :  { %187 = vst.msk [vmem:[#allocation2 + $0x70] sm:$0xff] %vm90_vm1, %v19989_v8  ;;  %188 = vst.msk [vmem:[#allocation2 + $0x88] sm:$0xff] %vm90_vm1, %v19994_v9 }
  0x60   :  { %27164 = vst [vmem:[#allocation11_spill] sm:$0xff] %v20007_v10  ;;  %27165 = vst [vmem:[#allocation12_spill] sm:$0xff] %v20012_v11 }
  0x61   :  { %27166 = vst [vmem:[#allocation13_spill] sm:$0xff] %v20017_v12  ;;  %189 = vst.msk [vmem:[#allocation2 + $0x90] sm:$0xff] %vm90_vm1, %v20007_v10 }
  0x62   :  { %190 = vst.msk [vmem:[#allocation2 + $0xa8] sm:$0xff] %vm90_vm1, %v20012_v11  ;;  %191 = vst.msk [vmem:[#allocation2 + $0xb0] sm:$0xff] %vm90_vm1, %v20017_v12 }
  0x63   :  { %27167 = vst [vmem:[#allocation14_spill] sm:$0xff] %v20028_v13  ;;  %27168 = vst [vmem:[#allocation15_spill] sm:$0xff] %v20033_v14  ;;  %v314_v28 = vld [vmem:[#allocation2 + $0x30] sm:$0xff]  ;;  %v315_v29 = vld [vmem:[#allocation2 + $0x48] sm:$0xff] }
  0x64   :  { %27169 = vst [vmem:[#allocation16_spill] sm:$0xff] %v20038_v15  ;;  %192 = vst.msk [vmem:[#allocation2 + $0xc8] sm:$0xff] %vm90_vm1, %v20028_v13  ;;  %16759 = vmatmul.mubr.msk.f32.gmra.mrb[2].mxu0 %vm90_vm1, %v314_v28  ;;  %v316_v30 = vld [vmem:[#allocation2 + $0x50] sm:$0xff] }
  0x65   :  { %193 = vst.msk [vmem:[#allocation2 + $0xd0] sm:$0xff] %vm90_vm1, %v20033_v14  ;;  %194 = vst.msk [vmem:[#allocation2 + $0xe8] sm:$0xff] %vm90_vm1, %v20038_v15  ;;  %16761 = vmatprep.mubr.msk.f32.mxu0 %vm90_vm1, %v315_v29  ;;  %v317_v31 = vld [vmem:[#allocation2 + $0x68] sm:$0xff]  ;;  %v20339_v29 = vld [vmem:[%s26865_s0 + $0x1b0] sm:$0xff] }
  0x66   :  { %27170 = vst [vmem:[#allocation17_spill] sm:$0xff] %v20049_v16  ;;  %27171 = vst [vmem:[#allocation18_spill] sm:$0xff] %v20054_v17  ;;  %v318_v38 = vld [vmem:[#allocation2 + $0x70] sm:$0xff]  ;;  %v319_v41 = vld [vmem:[#allocation2 + $0x88] sm:$0xff] }
  0x67   :  { %27172 = vst [vmem:[#allocation19_spill] sm:$0xff] %v20059_v18  ;;  %195 = vst.msk [vmem:[#allocation2 + $0xf0] sm:$0xff] %vm90_vm1, %v20049_v16  ;;  %v20702_v3 = vld [vmem:[#allocation2 + $0x29] sm:$0xff] }
  0x68   :  { %196 = vst.msk [vmem:[#allocation2 + $0x108] sm:$0xff] %vm90_vm1, %v20054_v17  ;;  %197 = vst.msk [vmem:[#allocation2 + $0x110] sm:$0xff] %vm90_vm1, %v20059_v18  ;;  %16762 = vmatmul.mubr.msk.f32.gmra.mrb[4].mxu0 %vm90_vm1, %v316_v30  ;;  %v320_v44 = vld [vmem:[#allocation2 + $0x90] sm:$0xff]  ;;  %v20344_v30 = vld [vmem:[%s26865_s0 + $0x1b8] sm:$0xff] }
  0x69   :  { %27173 = vst [vmem:[#allocation20_spill] sm:$0xff] %v20070_v19  ;;  %27174 = vst [vmem:[#allocation21_spill] sm:$0xff] %v20075_v20  ;;  %16764 = vmatprep.mubr.msk.f32.mxu0 %vm90_vm1, %v317_v31  ;;  %v321_v54 = vld [vmem:[#allocation2 + $0xa8] sm:$0xff]  ;;  %v322_v58 = vld [vmem:[#allocation2 + $0xb0] sm:$0xff] }
  0x6a   :  { %27175 = vst [vmem:[#allocation22_spill] sm:$0xff] %v20080_v21  ;;  %198 = vst.msk [vmem:[#allocation2 + $0x128] sm:$0xff] %vm90_vm1, %v20070_v19 }
  0x6b   :  { %199 = vst.msk [vmem:[#allocation2 + $0x130] sm:$0xff] %vm90_vm1, %v20075_v20  ;;  %200 = vst.msk [vmem:[#allocation2 + $0x148] sm:$0xff] %vm90_vm1, %v20080_v21  ;;  %v323_v60 = vld [vmem:[#allocation2 + $0xc8] sm:$0xff] }
  0x6c   :  { %27176 = vst [vmem:[#allocation23_spill] sm:$0xff] %v20091_v24  ;;  %201 = vst.msk [vmem:[#allocation2 + $0x150] sm:$0xff] %vm90_vm1, %v20091_v24  ;;  %16765 = vmatmul.mubr.msk.f32.gmra.mrb[6].mxu0 %vm90_vm1, %v318_v38  ;;  %v324_v62 = vld [vmem:[#allocation2 + $0xd0] sm:$0xff]  ;;  %v325_v63 = vld [vmem:[#allocation2 + $0xe8] sm:$0xff] }
  0x6d   :  { %27177 = vst [vmem:[#allocation24_spill] sm:$0xff] %v20099_v26  ;;  %27178 = vst [vmem:[#allocation25_spill] sm:$0xff] %v20104_v27  ;;  %16767 = vmatprep.mubr.msk.f32.mxu0 %vm90_vm1, %v319_v41  ;;  %v20353_v38 = vld [vmem:[%s26865_s0 + $0x1c0] sm:$0xff]  ;;  %v20358_v41 = vld [vmem:[%s26865_s0 + $0x1c8] sm:$0xff] }
  0x6e   :  { %202 = vst.msk [vmem:[#allocation2 + $0x168] sm:$0xff] %vm90_vm1, %v20099_v26  ;;  %203 = vst.msk [vmem:[#allocation2 + $0x170] sm:$0xff] %vm90_vm1, %v20104_v27  ;;  %v326_v28 = vld [vmem:[#allocation2 + $0xf0] sm:$0xff] }
  0x6f   :  { %27179 = vst [vmem:[#allocation26_spill] sm:$0xff] %v20119_v32  ;;  %27180 = vst [vmem:[#allocation27_spill] sm:$0xff] %v20124_v33  ;;  %v327_v31 = vld [vmem:[#allocation2 + $0x108] sm:$0xff] }
  0x70   :  { %204 = vst.msk [vmem:[#allocation2 + $0x188] sm:$0xff] %vm90_vm1, %v20119_v32  ;;  %205 = vst.msk [vmem:[#allocation2 + $0x190] sm:$0xff] %vm90_vm1, %v20124_v33  ;;  %16768 = vmatmul.mubr.msk.f32.gmra.mrb[8].mxu0 %vm90_vm1, %v320_v44  ;;  %v20367_v44 = vld [vmem:[%s26865_s0 + $0x1d0] sm:$0xff] }
  0x71   :  { %27181 = vst [vmem:[#allocation28_spill] sm:$0xff] %v20133_v34  ;;  %206 = vst.msk [vmem:[#allocation2 + $0x1a8] sm:$0xff] %vm90_vm1, %v20133_v34  ;;  %16770 = vmatprep.mubr.msk.f32.mxu0 %vm90_vm1, %v321_v54  ;;  %v20372_v54 = vld [vmem:[%s26865_s0 + $0x1d8] sm:$0xff] }
  0x72   :  { %27182 = vst [vmem:[#allocation29_spill] sm:$0xff] %v20141_v35  ;;  %27183 = vst [vmem:[#allocation30_spill] sm:$0xff] %v20146_v36 }
  0x73   :  { %27184 = vst [vmem:[#allocation31_spill] sm:$0xff] %v20151_v37  ;;  %207 = vst.msk [vmem:[#allocation2 + $0x1b0] sm:$0xff] %vm90_vm1, %v20141_v35 }
  0x74   :  { %208 = vst.msk [vmem:[#allocation2 + $0x1c8] sm:$0xff] %vm90_vm1, %v20146_v36  ;;  %209 = vst.msk [vmem:[#allocation2 + $0x1d0] sm:$0xff] %vm90_vm1, %v20151_v37  ;;  %16771 = vmatmul.mubr.msk.f32.gmra.mrb[10].mxu0 %vm90_vm1, %v322_v58  ;;  %v20377_v58 = vld [vmem:[%s26865_s0 + $0x1e0] sm:$0xff] }
  0x75   :  { %27185 = vst [vmem:[#allocation32_spill] sm:$0xff] %v20163_v39  ;;  %27186 = vst [vmem:[#allocation33_spill] sm:$0xff] %v20168_v40  ;;  %16773 = vmatprep.mubr.msk.f32.mxu0 %vm90_vm1, %v323_v60  ;;  %v20389_v60 = vld [vmem:[%s26865_s0 + $0x1e8] sm:$0xff] }
  0x76   :  { %210 = vst.msk [vmem:[#allocation2 + $0x1e8] sm:$0xff] %vm90_vm1, %v20163_v39  ;;  %211 = vst.msk [vmem:[#allocation2 + $0x1f0] sm:$0xff] %vm90_vm1, %v20168_v40 }
  0x77   :  { %27187 = vst [vmem:[#allocation34_spill] sm:$0xff] %v20177_v42  ;;  %27188 = vst [vmem:[#allocation35_spill] sm:$0xff] %v20182_v43 }
  0x78   :  { %214 = vst.msk [vmem:[#allocation2 + $0x268] sm:$0xff] %vm90_vm1, %v20177_v42  ;;  %215 = vst.msk [vmem:[#allocation2 + $0x270] sm:$0xff] %vm90_vm1, %v20182_v43  ;;  %16774 = vmatmul.mubr.msk.f32.gmra.mrb[12].mxu0 %vm90_vm1, %v324_v62  ;;  %v20394_v62 = vld [vmem:[%s26864_s1 + $0x8] sm:$0xf]  ;;  %v279_v43 = vld [vmem:[#allocation2 + $0x24f] sm:$0xff] }
  0x79   :  { %27189 = vst [vmem:[#allocation36_spill] sm:$0xff] %v20191_v45  ;;  %27190 = vst [vmem:[#allocation37_spill] sm:$0xff] %v20196_v46  ;;  %16776 = vmatprep.mubr.msk.f32.mxu0 %vm90_vm1, %v325_v63  ;;  %v328_v63 = vld [vmem:[#allocation2 + $0x110] sm:$0xff]  ;;  %16949 = vmatprep.subr.msk.mxu0 %vm569_vm0, %v20394_v62 }
  0x7a   :  { %27191 = vst [vmem:[#allocation38_spill] sm:$0xff] %v20201_v47  ;;  %216 = vst.msk [vmem:[#allocation2 + $0x288] sm:$0xff] %vm90_vm1, %v20191_v45  ;;  %v278_v45 = vld [vmem:[#allocation2 + $0x247] sm:$0xff] }
  0x7b   :  { %217 = vst.msk [vmem:[#allocation2 + $0x290] sm:$0xff] %vm90_vm1, %v20196_v46  ;;  %218 = vst.msk [vmem:[#allocation2 + $0x2a8] sm:$0xff] %vm90_vm1, %v20201_v47 }
  0x7c   :  { %27192 = vst [vmem:[#allocation39_spill] sm:$0xff] %v20213_v48  ;;  %27193 = vst [vmem:[#allocation40_spill] sm:$0xff] %v20218_v49  ;;  %16777 = vmatmul.mubr.msk.f32.gmra.mrb[14].mxu0 %vm90_vm1, %v326_v28  ;;  %v329_v28 = vld [vmem:[#allocation2 + $0x128] sm:$0xff] }
  0x7d   :  { %27194 = vst [vmem:[#allocation41_spill] sm:$0xff] %v20223_v50  ;;  %219 = vst.msk [vmem:[#allocation2 + $0x2b0] sm:$0xff] %vm90_vm1, %v20213_v48  ;;  %16779 = vmatprep.mubr.msk.f32.mxu0 %vm90_vm1, %v327_v31  ;;  %v333_v31 = vld [vmem:[#allocation2 + $0x168] sm:$0xff] }
  0x7e   :  { %220 = vst.msk [vmem:[#allocation2 + $0x2c8] sm:$0xff] %vm90_vm1, %v20218_v49  ;;  %221 = vst.msk [vmem:[#allocation2 + $0x2d0] sm:$0xff] %vm90_vm1, %v20223_v50  ;;  %v20559_v50 = vld [vmem:[#allocation2 + $0x1af] sm:$0xff]  ;;  %v20561_v49 = vld [vmem:[#allocation2 + $0x1c7] sm:$0xff] }
  0x7f   :  { %27195 = vst [vmem:[#allocation42_spill] sm:$0xff] %v20235_v51  ;;  %27196 = vst [vmem:[#allocation43_spill] sm:$0xff] %v20240_v52  ;;  %v20567_v48 = vld [vmem:[#allocation2 + $0x1cf] sm:$0xff]  ;;  %v20569_v47 = vld [vmem:[#allocation2 + $0x1e7] sm:$0xff] }
  0x80   :  { %27197 = vst [vmem:[#allocation44_spill] sm:$0xff] %v20245_v53  ;;  %222 = vst.msk [vmem:[#allocation2 + $0x2e8] sm:$0xff] %vm90_vm1, %v20235_v51  ;;  %16780 = vmatmul.mubr.msk.f32.gmra.mrb[16].mxu0 %vm90_vm1, %v328_v63  ;;  %v336_v63 = vld [vmem:[#allocation2 + $0x190] sm:$0xff]  ;;  %v20553_v51 = vld [vmem:[#allocation2 + $0x1a7] sm:$0xff] }
  0x81   :  { %223 = vst.msk [vmem:[#allocation2 + $0x2f0] sm:$0xff] %vm90_vm1, %v20240_v52  ;;  %224 = vst.msk [vmem:[#allocation2 + $0x308] sm:$0xff] %vm90_vm1, %v20245_v53  ;;  %16782 = vmatprep.mubr.msk.f32.mxu0 %vm90_vm1, %v329_v28  ;;  %v337_v28 = vld [vmem:[#allocation2 + $0x1a8] sm:$0xff] }
  0x82   :  { %27198 = vst [vmem:[#allocation45_spill] sm:$0xff] %v20256_v55  ;;  %225 = vst.msk [vmem:[#allocation2 + $0x310] sm:$0xff] %vm90_vm1, %v20256_v55  ;;  %v20543_v55 = vld [vmem:[#allocation2 + $0x16f] sm:$0xff]  ;;  %v20545_v53 = vld [vmem:[#allocation2 + $0x187] sm:$0xff] }
  0x83   :  { %27199 = vst [vmem:[#allocation46_spill] sm:$0xff] %v20263_v56  ;;  %27200 = vst [vmem:[#allocation47_spill] sm:$0xff] %v20268_v57  ;;  %v20551_v52 = vld [vmem:[#allocation2 + $0x18f] sm:$0xff]  ;;  %v20580_v42 = vld [vmem:[#allocation2 + $0x267] sm:$0xff] }
  0x84   :  { %226 = vst.msk [vmem:[#allocation2 + $0x328] sm:$0xff] %vm90_vm1, %v20263_v56  ;;  %227 = vst.msk [vmem:[#allocation2 + $0x330] sm:$0xff] %vm90_vm1, %v20268_v57  ;;  %v20535_v57 = vld [vmem:[#allocation2 + $0x14f] sm:$0xff]  ;;  %v20537_v56 = vld [vmem:[#allocation2 + $0x167] sm:$0xff] }
  0x85   :  { %27201 = vst [vmem:[#allocation48_spill] sm:$0xff] %v20279_v59  ;;  %228 = vst.msk [vmem:[#allocation2 + $0x348] sm:$0xff] %vm90_vm1, %v20279_v59  ;;  %v20529_v59 = vld [vmem:[#allocation2 + $0x147] sm:$0xff]  ;;  %v20575_v46 = vld [vmem:[#allocation2 + $0x1ef] sm:$0xff] }
  0x86   :  { %27202 = vst [vmem:[#allocation49_spill] sm:$0xff] %v20286_v61  ;;  %229 = vst.msk [vmem:[#allocation2 + $0x350] sm:$0xff] %vm90_vm1, %v20286_v61  ;;  %v20527_v61 = vld [vmem:[#allocation2 + $0x12f] sm:$0xff]  ;;  %v20587_v39 = vld [vmem:[#allocation2 + $0x287] sm:$0xff] }
  0x87   :  { %27203 = vst [vmem:[#allocation50_spill] sm:$0xff] %v20295_v0  ;;  %27204 = vst [vmem:[#allocation51_spill] sm:$0xff] %v20300_v1  ;;  %v20585_v40 = vld [vmem:[#allocation2 + $0x26f] sm:$0xff]  ;;  %v20603_v36 = vld [vmem:[#allocation2 + $0x2c7] sm:$0xff] }
  0x88   :  { %230 = vst.msk [vmem:[#allocation2 + $0x368] sm:$0xff] %vm90_vm1, %v20295_v0  ;;  %231 = vst.msk [vmem:[#allocation2 + $0x370] sm:$0xff] %vm90_vm1, %v20300_v1  ;;  %v20519_v1 = vld [vmem:[#allocation2 + $0x10f] sm:$0xff]  ;;  %v20521_v0 = vld [vmem:[#allocation2 + $0x127] sm:$0xff] }
  0x89   :  { %27205 = vst [vmem:[#allocation52_spill] sm:$0xff] %v20309_v2  ;;  %232 = vst.msk [vmem:[#allocation2 + $0x388] sm:$0xff] %vm90_vm1, %v20309_v2  ;;  %v20513_v2 = vld [vmem:[#allocation2 + $0x107] sm:$0xff]  ;;  %v20593_v37 = vld [vmem:[#allocation2 + $0x28f] sm:$0xff] }
  0x8a   :  { %27206 = vst [vmem:[#allocation53_spill] sm:$0xff] %v20317_v22  ;;  %27207 = vst [vmem:[#allocation54_spill] sm:$0xff] %v20322_v23  ;;  %v20609_v35 = vld [vmem:[#allocation2 + $0x2cf] sm:$0xff]  ;;  %v20611_v34 = vld [vmem:[#allocation2 + $0x2e7] sm:$0xff] }
  0x8b   :  { %27208 = vst [vmem:[#allocation55_spill] sm:$0xff] %v20327_v25  ;;  %233 = vst.msk [vmem:[#allocation2 + $0x390] sm:$0xff] %vm90_vm1, %v20317_v22  ;;  %v20511_v22 = vld [vmem:[#allocation2 + $0xef] sm:$0xff]  ;;  %v20619_v32 = vld [vmem:[#allocation2 + $0x307] sm:$0xff] }
  0x8c   :  { %234 = vst.msk [vmem:[#allocation2 + $0x3a8] sm:$0xff] %vm90_vm1, %v20322_v23  ;;  %235 = vst.msk [vmem:[#allocation2 + $0x3b0] sm:$0xff] %vm90_vm1, %v20327_v25  ;;  %v20503_v25 = vld [vmem:[#allocation2 + $0xcf] sm:$0xff]  ;;  %v20505_v23 = vld [vmem:[#allocation2 + $0xe7] sm:$0xff] }
  0x8d   :  { %27209 = vst [vmem:[#allocation56_spill] sm:$0xff] %v20339_v29  ;;  %27210 = vst [vmem:[#allocation57_spill] sm:$0xff] %v20344_v30  ;;  %v20617_v33 = vld [vmem:[#allocation2 + $0x2ef] sm:$0xff]  ;;  %v20627_v26 = vld [vmem:[#allocation2 + $0x327] sm:$0xff] }
  0x8e   :  { %236 = vst.msk [vmem:[#allocation2 + $0x3c8] sm:$0xff] %vm90_vm1, %v20339_v29  ;;  %237 = vst.msk [vmem:[#allocation2 + $0x3d0] sm:$0xff] %vm90_vm1, %v20344_v30  ;;  %v20495_v30 = vld [vmem:[#allocation2 + $0xaf] sm:$0xff]  ;;  %v20497_v29 = vld [vmem:[#allocation2 + $0xc7] sm:$0xff] }
  0x8f   :  { %27211 = vst [vmem:[#allocation58_spill] sm:$0xff] %v20353_v38  ;;  %27212 = vst [vmem:[#allocation59_spill] sm:$0xff] %v20358_v41  ;;  %v20625_v27 = vld [vmem:[#allocation2 + $0x30f] sm:$0xff]  ;;  %v20635_v21 = vld [vmem:[#allocation2 + $0x347] sm:$0xff] }
  0x90   :  { %238 = vst.msk [vmem:[#allocation2 + $0x3e8] sm:$0xff] %vm90_vm1, %v20353_v38  ;;  %239 = vst.msk [vmem:[#allocation2 + $0x3f0] sm:$0xff] %vm90_vm1, %v20358_v41  ;;  %v335_v41 = vld [vmem:[#allocation2 + $0x188] sm:$0xff] }
  0x91   :  { %27213 = vst [vmem:[#allocation60_spill] sm:$0xff] %v20367_v44  ;;  %27214 = vst [vmem:[#allocation61_spill] sm:$0xff] %v20372_v54  ;;  %v20489_v38 = vld [vmem:[#allocation2 + $0xa7] sm:$0xff]  ;;  %v20633_v24 = vld [vmem:[#allocation2 + $0x32f] sm:$0xff] }
  0x92   :  { %27215 = vst [vmem:[#allocation62_spill] sm:$0xff] %v20377_v58  ;;  %240 = vst.msk [vmem:[#allocation2 + $0x408] sm:$0xff] %vm90_vm1, %v20367_v44  ;;  %v332_v44 = vld [vmem:[#allocation2 + $0x150] sm:$0xff]  ;;  %v20643_v19 = vld [vmem:[#allocation2 + $0x367] sm:$0xff] }
  0x93   :  { %241 = vst.msk [vmem:[#allocation2 + $0x410] sm:$0xff] %vm90_vm1, %v20372_v54  ;;  %242 = vst.msk [vmem:[#allocation2 + $0x428] sm:$0xff] %vm90_vm1, %v20377_v58  ;;  %v330_v58 = vld [vmem:[#allocation2 + $0x130] sm:$0xff]  ;;  %v331_v54 = vld [vmem:[#allocation2 + $0x148] sm:$0xff] }
  0x94   :  { %27216 = vst [vmem:[#allocation63_spill] sm:$0xff] %v20389_v60  ;;  %243 = vst.msk [vmem:[#allocation2 + $0x430] sm:$0xff] %vm90_vm1, %v20389_v60  ;;  %16783 = vmatmul.mubr.msk.f32.gmra.mrb[18].mxu0 %vm90_vm1, %v330_v58  ;;  %v334_v60 = vld [vmem:[#allocation2 + $0x170] sm:$0xff]  ;;  %v20651_v17 = vld [vmem:[#allocation2 + $0x387] sm:$0xff] }
  0x95   :  { %16785 = vmatprep.mubr.msk.f32.mxu0 %vm90_vm1, %v331_v54  ;;  %v338_v58 = vld [vmem:[#allocation2 + $0x1b0] sm:$0xff]  ;;  %v339_v54 = vld [vmem:[#allocation2 + $0x1c8] sm:$0xff]  ;;  %27221 = vst [vmem:[#allocation68_spill] sm:$0xff] %v20702_v3 }
  0x96   :  { %v20641_v20 = vld [vmem:[#allocation2 + $0x34f] sm:$0xff]  ;;  %v20659_v15 = vld [vmem:[#allocation2 + $0x3a7] sm:$0xff] }
  0x97   :  { %v20649_v18 = vld [vmem:[#allocation2 + $0x36f] sm:$0xff]  ;;  %v20667_v13 = vld [vmem:[#allocation2 + $0x3c7] sm:$0xff] }
  0x98   :  { %16786 = vmatmul.mubr.msk.f32.gmra.mrb[20].mxu0 %vm90_vm1, %v332_v44  ;;  %v340_v44 = vld [vmem:[#allocation2 + $0x1d0] sm:$0xff]  ;;  %v20675_v11 = vld [vmem:[#allocation2 + $0x3e7] sm:$0xff] }
  0x99   :  { %16788 = vmatprep.mubr.msk.f32.mxu0 %vm90_vm1, %v333_v31  ;;  %v341_v31 = vld [vmem:[#allocation2 + $0x1e8] sm:$0xff] }
  0x9a   :  { %v20657_v16 = vld [vmem:[#allocation2 + $0x38f] sm:$0xff]  ;;  %v20683_v9 = vld [vmem:[#allocation2 + $0x407] sm:$0xff] }
  0x9b   :  { %v20665_v14 = vld [vmem:[#allocation2 + $0x3af] sm:$0xff]  ;;  %27217 = vst [vmem:[#allocation64_spill] sm:$0xff] %v20683_v9  ;;  %v20691_v7 = vld [vmem:[#allocation2 + $0x427] sm:$0xff] }
  0x9c   :  { %16789 = vmatmul.mubr.msk.f32.gmra.mrb[22].mxu0 %vm90_vm1, %v334_v60  ;;  %v342_v60 = vld [vmem:[#allocation2 + $0x1f0] sm:$0xff]  ;;  %27219 = vst [vmem:[#allocation66_spill] sm:$0xff] %v20691_v7 }
  0x9d   :  { %16791 = vmatprep.mubr.msk.f32.mxu0 %vm90_vm1, %v335_v41  ;;  %v343_v41 = vld [vmem:[#allocation2 + $0x248] sm:$0xff] }
  0x9e   :  { %v20673_v12 = vld [vmem:[#allocation2 + $0x3cf] sm:$0xff] }
  0x9f   :  { %v20681_v10 = vld [vmem:[#allocation2 + $0x3ef] sm:$0xff] }
  0xa0   :  { %16792 = vmatmul.mubr.msk.f32.gmra.mrb[24].mxu0 %vm90_vm1, %v336_v63  ;;  %v344_v63 = vld [vmem:[#allocation2 + $0x250] sm:$0xff] }
  0xa1   :  { %16794 = vmatprep.mubr.msk.f32.mxu0 %vm90_vm1, %v337_v28  ;;  %v345_v28 = vld [vmem:[#allocation2 + $0x268] sm:$0xff] }
  0xa2   :  { %v20689_v8 = vld [vmem:[#allocation2 + $0x40f] sm:$0xff] }
  0xa3   :  { %27218 = vst [vmem:[#allocation65_spill] sm:$0xff] %v20689_v8  ;;  %v20697_v6 = vld [vmem:[#allocation2 + $0x42f] sm:$0xff] }
  0xa4   :  { %16795 = vmatmul.mubr.msk.f32.gmra.mrb[26].mxu0 %vm90_vm1, %v338_v58  ;;  %v346_v58 = vld [vmem:[#allocation2 + $0x270] sm:$0xff]  ;;  %27220 = vst [vmem:[#allocation67_spill] sm:$0xff] %v20697_v6 }
  0xa5   :  { %16797 = vmatprep.mubr.msk.f32.mxu0 %vm90_vm1, %v339_v54  ;;  %v347_v54 = vld [vmem:[#allocation2 + $0x288] sm:$0xff] }
  0xa8   :  { %16798 = vmatmul.mubr.msk.f32.gmra.mrb[28].mxu0 %vm90_vm1, %v340_v44  ;;  %v348_v44 = vld [vmem:[#allocation2 + $0x290] sm:$0xff] }
  0xa9   :  { %16800 = vmatprep.mubr.msk.f32.mxu0 %vm90_vm1, %v341_v31  ;;  %v349_v31 = vld [vmem:[#allocation2 + $0x2a8] sm:$0xff] }
  0xac   :  { %16801 = vmatmul.mubr.msk.f32.gmra.mrb[30].mxu0 %vm90_vm1, %v342_v60  ;;  %v350_v60 = vld [vmem:[#allocation2 + $0x2b0] sm:$0xff] }
  0xad   :  { %16803 = vmatprep.mubr.msk.f32.mxu0 %vm90_vm1, %v343_v41  ;;  %v351_v41 = vld [vmem:[#allocation2 + $0x2c8] sm:$0xff] }
  0xb0   :  { %16804 = vmatmul.mubr.msk.f32.gmra.mrb[32].mxu0 %vm90_vm1, %v344_v63  ;;  %v352_v63 = vld [vmem:[#allocation2 + $0x2d0] sm:$0xff] }
  0xb1   :  { %16806 = vmatprep.mubr.msk.f32.mxu0 %vm90_vm1, %v345_v28  ;;  %v353_v28 = vld [vmem:[#allocation2 + $0x2e8] sm:$0xff] }
  0xb4   :  { %16807 = vmatmul.mubr.msk.f32.gmra.mrb[34].mxu0 %vm90_vm1, %v346_v58  ;;  %v354_v58 = vld [vmem:[#allocation2 + $0x2f0] sm:$0xff] }
  0xb5   :  { %16809 = vmatprep.mubr.msk.f32.mxu0 %vm90_vm1, %v347_v54  ;;  %v355_v54 = vld [vmem:[#allocation2 + $0x308] sm:$0xff] }
  0xb8   :  { %16810 = vmatmul.mubr.msk.f32.gmra.mrb[36].mxu0 %vm90_vm1, %v348_v44  ;;  %v356_v44 = vld [vmem:[#allocation2 + $0x310] sm:$0xff] }
  0xb9   :  { %16812 = vmatprep.mubr.msk.f32.mxu0 %vm90_vm1, %v349_v31  ;;  %v357_v31 = vld [vmem:[#allocation2 + $0x328] sm:$0xff] }
  0xbc   :  { %16813 = vmatmul.mubr.msk.f32.gmra.mrb[38].mxu0 %vm90_vm1, %v350_v60  ;;  %v358_v60 = vld [vmem:[#allocation2 + $0x330] sm:$0xff] }
  0xbd   :  { %16815 = vmatprep.mubr.msk.f32.mxu0 %vm90_vm1, %v351_v41  ;;  %v359_v41 = vld [vmem:[#allocation2 + $0x348] sm:$0xff] }
  0xc0   :  { %16816 = vmatmul.mubr.msk.f32.gmra.mrb[40].mxu0 %vm90_vm1, %v352_v63  ;;  %v360_v63 = vld [vmem:[#allocation2 + $0x350] sm:$0xff] }
  0xc1   :  { %16818 = vmatprep.mubr.msk.f32.mxu0 %vm90_vm1, %v353_v28  ;;  %v361_v28 = vld [vmem:[#allocation2 + $0x368] sm:$0xff] }
  0xc4   :  { %16819 = vmatmul.mubr.msk.f32.gmra.mrb[42].mxu0 %vm90_vm1, %v354_v58  ;;  %v362_v58 = vld [vmem:[#allocation2 + $0x370] sm:$0xff] }
  0xc5   :  { %16821 = vmatprep.mubr.msk.f32.mxu0 %vm90_vm1, %v355_v54  ;;  %v363_v54 = vld [vmem:[#allocation2 + $0x388] sm:$0xff] }
  0xc8   :  { %16822 = vmatmul.mubr.msk.f32.gmra.mrb[44].mxu0 %vm90_vm1, %v356_v44  ;;  %v364_v44 = vld [vmem:[#allocation2 + $0x390] sm:$0xff] }
  0xc9   :  { %16824 = vmatprep.mubr.msk.f32.mxu0 %vm90_vm1, %v357_v31  ;;  %v365_v31 = vld [vmem:[#allocation2 + $0x3a8] sm:$0xff] }
  0xcc   :  { %16825 = vmatmul.mubr.msk.f32.gmra.mrb[46].mxu0 %vm90_vm1, %v358_v60  ;;  %v366_v60 = vld [vmem:[#allocation2 + $0x3b0] sm:$0xff] }
  0xcd   :  { %16827 = vmatprep.mubr.msk.f32.mxu0 %vm90_vm1, %v359_v41  ;;  %v367_v41 = vld [vmem:[#allocation2 + $0x3c8] sm:$0xff] }
  0xd0   :  { %16828 = vmatmul.mubr.msk.f32.gmra.mrb[48].mxu0 %vm90_vm1, %v360_v63  ;;  %v368_v63 = vld [vmem:[#allocation2 + $0x3d0] sm:$0xff] }
  0xd1   :  { %16830 = vmatprep.mubr.msk.f32.mxu0 %vm90_vm1, %v361_v28  ;;  %v369_v28 = vld [vmem:[#allocation2 + $0x3e8] sm:$0xff] }
  0xd4   :  { %16831 = vmatmul.mubr.msk.f32.gmra.mrb[50].mxu0 %vm90_vm1, %v362_v58  ;;  %v370_v58 = vld [vmem:[#allocation2 + $0x3f0] sm:$0xff] }
  0xd5   :  { %16833 = vmatprep.mubr.msk.f32.mxu0 %vm90_vm1, %v363_v54  ;;  %v371_v54 = vld [vmem:[#allocation2 + $0x408] sm:$0xff] }
  0xd8   :  { %16834 = vmatmul.mubr.msk.f32.gmra.mrb[52].mxu0 %vm90_vm1, %v364_v44  ;;  %v372_v44 = vld [vmem:[#allocation2 + $0x410] sm:$0xff] }
  0xd9   :  { %16836 = vmatprep.mubr.msk.f32.mxu0 %vm90_vm1, %v365_v31  ;;  %v373_v31 = vld [vmem:[#allocation2 + $0x428] sm:$0xff] }
  0xdc   :  { %16837 = vmatmul.mubr.msk.f32.gmra.mrb[54].mxu0 %vm90_vm1, %v366_v60  ;;  %v374_v60 = vld [vmem:[#allocation2 + $0x430] sm:$0xff] }
  0xdd   :  { %16839 = vmatprep.mubr.msk.f32.mxu0 %vm90_vm1, %v367_v41  ;;  %v246_v41 = vld [vmem:[#allocation2 + $0x7] sm:$0xff] }
  0xe0   :  { %16840 = vmatmul.mubr.msk.f32.gmra.mrb[56].mxu0 %vm90_vm1, %v368_v63  ;;  %v247_v63 = vld [vmem:[#allocation2 + $0xf] sm:$0xff] }
  0xe1   :  { %16842 = vmatprep.mubr.msk.f32.mxu0 %vm90_vm1, %v369_v28  ;;  %v20449_v28 = vld [vmem:[#allocation2 + $0x27] sm:$0xff] }
  0xe4   :  { %16843 = vmatmul.mubr.msk.f32.gmra.mrb[58].mxu0 %vm90_vm1, %v370_v58  ;;  %v20454_v58 = vld [vmem:[%s26864_s1 + $0xc] sm:$0xf] }
  0xe5   :  { %16845 = vmatprep.mubr.msk.f32.mxu0 %vm90_vm1, %v371_v54  ;;  %v20461_v54 = vld [vmem:[#allocation2 + $0x2f] sm:$0xff] }
  0xe8   :  { %16846 = vmatmul.mubr.msk.f32.gmra.mrb[60].mxu0 %vm90_vm1, %v372_v44  ;;  %v20463_v44 = vld [vmem:[#allocation2 + $0x47] sm:$0xff] }
  0xe9   :  { %16848 = vmatprep.mubr.msk.f32.mxu0 %vm90_vm1, %v373_v31  ;;  %v20471_v31 = vld [vmem:[#allocation2 + $0x4f] sm:$0xff] }
  0xec   :  { %16849 = vmatmul.mubr.msk.f32.gmra.mrb[62].mxu0 %vm90_vm1, %v374_v60  ;;  %v20473_v60 = vld [vmem:[#allocation2 + $0x67] sm:$0xff] }
  0xed   :  { %16853 = vmatprep.mubr.msk.f32.mxu0 %vm90_vm1, %v246_v41  ;;  %v20481_v41 = vld [vmem:[#allocation2 + $0x87] sm:$0xff] }
  0xf0   :  { %16854 = vmatmul.mubr.msk.f32.vlgmr.msra.gmra.mrb[0].mxu0 %vm90_vm1, %v247_v63  ;;  %v20487_v63 = vld [vmem:[#allocation2 + $0x8f] sm:$0xff] }
  0xf1   :  { %16950 = vmatpush3.msk.msra.mxu0 %vm569_vm0, %v20394_v62  ;;  %16856 = vmatprep.mubr.msk.f32.mxu0 %vm90_vm1, %v20449_v28  ;;  %v20479_v62 = vld [vmem:[#allocation2 + $0x6f] sm:$0xff] }
  0xf2   :  { %17047 = vmatprep.subr.msk.mxu0 %vm569_vm0, %v20454_v58 }
  0xf4   :  { %16857 = vmatmul.mubr.msk.f32.gmra.mrb[2].mxu0 %vm90_vm1, %v20461_v54 }
  0xf5   :  { %16859 = vmatprep.mubr.msk.f32.mxu0 %vm90_vm1, %v20463_v44 }
  0xf8   :  { %16860 = vmatmul.mubr.msk.f32.gmra.mrb[4].mxu0 %vm90_vm1, %v20471_v31 }
  0xf9   :  { %16862 = vmatprep.mubr.msk.f32.mxu0 %vm90_vm1, %v20473_v60 }
  0xfc   :  { %16863 = vmatmul.mubr.msk.f32.gmra.mrb[6].mxu0 %vm90_vm1, %v20479_v62 }
  0xfd   :  { %16865 = vmatprep.mubr.msk.f32.mxu0 %vm90_vm1, %v20481_v41 }
 0x100   :  { %16866 = vmatmul.mubr.msk.f32.gmra.mrb[8].mxu0 %vm90_vm1, %v20487_v63 }
 0x101   :  { %16868 = vmatprep.mubr.msk.f32.mxu0 %vm90_vm1, %v20489_v38 }
 0x104   :  { %16869 = vmatmul.mubr.msk.f32.gmra.mrb[10].mxu0 %vm90_vm1, %v20495_v30 }
 0x105   :  { %16871 = vmatprep.mubr.msk.f32.mxu0 %vm90_vm1, %v20497_v29 }
 0x108   :  { %16872 = vmatmul.mubr.msk.f32.gmra.mrb[12].mxu0 %vm90_vm1, %v20503_v25 }
 0x109   :  { %16874 = vmatprep.mubr.msk.f32.mxu0 %vm90_vm1, %v20505_v23 }
 0x10c   :  { %16875 = vmatmul.mubr.msk.f32.gmra.mrb[14].mxu0 %vm90_vm1, %v20511_v22 }
 0x10d   :  { %16877 = vmatprep.mubr.msk.f32.mxu0 %vm90_vm1, %v20513_v2 }
 0x110   :  { %16878 = vmatmul.mubr.msk.f32.gmra.mrb[16].mxu0 %vm90_vm1, %v20519_v1 }
 0x111   :  { %16880 = vmatprep.mubr.msk.f32.mxu0 %vm90_vm1, %v20521_v0 }
 0x114   :  { %16881 = vmatmul.mubr.msk.f32.gmra.mrb[18].mxu0 %vm90_vm1, %v20527_v61 }
 0x115   :  { %16883 = vmatprep.mubr.msk.f32.mxu0 %vm90_vm1, %v20529_v59 }
 0x118   :  { %16884 = vmatmul.mubr.msk.f32.gmra.mrb[20].mxu0 %vm90_vm1, %v20535_v57 }
 0x119   :  { %16886 = vmatprep.mubr.msk.f32.mxu0 %vm90_vm1, %v20537_v56 }
 0x11c   :  { %16887 = vmatmul.mubr.msk.f32.gmra.mrb[22].mxu0 %vm90_vm1, %v20543_v55 }
 0x11d   :  { %16889 = vmatprep.mubr.msk.f32.mxu0 %vm90_vm1, %v20545_v53 }
 0x120   :  { %16890 = vmatmul.mubr.msk.f32.gmra.mrb[24].mxu0 %vm90_vm1, %v20551_v52 }
 0x121   :  { %16892 = vmatprep.mubr.msk.f32.mxu0 %vm90_vm1, %v20553_v51 }
 0x124   :  { %16893 = vmatmul.mubr.msk.f32.gmra.mrb[26].mxu0 %vm90_vm1, %v20559_v50 }
 0x125   :  { %16895 = vmatprep.mubr.msk.f32.mxu0 %vm90_vm1, %v20561_v49 }
 0x128   :  { %16896 = vmatmul.mubr.msk.f32.gmra.mrb[28].mxu0 %vm90_vm1, %v20567_v48 }
 0x129   :  { %16898 = vmatprep.mubr.msk.f32.mxu0 %vm90_vm1, %v20569_v47 }
 0x12c   :  { %16899 = vmatmul.mubr.msk.f32.gmra.mrb[30].mxu0 %vm90_vm1, %v20575_v46 }
 0x12d   :  { %16901 = vmatprep.mubr.msk.f32.mxu0 %vm90_vm1, %v278_v45  ;;  %v20595_v45 = vld [vmem:[#allocation2 + $0x2a7] sm:$0xff] }
 0x130   :  { %16902 = vmatmul.mubr.msk.f32.gmra.mrb[32].mxu0 %vm90_vm1, %v279_v43  ;;  %v20601_v43 = vld [vmem:[#allocation2 + $0x2af] sm:$0xff] }
 0x131   :  { %16904 = vmatprep.mubr.msk.f32.mxu0 %vm90_vm1, %v20580_v42 }
 0x134   :  { %16905 = vmatmul.mubr.msk.f32.gmra.mrb[34].mxu0 %vm90_vm1, %v20585_v40 }
 0x135   :  { %16907 = vmatprep.mubr.msk.f32.mxu0 %vm90_vm1, %v20587_v39 }
 0x138   :  { %16908 = vmatmul.mubr.msk.f32.gmra.mrb[36].mxu0 %vm90_vm1, %v20593_v37 }
 0x139   :  { %16910 = vmatprep.mubr.msk.f32.mxu0 %vm90_vm1, %v20595_v45 }
 0x13c   :  { %16911 = vmatmul.mubr.msk.f32.gmra.mrb[38].mxu0 %vm90_vm1, %v20601_v43 }
 0x13d   :  { %16913 = vmatprep.mubr.msk.f32.mxu0 %vm90_vm1, %v20603_v36 }
 0x140   :  { %16914 = vmatmul.mubr.msk.f32.gmra.mrb[40].mxu0 %vm90_vm1, %v20609_v35 }
 0x141   :  { %16916 = vmatprep.mubr.msk.f32.mxu0 %vm90_vm1, %v20611_v34 }
 0x144   :  { %16917 = vmatmul.mubr.msk.f32.gmra.mrb[42].mxu0 %vm90_vm1, %v20617_v33 }
 0x145   :  { %16919 = vmatprep.mubr.msk.f32.mxu0 %vm90_vm1, %v20619_v32 }
 0x148   :  { %16920 = vmatmul.mubr.msk.f32.gmra.mrb[44].mxu0 %vm90_vm1, %v20625_v27 }
 0x149   :  { %16922 = vmatprep.mubr.msk.f32.mxu0 %vm90_vm1, %v20627_v26 }
 0x14c   :  { %16923 = vmatmul.mubr.msk.f32.gmra.mrb[46].mxu0 %vm90_vm1, %v20633_v24 }
 0x14d   :  { %16925 = vmatprep.mubr.msk.f32.mxu0 %vm90_vm1, %v20635_v21 }
 0x150   :  { %16926 = vmatmul.mubr.msk.f32.gmra.mrb[48].mxu0 %vm90_vm1, %v20641_v20 }
 0x151   :  { %16928 = vmatprep.mubr.msk.f32.mxu0 %vm90_vm1, %v20643_v19 }
 0x154   :  { %16929 = vmatmul.mubr.msk.f32.gmra.mrb[50].mxu0 %vm90_vm1, %v20649_v18 }
 0x155   :  { %16931 = vmatprep.mubr.msk.f32.mxu0 %vm90_vm1, %v20651_v17 }
 0x158   :  { %16932 = vmatmul.mubr.msk.f32.gmra.mrb[52].mxu0 %vm90_vm1, %v20657_v16 }
 0x159   :  { %16934 = vmatprep.mubr.msk.f32.mxu0 %vm90_vm1, %v20659_v15 }
 0x15c   :  { %16935 = vmatmul.mubr.msk.f32.gmra.mrb[54].mxu0 %vm90_vm1, %v20665_v14 }
 0x15d   :  { %16937 = vmatprep.mubr.msk.f32.mxu0 %vm90_vm1, %v20667_v13 }
 0x160   :  { %16938 = vmatmul.mubr.msk.f32.gmra.mrb[56].mxu0 %vm90_vm1, %v20673_v12 }
 0x161   :  { %16940 = vmatprep.mubr.msk.f32.mxu0 %vm90_vm1, %v20675_v11 }
 0x164   :  { %16941 = vmatmul.mubr.msk.f32.gmra.mrb[58].mxu0 %vm90_vm1, %v20681_v10 }
 0x165   :  { %16943 = vmatprep.mubr.msk.f32.mxu0 %vm90_vm1, %v20683_v9  ;;  %v20707_v9 = vld [vmem:[%s26864_s1 + $0x10] sm:$0xf] }
 0x168   :  { %16944 = vmatmul.mubr.msk.f32.gmra.mrb[60].mxu0 %vm90_vm1, %v20689_v8  ;;  %v1570_v8 = vld [vmem:[#allocation2 + $0x249] sm:$0xff] }
 0x169   :  { %16946 = vmatprep.mubr.msk.f32.mxu0 %vm90_vm1, %v20691_v7  ;;  %v20714_v7 = vld [vmem:[#allocation2 + $0x31] sm:$0xff] }
 0x16a   :  { %27222 = vst [vmem:[#allocation69_spill] sm:$0xff] %v20714_v7 }
 0x16c   :  { %16947 = vmatmul.mubr.msk.f32.gmra.mrb[62].mxu0 %vm90_vm1, %v20697_v6  ;;  %v20716_v6 = vld [vmem:[#allocation2 + $0x49] sm:$0xff] }
 0x16d   :  { %16951 = vmatprep.mubr.msk.f32.mxu0 %vm90_vm1, %v1538_v5  ;;  %27223 = vst [vmem:[#allocation70_spill] sm:$0xff] %v20716_v6  ;;  %v20726_v5 = vld [vmem:[#allocation2 + $0x69] sm:$0xff] }
 0x16e   :  { %27225 = vst [vmem:[#allocation72_spill] sm:$0xff] %v20726_v5 }
 0x170   :  { %16952 = vmatmul.mubr.msk.f32.vlgmr.msra.gmra.mrb[0].mxu0 %vm90_vm1, %v1539_v4  ;;  %v20724_v4 = vld [vmem:[#allocation2 + $0x51] sm:$0xff] }
 0x171   :  { %17048 = vmatpush3.msk.msra.mxu0 %vm569_vm0, %v20454_v58  ;;  %16954 = vmatprep.mubr.msk.f32.mxu0 %vm90_vm1, %v20702_v3  ;;  %27224 = vst [vmem:[#allocation71_spill] sm:$0xff] %v20724_v4  ;;  %v20732_v58 = vld [vmem:[#allocation2 + $0x71] sm:$0xff]  ;;  %v20734_v3 = vld [vmem:[#allocation2 + $0x89] sm:$0xff] }
 0x172   :  { %17145 = vmatprep.subr.msk.mxu0 %vm569_vm0, %v20707_v9  ;;  %27226 = vst [vmem:[#allocation73_spill] sm:$0xff] %v20732_v58  ;;  %27227 = vst [vmem:[#allocation74_spill] sm:$0xff] %v20734_v3 }
 0x174   :  { %16955 = vmatmul.mubr.msk.f32.gmra.mrb[2].mxu0 %vm90_vm1, %v20714_v7  ;;  %v20742_v7 = vld [vmem:[#allocation2 + $0xa9] sm:$0xff] }
 0x175   :  { %16957 = vmatprep.mubr.msk.f32.mxu0 %vm90_vm1, %v20716_v6  ;;  %v20740_v6 = vld [vmem:[#allocation2 + $0x91] sm:$0xff]  ;;  %27229 = vst [vmem:[#allocation76_spill] sm:$0xff] %v20742_v7 }
 0x176   :  { %27228 = vst [vmem:[#allocation75_spill] sm:$0xff] %v20740_v6 }
 0x178   :  { %16958 = vmatmul.mubr.msk.f32.gmra.mrb[4].mxu0 %vm90_vm1, %v20724_v4  ;;  %v20750_v4 = vld [vmem:[#allocation2 + $0xc9] sm:$0xff] }
 0x179   :  { %16960 = vmatprep.mubr.msk.f32.mxu0 %vm90_vm1, %v20726_v5  ;;  %v20748_v5 = vld [vmem:[#allocation2 + $0xb1] sm:$0xff]  ;;  %27231 = vst [vmem:[#allocation78_spill] sm:$0xff] %v20750_v4 }
 0x17a   :  { %27230 = vst [vmem:[#allocation77_spill] sm:$0xff] %v20748_v5 }
 0x17c   :  { %16961 = vmatmul.mubr.msk.f32.gmra.mrb[6].mxu0 %vm90_vm1, %v20732_v58  ;;  %v20758_v58 = vld [vmem:[#allocation2 + $0xe9] sm:$0xff] }
 0x17d   :  { %16963 = vmatprep.mubr.msk.f32.mxu0 %vm90_vm1, %v20734_v3  ;;  %v20756_v3 = vld [vmem:[#allocation2 + $0xd1] sm:$0xff]  ;;  %27233 = vst [vmem:[#allocation80_spill] sm:$0xff] %v20758_v58 }
 0x17e   :  { %27232 = vst [vmem:[#allocation79_spill] sm:$0xff] %v20756_v3 }
 0x180   :  { %16964 = vmatmul.mubr.msk.f32.gmra.mrb[8].mxu0 %vm90_vm1, %v20740_v6  ;;  %v20766_v6 = vld [vmem:[#allocation2 + $0x109] sm:$0xff] }
 0x181   :  { %16966 = vmatprep.mubr.msk.f32.mxu0 %vm90_vm1, %v20742_v7  ;;  %v20764_v7 = vld [vmem:[#allocation2 + $0xf1] sm:$0xff]  ;;  %27235 = vst [vmem:[#allocation82_spill] sm:$0xff] %v20766_v6 }
 0x182   :  { %27234 = vst [vmem:[#allocation81_spill] sm:$0xff] %v20764_v7 }
 0x184   :  { %16967 = vmatmul.mubr.msk.f32.gmra.mrb[10].mxu0 %vm90_vm1, %v20748_v5  ;;  %v20774_v5 = vld [vmem:[#allocation2 + $0x129] sm:$0xff] }
 0x185   :  { %16969 = vmatprep.mubr.msk.f32.mxu0 %vm90_vm1, %v20750_v4  ;;  %v20772_v4 = vld [vmem:[#allocation2 + $0x111] sm:$0xff]  ;;  %27237 = vst [vmem:[#allocation84_spill] sm:$0xff] %v20774_v5 }
 0x186   :  { %27236 = vst [vmem:[#allocation83_spill] sm:$0xff] %v20772_v4 }
 0x188   :  { %16970 = vmatmul.mubr.msk.f32.gmra.mrb[12].mxu0 %vm90_vm1, %v20756_v3  ;;  %v20782_v3 = vld [vmem:[#allocation2 + $0x149] sm:$0xff] }
 0x189   :  { %16972 = vmatprep.mubr.msk.f32.mxu0 %vm90_vm1, %v20758_v58  ;;  %v20780_v58 = vld [vmem:[#allocation2 + $0x131] sm:$0xff]  ;;  %27239 = vst [vmem:[#allocation86_spill] sm:$0xff] %v20782_v3 }
 0x18a   :  { %27238 = vst [vmem:[#allocation85_spill] sm:$0xff] %v20780_v58 }
 0x18c   :  { %16973 = vmatmul.mubr.msk.f32.gmra.mrb[14].mxu0 %vm90_vm1, %v20764_v7  ;;  %v20790_v7 = vld [vmem:[#allocation2 + $0x169] sm:$0xff] }
 0x18d   :  { %16975 = vmatprep.mubr.msk.f32.mxu0 %vm90_vm1, %v20766_v6  ;;  %v20788_v6 = vld [vmem:[#allocation2 + $0x151] sm:$0xff]  ;;  %27241 = vst [vmem:[#allocation88_spill] sm:$0xff] %v20790_v7 }
 0x18e   :  { %27240 = vst [vmem:[#allocation87_spill] sm:$0xff] %v20788_v6 }
 0x190   :  { %16976 = vmatmul.mubr.msk.f32.gmra.mrb[16].mxu0 %vm90_vm1, %v20772_v4  ;;  %v20798_v4 = vld [vmem:[#allocation2 + $0x189] sm:$0xff] }
 0x191   :  { %16978 = vmatprep.mubr.msk.f32.mxu0 %vm90_vm1, %v20774_v5  ;;  %v20796_v5 = vld [vmem:[#allocation2 + $0x171] sm:$0xff]  ;;  %27243 = vst [vmem:[#allocation90_spill] sm:$0xff] %v20798_v4 }
 0x192   :  { %27242 = vst [vmem:[#allocation89_spill] sm:$0xff] %v20796_v5 }
 0x194   :  { %16979 = vmatmul.mubr.msk.f32.gmra.mrb[18].mxu0 %vm90_vm1, %v20780_v58  ;;  %v20806_v58 = vld [vmem:[#allocation2 + $0x1a9] sm:$0xff] }
 0x195   :  { %16981 = vmatprep.mubr.msk.f32.mxu0 %vm90_vm1, %v20782_v3  ;;  %v20804_v3 = vld [vmem:[#allocation2 + $0x191] sm:$0xff]  ;;  %27245 = vst [vmem:[#allocation92_spill] sm:$0xff] %v20806_v58 }
 0x196   :  { %27244 = vst [vmem:[#allocation91_spill] sm:$0xff] %v20804_v3 }
 0x198   :  { %16982 = vmatmul.mubr.msk.f32.gmra.mrb[20].mxu0 %vm90_vm1, %v20788_v6  ;;  %v20814_v6 = vld [vmem:[#allocation2 + $0x1c9] sm:$0xff] }
 0x199   :  { %16984 = vmatprep.mubr.msk.f32.mxu0 %vm90_vm1, %v20790_v7  ;;  %v20812_v7 = vld [vmem:[#allocation2 + $0x1b1] sm:$0xff]  ;;  %27247 = vst [vmem:[#allocation94_spill] sm:$0xff] %v20814_v6 }
 0x19a   :  { %27246 = vst [vmem:[#allocation93_spill] sm:$0xff] %v20812_v7 }
 0x19c   :  { %16985 = vmatmul.mubr.msk.f32.gmra.mrb[22].mxu0 %vm90_vm1, %v20796_v5  ;;  %v20819_v5 = vld [vmem:[%s26865_s0 + $0xf0] sm:$0xff] }
 0x19d   :  { %16987 = vmatprep.mubr.msk.f32.mxu0 %vm90_vm1, %v20798_v4  ;;  %27248 = vst [vmem:[#allocation95_spill] sm:$0xff] %v20819_v5  ;;  %212 = vst.msk [vmem:[#allocation2 + $0x208] sm:$0xff] %vm90_vm1, %v20819_v5  ;;  %v20826_v4 = vld [vmem:[%s26865_s0 + $0xf8] sm:$0xff] }
 0x19e   :  { %27249 = vst [vmem:[#allocation96_spill] sm:$0xff] %v20826_v4  ;;  %213 = vst.msk [vmem:[#allocation2 + $0x210] sm:$0xff] %vm90_vm1, %v20826_v4  ;;  %v20842_v5 = vld [vmem:[#allocation2 + $0x1f1] sm:$0xff] }
 0x19f   :  { %27251 = vst [vmem:[#allocation98_spill] sm:$0xff] %v20842_v5  ;;  %v1571_v4 = vld [vmem:[#allocation2 + $0x251] sm:$0xff] }
 0x1a0   :  { %16988 = vmatmul.mubr.msk.f32.gmra.mrb[24].mxu0 %vm90_vm1, %v20804_v3  ;;  %v20836_v3 = vld [vmem:[#allocation2 + $0x1e9] sm:$0xff] }
 0x1a1   :  { %16990 = vmatprep.mubr.msk.f32.mxu0 %vm90_vm1, %v20806_v58  ;;  %v20834_v58 = vld [vmem:[#allocation2 + $0x1d1] sm:$0xff] }
 0x1a2   :  { %27250 = vst [vmem:[#allocation97_spill] sm:$0xff] %v20834_v58 }
 0x1a4   :  { %16991 = vmatmul.mubr.msk.f32.gmra.mrb[26].mxu0 %vm90_vm1, %v20812_v7  ;;  %v20854_v7 = vld [vmem:[#allocation2 + $0x289] sm:$0xff] }
 0x1a5   :  { %16993 = vmatprep.mubr.msk.f32.mxu0 %vm90_vm1, %v20814_v6  ;;  %v20847_v6 = vld [vmem:[#allocation2 + $0x269] sm:$0xff]  ;;  %27254 = vst [vmem:[#allocation101_spill] sm:$0xff] %v20854_v7 }
 0x1a6   :  { %27252 = vst [vmem:[#allocation99_spill] sm:$0xff] %v20847_v6 }
 0x1a8   :  { %16994 = vmatmul.mubr.msk.f32.gmra.mrb[28].mxu0 %vm90_vm1, %v20834_v58  ;;  %v20852_v58 = vld [vmem:[#allocation2 + $0x271] sm:$0xff] }
 0x1a9   :  { %16996 = vmatprep.mubr.msk.f32.mxu0 %vm90_vm1, %v20836_v3  ;;  %27253 = vst [vmem:[#allocation100_spill] sm:$0xff] %v20852_v58 }
 0x1ac   :  { %16997 = vmatmul.mubr.msk.f32.gmra.mrb[30].mxu0 %vm90_vm1, %v20842_v5  ;;  %v20860_v5 = vld [vmem:[#allocation2 + $0x291] sm:$0xff] }
 0x1ad   :  { %16999 = vmatprep.mubr.msk.f32.mxu0 %vm90_vm1, %v1570_v8  ;;  %27255 = vst [vmem:[#allocation102_spill] sm:$0xff] %v20860_v5  ;;  %v20862_v8 = vld [vmem:[#allocation2 + $0x2a9] sm:$0xff] }
 0x1ae   :  { %27256 = vst [vmem:[#allocation103_spill] sm:$0xff] %v20862_v8 }
 0x1b0   :  { %17000 = vmatmul.mubr.msk.f32.gmra.mrb[32].mxu0 %vm90_vm1, %v1571_v4  ;;  %v20868_v4 = vld [vmem:[#allocation2 + $0x2b1] sm:$0xff] }
 0x1b1   :  { %17002 = vmatprep.mubr.msk.f32.mxu0 %vm90_vm1, %v20847_v6  ;;  %27257 = vst [vmem:[#allocation104_spill] sm:$0xff] %v20868_v4  ;;  %v20870_v6 = vld [vmem:[#allocation2 + $0x2c9] sm:$0xff] }
 0x1b2   :  { %27258 = vst [vmem:[#allocation105_spill] sm:$0xff] %v20870_v6 }
 0x1b4   :  { %17003 = vmatmul.mubr.msk.f32.gmra.mrb[34].mxu0 %vm90_vm1, %v20852_v58  ;;  %v20878_v58 = vld [vmem:[#allocation2 + $0x2e9] sm:$0xff] }
 0x1b5   :  { %17005 = vmatprep.mubr.msk.f32.mxu0 %vm90_vm1, %v20854_v7  ;;  %v20876_v7 = vld [vmem:[#allocation2 + $0x2d1] sm:$0xff]  ;;  %27260 = vst [vmem:[#allocation107_spill] sm:$0xff] %v20878_v58 }
 0x1b6   :  { %27259 = vst [vmem:[#allocation106_spill] sm:$0xff] %v20876_v7 }
 0x1b8   :  { %17006 = vmatmul.mubr.msk.f32.gmra.mrb[36].mxu0 %vm90_vm1, %v20860_v5  ;;  %v20886_v5 = vld [vmem:[#allocation2 + $0x309] sm:$0xff] }
 0x1b9   :  { %17008 = vmatprep.mubr.msk.f32.mxu0 %vm90_vm1, %v20862_v8  ;;  %v20884_v8 = vld [vmem:[#allocation2 + $0x2f1] sm:$0xff]  ;;  %27262 = vst [vmem:[#allocation109_spill] sm:$0xff] %v20886_v5 }
 0x1ba   :  { %27261 = vst [vmem:[#allocation108_spill] sm:$0xff] %v20884_v8 }
 0x1bc   :  { %17009 = vmatmul.mubr.msk.f32.gmra.mrb[38].mxu0 %vm90_vm1, %v20868_v4  ;;  %v20894_v4 = vld [vmem:[#allocation2 + $0x329] sm:$0xff] }
 0x1bd   :  { %17011 = vmatprep.mubr.msk.f32.mxu0 %vm90_vm1, %v20870_v6  ;;  %v20892_v6 = vld [vmem:[#allocation2 + $0x311] sm:$0xff]  ;;  %27264 = vst [vmem:[#allocation111_spill] sm:$0xff] %v20894_v4 }
 0x1be   :  { %27263 = vst [vmem:[#allocation110_spill] sm:$0xff] %v20892_v6 }
 0x1c0   :  { %17012 = vmatmul.mubr.msk.f32.gmra.mrb[40].mxu0 %vm90_vm1, %v20876_v7  ;;  %v20902_v7 = vld [vmem:[#allocation2 + $0x349] sm:$0xff] }
 0x1c1   :  { %17014 = vmatprep.mubr.msk.f32.mxu0 %vm90_vm1, %v20878_v58  ;;  %v20900_v58 = vld [vmem:[#allocation2 + $0x331] sm:$0xff]  ;;  %27266 = vst [vmem:[#allocation113_spill] sm:$0xff] %v20902_v7 }
 0x1c2   :  { %27265 = vst [vmem:[#allocation112_spill] sm:$0xff] %v20900_v58 }
 0x1c4   :  { %17015 = vmatmul.mubr.msk.f32.gmra.mrb[42].mxu0 %vm90_vm1, %v20884_v8  ;;  %v20910_v8 = vld [vmem:[#allocation2 + $0x369] sm:$0xff] }
 0x1c5   :  { %17017 = vmatprep.mubr.msk.f32.mxu0 %vm90_vm1, %v20886_v5  ;;  %v20908_v5 = vld [vmem:[#allocation2 + $0x351] sm:$0xff]  ;;  %27268 = vst [vmem:[#allocation115_spill] sm:$0xff] %v20910_v8 }
 0x1c6   :  { %27267 = vst [vmem:[#allocation114_spill] sm:$0xff] %v20908_v5 }
 0x1c8   :  { %17018 = vmatmul.mubr.msk.f32.gmra.mrb[44].mxu0 %vm90_vm1, %v20892_v6  ;;  %v20918_v6 = vld [vmem:[#allocation2 + $0x389] sm:$0xff] }
 0x1c9   :  { %17020 = vmatprep.mubr.msk.f32.mxu0 %vm90_vm1, %v20894_v4  ;;  %v20916_v4 = vld [vmem:[#allocation2 + $0x371] sm:$0xff]  ;;  %27270 = vst [vmem:[#allocation117_spill] sm:$0xff] %v20918_v6 }
 0x1ca   :  { %27269 = vst [vmem:[#allocation116_spill] sm:$0xff] %v20916_v4 }
 0x1cc   :  { %17021 = vmatmul.mubr.msk.f32.gmra.mrb[46].mxu0 %vm90_vm1, %v20900_v58  ;;  %v20926_v58 = vld [vmem:[#allocation2 + $0x3a9] sm:$0xff] }
 0x1cd   :  { %17023 = vmatprep.mubr.msk.f32.mxu0 %vm90_vm1, %v20902_v7  ;;  %v20924_v7 = vld [vmem:[#allocation2 + $0x391] sm:$0xff]  ;;  %27272 = vst [vmem:[#allocation119_spill] sm:$0xff] %v20926_v58 }
 0x1ce   :  { %27271 = vst [vmem:[#allocation118_spill] sm:$0xff] %v20924_v7 }
 0x1d0   :  { %17024 = vmatmul.mubr.msk.f32.gmra.mrb[48].mxu0 %vm90_vm1, %v20908_v5  ;;  %v20934_v5 = vld [vmem:[#allocation2 + $0x3c9] sm:$0xff] }
 0x1d1   :  { %17026 = vmatprep.mubr.msk.f32.mxu0 %vm90_vm1, %v20910_v8  ;;  %v20932_v8 = vld [vmem:[#allocation2 + $0x3b1] sm:$0xff]  ;;  %27274 = vst [vmem:[#allocation121_spill] sm:$0xff] %v20934_v5 }
 0x1d2   :  { %27273 = vst [vmem:[#allocation120_spill] sm:$0xff] %v20932_v8 }
 0x1d4   :  { %17027 = vmatmul.mubr.msk.f32.gmra.mrb[50].mxu0 %vm90_vm1, %v20916_v4  ;;  %v20942_v4 = vld [vmem:[#allocation2 + $0x3e9] sm:$0xff] }
 0x1d5   :  { %17029 = vmatprep.mubr.msk.f32.mxu0 %vm90_vm1, %v20918_v6  ;;  %v20940_v6 = vld [vmem:[#allocation2 + $0x3d1] sm:$0xff]  ;;  %27276 = vst [vmem:[#allocation123_spill] sm:$0xff] %v20942_v4 }
 0x1d6   :  { %27275 = vst [vmem:[#allocation122_spill] sm:$0xff] %v20940_v6 }
 0x1d8   :  { %17030 = vmatmul.mubr.msk.f32.gmra.mrb[52].mxu0 %vm90_vm1, %v20924_v7  ;;  %v20950_v7 = vld [vmem:[#allocation2 + $0x409] sm:$0xff] }
 0x1d9   :  { %17032 = vmatprep.mubr.msk.f32.mxu0 %vm90_vm1, %v20926_v58  ;;  %v20948_v58 = vld [vmem:[#allocation2 + $0x3f1] sm:$0xff] }
 0x1dc   :  { %17033 = vmatmul.mubr.msk.f32.gmra.mrb[54].mxu0 %vm90_vm1, %v20932_v8  ;;  %v20955_v8 = vld [vmem:[%s26865_s0 + $0x1f0] sm:$0xff] }
 0x1dd   :  { %17035 = vmatprep.mubr.msk.f32.mxu0 %vm90_vm1, %v20934_v5  ;;  %27277 = vst [vmem:[#allocation124_spill] sm:$0xff] %v20955_v8  ;;  %244 = vst.msk [vmem:[#allocation2 + $0x448] sm:$0xff] %vm90_vm1, %v20955_v8  ;;  %v20962_v5 = vld [vmem:[%s26865_s0 + $0x1f8] sm:$0xff] }
 0x1de   :  { %27278 = vst [vmem:[#allocation125_spill] sm:$0xff] %v20962_v5  ;;  %245 = vst.msk [vmem:[#allocation2 + $0x450] sm:$0xff] %vm90_vm1, %v20962_v5  ;;  %v20978_v8 = vld [vmem:[#allocation2 + $0x431] sm:$0xff] }
 0x1df   :  { %v20987_v5 = vld [vmem:[%s26864_s1 + $0x14] sm:$0xf] }
 0x1e0   :  { %17036 = vmatmul.mubr.msk.f32.gmra.mrb[56].mxu0 %vm90_vm1, %v20940_v6  ;;  %v20972_v6 = vld [vmem:[#allocation2 + $0x429] sm:$0xff] }
 0x1e1   :  { %17038 = vmatprep.mubr.msk.f32.mxu0 %vm90_vm1, %v20942_v4  ;;  %v20970_v4 = vld [vmem:[#allocation2 + $0x411] sm:$0xff] }
 0x1e4   :  { %17039 = vmatmul.mubr.msk.f32.gmra.mrb[58].mxu0 %vm90_vm1, %v20948_v58 }
 0x1e5   :  { %17041 = vmatprep.mubr.msk.f32.mxu0 %vm90_vm1, %v20950_v7 }
 0x1e8   :  { %17042 = vmatmul.mubr.msk.f32.gmra.mrb[60].mxu0 %vm90_vm1, %v20970_v4 }
 0x1e9   :  { %17044 = vmatprep.mubr.msk.f32.mxu0 %vm90_vm1, %v20972_v6 }
 0x1ec   :  { %17045 = vmatmul.mubr.msk.f32.gmra.mrb[62].mxu0 %vm90_vm1, %v20978_v8 }
 0x1ed   :  { %17049 = vmatprep.mubr.msk.f32.mxu0 %vm90_vm1, %v20449_v28  ;;  %v21274_v28 = vld [vmem:[#allocation2 + $0x2c8] sm:$0xff] }
 0x1f0   :  { %17050 = vmatmul.mubr.msk.f32.vlgmr.msra.gmra.mrb[0].mxu0 %vm90_vm1, %v20461_v54  ;;  %v21280_v54 = vld [vmem:[#allocation2 + $0x2d0] sm:$0xff] }
 0x1f1   :  { %17146 = vmatpush3.msk.msra.mxu0 %vm569_vm0, %v20707_v9  ;;  %17052 = vmatprep.mubr.msk.f32.mxu0 %vm90_vm1, %v20463_v44  ;;  %v21049_v9 = vld [vmem:[#allocation2 + $0x207] sm:$0xff] }
 0x1f2   :  { %17243 = vmatprep.subr.msk.mxu0 %vm569_vm0, %v20987_v5  ;;  %v21282_v44 = vld [vmem:[#allocation2 + $0x2e8] sm:$0xff] }
 0x1f4   :  { %17053 = vmatmul.mubr.msk.f32.gmra.mrb[2].mxu0 %vm90_vm1, %v20471_v31  ;;  %v21288_v31 = vld [vmem:[#allocation2 + $0x2f0] sm:$0xff] }
 0x1f5   :  { %17055 = vmatprep.mubr.msk.f32.mxu0 %vm90_vm1, %v20473_v60  ;;  %v21290_v60 = vld [vmem:[#allocation2 + $0x308] sm:$0xff] }
 0x1f8   :  { %17056 = vmatmul.mubr.msk.f32.gmra.mrb[4].mxu0 %vm90_vm1, %v20479_v62  ;;  %v21296_v62 = vld [vmem:[#allocation2 + $0x310] sm:$0xff] }
 0x1f9   :  { %17058 = vmatprep.mubr.msk.f32.mxu0 %vm90_vm1, %v20481_v41  ;;  %v21298_v41 = vld [vmem:[#allocation2 + $0x328] sm:$0xff] }
 0x1fc   :  { %17059 = vmatmul.mubr.msk.f32.gmra.mrb[6].mxu0 %vm90_vm1, %v20487_v63  ;;  %v21304_v63 = vld [vmem:[#allocation2 + $0x330] sm:$0xff] }
 0x1fd   :  { %17061 = vmatprep.mubr.msk.f32.mxu0 %vm90_vm1, %v20489_v38  ;;  %v21272_v38 = vld [vmem:[#allocation2 + $0x2b0] sm:$0xff] }
 0x200   :  { %17062 = vmatmul.mubr.msk.f32.gmra.mrb[8].mxu0 %vm90_vm1, %v20495_v30  ;;  %v21266_v30 = vld [vmem:[#allocation2 + $0x2a8] sm:$0xff] }
 0x201   :  { %17064 = vmatprep.mubr.msk.f32.mxu0 %vm90_vm1, %v20497_v29  ;;  %v21264_v29 = vld [vmem:[#allocation2 + $0x290] sm:$0xff] }
 0x204   :  { %17065 = vmatmul.mubr.msk.f32.gmra.mrb[10].mxu0 %vm90_vm1, %v20503_v25  ;;  %v21259_v25 = vld [vmem:[#allocation2 + $0x288] sm:$0xff] }
 0x205   :  { %17067 = vmatprep.mubr.msk.f32.mxu0 %vm90_vm1, %v20505_v23  ;;  %v2991_v23 = vld [vmem:[#allocation2 + $0x270] sm:$0xff] }
 0x208   :  { %17068 = vmatmul.mubr.msk.f32.gmra.mrb[12].mxu0 %vm90_vm1, %v20511_v22  ;;  %v2990_v22 = vld [vmem:[#allocation2 + $0x268] sm:$0xff] }
 0x209   :  { %17070 = vmatprep.mubr.msk.f32.mxu0 %vm90_vm1, %v20513_v2  ;;  %v21254_v2 = vld [vmem:[#allocation2 + $0x210] sm:$0xff] }
 0x20c   :  { %17071 = vmatmul.mubr.msk.f32.gmra.mrb[14].mxu0 %vm90_vm1, %v20519_v1  ;;  %v21248_v1 = vld [vmem:[#allocation2 + $0x208] sm:$0xff] }
 0x20d   :  { %17073 = vmatprep.mubr.msk.f32.mxu0 %vm90_vm1, %v20521_v0  ;;  %v21246_v0 = vld [vmem:[#allocation2 + $0x1f0] sm:$0xff] }
 0x210   :  { %17074 = vmatmul.mubr.msk.f32.gmra.mrb[16].mxu0 %vm90_vm1, %v20527_v61  ;;  %v21240_v61 = vld [vmem:[#allocation2 + $0x1e8] sm:$0xff] }
 0x211   :  { %17076 = vmatprep.mubr.msk.f32.mxu0 %vm90_vm1, %v20529_v59  ;;  %v21238_v59 = vld [vmem:[#allocation2 + $0x1d0] sm:$0xff] }
 0x214   :  { %17077 = vmatmul.mubr.msk.f32.gmra.mrb[18].mxu0 %vm90_vm1, %v20535_v57  ;;  %v21232_v57 = vld [vmem:[#allocation2 + $0x1c8] sm:$0xff] }
 0x215   :  { %17079 = vmatprep.mubr.msk.f32.mxu0 %vm90_vm1, %v20537_v56  ;;  %v21230_v56 = vld [vmem:[#allocation2 + $0x1b0] sm:$0xff] }
 0x218   :  { %17080 = vmatmul.mubr.msk.f32.gmra.mrb[20].mxu0 %vm90_vm1, %v20543_v55  ;;  %v21224_v55 = vld [vmem:[#allocation2 + $0x1a8] sm:$0xff] }
 0x219   :  { %17082 = vmatprep.mubr.msk.f32.mxu0 %vm90_vm1, %v20545_v53  ;;  %v21222_v53 = vld [vmem:[#allocation2 + $0x190] sm:$0xff] }
 0x21c   :  { %17083 = vmatmul.mubr.msk.f32.gmra.mrb[22].mxu0 %vm90_vm1, %v20551_v52  ;;  %v21216_v52 = vld [vmem:[#allocation2 + $0x188] sm:$0xff] }
 0x21d   :  { %17085 = vmatprep.mubr.msk.f32.mxu0 %vm90_vm1, %v20553_v51  ;;  %v21055_v51 = vld [vmem:[#allocation2 + $0x20f] sm:$0xff] }
 0x220   :  { %17086 = vmatmul.mubr.msk.f32.gmra.mrb[24].mxu0 %vm90_vm1, %v20559_v50  ;;  %v21214_v50 = vld [vmem:[#allocation2 + $0x170] sm:$0xff] }
 0x221   :  { %17088 = vmatprep.mubr.msk.f32.mxu0 %vm90_vm1, %v20561_v49  ;;  %v21208_v49 = vld [vmem:[#allocation2 + $0x168] sm:$0xff] }
 0x224   :  { %17089 = vmatmul.mubr.msk.f32.gmra.mrb[26].mxu0 %vm90_vm1, %v20567_v48  ;;  %v21206_v48 = vld [vmem:[#allocation2 + $0x150] sm:$0xff] }
 0x225   :  { %17091 = vmatprep.mubr.msk.f32.mxu0 %vm90_vm1, %v20569_v47  ;;  %v21200_v47 = vld [vmem:[#allocation2 + $0x148] sm:$0xff] }
 0x228   :  { %17092 = vmatmul.mubr.msk.f32.gmra.mrb[28].mxu0 %vm90_vm1, %v20575_v46  ;;  %v21198_v46 = vld [vmem:[#allocation2 + $0x130] sm:$0xff] }
 0x229   :  { %17094 = vmatprep.mubr.msk.f32.mxu0 %vm90_vm1, %v21049_v9 }
 0x22c   :  { %17095 = vmatmul.mubr.msk.f32.gmra.mrb[30].mxu0 %vm90_vm1, %v21055_v51 }
 0x22d   :  { %17097 = vmatprep.mubr.msk.f32.mxu0 %vm90_vm1, %v20580_v42  ;;  %v21192_v42 = vld [vmem:[#allocation2 + $0x128] sm:$0xff] }
 0x230   :  { %17098 = vmatmul.mubr.msk.f32.gmra.mrb[32].mxu0 %vm90_vm1, %v20585_v40  ;;  %v21190_v40 = vld [vmem:[#allocation2 + $0x110] sm:$0xff] }
 0x231   :  { %17100 = vmatprep.mubr.msk.f32.mxu0 %vm90_vm1, %v20587_v39  ;;  %v21184_v39 = vld [vmem:[#allocation2 + $0x108] sm:$0xff] }
 0x234   :  { %17101 = vmatmul.mubr.msk.f32.gmra.mrb[34].mxu0 %vm90_vm1, %v20593_v37  ;;  %v21182_v37 = vld [vmem:[#allocation2 + $0xf0] sm:$0xff] }
 0x235   :  { %17103 = vmatprep.mubr.msk.f32.mxu0 %vm90_vm1, %v20595_v45  ;;  %v21306_v45 = vld [vmem:[#allocation2 + $0x348] sm:$0xff] }
 0x238   :  { %17104 = vmatmul.mubr.msk.f32.gmra.mrb[36].mxu0 %vm90_vm1, %v20601_v43  ;;  %v21312_v43 = vld [vmem:[#allocation2 + $0x350] sm:$0xff] }
 0x239   :  { %17106 = vmatprep.mubr.msk.f32.mxu0 %vm90_vm1, %v20603_v36  ;;  %v21176_v36 = vld [vmem:[#allocation2 + $0xe8] sm:$0xff] }
 0x23c   :  { %17107 = vmatmul.mubr.msk.f32.gmra.mrb[38].mxu0 %vm90_vm1, %v20609_v35  ;;  %v21174_v35 = vld [vmem:[#allocation2 + $0xd0] sm:$0xff] }
 0x23d   :  { %17109 = vmatprep.mubr.msk.f32.mxu0 %vm90_vm1, %v20611_v34  ;;  %v21168_v34 = vld [vmem:[#allocation2 + $0xc8] sm:$0xff] }
 0x240   :  { %17110 = vmatmul.mubr.msk.f32.gmra.mrb[40].mxu0 %vm90_vm1, %v20617_v33  ;;  %v21166_v33 = vld [vmem:[#allocation2 + $0xb0] sm:$0xff] }
 0x241   :  { %17112 = vmatprep.mubr.msk.f32.mxu0 %vm90_vm1, %v20619_v32  ;;  %v21160_v32 = vld [vmem:[#allocation2 + $0xa8] sm:$0xff] }
 0x244   :  { %17113 = vmatmul.mubr.msk.f32.gmra.mrb[42].mxu0 %vm90_vm1, %v20625_v27  ;;  %v21158_v27 = vld [vmem:[#allocation2 + $0x90] sm:$0xff] }
 0x245   :  { %17115 = vmatprep.mubr.msk.f32.mxu0 %vm90_vm1, %v20627_v26  ;;  %v21152_v26 = vld [vmem:[#allocation2 + $0x88] sm:$0xff] }
 0x248   :  { %17116 = vmatmul.mubr.msk.f32.gmra.mrb[44].mxu0 %vm90_vm1, %v20633_v24  ;;  %v21150_v24 = vld [vmem:[#allocation2 + $0x70] sm:$0xff] }
 0x249   :  { %17118 = vmatprep.mubr.msk.f32.mxu0 %vm90_vm1, %v20635_v21  ;;  %v21142_v21 = vld [vmem:[#allocation2 + $0x68] sm:$0xff] }
 0x24c   :  { %17119 = vmatmul.mubr.msk.f32.gmra.mrb[46].mxu0 %vm90_vm1, %v20641_v20  ;;  %v21140_v20 = vld [vmem:[#allocation2 + $0x50] sm:$0xff] }
 0x24d   :  { %17121 = vmatprep.mubr.msk.f32.mxu0 %vm90_vm1, %v20643_v19  ;;  %v21133_v19 = vld [vmem:[%s26864_s1 + $0x18] sm:$0xf] }
 0x250   :  { %17122 = vmatmul.mubr.msk.f32.gmra.mrb[48].mxu0 %vm90_vm1, %v20649_v18  ;;  %v21128_v18 = vld [vmem:[#allocation2 + $0x48] sm:$0xff] }
 0x251   :  { %17124 = vmatprep.mubr.msk.f32.mxu0 %vm90_vm1, %v20651_v17  ;;  %v27279_v17 = vld [vmem:[#allocation64_spill] sm:$0xff] }
 0x254   :  { %17125 = vmatmul.mubr.msk.f32.gmra.mrb[50].mxu0 %vm90_vm1, %v20657_v16  ;;  %v27280_v16 = vld [vmem:[#allocation65_spill] sm:$0xff] }
 0x255   :  { %17127 = vmatprep.mubr.msk.f32.mxu0 %vm90_vm1, %v20659_v15  ;;  %v27281_v15 = vld [vmem:[#allocation66_spill] sm:$0xff] }
 0x258   :  { %17128 = vmatmul.mubr.msk.f32.gmra.mrb[52].mxu0 %vm90_vm1, %v20665_v14  ;;  %v21117_v14 = vld [vmem:[#allocation2 + $0x447] sm:$0xff] }
 0x259   :  { %17130 = vmatprep.mubr.msk.f32.mxu0 %vm90_vm1, %v20667_v13  ;;  %v27282_v13 = vld [vmem:[#allocation67_spill] sm:$0xff] }
 0x25c   :  { %17131 = vmatmul.mubr.msk.f32.gmra.mrb[54].mxu0 %vm90_vm1, %v20673_v12  ;;  %v2959_v12 = vld [vmem:[#allocation2 + $0x30] sm:$0xff] }
 0x25d   :  { %17133 = vmatprep.mubr.msk.f32.mxu0 %vm90_vm1, %v20675_v11  ;;  %v21123_v11 = vld [vmem:[#allocation2 + $0x44f] sm:$0xff] }
 0x260   :  { %17134 = vmatmul.mubr.msk.f32.gmra.mrb[56].mxu0 %vm90_vm1, %v20681_v10  ;;  %v2958_v10 = vld [vmem:[#allocation2 + $0x28] sm:$0xff] }
 0x261   :  { %17136 = vmatprep.mubr.msk.f32.mxu0 %vm90_vm1, %v27279_v17  ;;  %v21320_v17 = vld [vmem:[#allocation2 + $0x370] sm:$0xff] }
 0x262   :  { %27283 = vst [vmem:[#allocation64_spill] sm:$0xff] %v21320_v17 }
 0x264   :  { %17137 = vmatmul.mubr.msk.f32.gmra.mrb[58].mxu0 %vm90_vm1, %v27280_v16  ;;  %v21322_v16 = vld [vmem:[#allocation2 + $0x388] sm:$0xff] }
 0x265   :  { %17139 = vmatprep.mubr.msk.f32.mxu0 %vm90_vm1, %v27281_v15  ;;  %27284 = vst [vmem:[#allocation65_spill] sm:$0xff] %v21322_v16  ;;  %v21328_v15 = vld [vmem:[#allocation2 + $0x390] sm:$0xff] }
 0x266   :  { %27285 = vst [vmem:[#allocation66_spill] sm:$0xff] %v21328_v15 }
 0x268   :  { %17140 = vmatmul.mubr.msk.f32.gmra.mrb[60].mxu0 %vm90_vm1, %v27282_v13  ;;  %v21330_v13 = vld [vmem:[#allocation2 + $0x3a8] sm:$0xff] }
 0x269   :  { %17142 = vmatprep.mubr.msk.f32.mxu0 %vm90_vm1, %v21117_v14  ;;  %27286 = vst [vmem:[#allocation67_spill] sm:$0xff] %v21330_v13 }
 0x26c   :  { %17143 = vmatmul.mubr.msk.f32.gmra.mrb[62].mxu0 %vm90_vm1, %v21123_v11 }
 0x26d   :  { %17147 = vmatprep.mubr.msk.f32.mxu0 %vm90_vm1, %v2958_v10  ;;  %v21336_v10 = vld [vmem:[#allocation2 + $0x3b0] sm:$0xff] }
 0x26e   :  { %27287 = vst [vmem:[#allocation126_spill] sm:$0xff] %v21336_v10 }
 0x270   :  { %17148 = vmatmul.mubr.msk.f32.vlgmr.msra.gmra.mrb[0].mxu0 %vm90_vm1, %v2959_v12  ;;  %v21338_v12 = vld [vmem:[#allocation2 + $0x3c8] sm:$0xff] }
 0x271   :  { %17244 = vmatpush3.msk.msra.mxu0 %vm569_vm0, %v20987_v5  ;;  %17150 = vmatprep.mubr.msk.f32.mxu0 %vm90_vm1, %v21128_v18  ;;  %v21314_v5 = vld [vmem:[#allocation2 + $0x368] sm:$0xff]  ;;  %27288 = vst [vmem:[#allocation127_spill] sm:$0xff] %v21338_v12 }
 0x272   :  { %17341 = vmatprep.subr.msk.mxu0 %vm569_vm0, %v21133_v19 }
 0x274   :  { %17151 = vmatmul.mubr.msk.f32.gmra.mrb[2].mxu0 %vm90_vm1, %v21140_v20 }
 0x275   :  { %17153 = vmatprep.mubr.msk.f32.mxu0 %vm90_vm1, %v21142_v21 }
 0x278   :  { %17154 = vmatmul.mubr.msk.f32.gmra.mrb[4].mxu0 %vm90_vm1, %v21150_v24 }
 0x279   :  { %17156 = vmatprep.mubr.msk.f32.mxu0 %vm90_vm1, %v21152_v26 }
 0x27c   :  { %17157 = vmatmul.mubr.msk.f32.gmra.mrb[6].mxu0 %vm90_vm1, %v21158_v27 }
 0x27d   :  { %17159 = vmatprep.mubr.msk.f32.mxu0 %vm90_vm1, %v21160_v32 }
 0x280   :  { %17160 = vmatmul.mubr.msk.f32.gmra.mrb[8].mxu0 %vm90_vm1, %v21166_v33 }
 0x281   :  { %17162 = vmatprep.mubr.msk.f32.mxu0 %vm90_vm1, %v21168_v34 }
 0x284   :  { %17163 = vmatmul.mubr.msk.f32.gmra.mrb[10].mxu0 %vm90_vm1, %v21174_v35 }
 0x285   :  { %17165 = vmatprep.mubr.msk.f32.mxu0 %vm90_vm1, %v21176_v36 }
 0x288   :  { %17166 = vmatmul.mubr.msk.f32.gmra.mrb[12].mxu0 %vm90_vm1, %v21182_v37 }
 0x289   :  { %17168 = vmatprep.mubr.msk.f32.mxu0 %vm90_vm1, %v21184_v39 }
 0x28c   :  { %17169 = vmatmul.mubr.msk.f32.gmra.mrb[14].mxu0 %vm90_vm1, %v21190_v40 }
 0x28d   :  { %17171 = vmatprep.mubr.msk.f32.mxu0 %vm90_vm1, %v21192_v42 }
 0x290   :  { %17172 = vmatmul.mubr.msk.f32.gmra.mrb[16].mxu0 %vm90_vm1, %v21198_v46 }
 0x291   :  { %17174 = vmatprep.mubr.msk.f32.mxu0 %vm90_vm1, %v21200_v47 }
 0x294   :  { %17175 = vmatmul.mubr.msk.f32.gmra.mrb[18].mxu0 %vm90_vm1, %v21206_v48 }
 0x295   :  { %17177 = vmatprep.mubr.msk.f32.mxu0 %vm90_vm1, %v21208_v49 }
 0x298   :  { %17178 = vmatmul.mubr.msk.f32.gmra.mrb[20].mxu0 %vm90_vm1, %v21214_v50 }
 0x299   :  { %17180 = vmatprep.mubr.msk.f32.mxu0 %vm90_vm1, %v21216_v52 }
 0x29c   :  { %17181 = vmatmul.mubr.msk.f32.gmra.mrb[22].mxu0 %vm90_vm1, %v21222_v53 }
 0x29d   :  { %17183 = vmatprep.mubr.msk.f32.mxu0 %vm90_vm1, %v21224_v55 }
 0x2a0   :  { %17184 = vmatmul.mubr.msk.f32.gmra.mrb[24].mxu0 %vm90_vm1, %v21230_v56 }
 0x2a1   :  { %17186 = vmatprep.mubr.msk.f32.mxu0 %vm90_vm1, %v21232_v57 }
 0x2a4   :  { %17187 = vmatmul.mubr.msk.f32.gmra.mrb[26].mxu0 %vm90_vm1, %v21238_v59 }
 0x2a5   :  { %17189 = vmatprep.mubr.msk.f32.mxu0 %vm90_vm1, %v21240_v61 }
 0x2a8   :  { %17190 = vmatmul.mubr.msk.f32.gmra.mrb[28].mxu0 %vm90_vm1, %v21246_v0 }
 0x2a9   :  { %17192 = vmatprep.mubr.msk.f32.mxu0 %vm90_vm1, %v21248_v1 }
 0x2ac   :  { %17193 = vmatmul.mubr.msk.f32.gmra.mrb[30].mxu0 %vm90_vm1, %v21254_v2 }
 0x2ad   :  { %17195 = vmatprep.mubr.msk.f32.mxu0 %vm90_vm1, %v2990_v22  ;;  %v21344_v22 = vld [vmem:[#allocation2 + $0x3d0] sm:$0xff] }
 0x2ae   :  { %27289 = vst [vmem:[#allocation128_spill] sm:$0xff] %v21344_v22 }
 0x2b0   :  { %17196 = vmatmul.mubr.msk.f32.gmra.mrb[32].mxu0 %vm90_vm1, %v2991_v23  ;;  %v21346_v23 = vld [vmem:[#allocation2 + $0x3e8] sm:$0xff] }
 0x2b1   :  { %17198 = vmatprep.mubr.msk.f32.mxu0 %vm90_vm1, %v21259_v25  ;;  %27290 = vst [vmem:[#allocation129_spill] sm:$0xff] %v21346_v23 }
 0x2b4   :  { %17199 = vmatmul.mubr.msk.f32.gmra.mrb[34].mxu0 %vm90_vm1, %v21264_v29 }
 0x2b5   :  { %17201 = vmatprep.mubr.msk.f32.mxu0 %vm90_vm1, %v21266_v30 }
 0x2b8   :  { %17202 = vmatmul.mubr.msk.f32.gmra.mrb[36].mxu0 %vm90_vm1, %v21272_v38 }
 0x2b9   :  { %17204 = vmatprep.mubr.msk.f32.mxu0 %vm90_vm1, %v21274_v28 }
 0x2bc   :  { %17205 = vmatmul.mubr.msk.f32.gmra.mrb[38].mxu0 %vm90_vm1, %v21280_v54 }
 0x2bd   :  { %17207 = vmatprep.mubr.msk.f32.mxu0 %vm90_vm1, %v21282_v44 }
 0x2c0   :  { %17208 = vmatmul.mubr.msk.f32.gmra.mrb[40].mxu0 %vm90_vm1, %v21288_v31 }
 0x2c1   :  { %17210 = vmatprep.mubr.msk.f32.mxu0 %vm90_vm1, %v21290_v60 }
 0x2c4   :  { %17211 = vmatmul.mubr.msk.f32.gmra.mrb[42].mxu0 %vm90_vm1, %v21296_v62 }
 0x2c5   :  { %17213 = vmatprep.mubr.msk.f32.mxu0 %vm90_vm1, %v21298_v41 }
 0x2c8   :  { %17214 = vmatmul.mubr.msk.f32.gmra.mrb[44].mxu0 %vm90_vm1, %v21304_v63 }
 0x2c9   :  { %17216 = vmatprep.mubr.msk.f32.mxu0 %vm90_vm1, %v21306_v45 }
 0x2cc   :  { %17217 = vmatmul.mubr.msk.f32.gmra.mrb[46].mxu0 %vm90_vm1, %v21312_v43 }
 0x2cd   :  { %17219 = vmatprep.mubr.msk.f32.mxu0 %vm90_vm1, %v21314_v5 }
 0x2d0   :  { %17220 = vmatmul.mubr.msk.f32.gmra.mrb[48].mxu0 %vm90_vm1, %v21320_v17  ;;  %v27308_v17 = vld [vmem:[#allocation78_spill] sm:$0xff] }
 0x2d1   :  { %17222 = vmatprep.mubr.msk.f32.mxu0 %vm90_vm1, %v21322_v16  ;;  %v27304_v16 = vld [vmem:[#allocation74_spill] sm:$0xff] }
 0x2d4   :  { %17223 = vmatmul.mubr.msk.f32.gmra.mrb[50].mxu0 %vm90_vm1, %v21328_v15  ;;  %v21354_v15 = vld [vmem:[#allocation2 + $0x408] sm:$0xff] }
 0x2d5   :  { %17225 = vmatprep.mubr.msk.f32.mxu0 %vm90_vm1, %v21330_v13  ;;  %v21352_v13 = vld [vmem:[#allocation2 + $0x3f0] sm:$0xff]  ;;  %27292 = vst [vmem:[#allocation131_spill] sm:$0xff] %v21354_v15 }
 0x2d6   :  { %27291 = vst [vmem:[#allocation130_spill] sm:$0xff] %v21352_v13 }
 0x2d8   :  { %17226 = vmatmul.mubr.msk.f32.gmra.mrb[52].mxu0 %vm90_vm1, %v21336_v10  ;;  %v21362_v10 = vld [vmem:[#allocation2 + $0x428] sm:$0xff] }
 0x2d9   :  { %17228 = vmatprep.mubr.msk.f32.mxu0 %vm90_vm1, %v21338_v12  ;;  %v21360_v12 = vld [vmem:[#allocation2 + $0x410] sm:$0xff]  ;;  %27294 = vst [vmem:[#allocation133_spill] sm:$0xff] %v21362_v10 }
 0x2da   :  { %27293 = vst [vmem:[#allocation132_spill] sm:$0xff] %v21360_v12 }
 0x2dc   :  { %17229 = vmatmul.mubr.msk.f32.gmra.mrb[54].mxu0 %vm90_vm1, %v21344_v22  ;;  %v21370_v22 = vld [vmem:[#allocation2 + $0x448] sm:$0xff] }
 0x2dd   :  { %17231 = vmatprep.mubr.msk.f32.mxu0 %vm90_vm1, %v21346_v23  ;;  %v21368_v23 = vld [vmem:[#allocation2 + $0x430] sm:$0xff]  ;;  %27296 = vst [vmem:[#allocation135_spill] sm:$0xff] %v21370_v22 }
 0x2de   :  { %27295 = vst [vmem:[#allocation134_spill] sm:$0xff] %v21368_v23 }
 0x2e0   :  { %17232 = vmatmul.mubr.msk.f32.gmra.mrb[56].mxu0 %vm90_vm1, %v21352_v13  ;;  %v27298_v13 = vld [vmem:[#allocation68_spill] sm:$0xff] }
 0x2e1   :  { %17234 = vmatprep.mubr.msk.f32.mxu0 %vm90_vm1, %v21354_v15  ;;  %v21376_v15 = vld [vmem:[#allocation2 + $0x450] sm:$0xff] }
 0x2e2   :  { %27297 = vst [vmem:[#allocation136_spill] sm:$0xff] %v21376_v15 }
 0x2e4   :  { %17235 = vmatmul.mubr.msk.f32.gmra.mrb[58].mxu0 %vm90_vm1, %v21360_v12  ;;  %v27299_v12 = vld [vmem:[#allocation69_spill] sm:$0xff] }
 0x2e5   :  { %17237 = vmatprep.mubr.msk.f32.mxu0 %vm90_vm1, %v21362_v10  ;;  %v21385_v10 = vld [vmem:[%s26864_s1 + $0x1c] sm:$0xf] }
 0x2e8   :  { %17238 = vmatmul.mubr.msk.f32.gmra.mrb[60].mxu0 %vm90_vm1, %v21368_v23  ;;  %v27303_v23 = vld [vmem:[#allocation73_spill] sm:$0xff] }
 0x2e9   :  { %17240 = vmatprep.mubr.msk.f32.mxu0 %vm90_vm1, %v21370_v22  ;;  %v27300_v22 = vld [vmem:[#allocation70_spill] sm:$0xff] }
 0x2ec   :  { %17241 = vmatmul.mubr.msk.f32.gmra.mrb[62].mxu0 %vm90_vm1, %v21376_v15  ;;  %v27301_v15 = vld [vmem:[#allocation71_spill] sm:$0xff] }
 0x2ed   :  { %17245 = vmatprep.mubr.msk.f32.mxu0 %vm90_vm1, %v27298_v13  ;;  %v27302_v13 = vld [vmem:[#allocation72_spill] sm:$0xff] }
 0x2f0   :  { %17246 = vmatmul.mubr.msk.f32.vlgmr.msra.gmra.mrb[0].mxu0 %vm90_vm1, %v27299_v12  ;;  %v27305_v12 = vld [vmem:[#allocation75_spill] sm:$0xff] }
 0x2f1   :  { %17342 = vmatpush3.msk.msra.mxu0 %vm569_vm0, %v21133_v19  ;;  %17248 = vmatprep.mubr.msk.f32.mxu0 %vm90_vm1, %v27300_v22  ;;  %v27306_v19 = vld [vmem:[#allocation76_spill] sm:$0xff]  ;;  %v27307_v22 = vld [vmem:[#allocation77_spill] sm:$0xff] }
 0x2f2   :  { %17439 = vmatprep.subr.msk.mxu0 %vm569_vm0, %v21385_v10 }
 0x2f4   :  { %17249 = vmatmul.mubr.msk.f32.gmra.mrb[2].mxu0 %vm90_vm1, %v27301_v15  ;;  %v27309_v15 = vld [vmem:[#allocation79_spill] sm:$0xff] }
 0x2f5   :  { %17251 = vmatprep.mubr.msk.f32.mxu0 %vm90_vm1, %v27302_v13  ;;  %v27310_v13 = vld [vmem:[#allocation80_spill] sm:$0xff] }
 0x2f8   :  { %17252 = vmatmul.mubr.msk.f32.gmra.mrb[4].mxu0 %vm90_vm1, %v27303_v23  ;;  %v27311_v23 = vld [vmem:[#allocation81_spill] sm:$0xff] }
 0x2f9   :  { %17254 = vmatprep.mubr.msk.f32.mxu0 %vm90_vm1, %v27304_v16  ;;  %v27312_v16 = vld [vmem:[#allocation82_spill] sm:$0xff] }
 0x2fc   :  { %17255 = vmatmul.mubr.msk.f32.gmra.mrb[6].mxu0 %vm90_vm1, %v27305_v12  ;;  %v27313_v12 = vld [vmem:[#allocation83_spill] sm:$0xff] }
 0x2fd   :  { %17257 = vmatprep.mubr.msk.f32.mxu0 %vm90_vm1, %v27306_v19  ;;  %v27314_v19 = vld [vmem:[#allocation84_spill] sm:$0xff] }
 0x300   :  { %17258 = vmatmul.mubr.msk.f32.gmra.mrb[8].mxu0 %vm90_vm1, %v27307_v22  ;;  %v27315_v22 = vld [vmem:[#allocation85_spill] sm:$0xff] }
 0x301   :  { %17260 = vmatprep.mubr.msk.f32.mxu0 %vm90_vm1, %v27308_v17  ;;  %v27316_v17 = vld [vmem:[#allocation86_spill] sm:$0xff] }
 0x304   :  { %17261 = vmatmul.mubr.msk.f32.gmra.mrb[10].mxu0 %vm90_vm1, %v27309_v15  ;;  %v27317_v15 = vld [vmem:[#allocation87_spill] sm:$0xff] }
 0x305   :  { %17263 = vmatprep.mubr.msk.f32.mxu0 %vm90_vm1, %v27310_v13  ;;  %v27318_v13 = vld [vmem:[#allocation88_spill] sm:$0xff] }
 0x308   :  { %17264 = vmatmul.mubr.msk.f32.gmra.mrb[12].mxu0 %vm90_vm1, %v27311_v23  ;;  %v27319_v23 = vld [vmem:[#allocation89_spill] sm:$0xff] }
 0x309   :  { %17266 = vmatprep.mubr.msk.f32.mxu0 %vm90_vm1, %v27312_v16  ;;  %v27320_v16 = vld [vmem:[#allocation90_spill] sm:$0xff] }
 0x30c   :  { %17267 = vmatmul.mubr.msk.f32.gmra.mrb[14].mxu0 %vm90_vm1, %v27313_v12  ;;  %v27321_v12 = vld [vmem:[#allocation91_spill] sm:$0xff] }
 0x30d   :  { %17269 = vmatprep.mubr.msk.f32.mxu0 %vm90_vm1, %v27314_v19  ;;  %v27322_v19 = vld [vmem:[#allocation92_spill] sm:$0xff] }
 0x310   :  { %17270 = vmatmul.mubr.msk.f32.gmra.mrb[16].mxu0 %vm90_vm1, %v27315_v22  ;;  %v27323_v22 = vld [vmem:[#allocation93_spill] sm:$0xff] }
 0x311   :  { %17272 = vmatprep.mubr.msk.f32.mxu0 %vm90_vm1, %v27316_v17  ;;  %v27324_v17 = vld [vmem:[#allocation94_spill] sm:$0xff] }
 0x314   :  { %17273 = vmatmul.mubr.msk.f32.gmra.mrb[18].mxu0 %vm90_vm1, %v27317_v15  ;;  %v27325_v15 = vld [vmem:[#allocation97_spill] sm:$0xff] }
 0x315   :  { %17275 = vmatprep.mubr.msk.f32.mxu0 %vm90_vm1, %v27318_v13  ;;  %v21447_v13 = vld [vmem:[#allocation2 + $0x209] sm:$0xff] }
 0x318   :  { %17276 = vmatmul.mubr.msk.f32.gmra.mrb[20].mxu0 %vm90_vm1, %v27319_v23  ;;  %v27326_v23 = vld [vmem:[#allocation98_spill] sm:$0xff] }
 0x319   :  { %17278 = vmatprep.mubr.msk.f32.mxu0 %vm90_vm1, %v27320_v16  ;;  %v21453_v16 = vld [vmem:[#allocation2 + $0x211] sm:$0xff] }
 0x31a   :  { %27327 = vst [vmem:[#allocation68_spill] sm:$0xff] %v21453_v16 }
 0x31c   :  { %17279 = vmatmul.mubr.msk.f32.gmra.mrb[22].mxu0 %vm90_vm1, %v27321_v12  ;;  %v27328_v12 = vld [vmem:[#allocation99_spill] sm:$0xff] }
 0x31d   :  { %17281 = vmatprep.mubr.msk.f32.mxu0 %vm90_vm1, %v27322_v19  ;;  %v27329_v19 = vld [vmem:[#allocation100_spill] sm:$0xff] }
 0x320   :  { %17282 = vmatmul.mubr.msk.f32.gmra.mrb[24].mxu0 %vm90_vm1, %v27323_v22  ;;  %v27331_v22 = vld [vmem:[#allocation102_spill] sm:$0xff] }
 0x321   :  { %17284 = vmatprep.mubr.msk.f32.mxu0 %vm90_vm1, %v27324_v17  ;;  %v27332_v17 = vld [vmem:[#allocation103_spill] sm:$0xff] }
 0x324   :  { %17285 = vmatmul.mubr.msk.f32.gmra.mrb[26].mxu0 %vm90_vm1, %v27325_v15  ;;  %v27333_v15 = vld [vmem:[#allocation104_spill] sm:$0xff] }
 0x325   :  { %17287 = vmatprep.mubr.msk.f32.mxu0 %vm90_vm1, %v20836_v3  ;;  %v27330_v3 = vld [vmem:[#allocation101_spill] sm:$0xff] }
 0x328   :  { %17288 = vmatmul.mubr.msk.f32.gmra.mrb[28].mxu0 %vm90_vm1, %v27326_v23  ;;  %v27334_v23 = vld [vmem:[#allocation105_spill] sm:$0xff] }
 0x329   :  { %17290 = vmatprep.mubr.msk.f32.mxu0 %vm90_vm1, %v21447_v13 }
 0x32c   :  { %17291 = vmatmul.mubr.msk.f32.gmra.mrb[30].mxu0 %vm90_vm1, %v21453_v16  ;;  %v27335_v16 = vld [vmem:[#allocation106_spill] sm:$0xff] }
 0x32d   :  { %17293 = vmatprep.mubr.msk.f32.mxu0 %vm90_vm1, %v27328_v12  ;;  %v27336_v12 = vld [vmem:[#allocation107_spill] sm:$0xff] }
 0x330   :  { %17294 = vmatmul.mubr.msk.f32.gmra.mrb[32].mxu0 %vm90_vm1, %v27329_v19  ;;  %v27337_v19 = vld [vmem:[#allocation108_spill] sm:$0xff] }
 0x331   :  { %17296 = vmatprep.mubr.msk.f32.mxu0 %vm90_vm1, %v27330_v3  ;;  %v27338_v3 = vld [vmem:[#allocation109_spill] sm:$0xff] }
 0x334   :  { %17297 = vmatmul.mubr.msk.f32.gmra.mrb[34].mxu0 %vm90_vm1, %v27331_v22  ;;  %v27339_v22 = vld [vmem:[#allocation110_spill] sm:$0xff] }
 0x335   :  { %17299 = vmatprep.mubr.msk.f32.mxu0 %vm90_vm1, %v27332_v17  ;;  %v27340_v17 = vld [vmem:[#allocation111_spill] sm:$0xff] }
 0x338   :  { %17300 = vmatmul.mubr.msk.f32.gmra.mrb[36].mxu0 %vm90_vm1, %v27333_v15  ;;  %v27341_v15 = vld [vmem:[#allocation112_spill] sm:$0xff] }
 0x339   :  { %17302 = vmatprep.mubr.msk.f32.mxu0 %vm90_vm1, %v27334_v23  ;;  %v27342_v23 = vld [vmem:[#allocation113_spill] sm:$0xff] }
 0x33c   :  { %17303 = vmatmul.mubr.msk.f32.gmra.mrb[38].mxu0 %vm90_vm1, %v27335_v16  ;;  %v27343_v16 = vld [vmem:[#allocation114_spill] sm:$0xff] }
 0x33d   :  { %17305 = vmatprep.mubr.msk.f32.mxu0 %vm90_vm1, %v27336_v12  ;;  %v27344_v12 = vld [vmem:[#allocation115_spill] sm:$0xff] }
 0x340   :  { %17306 = vmatmul.mubr.msk.f32.gmra.mrb[40].mxu0 %vm90_vm1, %v27337_v19  ;;  %v27345_v19 = vld [vmem:[#allocation116_spill] sm:$0xff] }
 0x341   :  { %17308 = vmatprep.mubr.msk.f32.mxu0 %vm90_vm1, %v27338_v3  ;;  %v27346_v3 = vld [vmem:[#allocation117_spill] sm:$0xff] }
 0x344   :  { %17309 = vmatmul.mubr.msk.f32.gmra.mrb[42].mxu0 %vm90_vm1, %v27339_v22  ;;  %v27347_v22 = vld [vmem:[#allocation118_spill] sm:$0xff] }
 0x345   :  { %17311 = vmatprep.mubr.msk.f32.mxu0 %vm90_vm1, %v27340_v17  ;;  %v27348_v17 = vld [vmem:[#allocation119_spill] sm:$0xff] }
 0x348   :  { %17312 = vmatmul.mubr.msk.f32.gmra.mrb[44].mxu0 %vm90_vm1, %v27341_v15  ;;  %v27349_v15 = vld [vmem:[#allocation120_spill] sm:$0xff] }
 0x349   :  { %17314 = vmatprep.mubr.msk.f32.mxu0 %vm90_vm1, %v27342_v23  ;;  %v27350_v23 = vld [vmem:[#allocation121_spill] sm:$0xff] }
 0x34c   :  { %17315 = vmatmul.mubr.msk.f32.gmra.mrb[46].mxu0 %vm90_vm1, %v27343_v16  ;;  %v27351_v16 = vld [vmem:[#allocation122_spill] sm:$0xff] }
 0x34d   :  { %17317 = vmatprep.mubr.msk.f32.mxu0 %vm90_vm1, %v27344_v12  ;;  %v27352_v12 = vld [vmem:[#allocation123_spill] sm:$0xff] }
 0x350   :  { %17318 = vmatmul.mubr.msk.f32.gmra.mrb[48].mxu0 %vm90_vm1, %v27345_v19  ;;  %v21515_v19 = vld [vmem:[#allocation2 + $0x449] sm:$0xff] }
 0x351   :  { %17320 = vmatprep.mubr.msk.f32.mxu0 %vm90_vm1, %v27346_v3  ;;  %v21521_v3 = vld [vmem:[#allocation2 + $0x451] sm:$0xff] }
 0x354   :  { %17321 = vmatmul.mubr.msk.f32.gmra.mrb[50].mxu0 %vm90_vm1, %v27347_v22  ;;  %v4383_v22 = vld [vmem:[#allocation2 + $0x87] sm:$0xff] }
 0x355   :  { %17323 = vmatprep.mubr.msk.f32.mxu0 %vm90_vm1, %v27348_v17  ;;  %v4384_v17 = vld [vmem:[#allocation2 + $0x8f] sm:$0xff] }
 0x358   :  { %17324 = vmatmul.mubr.msk.f32.gmra.mrb[52].mxu0 %vm90_vm1, %v27349_v15  ;;  %v4385_v15 = vld [vmem:[#allocation2 + $0xa7] sm:$0xff] }
 0x359   :  { %17326 = vmatprep.mubr.msk.f32.mxu0 %vm90_vm1, %v27350_v23  ;;  %v4386_v23 = vld [vmem:[#allocation2 + $0xaf] sm:$0xff] }
 0x35c   :  { %17327 = vmatmul.mubr.msk.f32.gmra.mrb[54].mxu0 %vm90_vm1, %v27351_v16  ;;  %v4387_v16 = vld [vmem:[#allocation2 + $0xc7] sm:$0xff] }
 0x35d   :  { %17329 = vmatprep.mubr.msk.f32.mxu0 %vm90_vm1, %v27352_v12  ;;  %v4389_v12 = vld [vmem:[#allocation2 + $0xe7] sm:$0xff] }
 0x360   :  { %17330 = vmatmul.mubr.msk.f32.gmra.mrb[56].mxu0 %vm90_vm1, %v20948_v58  ;;  %v4379_v58 = vld [vmem:[#allocation2 + $0x47] sm:$0xff] }
 0x361   :  { %17332 = vmatprep.mubr.msk.f32.mxu0 %vm90_vm1, %v20950_v7  ;;  %v4380_v7 = vld [vmem:[#allocation2 + $0x4f] sm:$0xff] }
 0x364   :  { %17333 = vmatmul.mubr.msk.f32.gmra.mrb[58].mxu0 %vm90_vm1, %v20970_v4  ;;  %v4381_v4 = vld [vmem:[#allocation2 + $0x67] sm:$0xff] }
 0x365   :  { %17335 = vmatprep.mubr.msk.f32.mxu0 %vm90_vm1, %v20972_v6  ;;  %v21529_v6 = vld [vmem:[%s26864_s1 + $0x20] sm:$0xf] }
 0x368   :  { %17336 = vmatmul.mubr.msk.f32.gmra.mrb[60].mxu0 %vm90_vm1, %v20978_v8  ;;  %v4382_v8 = vld [vmem:[#allocation2 + $0x6f] sm:$0xff] }
 0x369   :  { %17338 = vmatprep.mubr.msk.f32.mxu0 %vm90_vm1, %v21515_v19 }
 0x36c   :  { %17339 = vmatmul.mubr.msk.f32.gmra.mrb[62].mxu0 %vm90_vm1, %v21521_v3 }
 0x36d   :  { %17343 = vmatprep.mubr.msk.f32.mxu0 %vm90_vm1, %v4379_v58  ;;  %v4390_v58 = vld [vmem:[#allocation2 + $0xef] sm:$0xff] }
 0x370   :  { %17344 = vmatmul.mubr.msk.f32.vlgmr.msra.gmra.mrb[0].mxu0 %vm90_vm1, %v4380_v7  ;;  %v4391_v7 = vld [vmem:[#allocation2 + $0x107] sm:$0xff] }
 0x371   :  { %17440 = vmatpush3.msk.msra.mxu0 %vm569_vm0, %v21385_v10  ;;  %17346 = vmatprep.mubr.msk.f32.mxu0 %vm90_vm1, %v4381_v4  ;;  %v4388_v10 = vld [vmem:[#allocation2 + $0xcf] sm:$0xff] }
 0x372   :  { %17537 = vmatprep.subr.msk.mxu0 %vm569_vm0, %v21529_v6  ;;  %v4392_v4 = vld [vmem:[#allocation2 + $0x10f] sm:$0xff] }
 0x374   :  { %17347 = vmatmul.mubr.msk.f32.gmra.mrb[2].mxu0 %vm90_vm1, %v4382_v8  ;;  %v4393_v8 = vld [vmem:[#allocation2 + $0x127] sm:$0xff] }
 0x375   :  { %17349 = vmatprep.mubr.msk.f32.mxu0 %vm90_vm1, %v4383_v22  ;;  %v4394_v22 = vld [vmem:[#allocation2 + $0x12f] sm:$0xff] }
 0x378   :  { %17350 = vmatmul.mubr.msk.f32.gmra.mrb[4].mxu0 %vm90_vm1, %v4384_v17  ;;  %v4395_v17 = vld [vmem:[#allocation2 + $0x147] sm:$0xff] }
 0x379   :  { %17352 = vmatprep.mubr.msk.f32.mxu0 %vm90_vm1, %v4385_v15  ;;  %v4396_v15 = vld [vmem:[#allocation2 + $0x14f] sm:$0xff] }
 0x37c   :  { %17353 = vmatmul.mubr.msk.f32.gmra.mrb[6].mxu0 %vm90_vm1, %v4386_v23  ;;  %v4397_v23 = vld [vmem:[#allocation2 + $0x167] sm:$0xff] }
 0x37d   :  { %17355 = vmatprep.mubr.msk.f32.mxu0 %vm90_vm1, %v4387_v16  ;;  %v4398_v16 = vld [vmem:[#allocation2 + $0x16f] sm:$0xff] }
 0x380   :  { %17356 = vmatmul.mubr.msk.f32.gmra.mrb[8].mxu0 %vm90_vm1, %v4388_v10  ;;  %v4399_v10 = vld [vmem:[#allocation2 + $0x187] sm:$0xff] }
 0x381   :  { %17358 = vmatprep.mubr.msk.f32.mxu0 %vm90_vm1, %v4389_v12  ;;  %v4400_v12 = vld [vmem:[#allocation2 + $0x18f] sm:$0xff] }
 0x384   :  { %17359 = vmatmul.mubr.msk.f32.gmra.mrb[10].mxu0 %vm90_vm1, %v4390_v58  ;;  %v4401_v58 = vld [vmem:[#allocation2 + $0x1a7] sm:$0xff] }
 0x385   :  { %17361 = vmatprep.mubr.msk.f32.mxu0 %vm90_vm1, %v4391_v7  ;;  %v4402_v7 = vld [vmem:[#allocation2 + $0x1af] sm:$0xff] }
 0x388   :  { %17362 = vmatmul.mubr.msk.f32.gmra.mrb[12].mxu0 %vm90_vm1, %v4392_v4  ;;  %v4403_v4 = vld [vmem:[#allocation2 + $0x1c7] sm:$0xff] }
 0x389   :  { %17364 = vmatprep.mubr.msk.f32.mxu0 %vm90_vm1, %v4393_v8  ;;  %v4404_v8 = vld [vmem:[#allocation2 + $0x1cf] sm:$0xff] }
 0x38c   :  { %17365 = vmatmul.mubr.msk.f32.gmra.mrb[14].mxu0 %vm90_vm1, %v4394_v22  ;;  %v4405_v22 = vld [vmem:[#allocation2 + $0x1e7] sm:$0xff] }
 0x38d   :  { %17367 = vmatprep.mubr.msk.f32.mxu0 %vm90_vm1, %v4395_v17  ;;  %v4406_v17 = vld [vmem:[#allocation2 + $0x1ef] sm:$0xff] }
 0x390   :  { %17368 = vmatmul.mubr.msk.f32.gmra.mrb[16].mxu0 %vm90_vm1, %v4396_v15  ;;  %v4409_v15 = vld [vmem:[#allocation2 + $0x227] sm:$0xff] }
 0x391   :  { %17370 = vmatprep.mubr.msk.f32.mxu0 %vm90_vm1, %v4397_v23  ;;  %v4410_v23 = vld [vmem:[#allocation2 + $0x22f] sm:$0xff] }
 0x394   :  { %17371 = vmatmul.mubr.msk.f32.gmra.mrb[18].mxu0 %vm90_vm1, %v4398_v16  ;;  %v4411_v16 = vld [vmem:[#allocation2 + $0x287] sm:$0xff] }
 0x395   :  { %17373 = vmatprep.mubr.msk.f32.mxu0 %vm90_vm1, %v4399_v10  ;;  %v4412_v10 = vld [vmem:[#allocation2 + $0x28f] sm:$0xff] }
 0x398   :  { %17374 = vmatmul.mubr.msk.f32.gmra.mrb[20].mxu0 %vm90_vm1, %v4400_v12  ;;  %v4413_v12 = vld [vmem:[#allocation2 + $0x2a7] sm:$0xff] }
 0x399   :  { %17376 = vmatprep.mubr.msk.f32.mxu0 %vm90_vm1, %v4401_v58  ;;  %v4414_v58 = vld [vmem:[#allocation2 + $0x2af] sm:$0xff] }
 0x39c   :  { %17377 = vmatmul.mubr.msk.f32.gmra.mrb[22].mxu0 %vm90_vm1, %v4402_v7  ;;  %v4417_v7 = vld [vmem:[#allocation2 + $0x2e7] sm:$0xff] }
 0x39d   :  { %17379 = vmatprep.mubr.msk.f32.mxu0 %vm90_vm1, %v4403_v4  ;;  %v4418_v4 = vld [vmem:[#allocation2 + $0x2ef] sm:$0xff] }
 0x3a0   :  { %17380 = vmatmul.mubr.msk.f32.gmra.mrb[24].mxu0 %vm90_vm1, %v4404_v8  ;;  %v4419_v8 = vld [vmem:[#allocation2 + $0x307] sm:$0xff] }
 0x3a1   :  { %17382 = vmatprep.mubr.msk.f32.mxu0 %vm90_vm1, %v4405_v22  ;;  %v4420_v22 = vld [vmem:[#allocation2 + $0x30f] sm:$0xff] }
 0x3a4   :  { %17383 = vmatmul.mubr.msk.f32.gmra.mrb[26].mxu0 %vm90_vm1, %v4406_v17  ;;  %v4421_v17 = vld [vmem:[#allocation2 + $0x327] sm:$0xff] }
 0x3a5   :  { %17385 = vmatprep.mubr.msk.f32.mxu0 %vm90_vm1, %v21049_v9  ;;  %v4415_v9 = vld [vmem:[#allocation2 + $0x2c7] sm:$0xff] }
 0x3a8   :  { %17386 = vmatmul.mubr.msk.f32.gmra.mrb[28].mxu0 %vm90_vm1, %v21055_v51  ;;  %v4416_v51 = vld [vmem:[#allocation2 + $0x2cf] sm:$0xff] }
 0x3a9   :  { %17388 = vmatprep.mubr.msk.f32.mxu0 %vm90_vm1, %v4409_v15  ;;  %v4422_v15 = vld [vmem:[#allocation2 + $0x32f] sm:$0xff] }
 0x3ac   :  { %17389 = vmatmul.mubr.msk.f32.gmra.mrb[30].mxu0 %vm90_vm1, %v4410_v23  ;;  %v4423_v23 = vld [vmem:[#allocation2 + $0x347] sm:$0xff] }
 0x3ad   :  { %17391 = vmatprep.mubr.msk.f32.mxu0 %vm90_vm1, %v4411_v16  ;;  %v4424_v16 = vld [vmem:[#allocation2 + $0x34f] sm:$0xff] }
 0x3b0   :  { %17392 = vmatmul.mubr.msk.f32.gmra.mrb[32].mxu0 %vm90_vm1, %v4412_v10  ;;  %v4425_v10 = vld [vmem:[#allocation2 + $0x367] sm:$0xff] }
 0x3b1   :  { %17394 = vmatprep.mubr.msk.f32.mxu0 %vm90_vm1, %v4413_v12  ;;  %v4426_v12 = vld [vmem:[#allocation2 + $0x36f] sm:$0xff] }
 0x3b4   :  { %17395 = vmatmul.mubr.msk.f32.gmra.mrb[34].mxu0 %vm90_vm1, %v4414_v58  ;;  %v4427_v58 = vld [vmem:[#allocation2 + $0x387] sm:$0xff] }
 0x3b5   :  { %17397 = vmatprep.mubr.msk.f32.mxu0 %vm90_vm1, %v4415_v9  ;;  %v4428_v9 = vld [vmem:[#allocation2 + $0x38f] sm:$0xff] }
 0x3b8   :  { %17398 = vmatmul.mubr.msk.f32.gmra.mrb[36].mxu0 %vm90_vm1, %v4416_v51  ;;  %v4429_v51 = vld [vmem:[#allocation2 + $0x3a7] sm:$0xff] }
 0x3b9   :  { %17400 = vmatprep.mubr.msk.f32.mxu0 %vm90_vm1, %v4417_v7  ;;  %v4430_v7 = vld [vmem:[#allocation2 + $0x3af] sm:$0xff] }
 0x3bc   :  { %17401 = vmatmul.mubr.msk.f32.gmra.mrb[38].mxu0 %vm90_vm1, %v4418_v4  ;;  %v4431_v4 = vld [vmem:[#allocation2 + $0x3c7] sm:$0xff] }
 0x3bd   :  { %17403 = vmatprep.mubr.msk.f32.mxu0 %vm90_vm1, %v4419_v8  ;;  %v4432_v8 = vld [vmem:[#allocation2 + $0x3cf] sm:$0xff] }
 0x3c0   :  { %17404 = vmatmul.mubr.msk.f32.gmra.mrb[40].mxu0 %vm90_vm1, %v4420_v22  ;;  %v4433_v22 = vld [vmem:[#allocation2 + $0x3e7] sm:$0xff] }
 0x3c1   :  { %17406 = vmatprep.mubr.msk.f32.mxu0 %vm90_vm1, %v4421_v17  ;;  %v4434_v17 = vld [vmem:[#allocation2 + $0x3ef] sm:$0xff] }
 0x3c4   :  { %17407 = vmatmul.mubr.msk.f32.gmra.mrb[42].mxu0 %vm90_vm1, %v4422_v15  ;;  %v4435_v15 = vld [vmem:[#allocation2 + $0x407] sm:$0xff] }
 0x3c5   :  { %17409 = vmatprep.mubr.msk.f32.mxu0 %vm90_vm1, %v4423_v23  ;;  %v4436_v23 = vld [vmem:[#allocation2 + $0x40f] sm:$0xff] }
 0x3c8   :  { %17410 = vmatmul.mubr.msk.f32.gmra.mrb[44].mxu0 %vm90_vm1, %v4424_v16  ;;  %v4437_v16 = vld [vmem:[#allocation2 + $0x427] sm:$0xff] }
 0x3c9   :  { %17412 = vmatprep.mubr.msk.f32.mxu0 %vm90_vm1, %v4425_v10  ;;  %v4438_v10 = vld [vmem:[#allocation2 + $0x42f] sm:$0xff] }
 0x3cc   :  { %17413 = vmatmul.mubr.msk.f32.gmra.mrb[46].mxu0 %vm90_vm1, %v4426_v12  ;;  %v4441_v12 = vld [vmem:[#allocation2 + $0x467] sm:$0xff] }
 0x3cd   :  { %17415 = vmatprep.mubr.msk.f32.mxu0 %vm90_vm1, %v4427_v58  ;;  %v4442_v58 = vld [vmem:[#allocation2 + $0x46f] sm:$0xff] }
 0x3d0   :  { %17416 = vmatmul.mubr.msk.f32.gmra.mrb[48].mxu0 %vm90_vm1, %v4428_v9  ;;  %v27368_v9 = vld [vmem:[#allocation68_spill] sm:$0xff] }
 0x3d1   :  { %17418 = vmatprep.mubr.msk.f32.mxu0 %vm90_vm1, %v4429_v51  ;;  %v5830_v51 = vld [vmem:[#allocation2 + $0x231] sm:$0xff] }
 0x3d4   :  { %17419 = vmatmul.mubr.msk.f32.gmra.mrb[50].mxu0 %vm90_vm1, %v4430_v7  ;;  %v5831_v7 = vld [vmem:[#allocation2 + $0x289] sm:$0xff] }
 0x3d5   :  { %17421 = vmatprep.mubr.msk.f32.mxu0 %vm90_vm1, %v4431_v4  ;;  %v5832_v4 = vld [vmem:[#allocation2 + $0x291] sm:$0xff] }
 0x3d8   :  { %17422 = vmatmul.mubr.msk.f32.gmra.mrb[52].mxu0 %vm90_vm1, %v4432_v8  ;;  %v5833_v8 = vld [vmem:[#allocation2 + $0x2a9] sm:$0xff] }
 0x3d9   :  { %17424 = vmatprep.mubr.msk.f32.mxu0 %vm90_vm1, %v4433_v22  ;;  %v5834_v22 = vld [vmem:[#allocation2 + $0x2b1] sm:$0xff] }
 0x3dc   :  { %17425 = vmatmul.mubr.msk.f32.gmra.mrb[54].mxu0 %vm90_vm1, %v4434_v17  ;;  %v5836_v17 = vld [vmem:[#allocation2 + $0x2d1] sm:$0xff] }
 0x3dd   :  { %17427 = vmatprep.mubr.msk.f32.mxu0 %vm90_vm1, %v4435_v15  ;;  %v5837_v15 = vld [vmem:[#allocation2 + $0x2e9] sm:$0xff] }
 0x3e0   :  { %17428 = vmatmul.mubr.msk.f32.gmra.mrb[56].mxu0 %vm90_vm1, %v4436_v23  ;;  %v5838_v23 = vld [vmem:[#allocation2 + $0x2f1] sm:$0xff] }
 0x3e1   :  { %17430 = vmatprep.mubr.msk.f32.mxu0 %vm90_vm1, %v4437_v16  ;;  %v5839_v16 = vld [vmem:[#allocation2 + $0x309] sm:$0xff] }
 0x3e4   :  { %17431 = vmatmul.mubr.msk.f32.gmra.mrb[58].mxu0 %vm90_vm1, %v4438_v10  ;;  %v5840_v10 = vld [vmem:[#allocation2 + $0x311] sm:$0xff] }
 0x3e5   :  { %17433 = vmatprep.mubr.msk.f32.mxu0 %vm90_vm1, %v21117_v14  ;;  %v5119_v14 = vld [vmem:[#allocation2 + $0x228] sm:$0xff] }
 0x3e8   :  { %17434 = vmatmul.mubr.msk.f32.gmra.mrb[60].mxu0 %vm90_vm1, %v21123_v11  ;;  %v5120_v11 = vld [vmem:[#allocation2 + $0x230] sm:$0xff] }
 0x3e9   :  { %17436 = vmatprep.mubr.msk.f32.mxu0 %vm90_vm1, %v4441_v12  ;;  %v5841_v12 = vld [vmem:[#allocation2 + $0x329] sm:$0xff] }
 0x3ec   :  { %17437 = vmatmul.mubr.msk.f32.gmra.mrb[62].mxu0 %vm90_vm1, %v4442_v58  ;;  %v5842_v58 = vld [vmem:[#allocation2 + $0x331] sm:$0xff] }
 0x3ed   :  { %17441 = vmatprep.mubr.msk.f32.mxu0 %vm90_vm1, %v21128_v18  ;;  %v27353_v18 = vld [vmem:[#allocation64_spill] sm:$0xff] }
 0x3f0   :  { %17442 = vmatmul.mubr.msk.f32.vlgmr.msra.gmra.mrb[0].mxu0 %vm90_vm1, %v21140_v20  ;;  %v27354_v20 = vld [vmem:[#allocation65_spill] sm:$0xff] }
 0x3f1   :  { %17538 = vmatpush3.msk.msra.mxu0 %vm569_vm0, %v21529_v6  ;;  %17444 = vmatprep.mubr.msk.f32.mxu0 %vm90_vm1, %v21142_v21  ;;  %v27355_v21 = vld [vmem:[#allocation66_spill] sm:$0xff] }
 0x3f2   :  { %v5829_v6 = vld [vmem:[#allocation2 + $0x229] sm:$0xff] }
 0x3f4   :  { %17445 = vmatmul.mubr.msk.f32.gmra.mrb[2].mxu0 %vm90_vm1, %v21150_v24  ;;  %v27356_v24 = vld [vmem:[#allocation67_spill] sm:$0xff] }
 0x3f5   :  { %17447 = vmatprep.mubr.msk.f32.mxu0 %vm90_vm1, %v21152_v26  ;;  %v27357_v26 = vld [vmem:[#allocation126_spill] sm:$0xff] }
 0x3f8   :  { %17448 = vmatmul.mubr.msk.f32.gmra.mrb[4].mxu0 %vm90_vm1, %v21158_v27  ;;  %v27358_v27 = vld [vmem:[#allocation127_spill] sm:$0xff] }
 0x3f9   :  { %17450 = vmatprep.mubr.msk.f32.mxu0 %vm90_vm1, %v21160_v32  ;;  %v27359_v32 = vld [vmem:[#allocation128_spill] sm:$0xff] }
 0x3fc   :  { %17451 = vmatmul.mubr.msk.f32.gmra.mrb[6].mxu0 %vm90_vm1, %v21166_v33  ;;  %v27360_v33 = vld [vmem:[#allocation129_spill] sm:$0xff] }
 0x3fd   :  { %17453 = vmatprep.mubr.msk.f32.mxu0 %vm90_vm1, %v21168_v34  ;;  %v27361_v34 = vld [vmem:[#allocation130_spill] sm:$0xff] }
 0x400   :  { %17454 = vmatmul.mubr.msk.f32.gmra.mrb[8].mxu0 %vm90_vm1, %v21174_v35  ;;  %v27362_v35 = vld [vmem:[#allocation131_spill] sm:$0xff] }
 0x401   :  { %17456 = vmatprep.mubr.msk.f32.mxu0 %vm90_vm1, %v21176_v36  ;;  %v27363_v36 = vld [vmem:[#allocation132_spill] sm:$0xff] }
 0x404   :  { %17457 = vmatmul.mubr.msk.f32.gmra.mrb[10].mxu0 %vm90_vm1, %v21182_v37  ;;  %v27364_v37 = vld [vmem:[#allocation133_spill] sm:$0xff] }
 0x405   :  { %17459 = vmatprep.mubr.msk.f32.mxu0 %vm90_vm1, %v21184_v39  ;;  %v27365_v39 = vld [vmem:[#allocation134_spill] sm:$0xff] }
 0x408   :  { %17460 = vmatmul.mubr.msk.f32.gmra.mrb[12].mxu0 %vm90_vm1, %v21190_v40  ;;  %v27366_v40 = vld [vmem:[#allocation135_spill] sm:$0xff] }
 0x409   :  { %17462 = vmatprep.mubr.msk.f32.mxu0 %vm90_vm1, %v21192_v42  ;;  %v5151_v42 = vld [vmem:[#allocation2 + $0x468] sm:$0xff] }
 0x40c   :  { %17463 = vmatmul.mubr.msk.f32.gmra.mrb[14].mxu0 %vm90_vm1, %v21198_v46  ;;  %v27367_v46 = vld [vmem:[#allocation136_spill] sm:$0xff] }
 0x40d   :  { %17465 = vmatprep.mubr.msk.f32.mxu0 %vm90_vm1, %v21200_v47  ;;  %v5152_v47 = vld [vmem:[#allocation2 + $0x470] sm:$0xff] }
 0x410   :  { %17466 = vmatmul.mubr.msk.f32.gmra.mrb[16].mxu0 %vm90_vm1, %v21206_v48  ;;  %v5799_v48 = vld [vmem:[#allocation2 + $0x49] sm:$0xff] }
 0x411   :  { %17468 = vmatprep.mubr.msk.f32.mxu0 %vm90_vm1, %v21208_v49  ;;  %v5800_v49 = vld [vmem:[#allocation2 + $0x51] sm:$0xff] }
 0x414   :  { %17469 = vmatmul.mubr.msk.f32.gmra.mrb[18].mxu0 %vm90_vm1, %v21214_v50  ;;  %v5801_v50 = vld [vmem:[#allocation2 + $0x69] sm:$0xff] }
 0x415   :  { %17471 = vmatprep.mubr.msk.f32.mxu0 %vm90_vm1, %v21216_v52  ;;  %v5802_v52 = vld [vmem:[#allocation2 + $0x71] sm:$0xff] }
 0x418   :  { %17472 = vmatmul.mubr.msk.f32.gmra.mrb[20].mxu0 %vm90_vm1, %v21222_v53  ;;  %v5803_v53 = vld [vmem:[#allocation2 + $0x89] sm:$0xff] }
 0x419   :  { %17474 = vmatprep.mubr.msk.f32.mxu0 %vm90_vm1, %v21224_v55  ;;  %v5804_v55 = vld [vmem:[#allocation2 + $0x91] sm:$0xff] }
 0x41c   :  { %17475 = vmatmul.mubr.msk.f32.gmra.mrb[22].mxu0 %vm90_vm1, %v21230_v56  ;;  %v5805_v56 = vld [vmem:[#allocation2 + $0xa9] sm:$0xff] }
 0x41d   :  { %17477 = vmatprep.mubr.msk.f32.mxu0 %vm90_vm1, %v21232_v57  ;;  %v5806_v57 = vld [vmem:[#allocation2 + $0xb1] sm:$0xff] }
 0x420   :  { %17478 = vmatmul.mubr.msk.f32.gmra.mrb[24].mxu0 %vm90_vm1, %v21238_v59  ;;  %v5807_v59 = vld [vmem:[#allocation2 + $0xc9] sm:$0xff] }
 0x421   :  { %17480 = vmatprep.mubr.msk.f32.mxu0 %vm90_vm1, %v21240_v61  ;;  %v5808_v61 = vld [vmem:[#allocation2 + $0xd1] sm:$0xff] }
 0x424   :  { %17481 = vmatmul.mubr.msk.f32.gmra.mrb[26].mxu0 %vm90_vm1, %v21246_v0  ;;  %v5809_v0 = vld [vmem:[#allocation2 + $0xe9] sm:$0xff] }
 0x425   :  { %17483 = vmatprep.mubr.msk.f32.mxu0 %vm90_vm1, %v21248_v1  ;;  %v5810_v1 = vld [vmem:[#allocation2 + $0xf1] sm:$0xff] }
 0x428   :  { %17484 = vmatmul.mubr.msk.f32.gmra.mrb[28].mxu0 %vm90_vm1, %v21254_v2  ;;  %v5811_v2 = vld [vmem:[#allocation2 + $0x109] sm:$0xff] }
 0x429   :  { %17486 = vmatprep.mubr.msk.f32.mxu0 %vm90_vm1, %v5119_v14  ;;  %v5843_v14 = vld [vmem:[#allocation2 + $0x349] sm:$0xff] }
 0x42c   :  { %17487 = vmatmul.mubr.msk.f32.gmra.mrb[30].mxu0 %vm90_vm1, %v5120_v11  ;;  %v5844_v11 = vld [vmem:[#allocation2 + $0x351] sm:$0xff] }
 0x42d   :  { %17489 = vmatprep.mubr.msk.f32.mxu0 %vm90_vm1, %v21259_v25  ;;  %v5812_v25 = vld [vmem:[#allocation2 + $0x111] sm:$0xff] }
 0x430   :  { %17490 = vmatmul.mubr.msk.f32.gmra.mrb[32].mxu0 %vm90_vm1, %v21264_v29  ;;  %v5813_v29 = vld [vmem:[#allocation2 + $0x129] sm:$0xff] }
 0x431   :  { %17492 = vmatprep.mubr.msk.f32.mxu0 %vm90_vm1, %v21266_v30  ;;  %v5814_v30 = vld [vmem:[#allocation2 + $0x131] sm:$0xff] }
 0x434   :  { %17493 = vmatmul.mubr.msk.f32.gmra.mrb[34].mxu0 %vm90_vm1, %v21272_v38  ;;  %v5815_v38 = vld [vmem:[#allocation2 + $0x149] sm:$0xff] }
 0x435   :  { %17495 = vmatprep.mubr.msk.f32.mxu0 %vm90_vm1, %v21274_v28  ;;  %v5816_v28 = vld [vmem:[#allocation2 + $0x151] sm:$0xff] }
 0x438   :  { %17496 = vmatmul.mubr.msk.f32.gmra.mrb[36].mxu0 %vm90_vm1, %v21280_v54  ;;  %v5817_v54 = vld [vmem:[#allocation2 + $0x169] sm:$0xff] }
 0x439   :  { %17498 = vmatprep.mubr.msk.f32.mxu0 %vm90_vm1, %v21282_v44  ;;  %v5818_v44 = vld [vmem:[#allocation2 + $0x171] sm:$0xff] }
 0x43c   :  { %17499 = vmatmul.mubr.msk.f32.gmra.mrb[38].mxu0 %vm90_vm1, %v21288_v31  ;;  %v5819_v31 = vld [vmem:[#allocation2 + $0x189] sm:$0xff] }
 0x43d   :  { %17501 = vmatprep.mubr.msk.f32.mxu0 %vm90_vm1, %v21290_v60  ;;  %v5820_v60 = vld [vmem:[#allocation2 + $0x191] sm:$0xff] }
 0x440   :  { %17502 = vmatmul.mubr.msk.f32.gmra.mrb[40].mxu0 %vm90_vm1, %v21296_v62  ;;  %v5821_v62 = vld [vmem:[#allocation2 + $0x1a9] sm:$0xff] }
 0x441   :  { %17504 = vmatprep.mubr.msk.f32.mxu0 %vm90_vm1, %v21298_v41  ;;  %v5822_v41 = vld [vmem:[#allocation2 + $0x1b1] sm:$0xff] }
 0x444   :  { %17505 = vmatmul.mubr.msk.f32.gmra.mrb[42].mxu0 %vm90_vm1, %v21304_v63  ;;  %v5823_v63 = vld [vmem:[#allocation2 + $0x1c9] sm:$0xff] }
 0x445   :  { %17507 = vmatprep.mubr.msk.f32.mxu0 %vm90_vm1, %v21306_v45  ;;  %v5824_v45 = vld [vmem:[#allocation2 + $0x1d1] sm:$0xff] }
 0x448   :  { %17508 = vmatmul.mubr.msk.f32.gmra.mrb[44].mxu0 %vm90_vm1, %v21312_v43  ;;  %v5825_v43 = vld [vmem:[#allocation2 + $0x1e9] sm:$0xff] }
 0x449   :  { %17510 = vmatprep.mubr.msk.f32.mxu0 %vm90_vm1, %v21314_v5  ;;  %v5826_v5 = vld [vmem:[#allocation2 + $0x1f1] sm:$0xff] }
 0x44c   :  { %17511 = vmatmul.mubr.msk.f32.gmra.mrb[46].mxu0 %vm90_vm1, %v27353_v18  ;;  %v5845_v18 = vld [vmem:[#allocation2 + $0x369] sm:$0xff] }
 0x44d   :  { %17513 = vmatprep.mubr.msk.f32.mxu0 %vm90_vm1, %v27354_v20  ;;  %v5846_v20 = vld [vmem:[#allocation2 + $0x371] sm:$0xff] }
 0x450   :  { %17514 = vmatmul.mubr.msk.f32.gmra.mrb[48].mxu0 %vm90_vm1, %v27355_v21  ;;  %v5847_v21 = vld [vmem:[#allocation2 + $0x389] sm:$0xff] }
 0x451   :  { %17516 = vmatprep.mubr.msk.f32.mxu0 %vm90_vm1, %v27356_v24  ;;  %v5848_v24 = vld [vmem:[#allocation2 + $0x391] sm:$0xff] }
 0x454   :  { %17517 = vmatmul.mubr.msk.f32.gmra.mrb[50].mxu0 %vm90_vm1, %v27357_v26  ;;  %v5849_v26 = vld [vmem:[#allocation2 + $0x3a9] sm:$0xff] }
 0x455   :  { %17519 = vmatprep.mubr.msk.f32.mxu0 %vm90_vm1, %v27358_v27  ;;  %v5850_v27 = vld [vmem:[#allocation2 + $0x3b1] sm:$0xff] }
 0x458   :  { %17520 = vmatmul.mubr.msk.f32.gmra.mrb[52].mxu0 %vm90_vm1, %v27359_v32  ;;  %v5851_v32 = vld [vmem:[#allocation2 + $0x3c9] sm:$0xff] }
 0x459   :  { %17522 = vmatprep.mubr.msk.f32.mxu0 %vm90_vm1, %v27360_v33  ;;  %v5852_v33 = vld [vmem:[#allocation2 + $0x3d1] sm:$0xff] }
 0x45c   :  { %17523 = vmatmul.mubr.msk.f32.gmra.mrb[54].mxu0 %vm90_vm1, %v27361_v34  ;;  %v5853_v34 = vld [vmem:[#allocation2 + $0x3e9] sm:$0xff] }
 0x45d   :  { %17525 = vmatprep.mubr.msk.f32.mxu0 %vm90_vm1, %v27362_v35  ;;  %v5854_v35 = vld [vmem:[#allocation2 + $0x3f1] sm:$0xff] }
 0x460   :  { %17526 = vmatmul.mubr.msk.f32.gmra.mrb[56].mxu0 %vm90_vm1, %v27363_v36  ;;  %v5855_v36 = vld [vmem:[#allocation2 + $0x409] sm:$0xff] }
 0x461   :  { %17528 = vmatprep.mubr.msk.f32.mxu0 %vm90_vm1, %v27364_v37  ;;  %v5856_v37 = vld [vmem:[#allocation2 + $0x411] sm:$0xff] }
 0x464   :  { %17529 = vmatmul.mubr.msk.f32.gmra.mrb[58].mxu0 %vm90_vm1, %v27365_v39  ;;  %v5857_v39 = vld [vmem:[#allocation2 + $0x429] sm:$0xff] }
 0x465   :  { %17531 = vmatprep.mubr.msk.f32.mxu0 %vm90_vm1, %v27366_v40  ;;  %v5858_v40 = vld [vmem:[#allocation2 + $0x431] sm:$0xff] }
 0x468   :  { %17532 = vmatmul.mubr.msk.f32.gmra.mrb[60].mxu0 %vm90_vm1, %v27367_v46  ;;  %v5862_v46 = vld [vmem:[#allocation2 + $0x471] sm:$0xff] }
 0x469   :  { %17534 = vmatprep.mubr.msk.f32.mxu0 %vm90_vm1, %v5151_v42  ;;  %v5861_v42 = vld [vmem:[#allocation2 + $0x469] sm:$0xff] }
 0x46c   :  { %17535 = vmatmul.mubr.msk.f32.gmra.mrb[62].mxu0 %vm90_vm1, %v5152_v47 }
 0x46d   :  { %17539 = vmatprep.mubr.msk.f32.mxu0 %vm90_vm1, %v5799_v48 }
 0x470   :  { %17540 = vmatmul.mubr.msk.f32.vlgmr.msra.gmra.mrb[0].mxu0 %vm90_vm1, %v5800_v49 }
 0x471   :  { %17542 = vmatprep.mubr.msk.f32.mxu0 %vm90_vm1, %v5801_v50 }
 0x474   :  { %17543 = vmatmul.mubr.msk.f32.gmra.mrb[2].mxu0 %vm90_vm1, %v5802_v52 }
 0x475   :  { %17545 = vmatprep.mubr.msk.f32.mxu0 %vm90_vm1, %v5803_v53 }
 0x478   :  { %17546 = vmatmul.mubr.msk.f32.gmra.mrb[4].mxu0 %vm90_vm1, %v5804_v55 }
 0x479   :  { %17548 = vmatprep.mubr.msk.f32.mxu0 %vm90_vm1, %v5805_v56 }
 0x47c   :  { %17549 = vmatmul.mubr.msk.f32.gmra.mrb[6].mxu0 %vm90_vm1, %v5806_v57 }
 0x47d   :  { %17551 = vmatprep.mubr.msk.f32.mxu0 %vm90_vm1, %v5807_v59 }
 0x480   :  { %17552 = vmatmul.mubr.msk.f32.gmra.mrb[8].mxu0 %vm90_vm1, %v5808_v61 }
 0x481   :  { %17554 = vmatprep.mubr.msk.f32.mxu0 %vm90_vm1, %v5809_v0 }
 0x484   :  { %17555 = vmatmul.mubr.msk.f32.gmra.mrb[10].mxu0 %vm90_vm1, %v5810_v1 }
 0x485   :  { %17557 = vmatprep.mubr.msk.f32.mxu0 %vm90_vm1, %v5811_v2 }
 0x488   :  { %17558 = vmatmul.mubr.msk.f32.gmra.mrb[12].mxu0 %vm90_vm1, %v5812_v25 }
 0x489   :  { %17560 = vmatprep.mubr.msk.f32.mxu0 %vm90_vm1, %v5813_v29 }
 0x48c   :  { %17561 = vmatmul.mubr.msk.f32.gmra.mrb[14].mxu0 %vm90_vm1, %v5814_v30 }
 0x48d   :  { %17563 = vmatprep.mubr.msk.f32.mxu0 %vm90_vm1, %v5815_v38 }
 0x490   :  { %17564 = vmatmul.mubr.msk.f32.gmra.mrb[16].mxu0 %vm90_vm1, %v5816_v28 }
 0x491   :  { %17566 = vmatprep.mubr.msk.f32.mxu0 %vm90_vm1, %v5817_v54 }
 0x494   :  { %17567 = vmatmul.mubr.msk.f32.gmra.mrb[18].mxu0 %vm90_vm1, %v5818_v44 }
 0x495   :  { %17569 = vmatprep.mubr.msk.f32.mxu0 %vm90_vm1, %v5819_v31 }
 0x498   :  { %17570 = vmatmul.mubr.msk.f32.gmra.mrb[20].mxu0 %vm90_vm1, %v5820_v60 }
 0x499   :  { %17572 = vmatprep.mubr.msk.f32.mxu0 %vm90_vm1, %v5821_v62 }
 0x49c   :  { %17573 = vmatmul.mubr.msk.f32.gmra.mrb[22].mxu0 %vm90_vm1, %v5822_v41 }
 0x49d   :  { %17575 = vmatprep.mubr.msk.f32.mxu0 %vm90_vm1, %v5823_v63 }
 0x4a0   :  { %17576 = vmatmul.mubr.msk.f32.gmra.mrb[24].mxu0 %vm90_vm1, %v5824_v45 }
 0x4a1   :  { %17578 = vmatprep.mubr.msk.f32.mxu0 %vm90_vm1, %v5825_v43 }
 0x4a4   :  { %17579 = vmatmul.mubr.msk.f32.gmra.mrb[26].mxu0 %vm90_vm1, %v5826_v5 }
 0x4a5   :  { %17581 = vmatprep.mubr.msk.f32.mxu0 %vm90_vm1, %v21447_v13  ;;  %v5835_v13 = vld [vmem:[#allocation2 + $0x2c9] sm:$0xff] }
 0x4a8   :  { %17582 = vmatmul.mubr.msk.f32.gmra.mrb[28].mxu0 %vm90_vm1, %v27368_v9 }
 0x4a9   :  { %17584 = vmatprep.mubr.msk.f32.mxu0 %vm90_vm1, %v5829_v6 }
 0x4ac   :  { %17585 = vmatmul.mubr.msk.f32.gmra.mrb[30].mxu0 %vm90_vm1, %v5830_v51 }
 0x4ad   :  { %17587 = vmatprep.mubr.msk.f32.mxu0 %vm90_vm1, %v5831_v7 }
 0x4b0   :  { %17588 = vmatmul.mubr.msk.f32.gmra.mrb[32].mxu0 %vm90_vm1, %v5832_v4 }
 0x4b1   :  { %17590 = vmatprep.mubr.msk.f32.mxu0 %vm90_vm1, %v5833_v8 }
 0x4b4   :  { %17591 = vmatmul.mubr.msk.f32.gmra.mrb[34].mxu0 %vm90_vm1, %v5834_v22 }
 0x4b5   :  { %17593 = vmatprep.mubr.msk.f32.mxu0 %vm90_vm1, %v5835_v13 }
 0x4b8   :  { %17594 = vmatmul.mubr.msk.f32.gmra.mrb[36].mxu0 %vm90_vm1, %v5836_v17 }
 0x4b9   :  { %17596 = vmatprep.mubr.msk.f32.mxu0 %vm90_vm1, %v5837_v15 }
 0x4bc   :  { %17597 = vmatmul.mubr.msk.f32.gmra.mrb[38].mxu0 %vm90_vm1, %v5838_v23 }
 0x4bd   :  { %17599 = vmatprep.mubr.msk.f32.mxu0 %vm90_vm1, %v5839_v16 }
 0x4c0   :  { %17600 = vmatmul.mubr.msk.f32.gmra.mrb[40].mxu0 %vm90_vm1, %v5840_v10 }
 0x4c1   :  { %17602 = vmatprep.mubr.msk.f32.mxu0 %vm90_vm1, %v5841_v12 }
 0x4c4   :  { %17603 = vmatmul.mubr.msk.f32.gmra.mrb[42].mxu0 %vm90_vm1, %v5842_v58 }
 0x4c5   :  { %17605 = vmatprep.mubr.msk.f32.mxu0 %vm90_vm1, %v5843_v14 }
 0x4c8   :  { %17606 = vmatmul.mubr.msk.f32.gmra.mrb[44].mxu0 %vm90_vm1, %v5844_v11 }
 0x4c9   :  { %17608 = vmatprep.mubr.msk.f32.mxu0 %vm90_vm1, %v5845_v18 }
 0x4cc   :  { %17609 = vmatmul.mubr.msk.f32.gmra.mrb[46].mxu0 %vm90_vm1, %v5846_v20 }
 0x4cd   :  { %17611 = vmatprep.mubr.msk.f32.mxu0 %vm90_vm1, %v5847_v21 }
 0x4d0   :  { %17612 = vmatmul.mubr.msk.f32.gmra.mrb[48].mxu0 %vm90_vm1, %v5848_v24 }
 0x4d1   :  { %17614 = vmatprep.mubr.msk.f32.mxu0 %vm90_vm1, %v5849_v26 }
 0x4d4   :  { %17615 = vmatmul.mubr.msk.f32.gmra.mrb[50].mxu0 %vm90_vm1, %v5850_v27 }
 0x4d5   :  { %17617 = vmatprep.mubr.msk.f32.mxu0 %vm90_vm1, %v5851_v32 }
 0x4d8   :  { %17618 = vmatmul.mubr.msk.f32.gmra.mrb[52].mxu0 %vm90_vm1, %v5852_v33 }
 0x4d9   :  { %17620 = vmatprep.mubr.msk.f32.mxu0 %vm90_vm1, %v5853_v34 }
 0x4dc   :  { %17621 = vmatmul.mubr.msk.f32.gmra.mrb[54].mxu0 %vm90_vm1, %v5854_v35 }
 0x4dd   :  { %17623 = vmatprep.mubr.msk.f32.mxu0 %vm90_vm1, %v5855_v36 }
 0x4e0   :  { %17624 = vmatmul.mubr.msk.f32.gmra.mrb[56].mxu0 %vm90_vm1, %v5856_v37 }
 0x4e1   :  { %17626 = vmatprep.mubr.msk.f32.mxu0 %vm90_vm1, %v5857_v39 }
 0x4e4   :  { %17627 = vmatmul.mubr.msk.f32.gmra.mrb[58].mxu0 %vm90_vm1, %v5858_v40 }
 0x4e5   :  { %17629 = vmatprep.mubr.msk.f32.mxu0 %vm90_vm1, %v21515_v19 }
 0x4e8   :  { %17630 = vmatmul.mubr.msk.f32.gmra.mrb[60].mxu0 %vm90_vm1, %v21521_v3 }
 0x4e9   :  { %17632 = vmatprep.mubr.msk.f32.mxu0 %vm90_vm1, %v5861_v42 }
 0x4ec   :  { %17633 = vmatmul.mubr.msk.f32.gmra.mrb[62].mxu0 %vm90_vm1, %v5862_v46 }
 0x543   :  { %v21796_v47 = vpop.f32.mrb[0].mxu0 }
 0x544   :  { %v6510_v48 = vsel %vm90_vm1, %v21796_v47, 0.0  ;;  %v21800_v49 = vpop.f32.mrb[1].mxu0 }
 0x545   :  { %v6509_v50 = vsel %vm90_vm1, %v21800_v49, 0.0 }
 0x546   :  { %v6511_v19 = vadd.f32 %v6510_v48, %v6509_v50 }
 0x547   :  { %v21804_v52 = vpop.f32.mrb[2].mxu0 }
 0x548   :  { %v21806_v53 = vpop.f32.mrb[3].mxu0  ;;  %v6514_v56 = vsel %vm90_vm1, %v21804_v52, 0.0 }
 0x549   :  { %v6512_v3 = vsel %vm90_vm1, %v21806_v53, 0.0 }
 0x54a   :  { %v6513_v55 = vadd.f32 %v6512_v3, %v6511_v19 }
 0x54b   :  { %v21812_v57 = vpop.f32.mrb[4].mxu0 }
 0x54c   :  { %v6515_v59 = vadd.f32 %v6514_v56, %v6513_v55  ;;  %v21814_v61 = vpop.f32.mrb[5].mxu0  ;;  %v6518_v2 = vsel %vm90_vm1, %v21812_v57, 0.0 }
 0x54d   :  { %v6516_v0 = vsel %vm90_vm1, %v21814_v61, 0.0 }
 0x54e   :  { %v6517_v1 = vadd.f32 %v6516_v0, %v6515_v59 }
 0x54f   :  { %v21820_v25 = vpop.f32.mrb[6].mxu0 }
 0x550   :  { %v21822_v29 = vpop.f32.mrb[7].mxu0  ;;  %v6519_v30 = vadd.f32 %v6518_v2, %v6517_v1  ;;  %v6522_v54 = vsel %vm90_vm1, %v21820_v25, 0.0 }
 0x551   :  { %v6520_v38 = vsel %vm90_vm1, %v21822_v29, 0.0 }
 0x552   :  { %v6521_v28 = vadd.f32 %v6520_v38, %v6519_v30 }
 0x553   :  { %v21828_v44 = vpop.f32.mrb[8].mxu0 }
 0x554   :  { %v21830_v31 = vpop.f32.mrb[9].mxu0  ;;  %v6523_v60 = vadd.f32 %v6522_v54, %v6521_v28  ;;  %v6526_v63 = vsel %vm90_vm1, %v21828_v44, 0.0 }
 0x555   :  { %v6524_v62 = vsel %vm90_vm1, %v21830_v31, 0.0 }
 0x556   :  { %v6525_v41 = vadd.f32 %v6524_v62, %v6523_v60 }
 0x557   :  { %v21836_v45 = vpop.f32.mrb[10].mxu0 }
 0x558   :  { %v21838_v43 = vpop.f32.mrb[11].mxu0  ;;  %v6527_v5 = vadd.f32 %v6526_v63, %v6525_v41  ;;  %v6530_v51 = vsel %vm90_vm1, %v21836_v45, 0.0 }
 0x559   :  { %v6528_v6 = vsel %vm90_vm1, %v21838_v43, 0.0 }
 0x55a   :  { %v6529_v9 = vadd.f32 %v6528_v6, %v6527_v5 }
 0x55b   :  { %v21844_v7 = vpop.f32.mrb[12].mxu0 }
 0x55c   :  { %v21846_v4 = vpop.f32.mrb[13].mxu0  ;;  %v6531_v8 = vadd.f32 %v6530_v51, %v6529_v9  ;;  %v6534_v17 = vsel %vm90_vm1, %v21844_v7, 0.0 }
 0x55d   :  { %v6532_v22 = vsel %vm90_vm1, %v21846_v4, 0.0 }
 0x55e   :  { %v6533_v13 = vadd.f32 %v6532_v22, %v6531_v8 }
 0x55f   :  { %v21852_v15 = vpop.f32.mrb[14].mxu0 }
 0x560   :  { %v21854_v23 = vpop.f32.mrb[15].mxu0  ;;  %v6535_v16 = vadd.f32 %v6534_v17, %v6533_v13  ;;  %v6538_v58 = vsel %vm90_vm1, %v21852_v15, 0.0 }
 0x561   :  { %v6536_v10 = vsel %vm90_vm1, %v21854_v23, 0.0 }
 0x562   :  { %v6537_v12 = vadd.f32 %v6536_v10, %v6535_v16 }
 0x563   :  { %v21860_v14 = vpop.f32.mrb[16].mxu0 }
 0x564   :  { %v21862_v11 = vpop.f32.mrb[17].mxu0  ;;  %v6539_v18 = vadd.f32 %v6538_v58, %v6537_v12  ;;  %v6542_v24 = vsel %vm90_vm1, %v21860_v14, 0.0 }
 0x565   :  { %v6540_v20 = vsel %vm90_vm1, %v21862_v11, 0.0 }
 0x566   :  { %v6541_v21 = vadd.f32 %v6540_v20, %v6539_v18 }
 0x567   :  { %v21868_v26 = vpop.f32.mrb[18].mxu0 }
 0x568   :  { %v21870_v27 = vpop.f32.mrb[19].mxu0  ;;  %v6543_v32 = vadd.f32 %v6542_v24, %v6541_v21  ;;  %v6546_v35 = vsel %vm90_vm1, %v21868_v26, 0.0 }
 0x569   :  { %v6544_v33 = vsel %vm90_vm1, %v21870_v27, 0.0 }
 0x56a   :  { %v6545_v34 = vadd.f32 %v6544_v33, %v6543_v32 }
 0x56b   :  { %v21876_v36 = vpop.f32.mrb[20].mxu0 }
 0x56c   :  { %v21878_v37 = vpop.f32.mrb[21].mxu0  ;;  %v6547_v39 = vadd.f32 %v6546_v35, %v6545_v34  ;;  %v6550_v46 = vsel %vm90_vm1, %v21876_v36, 0.0 }
 0x56d   :  { %v6548_v40 = vsel %vm90_vm1, %v21878_v37, 0.0 }
 0x56e   :  { %v6549_v42 = vadd.f32 %v6548_v40, %v6547_v39 }
 0x56f   :  { %v21884_v48 = vpop.f32.mrb[22].mxu0 }
 0x570   :  { %v21886_v50 = vpop.f32.mrb[23].mxu0  ;;  %v6551_v19 = vadd.f32 %v6550_v46, %v6549_v42  ;;  %v6554_v56 = vsel %vm90_vm1, %v21884_v48, 0.0 }
 0x571   :  { %v6552_v3 = vsel %vm90_vm1, %v21886_v50, 0.0 }
 0x572   :  { %v6553_v55 = vadd.f32 %v6552_v3, %v6551_v19 }
 0x573   :  { %v21892_v59 = vpop.f32.mrb[24].mxu0 }
 0x574   :  { %v21894_v0 = vpop.f32.mrb[25].mxu0  ;;  %v6555_v1 = vadd.f32 %v6554_v56, %v6553_v55  ;;  %v6558_v38 = vsel %vm90_vm1, %v21892_v59, 0.0 }
 0x575   :  { %v6556_v2 = vsel %vm90_vm1, %v21894_v0, 0.0 }
 0x576   :  { %v6557_v30 = vadd.f32 %v6556_v2, %v6555_v1 }
 0x577   :  { %v21900_v28 = vpop.f32.mrb[26].mxu0 }
 0x578   :  { %v21902_v54 = vpop.f32.mrb[27].mxu0  ;;  %v6559_v60 = vadd.f32 %v6558_v38, %v6557_v30  ;;  %v6562_v63 = vsel %vm90_vm1, %v21900_v28, 0.0 }
 0x579   :  { %v6560_v62 = vsel %vm90_vm1, %v21902_v54, 0.0 }
 0x57a   :  { %v6561_v41 = vadd.f32 %v6560_v62, %v6559_v60 }
 0x57b   :  { %v21908_v5 = vpop.f32.mrb[28].mxu0 }
 0x57c   :  { %v21910_v6 = vpop.f32.mrb[29].mxu0  ;;  %v6563_v9 = vadd.f32 %v6562_v63, %v6561_v41  ;;  %v6566_v22 = vsel %vm90_vm1, %v21908_v5, 0.0 }
 0x57d   :  { %v6564_v51 = vsel %vm90_vm1, %v21910_v6, 0.0 }
 0x57e   :  { %v6565_v8 = vadd.f32 %v6564_v51, %v6563_v9 }
 0x57f   :  { %v21916_v13 = vpop.f32.mrb[30].mxu0 }
 0x580   :  { %v21918_v17 = vpop.f32.mrb[31].mxu0  ;;  %v6567_v16 = vadd.f32 %v6566_v22, %v6565_v8  ;;  %v6570_v58 = vsel %vm90_vm1, %v21916_v13, 0.0 }
 0x581   :  { %v6568_v10 = vsel %vm90_vm1, %v21918_v17, 0.0 }
 0x582   :  { %v6569_v12 = vadd.f32 %v6568_v10, %v6567_v16 }
 0x583   :  { %v21924_v18 = vpop.f32.mrb[32].mxu0 }
 0x584   :  { %v21926_v20 = vpop.f32.mrb[33].mxu0  ;;  %v6571_v21 = vadd.f32 %v6570_v58, %v6569_v12  ;;  %v6574_v33 = vsel %vm90_vm1, %v21924_v18, 0.0 }
 0x585   :  { %v6572_v24 = vsel %vm90_vm1, %v21926_v20, 0.0 }
 0x586   :  { %v6573_v32 = vadd.f32 %v6572_v24, %v6571_v21 }
 0x587   :  { %v21932_v34 = vpop.f32.mrb[34].mxu0 }
 0x588   :  { %v21934_v35 = vpop.f32.mrb[35].mxu0  ;;  %v6575_v39 = vadd.f32 %v6574_v33, %v6573_v32  ;;  %v6578_v46 = vsel %vm90_vm1, %v21932_v34, 0.0 }
 0x589   :  { %v6576_v40 = vsel %vm90_vm1, %v21934_v35, 0.0 }
 0x58a   :  { %v6577_v42 = vadd.f32 %v6576_v40, %v6575_v39 }
 0x58b   :  { %v21940_v19 = vpop.f32.mrb[36].mxu0 }
 0x58c   :  { %v21942_v3 = vpop.f32.mrb[37].mxu0  ;;  %v6579_v55 = vadd.f32 %v6578_v46, %v6577_v42  ;;  %v6582_v2 = vsel %vm90_vm1, %v21940_v19, 0.0 }
 0x58d   :  { %v6580_v56 = vsel %vm90_vm1, %v21942_v3, 0.0 }
 0x58e   :  { %v6581_v1 = vadd.f32 %v6580_v56, %v6579_v55 }
 0x58f   :  { %v21948_v30 = vpop.f32.mrb[38].mxu0 }
 0x590   :  { %v21950_v38 = vpop.f32.mrb[39].mxu0  ;;  %v6583_v60 = vadd.f32 %v6582_v2, %v6581_v1  ;;  %v6586_v63 = vsel %vm90_vm1, %v21948_v30, 0.0 }
 0x591   :  { %v6584_v62 = vsel %vm90_vm1, %v21950_v38, 0.0 }
 0x592   :  { %v6585_v41 = vadd.f32 %v6584_v62, %v6583_v60 }
 0x593   :  { %v21956_v9 = vpop.f32.mrb[40].mxu0 }
 0x594   :  { %v21958_v51 = vpop.f32.mrb[41].mxu0  ;;  %v6587_v8 = vadd.f32 %v6586_v63, %v6585_v41  ;;  %v6590_v10 = vsel %vm90_vm1, %v21956_v9, 0.0 }
 0x595   :  { %v6588_v22 = vsel %vm90_vm1, %v21958_v51, 0.0 }
 0x596   :  { %v6589_v16 = vadd.f32 %v6588_v22, %v6587_v8 }
 0x597   :  { %v21964_v12 = vpop.f32.mrb[42].mxu0 }
 0x598   :  { %v21966_v58 = vpop.f32.mrb[43].mxu0  ;;  %v6591_v21 = vadd.f32 %v6590_v10, %v6589_v16  ;;  %v6594_v33 = vsel %vm90_vm1, %v21964_v12, 0.0 }
 0x599   :  { %v6592_v24 = vsel %vm90_vm1, %v21966_v58, 0.0 }
 0x59a   :  { %v6593_v32 = vadd.f32 %v6592_v24, %v6591_v21 }
 0x59b   :  { %v21972_v39 = vpop.f32.mrb[44].mxu0 }
 0x59c   :  { %v21974_v40 = vpop.f32.mrb[45].mxu0  ;;  %v6595_v42 = vadd.f32 %v6594_v33, %v6593_v32  ;;  %v6598_v56 = vsel %vm90_vm1, %v21972_v39, 0.0 }
 0x59d   :  { %v6596_v46 = vsel %vm90_vm1, %v21974_v40, 0.0 }
 0x59e   :  { %v6597_v55 = vadd.f32 %v6596_v46, %v6595_v42 }
 0x59f   :  { %v21980_v1 = vpop.f32.mrb[46].mxu0 }
 0x5a0   :  { %27369 = vst [vmem:[#allocation69_spill] sm:$0xff] %v21980_v1  ;;  %v21982_v2 = vpop.f32.mrb[47].mxu0  ;;  %v6599_v60 = vadd.f32 %v6598_v56, %v6597_v55  ;;  %v6602_v63 = vsel %vm90_vm1, %v21980_v1, 0.0 }
 0x5a1   :  { %v6600_v62 = vsel %vm90_vm1, %v21982_v2, 0.0 }
 0x5a2   :  { %v6601_v41 = vadd.f32 %v6600_v62, %v6599_v60 }
 0x5a3   :  { %v21988_v8 = vpop.f32.mrb[48].mxu0 }
 0x5a4   :  { %27370 = vst [vmem:[#allocation70_spill] sm:$0xff] %v21988_v8  ;;  %v21990_v22 = vpop.f32.mrb[49].mxu0  ;;  %v6603_v16 = vadd.f32 %v6602_v63, %v6601_v41  ;;  %v6606_v24 = vsel %vm90_vm1, %v21988_v8, 0.0 }
 0x5a5   :  { %27371 = vst [vmem:[#allocation71_spill] sm:$0xff] %v21990_v22  ;;  %v6604_v10 = vsel %vm90_vm1, %v21990_v22, 0.0 }
 0x5a6   :  { %v6605_v21 = vadd.f32 %v6604_v10, %v6603_v16 }
 0x5a7   :  { %v21996_v32 = vpop.f32.mrb[50].mxu0 }
 0x5a8   :  { %27372 = vst [vmem:[#allocation72_spill] sm:$0xff] %v21996_v32  ;;  %v21998_v33 = vpop.f32.mrb[51].mxu0  ;;  %v6607_v42 = vadd.f32 %v6606_v24, %v6605_v21  ;;  %v6610_v56 = vsel %vm90_vm1, %v21996_v32, 0.0 }
 0x5a9   :  { %27373 = vst [vmem:[#allocation73_spill] sm:$0xff] %v21998_v33  ;;  %v6608_v46 = vsel %vm90_vm1, %v21998_v33, 0.0 }
 0x5aa   :  { %v6609_v55 = vadd.f32 %v6608_v46, %v6607_v42 }
 0x5ab   :  { %v22004_v60 = vpop.f32.mrb[52].mxu0 }
 0x5ac   :  { %27374 = vst [vmem:[#allocation74_spill] sm:$0xff] %v22004_v60  ;;  %v22006_v62 = vpop.f32.mrb[53].mxu0  ;;  %v6611_v41 = vadd.f32 %v6610_v56, %v6609_v55  ;;  %v6614_v10 = vsel %vm90_vm1, %v22004_v60, 0.0 }
 0x5ad   :  { %27375 = vst [vmem:[#allocation75_spill] sm:$0xff] %v22006_v62  ;;  %v6612_v63 = vsel %vm90_vm1, %v22006_v62, 0.0 }
 0x5ae   :  { %v6613_v16 = vadd.f32 %v6612_v63, %v6611_v41 }
 0x5af   :  { %v22012_v21 = vpop.f32.mrb[54].mxu0 }
 0x5b0   :  { %27376 = vst [vmem:[#allocation76_spill] sm:$0xff] %v22012_v21  ;;  %v22014_v24 = vpop.f32.mrb[55].mxu0  ;;  %v6615_v42 = vadd.f32 %v6614_v10, %v6613_v16  ;;  %v6618_v33 = vsel %vm90_vm1, %v22012_v21, 0.0 }
 0x5b1   :  { %27377 = vst [vmem:[#allocation77_spill] sm:$0xff] %v22014_v24  ;;  %v6616_v46 = vsel %vm90_vm1, %v22014_v24, 0.0 }
 0x5b2   :  { %v6617_v32 = vadd.f32 %v6616_v46, %v6615_v42 }
 0x5b3   :  { %v22020_v55 = vpop.f32.mrb[56].mxu0 }
 0x5b4   :  { %27378 = vst [vmem:[#allocation78_spill] sm:$0xff] %v22020_v55  ;;  %v22022_v56 = vpop.f32.mrb[57].mxu0  ;;  %v6619_v41 = vadd.f32 %v6618_v33, %v6617_v32  ;;  %v6622_v62 = vsel %vm90_vm1, %v22020_v55, 0.0 }
 0x5b5   :  { %27379 = vst [vmem:[#allocation79_spill] sm:$0xff] %v22022_v56  ;;  %v6620_v63 = vsel %vm90_vm1, %v22022_v56, 0.0 }
 0x5b6   :  { %v6621_v60 = vadd.f32 %v6620_v63, %v6619_v41 }
 0x5b7   :  { %v22028_v16 = vpop.f32.mrb[58].mxu0 }
 0x5b8   :  { %27380 = vst [vmem:[#allocation80_spill] sm:$0xff] %v22028_v16  ;;  %v22030_v10 = vpop.f32.mrb[59].mxu0  ;;  %v6623_v42 = vadd.f32 %v6622_v62, %v6621_v60  ;;  %v6626_v24 = vsel %vm90_vm1, %v22028_v16, 0.0 }
 0x5b9   :  { %27381 = vst [vmem:[#allocation81_spill] sm:$0xff] %v22030_v10  ;;  %v6624_v46 = vsel %vm90_vm1, %v22030_v10, 0.0 }
 0x5ba   :  { %v6625_v21 = vadd.f32 %v6624_v46, %v6623_v42 }
 0x5bb   :  { %v22036_v32 = vpop.f32.mrb[60].mxu0 }
 0x5bc   :  { %27382 = vst [vmem:[#allocation82_spill] sm:$0xff] %v22036_v32  ;;  %v22038_v33 = vpop.f32.mrb[61].mxu0  ;;  %v6627_v41 = vadd.f32 %v6626_v24, %v6625_v21  ;;  %v6630_v56 = vsel %vm90_vm1, %v22036_v32, 0.0 }
 0x5bd   :  { %27383 = vst [vmem:[#allocation83_spill] sm:$0xff] %v22038_v33  ;;  %v6628_v63 = vsel %vm90_vm1, %v22038_v33, 0.0 }
 0x5be   :  { %v6629_v55 = vadd.f32 %v6628_v63, %v6627_v41 }
 0x5bf   :  { %v22044_v60 = vpop.f32.mrb[62].mxu0 }
 0x5c0   :  { %v22046_v62 = vpop.f32.mrb[63].mxu0  ;;  %v6631_v42 = vadd.f32 %v6630_v56, %v6629_v55  ;;  %v6634_v10 = vsel %vm90_vm1, %v22044_v60, 0.0 }
 0x5c1   :  { %v6632_v46 = vsel %vm90_vm1, %v22046_v62, 0.0 }
 0x5c2   :  { %v6633_v16 = vadd.f32 %v6632_v46, %v6631_v42  ;;  %v27394_v42 = vld [vmem:[#allocation73_spill] sm:$0xff]  ;;  %v27396_v46 = vld [vmem:[#allocation72_spill] sm:$0xff] }
 0x5c4   :  { %v6635_v21 = vadd.f32 %v6634_v10, %v6633_v16  ;;  %v27390_v10 = vld [vmem:[#allocation71_spill] sm:$0xff] }
 0x5c6   :  { %v6636_v24 = vrot.slane %v6635_v21, 4 }
 0x5c8   :  { %v6637_v8 = vadd.f32 %v6636_v24, %v6635_v21  ;;  %v27398_v21 = vld [vmem:[#allocation75_spill] sm:$0xff] }
 0x5ca   :  { %v6638_v33 = vrot.slane %v6637_v8, 2 }
 0x5cc   :  { %v6639_v41 = vadd.f32 %v6638_v33, %v6637_v8  ;;  %v27392_v33 = vld [vmem:[#allocation70_spill] sm:$0xff] }
 0x5ce   :  { %v6640_v63 = vrot.slane %v6639_v41, 1 }
 0x5d0   :  { %v6641_v22 = vadd.f32 %v6640_v63, %v6639_v41  ;;  %v27400_v41 = vld [vmem:[#allocation74_spill] sm:$0xff] }
 0x5d2   :  { %v22052_v32 = vmul.f32 0.001953125, %v6641_v22  ;;  %v27388_v22 = vld [vmem:[#allocation69_spill] sm:$0xff] }
 0x5d4   :  { %v22056_v1 = vsub.f32 %v21800_v49, %v22052_v32  ;;  %v22060_v55 = vsub.f32 %v21796_v47, %v22052_v32  ;;  %v22064_v56 = vsub.f32 %v21806_v53, %v22052_v32  ;;  %v22068_v16 = vsub.f32 %v21804_v52, %v22052_v32 }
 0x5d5   :  { %v22072_v8 = vsub.f32 %v21814_v61, %v22052_v32  ;;  %v22076_v49 = vsub.f32 %v21812_v57, %v22052_v32  ;;  %v22080_v47 = vsub.f32 %v21822_v29, %v22052_v32  ;;  %v22084_v53 = vsub.f32 %v21820_v25, %v22052_v32 }
 0x5d6   :  { %27384 = vst [vmem:[#allocation84_spill] sm:$0xff] %v22056_v1  ;;  %27385 = vst [vmem:[#allocation85_spill] sm:$0xff] %v22060_v55  ;;  %v22088_v52 = vsub.f32 %v21830_v31, %v22052_v32  ;;  %v22092_v61 = vsub.f32 %v21828_v44, %v22052_v32  ;;  %v22096_v57 = vsub.f32 %v21838_v43, %v22052_v32 }
 0x5d7   :  { %27386 = vst [vmem:[#allocation86_spill] sm:$0xff] %v22064_v56  ;;  %27387 = vst [vmem:[#allocation87_spill] sm:$0xff] %v22068_v16  ;;  %v22100_v29 = vsub.f32 %v21836_v45, %v22052_v32  ;;  %v22104_v25 = vsub.f32 %v21846_v4, %v22052_v32  ;;  %v22108_v31 = vsub.f32 %v21844_v7, %v22052_v32 }
 0x5d8   :  { %v22112_v44 = vsub.f32 %v21854_v23, %v22052_v32  ;;  %v22116_v43 = vsub.f32 %v21852_v15, %v22052_v32  ;;  %v22120_v45 = vsub.f32 %v21862_v11, %v22052_v32  ;;  %v22124_v4 = vsub.f32 %v21860_v14, %v22052_v32 }
 0x5d9   :  { %v22128_v7 = vsub.f32 %v21870_v27, %v22052_v32  ;;  %v22132_v23 = vsub.f32 %v21868_v26, %v22052_v32  ;;  %v22136_v15 = vsub.f32 %v21878_v37, %v22052_v32  ;;  %v22140_v11 = vsub.f32 %v21876_v36, %v22052_v32 }
 0x5da   :  { %v22144_v14 = vsub.f32 %v21886_v50, %v22052_v32  ;;  %v22148_v27 = vsub.f32 %v21884_v48, %v22052_v32  ;;  %v22152_v26 = vsub.f32 %v21894_v0, %v22052_v32  ;;  %v22156_v37 = vsub.f32 %v21892_v59, %v22052_v32 }
 0x5db   :  { %v22160_v36 = vsub.f32 %v21902_v54, %v22052_v32  ;;  %v22164_v50 = vsub.f32 %v21900_v28, %v22052_v32  ;;  %v22168_v48 = vsub.f32 %v21910_v6, %v22052_v32  ;;  %v22172_v0 = vsub.f32 %v21908_v5, %v22052_v32 }
 0x5dc   :  { %v22176_v59 = vsub.f32 %v21918_v17, %v22052_v32  ;;  %v22180_v54 = vsub.f32 %v21916_v13, %v22052_v32  ;;  %v22184_v28 = vsub.f32 %v21926_v20, %v22052_v32  ;;  %v22188_v6 = vsub.f32 %v21924_v18, %v22052_v32 }
 0x5dd   :  { %v22192_v5 = vsub.f32 %v21934_v35, %v22052_v32  ;;  %v22196_v17 = vsub.f32 %v21932_v34, %v22052_v32  ;;  %v22200_v13 = vsub.f32 %v21942_v3, %v22052_v32  ;;  %v22204_v20 = vsub.f32 %v21940_v19, %v22052_v32 }
 0x5de   :  { %v22208_v18 = vsub.f32 %v21950_v38, %v22052_v32  ;;  %v22212_v35 = vsub.f32 %v21948_v30, %v22052_v32  ;;  %v22216_v34 = vsub.f32 %v21958_v51, %v22052_v32  ;;  %v22220_v3 = vsub.f32 %v21956_v9, %v22052_v32 }
 0x5df   :  { %v22224_v19 = vsub.f32 %v21966_v58, %v22052_v32  ;;  %v22228_v38 = vsub.f32 %v21964_v12, %v22052_v32  ;;  %v22232_v30 = vsub.f32 %v21974_v40, %v22052_v32  ;;  %v22236_v51 = vsub.f32 %v21972_v39, %v22052_v32 }
 0x5e0   :  { %v22240_v9 = vsub.f32 %v21982_v2, %v22052_v32  ;;  %v22244_v58 = vsub.f32 %v27388_v22, %v22052_v32  ;;  %v22248_v12 = vsub.f32 %v27390_v10, %v22052_v32  ;;  %v22252_v40 = vsub.f32 %v27392_v33, %v22052_v32  ;;  %v27402_v22 = vld [vmem:[#allocation77_spill] sm:$0xff]  ;;  %v27404_v33 = vld [vmem:[#allocation76_spill] sm:$0xff] }
 0x5e1   :  { %v22256_v39 = vsub.f32 %v27394_v42, %v22052_v32  ;;  %v22260_v2 = vsub.f32 %v27396_v46, %v22052_v32  ;;  %v22264_v24 = vsub.f32 %v27398_v21, %v22052_v32  ;;  %v22268_v63 = vsub.f32 %v27400_v41, %v22052_v32 }
 0x5e2   :  { %27389 = vst [vmem:[#allocation88_spill] sm:$0xff] %v22244_v58  ;;  %27391 = vst [vmem:[#allocation89_spill] sm:$0xff] %v22248_v12  ;;  %v22272_v10 = vsub.f32 %v27402_v22, %v22052_v32  ;;  %v22276_v42 = vsub.f32 %v27404_v33, %v22052_v32 }
 0x5e3   :  { %27393 = vst [vmem:[#allocation90_spill] sm:$0xff] %v22252_v40  ;;  %27395 = vst [vmem:[#allocation91_spill] sm:$0xff] %v22256_v39  ;;  %v27406_v39 = vld [vmem:[#allocation79_spill] sm:$0xff] }
 0x5e4   :  { %27397 = vst [vmem:[#allocation92_spill] sm:$0xff] %v22260_v2  ;;  %27399 = vst [vmem:[#allocation93_spill] sm:$0xff] %v22264_v24  ;;  %v22280_v46 = vsub.f32 %v27406_v39, %v22052_v32  ;;  %v27408_v2 = vld [vmem:[#allocation78_spill] sm:$0xff]  ;;  %v27410_v24 = vld [vmem:[#allocation81_spill] sm:$0xff] }
 0x5e5   :  { %27401 = vst [vmem:[#allocation94_spill] sm:$0xff] %v22268_v63  ;;  %27403 = vst [vmem:[#allocation97_spill] sm:$0xff] %v22272_v10  ;;  %v22284_v21 = vsub.f32 %v27408_v2, %v22052_v32  ;;  %v22288_v41 = vsub.f32 %v27410_v24, %v22052_v32  ;;  %v27412_v63 = vld [vmem:[#allocation80_spill] sm:$0xff]  ;;  %v27414_v10 = vld [vmem:[#allocation83_spill] sm:$0xff]  ;;  %v22304_v2 = vsub.f32 %v22046_v62, %v22052_v32 }
 0x5e6   :  { %27405 = vst [vmem:[#allocation98_spill] sm:$0xff] %v22276_v42  ;;  %27407 = vst [vmem:[#allocation99_spill] sm:$0xff] %v22280_v46  ;;  %v22292_v22 = vsub.f32 %v27412_v63, %v22052_v32  ;;  %v22296_v33 = vsub.f32 %v27414_v10, %v22052_v32  ;;  %v27416_v42 = vld [vmem:[#allocation82_spill] sm:$0xff]  ;;  %v22308_v24 = vsub.f32 %v22044_v60, %v22052_v32 }
 0x5e7   :  { %27409 = vst [vmem:[#allocation100_spill] sm:$0xff] %v22284_v21  ;;  %27411 = vst [vmem:[#allocation101_spill] sm:$0xff] %v22288_v41  ;;  %v22300_v39 = vsub.f32 %v27416_v42, %v22052_v32  ;;  %v6707_v63 = vmul.f32 %v22056_v1, %v22056_v1  ;;  %v6709_v10 = vmul.f32 %v22064_v56, %v22064_v56 }
 0x5e8   :  { %27413 = vst [vmem:[#allocation102_spill] sm:$0xff] %v22292_v22  ;;  %27415 = vst [vmem:[#allocation103_spill] sm:$0xff] %v22296_v33  ;;  %v6708_v22 = vmul.f32 %v22060_v55, %v22060_v55  ;;  %v6710_v42 = vmul.f32 %v22068_v16, %v22068_v16  ;;  %v6711_v32 = vmul.f32 %v22072_v8, %v22072_v8 }
 0x5e9   :  { %27417 = vst [vmem:[#allocation104_spill] sm:$0xff] %v22300_v39  ;;  %27418 = vst [vmem:[#allocation105_spill] sm:$0xff] %v22304_v2  ;;  %v6771_v39 = vsel %vm90_vm1, %v6707_v63, 0.0  ;;  %v6774_v60 = vsel %vm90_vm1, %v6709_v10, 0.0  ;;  %v6712_v55 = vmul.f32 %v22076_v49, %v22076_v49  ;;  %v6713_v16 = vmul.f32 %v22080_v47, %v22080_v47 }
 0x5ea   :  { %27419 = vst [vmem:[#allocation106_spill] sm:$0xff] %v22308_v24  ;;  %v6772_v62 = vsel %vm90_vm1, %v6708_v22, 0.0  ;;  %v6776_v24 = vsel %vm90_vm1, %v6710_v42, 0.0  ;;  %v6778_v63 = vsel %vm90_vm1, %v6711_v32, 0.0  ;;  %v6714_v22 = vmul.f32 %v22084_v53, %v22084_v53 }
 0x5eb   :  { %v6773_v2 = vadd.f32 %v6772_v62, %v6771_v39  ;;  %v6780_v39 = vsel %vm90_vm1, %v6712_v55, 0.0  ;;  %v6782_v10 = vsel %vm90_vm1, %v6713_v16, 0.0  ;;  %v6718_v55 = vmul.f32 %v22100_v29, %v22100_v29 }
 0x5ec   :  { %v6719_v16 = vmul.f32 %v22104_v25, %v22104_v25 }
 0x5ed   :  { %v6775_v1 = vadd.f32 %v6774_v60, %v6773_v2  ;;  %v6715_v2 = vmul.f32 %v22088_v52, %v22088_v52 }
 0x5ef   :  { %v6777_v56 = vadd.f32 %v6776_v24, %v6775_v1  ;;  %v6716_v1 = vmul.f32 %v22092_v61, %v22092_v61  ;;  %v6784_v24 = vsel %vm90_vm1, %v6714_v22, 0.0  ;;  %v6786_v32 = vsel %vm90_vm1, %v6715_v2, 0.0 }
 0x5f0   :  { %v6720_v22 = vmul.f32 %v22108_v31, %v22108_v31  ;;  %v6721_v2 = vmul.f32 %v22112_v44, %v22112_v44 }
 0x5f1   :  { %v6779_v33 = vadd.f32 %v6778_v63, %v6777_v56  ;;  %v6717_v56 = vmul.f32 %v22096_v57, %v22096_v57 }
 0x5f3   :  { %v6781_v62 = vadd.f32 %v6780_v39, %v6779_v33  ;;  %v6788_v33 = vsel %vm90_vm1, %v6716_v1, 0.0  ;;  %v6722_v1 = vmul.f32 %v22116_v43, %v22116_v43 }
 0x5f5   :  { %v6783_v60 = vadd.f32 %v6782_v10, %v6781_v62  ;;  %v6790_v62 = vsel %vm90_vm1, %v6717_v56, 0.0  ;;  %v6723_v56 = vmul.f32 %v22120_v45, %v22120_v45 }
 0x5f7   :  { %v6785_v42 = vadd.f32 %v6784_v24, %v6783_v60  ;;  %v6792_v60 = vsel %vm90_vm1, %v6718_v55, 0.0  ;;  %v6724_v55 = vmul.f32 %v22124_v4, %v22124_v4 }
 0x5f9   :  { %v6787_v63 = vadd.f32 %v6786_v32, %v6785_v42  ;;  %v6794_v42 = vsel %vm90_vm1, %v6719_v16, 0.0  ;;  %v6725_v16 = vmul.f32 %v22128_v7, %v22128_v7 }
 0x5fb   :  { %v6789_v39 = vadd.f32 %v6788_v33, %v6787_v63  ;;  %v6796_v63 = vsel %vm90_vm1, %v6720_v22, 0.0  ;;  %v6726_v22 = vmul.f32 %v22132_v23, %v22132_v23 }
 0x5fd   :  { %v6791_v10 = vadd.f32 %v6790_v62, %v6789_v39  ;;  %v6798_v39 = vsel %vm90_vm1, %v6721_v2, 0.0  ;;  %v6727_v2 = vmul.f32 %v22136_v15, %v22136_v15 }
 0x5ff   :  { %v6793_v24 = vadd.f32 %v6792_v60, %v6791_v10  ;;  %v6800_v10 = vsel %vm90_vm1, %v6722_v1, 0.0  ;;  %v6728_v1 = vmul.f32 %v22140_v11, %v22140_v11 }
 0x601   :  { %v6795_v32 = vadd.f32 %v6794_v42, %v6793_v24  ;;  %v6802_v24 = vsel %vm90_vm1, %v6723_v56, 0.0  ;;  %v6729_v56 = vmul.f32 %v22144_v14, %v22144_v14 }
 0x603   :  { %v6797_v33 = vadd.f32 %v6796_v63, %v6795_v32  ;;  %v6804_v32 = vsel %vm90_vm1, %v6724_v55, 0.0  ;;  %v6730_v55 = vmul.f32 %v22148_v27, %v22148_v27 }
 0x605   :  { %v6799_v62 = vadd.f32 %v6798_v39, %v6797_v33  ;;  %v6806_v33 = vsel %vm90_vm1, %v6725_v16, 0.0  ;;  %v6731_v16 = vmul.f32 %v22152_v26, %v22152_v26 }
 0x607   :  { %v6801_v60 = vadd.f32 %v6800_v10, %v6799_v62  ;;  %v6808_v62 = vsel %vm90_vm1, %v6726_v22, 0.0  ;;  %v6732_v22 = vmul.f32 %v22156_v37, %v22156_v37 }
 0x609   :  { %v6803_v42 = vadd.f32 %v6802_v24, %v6801_v60  ;;  %v6810_v60 = vsel %vm90_vm1, %v6727_v2, 0.0  ;;  %v6733_v2 = vmul.f32 %v22160_v36, %v22160_v36 }
 0x60b   :  { %v6805_v63 = vadd.f32 %v6804_v32, %v6803_v42  ;;  %v6812_v42 = vsel %vm90_vm1, %v6728_v1, 0.0  ;;  %v6734_v1 = vmul.f32 %v22164_v50, %v22164_v50 }
 0x60d   :  { %v6807_v39 = vadd.f32 %v6806_v33, %v6805_v63  ;;  %v6814_v63 = vsel %vm90_vm1, %v6729_v56, 0.0  ;;  %v6735_v56 = vmul.f32 %v22168_v48, %v22168_v48 }
 0x60f   :  { %v6809_v10 = vadd.f32 %v6808_v62, %v6807_v39  ;;  %v6816_v39 = vsel %vm90_vm1, %v6730_v55, 0.0  ;;  %v6736_v55 = vmul.f32 %v22172_v0, %v22172_v0 }
 0x611   :  { %v6811_v24 = vadd.f32 %v6810_v60, %v6809_v10  ;;  %v6818_v10 = vsel %vm90_vm1, %v6731_v16, 0.0  ;;  %v6737_v16 = vmul.f32 %v22176_v59, %v22176_v59 }
 0x613   :  { %v6813_v32 = vadd.f32 %v6812_v42, %v6811_v24  ;;  %v6820_v24 = vsel %vm90_vm1, %v6732_v22, 0.0  ;;  %v6738_v22 = vmul.f32 %v22180_v54, %v22180_v54 }
 0x615   :  { %v6815_v33 = vadd.f32 %v6814_v63, %v6813_v32  ;;  %v6822_v32 = vsel %vm90_vm1, %v6733_v2, 0.0  ;;  %v6739_v2 = vmul.f32 %v22184_v28, %v22184_v28 }
 0x617   :  { %v6817_v62 = vadd.f32 %v6816_v39, %v6815_v33  ;;  %v6824_v33 = vsel %vm90_vm1, %v6734_v1, 0.0  ;;  %v6740_v1 = vmul.f32 %v22188_v6, %v22188_v6 }
 0x619   :  { %v6819_v60 = vadd.f32 %v6818_v10, %v6817_v62  ;;  %v6826_v62 = vsel %vm90_vm1, %v6735_v56, 0.0  ;;  %v6741_v56 = vmul.f32 %v22192_v5, %v22192_v5 }
 0x61b   :  { %v6821_v42 = vadd.f32 %v6820_v24, %v6819_v60  ;;  %v6828_v60 = vsel %vm90_vm1, %v6736_v55, 0.0  ;;  %v6742_v55 = vmul.f32 %v22196_v17, %v22196_v17 }
 0x61d   :  { %v6823_v63 = vadd.f32 %v6822_v32, %v6821_v42  ;;  %v6830_v42 = vsel %vm90_vm1, %v6737_v16, 0.0  ;;  %v6743_v16 = vmul.f32 %v22200_v13, %v22200_v13 }
 0x61f   :  { %v6825_v39 = vadd.f32 %v6824_v33, %v6823_v63  ;;  %v6832_v63 = vsel %vm90_vm1, %v6738_v22, 0.0  ;;  %v6744_v22 = vmul.f32 %v22204_v20, %v22204_v20 }
 0x621   :  { %v6827_v10 = vadd.f32 %v6826_v62, %v6825_v39  ;;  %v6834_v39 = vsel %vm90_vm1, %v6739_v2, 0.0  ;;  %v6745_v2 = vmul.f32 %v22208_v18, %v22208_v18 }
 0x623   :  { %v6829_v24 = vadd.f32 %v6828_v60, %v6827_v10  ;;  %v6836_v10 = vsel %vm90_vm1, %v6740_v1, 0.0  ;;  %v6746_v1 = vmul.f32 %v22212_v35, %v22212_v35 }
 0x625   :  { %v6831_v32 = vadd.f32 %v6830_v42, %v6829_v24  ;;  %v6838_v24 = vsel %vm90_vm1, %v6741_v56, 0.0  ;;  %v6747_v56 = vmul.f32 %v22216_v34, %v22216_v34 }
 0x627   :  { %v6833_v33 = vadd.f32 %v6832_v63, %v6831_v32  ;;  %v6840_v32 = vsel %vm90_vm1, %v6742_v55, 0.0  ;;  %v6748_v55 = vmul.f32 %v22220_v3, %v22220_v3 }
 0x629   :  { %v6835_v62 = vadd.f32 %v6834_v39, %v6833_v33  ;;  %v6842_v33 = vsel %vm90_vm1, %v6743_v16, 0.0  ;;  %v6749_v16 = vmul.f32 %v22224_v19, %v22224_v19 }
 0x62b   :  { %v6837_v60 = vadd.f32 %v6836_v10, %v6835_v62  ;;  %v6844_v62 = vsel %vm90_vm1, %v6744_v22, 0.0  ;;  %v6750_v22 = vmul.f32 %v22228_v38, %v22228_v38 }
 0x62d   :  { %v6839_v42 = vadd.f32 %v6838_v24, %v6837_v60  ;;  %v6846_v60 = vsel %vm90_vm1, %v6745_v2, 0.0  ;;  %v6751_v2 = vmul.f32 %v22232_v30, %v22232_v30 }
 0x62f   :  { %v6841_v63 = vadd.f32 %v6840_v32, %v6839_v42  ;;  %v6848_v42 = vsel %vm90_vm1, %v6746_v1, 0.0  ;;  %v6752_v1 = vmul.f32 %v22236_v51, %v22236_v51 }
 0x631   :  { %v6843_v39 = vadd.f32 %v6842_v33, %v6841_v63  ;;  %v6850_v63 = vsel %vm90_vm1, %v6747_v56, 0.0  ;;  %v6753_v56 = vmul.f32 %v22240_v9, %v22240_v9 }
 0x633   :  { %v6845_v10 = vadd.f32 %v6844_v62, %v6843_v39  ;;  %v6852_v39 = vsel %vm90_vm1, %v6748_v55, 0.0  ;;  %v6754_v55 = vmul.f32 %v22244_v58, %v22244_v58 }
 0x635   :  { %v6847_v24 = vadd.f32 %v6846_v60, %v6845_v10  ;;  %v6854_v10 = vsel %vm90_vm1, %v6749_v16, 0.0  ;;  %v6755_v16 = vmul.f32 %v22248_v12, %v22248_v12 }
 0x637   :  { %v6849_v32 = vadd.f32 %v6848_v42, %v6847_v24  ;;  %v6856_v24 = vsel %vm90_vm1, %v6750_v22, 0.0  ;;  %v14988_v22 = vld [vmem:[%s26866_s4 + $0x4] sm:$0xf] }
 0x638   :  { %17635 = vmatprep.subr.msk.mxu1 %vm569_vm0, %v14988_v22 }
 0x639   :  { %v6851_v33 = vadd.f32 %v6850_v63, %v6849_v32  ;;  %v6858_v32 = vsel %vm90_vm1, %v6751_v2, 0.0  ;;  %v7395_v2 = vld [vmem:[%s26866_s4] sm:$0xf]  ;;  %17636 = vmatpush3.msk.msra.mxu1 %vm569_vm0, %v14988_v22 }
 0x63a   :  { %17733 = vmatprep.subr.msk.mxu1 %vm569_vm0, %v7395_v2 }
 0x63b   :  { %v6853_v62 = vadd.f32 %v6852_v39, %v6851_v33  ;;  %v6860_v33 = vsel %vm90_vm1, %v6752_v1, 0.0  ;;  %v6864_v1 = vsel %vm90_vm1, %v6754_v55, 0.0  ;;  %v27421_v55 = vld [vmem:[#allocation92_spill] sm:$0xff] }
 0x63d   :  { %v6855_v60 = vadd.f32 %v6854_v10, %v6853_v62  ;;  %v6862_v62 = vsel %vm90_vm1, %v6753_v56, 0.0 }
 0x63f   :  { %v6857_v42 = vadd.f32 %v6856_v24, %v6855_v60  ;;  %v7396_v60 = vld [vmem:[#allocation3 + $0x8] sm:$0xff]  ;;  %v6756_v24 = vmul.f32 %v22252_v40, %v22252_v40 }
 0x640   :  { %17637 = vmatprep.mubr.msk.f32.mxu1 %vm90_vm1, %v7396_v60 }
 0x641   :  { %v6859_v63 = vadd.f32 %v6858_v32, %v6857_v42  ;;  %v7397_v42 = vld [vmem:[#allocation3 + $0x10] sm:$0xff]  ;;  %v27420_v32 = vld [vmem:[#allocation91_spill] sm:$0xff]  ;;  %v6868_v60 = vsel %vm90_vm1, %v6756_v24, 0.0 }
 0x642   :  { %17638 = vmatmul.mubr.msk.f32.vlgmr.msra.gmra.mrb[0].mxu1 %vm90_vm1, %v7397_v42  ;;  %v27425_v24 = vld [vmem:[#allocation98_spill] sm:$0xff] }
 0x643   :  { %v6861_v39 = vadd.f32 %v6860_v33, %v6859_v63  ;;  %v6757_v63 = vmul.f32 %v27420_v32, %v27420_v32  ;;  %v6866_v33 = vsel %vm90_vm1, %v6755_v16, 0.0  ;;  %17734 = vmatpush3.msk.msra.mxu1 %vm569_vm0, %v7395_v2  ;;  %v27423_v16 = vld [vmem:[#allocation94_spill] sm:$0xff] }
 0x644   :  { %v6760_v12 = vmul.f32 %v27423_v16, %v27423_v16 }
 0x645   :  { %v6863_v10 = vadd.f32 %v6862_v62, %v6861_v39  ;;  %v6758_v62 = vmul.f32 %v27421_v55, %v27421_v55  ;;  %v6870_v32 = vsel %vm90_vm1, %v6757_v63, 0.0 }
 0x647   :  { %v6865_v56 = vadd.f32 %v6864_v1, %v6863_v10  ;;  %v27422_v1 = vld [vmem:[#allocation93_spill] sm:$0xff]  ;;  %v6872_v42 = vsel %vm90_vm1, %v6758_v62, 0.0 }
 0x648   :  { %v6759_v22 = vmul.f32 %v27422_v1, %v27422_v1 }
 0x649   :  { %v6867_v39 = vadd.f32 %v6866_v33, %v6865_v56  ;;  %v27424_v33 = vld [vmem:[#allocation97_spill] sm:$0xff] }
 0x64a   :  { %v6761_v2 = vmul.f32 %v27424_v33, %v27424_v33  ;;  %v6874_v55 = vsel %vm90_vm1, %v6759_v22, 0.0 }
 0x64b   :  { %v6869_v10 = vadd.f32 %v6868_v60, %v6867_v39  ;;  %v6762_v39 = vmul.f32 %v27425_v24, %v27425_v24  ;;  %v6876_v60 = vsel %vm90_vm1, %v6760_v12, 0.0  ;;  %v27426_v12 = vld [vmem:[#allocation102_spill] sm:$0xff] }
 0x64c   :  { %v6878_v63 = vsel %vm90_vm1, %v6761_v2, 0.0  ;;  %v27427_v2 = vld [vmem:[#allocation103_spill] sm:$0xff] }
 0x64d   :  { %v6871_v40 = vadd.f32 %v6870_v32, %v6869_v10  ;;  %v6763_v32 = vmul.f32 %v22280_v46, %v22280_v46  ;;  %v6880_v62 = vsel %vm90_vm1, %v6762_v39, 0.0  ;;  %v27428_v39 = vld [vmem:[#allocation104_spill] sm:$0xff] }
 0x64f   :  { %v6873_v56 = vadd.f32 %v6872_v42, %v6871_v40  ;;  %v6764_v40 = vmul.f32 %v22284_v21, %v22284_v21  ;;  %v6882_v22 = vsel %vm90_vm1, %v6763_v32, 0.0  ;;  %v27429_v32 = vld [vmem:[#allocation105_spill] sm:$0xff] }
 0x651   :  { %v6875_v58 = vadd.f32 %v6874_v55, %v6873_v56  ;;  %v6765_v55 = vmul.f32 %v22288_v41, %v22288_v41 }
 0x653   :  { %v6877_v1 = vadd.f32 %v6876_v60, %v6875_v58  ;;  %v6766_v58 = vmul.f32 %v27426_v12, %v27426_v12  ;;  %v6884_v60 = vsel %vm90_vm1, %v6764_v40, 0.0  ;;  %v27430_v40 = vld [vmem:[#allocation106_spill] sm:$0xff] }
 0x655   :  { %v6879_v10 = vadd.f32 %v6878_v63, %v6877_v1  ;;  %v6767_v1 = vmul.f32 %v27427_v2, %v27427_v2  ;;  %v6886_v63 = vsel %vm90_vm1, %v6765_v55, 0.0 }
 0x657   :  { %v6881_v42 = vadd.f32 %v6880_v62, %v6879_v10  ;;  %v6768_v10 = vmul.f32 %v27428_v39, %v27428_v39  ;;  %v6888_v62 = vsel %vm90_vm1, %v6766_v58, 0.0 }
 0x659   :  { %v6883_v56 = vadd.f32 %v6882_v22, %v6881_v42  ;;  %v6769_v42 = vmul.f32 %v27429_v32, %v27429_v32  ;;  %v6890_v22 = vsel %vm90_vm1, %v6767_v1, 0.0 }
 0x65b   :  { %v6885_v46 = vadd.f32 %v6884_v60, %v6883_v56  ;;  %v6770_v56 = vmul.f32 %v27430_v40, %v27430_v40  ;;  %v6892_v60 = vsel %vm90_vm1, %v6768_v10, 0.0  ;;  %v27431_v10 = vld [vmem:[#allocation84_spill] sm:$0xff] }
 0x65d   :  { %v6887_v21 = vadd.f32 %v6886_v63, %v6885_v46  ;;  %v6894_v46 = vsel %vm90_vm1, %v6769_v42, 0.0  ;;  %v6896_v63 = vsel %vm90_vm1, %v6770_v56, 0.0  ;;  %v27432_v42 = vld [vmem:[#allocation85_spill] sm:$0xff]  ;;  %v22538_v56 = vld [vmem:[%s26868_s3] ss:$0 sm:$0xff] }
 0x65e   :  { %27434 = vst [vmem:[#allocation107_spill] sm:$0xff] %v22538_v56 }
 0x65f   :  { %v6889_v41 = vadd.f32 %v6888_v62, %v6887_v21 }
 0x661   :  { %v6891_v12 = vadd.f32 %v6890_v22, %v6889_v41 }
 0x663   :  { %v6893_v2 = vadd.f32 %v6892_v60, %v6891_v12  ;;  %v22519_v12 = vld [vmem:[%s26867_s2] ss:$0 sm:$0xff]  ;;  %v27435_v60 = vld [vmem:[#allocation87_spill] sm:$0xff] }
 0x665   :  { %v6895_v55 = vadd.f32 %v6894_v46, %v6893_v2 }
 0x667   :  { %v6897_v39 = vadd.f32 %v6896_v63, %v6895_v55 }
 0x669   :  { %v6898_v58 = vrot.slane %v6897_v39, 4 }
 0x66b   :  { %v6899_v21 = vadd.f32 %v6898_v58, %v6897_v39 }
 0x66d   :  { %v6900_v62 = vrot.slane %v6899_v21, 2 }
 0x66f   :  { %v6901_v24 = vadd.f32 %v6900_v62, %v6899_v21 }
 0x671   :  { %v6902_v33 = vrot.slane %v6901_v24, 1 }
 0x673   :  { %v6903_v16 = vadd.f32 %v6902_v33, %v6901_v24 }
 0x675   :  { %v6904_v1 = vmul.f32 0.001953125, %v6903_v16  ;;  %v27433_v16 = vld [vmem:[#allocation86_spill] sm:$0xff] }
 0x677   :  { %v6905_v41 = vadd.f32 1e-05, %v6904_v1 }
 0x679   :  { %19542 = vrsqrt.f32 %v6905_v41 }
 0x683   :  { %v22514_v22 = vpop.eup %19542 }
 0x684   :  { %v6969_v2 = vmul.f32 %v22514_v22, %v27429_v32  ;;  %v22525_v39 = vmul.f32 %v22514_v22, %v27431_v10  ;;  %v22529_v33 = vmul.f32 %v22514_v22, %v27432_v42  ;;  %v22533_v24 = vmul.f32 %v22514_v22, %v27433_v16  ;;  %v27437_v10 = vld [vmem:[#allocation89_spill] sm:$0xff]  ;;  %v27438_v42 = vld [vmem:[#allocation90_spill] sm:$0xff]  ;;  %v27439_v16 = vld [vmem:[#allocation91_spill] sm:$0xff] }
 0x685   :  { %v22542_v32 = vmul.f32 %v22514_v22, %v27435_v60  ;;  %v22546_v46 = vmul.f32 %v22514_v22, %v22072_v8  ;;  %v22550_v55 = vmul.f32 %v22514_v22, %v22076_v49  ;;  %v22554_v63 = vmul.f32 %v22514_v22, %v22080_v47  ;;  %v27441_v60 = vld [vmem:[#allocation92_spill] sm:$0xff] }
 0x686   :  { %v7040_v58 = vmul.f32 %v22519_v12, %v6969_v2  ;;  %v22559_v21 = vmul.f32 %v22514_v22, %v22084_v53  ;;  %v22563_v62 = vmul.f32 %v22514_v22, %v22088_v52  ;;  %v22567_v8 = vmul.f32 %v22514_v22, %v22092_v61  ;;  %v27436_v2 = vld [vmem:[#allocation88_spill] sm:$0xff] }
 0x687   :  { %v22571_v49 = vmul.f32 %v22514_v22, %v22096_v57  ;;  %v22575_v47 = vmul.f32 %v22514_v22, %v22100_v29  ;;  %v22579_v53 = vmul.f32 %v22514_v22, %v22104_v25  ;;  %v22583_v52 = vmul.f32 %v22514_v22, %v22108_v31 }
 0x688   :  { %v7111_v1 = vadd.f32 %v22538_v56, %v7040_v58  ;;  %v22588_v61 = vmul.f32 %v22514_v22, %v22112_v44  ;;  %v22592_v57 = vmul.f32 %v22514_v22, %v22116_v43  ;;  %v22596_v29 = vmul.f32 %v22514_v22, %v22120_v45  ;;  %v27443_v58 = vld [vmem:[#allocation93_spill] sm:$0xff]  ;;  %v27449_v56 = vld [vmem:[#allocation98_spill] sm:$0xff] }
 0x689   :  { %v22600_v25 = vmul.f32 %v22514_v22, %v22124_v4  ;;  %v22604_v31 = vmul.f32 %v22514_v22, %v22128_v7  ;;  %v22608_v44 = vmul.f32 %v22514_v22, %v22132_v23  ;;  %v22612_v43 = vmul.f32 %v22514_v22, %v22136_v15 }
 0x68a   :  { %v7175_v41 = vmax.f32 %v7111_v1, 0.0  ;;  %v22616_v45 = vmul.f32 %v22514_v22, %v22140_v11  ;;  %v22620_v4 = vmul.f32 %v22514_v22, %v22144_v14  ;;  %v22624_v7 = vmul.f32 %v22514_v22, %v22148_v27 }
 0x68b   :  { %v22628_v23 = vmul.f32 %v22514_v22, %v22152_v26  ;;  %v22632_v15 = vmul.f32 %v22514_v22, %v22156_v37  ;;  %v22636_v11 = vmul.f32 %v22514_v22, %v22160_v36  ;;  %v22640_v14 = vmul.f32 %v22514_v22, %v22164_v50 }
 0x68c   :  { %7329 = vst.msk [vmem:[#allocation3 + $0x448] sm:$0xff] %vm90_vm1, %v7175_v41  ;;  %v22645_v27 = vmul.f32 %v22514_v22, %v22168_v48  ;;  %v22649_v26 = vmul.f32 %v22514_v22, %v22172_v0  ;;  %v22653_v37 = vmul.f32 %v22514_v22, %v22176_v59  ;;  %v22657_v36 = vmul.f32 %v22514_v22, %v22180_v54  ;;  %v27445_v41 = vld [vmem:[#allocation94_spill] sm:$0xff] }
 0x68d   :  { %v22661_v50 = vmul.f32 %v22514_v22, %v22184_v28  ;;  %v22665_v48 = vmul.f32 %v22514_v22, %v22188_v6  ;;  %v22669_v0 = vmul.f32 %v22514_v22, %v22192_v5  ;;  %v22673_v59 = vmul.f32 %v22514_v22, %v22196_v17 }
 0x68e   :  { %v22677_v54 = vmul.f32 %v22514_v22, %v22200_v13  ;;  %v22681_v28 = vmul.f32 %v22514_v22, %v22204_v20  ;;  %v22685_v6 = vmul.f32 %v22514_v22, %v22208_v18  ;;  %v22689_v5 = vmul.f32 %v22514_v22, %v22212_v35 }
 0x68f   :  { %v22693_v17 = vmul.f32 %v22514_v22, %v22216_v34  ;;  %v22697_v13 = vmul.f32 %v22514_v22, %v22220_v3  ;;  %v22701_v20 = vmul.f32 %v22514_v22, %v22224_v19  ;;  %v22705_v18 = vmul.f32 %v22514_v22, %v22228_v38 }
 0x690   :  { %v22709_v35 = vmul.f32 %v22514_v22, %v22232_v30  ;;  %v22713_v34 = vmul.f32 %v22514_v22, %v22236_v51  ;;  %v22717_v3 = vmul.f32 %v22514_v22, %v22240_v9  ;;  %v22721_v19 = vmul.f32 %v22514_v22, %v27436_v2 }
 0x691   :  { %v22725_v38 = vmul.f32 %v22514_v22, %v27437_v10  ;;  %v22729_v30 = vmul.f32 %v22514_v22, %v27438_v42  ;;  %v22733_v51 = vmul.f32 %v22514_v22, %v27439_v16  ;;  %v22737_v9 = vmul.f32 %v22514_v22, %v27441_v60  ;;  %v27447_v10 = vld [vmem:[#allocation97_spill] sm:$0xff] }
 0x692   :  { %v22741_v1 = vmul.f32 %v22514_v22, %v27443_v58  ;;  %v22745_v2 = vmul.f32 %v22514_v22, %v27445_v41  ;;  %v22749_v42 = vmul.f32 %v22514_v22, %v27447_v10  ;;  %v22753_v16 = vmul.f32 %v22514_v22, %v27449_v56 }
 0x693   :  { %27440 = vst [vmem:[#allocation108_spill] sm:$0xff] %v22733_v51  ;;  %27442 = vst [vmem:[#allocation109_spill] sm:$0xff] %v22737_v9  ;;  %v27451_v51 = vld [vmem:[#allocation99_spill] sm:$0xff]  ;;  %v27452_v9 = vld [vmem:[#allocation100_spill] sm:$0xff] }
 0x694   :  { %27444 = vst [vmem:[#allocation110_spill] sm:$0xff] %v22741_v1  ;;  %27446 = vst [vmem:[#allocation111_spill] sm:$0xff] %v22745_v2  ;;  %v22757_v60 = vmul.f32 %v22514_v22, %v27451_v51  ;;  %v22761_v58 = vmul.f32 %v22514_v22, %v27452_v9  ;;  %v27453_v1 = vld [vmem:[#allocation101_spill] sm:$0xff]  ;;  %v27454_v2 = vld [vmem:[#allocation102_spill] sm:$0xff]  ;;  %v22781_v9 = vmul.f32 %v22514_v22, %v27430_v40 }
 0x695   :  { %27448 = vst [vmem:[#allocation112_spill] sm:$0xff] %v22749_v42  ;;  %27450 = vst [vmem:[#allocation113_spill] sm:$0xff] %v22753_v16  ;;  %v22765_v41 = vmul.f32 %v22514_v22, %v27453_v1  ;;  %v22769_v10 = vmul.f32 %v22514_v22, %v27454_v2  ;;  %v27455_v42 = vld [vmem:[#allocation103_spill] sm:$0xff]  ;;  %v27456_v16 = vld [vmem:[#allocation104_spill] sm:$0xff]  ;;  %v22785_v1 = vmul.f32 %v22519_v12, %v22525_v39 }
 0x696   :  { %v22773_v56 = vmul.f32 %v22514_v22, %v27455_v42  ;;  %v22777_v51 = vmul.f32 %v22514_v22, %v27456_v16  ;;  %v22789_v2 = vmul.f32 %v22519_v12, %v22529_v33  ;;  %v22793_v42 = vmul.f32 %v22519_v12, %v22533_v24 }
 0x697   :  { %v22797_v16 = vmul.f32 %v22519_v12, %v22542_v32  ;;  %v22801_v40 = vmul.f32 %v22519_v12, %v22546_v46  ;;  %v22805_v22 = vmul.f32 %v22519_v12, %v22550_v55  ;;  %v22809_v39 = vmul.f32 %v22519_v12, %v22554_v63 }
 0x698   :  { %v22813_v33 = vmul.f32 %v22519_v12, %v22559_v21  ;;  %v22817_v24 = vmul.f32 %v22519_v12, %v22563_v62  ;;  %v22821_v32 = vmul.f32 %v22519_v12, %v22567_v8  ;;  %v22825_v46 = vmul.f32 %v22519_v12, %v22571_v49 }
 0x699   :  { %v22829_v55 = vmul.f32 %v22519_v12, %v22575_v47  ;;  %v22833_v63 = vmul.f32 %v22519_v12, %v22579_v53  ;;  %v22837_v21 = vmul.f32 %v22519_v12, %v22583_v52  ;;  %v22841_v62 = vmul.f32 %v22519_v12, %v22588_v61 }
 0x69a   :  { %v22845_v8 = vmul.f32 %v22519_v12, %v22592_v57  ;;  %v22849_v49 = vmul.f32 %v22519_v12, %v22596_v29  ;;  %v22853_v47 = vmul.f32 %v22519_v12, %v22600_v25  ;;  %v22857_v53 = vmul.f32 %v22519_v12, %v22604_v31 }
 0x69b   :  { %v22861_v52 = vmul.f32 %v22519_v12, %v22608_v44  ;;  %v22865_v61 = vmul.f32 %v22519_v12, %v22612_v43  ;;  %v22869_v57 = vmul.f32 %v22519_v12, %v22616_v45  ;;  %v22873_v29 = vmul.f32 %v22519_v12, %v22620_v4 }
 0x69c   :  { %v22877_v25 = vmul.f32 %v22519_v12, %v22624_v7  ;;  %v22881_v31 = vmul.f32 %v22519_v12, %v22628_v23  ;;  %v22885_v44 = vmul.f32 %v22519_v12, %v22632_v15  ;;  %v22889_v43 = vmul.f32 %v22519_v12, %v22636_v11 }
 0x69d   :  { %v22893_v45 = vmul.f32 %v22519_v12, %v22640_v14  ;;  %v22897_v4 = vmul.f32 %v22519_v12, %v22645_v27  ;;  %v22901_v7 = vmul.f32 %v22519_v12, %v22649_v26  ;;  %v22905_v23 = vmul.f32 %v22519_v12, %v22653_v37 }
 0x69e   :  { %v22909_v15 = vmul.f32 %v22519_v12, %v22657_v36  ;;  %v22913_v11 = vmul.f32 %v22519_v12, %v22661_v50  ;;  %v22917_v14 = vmul.f32 %v22519_v12, %v22665_v48  ;;  %v22921_v27 = vmul.f32 %v22519_v12, %v22669_v0 }
 0x69f   :  { %v22925_v26 = vmul.f32 %v22519_v12, %v22673_v59  ;;  %v22929_v37 = vmul.f32 %v22519_v12, %v22677_v54  ;;  %v22933_v36 = vmul.f32 %v22519_v12, %v22681_v28  ;;  %v22937_v50 = vmul.f32 %v22519_v12, %v22685_v6 }
 0x6a0   :  { %v22941_v48 = vmul.f32 %v22519_v12, %v22689_v5  ;;  %v22945_v0 = vmul.f32 %v22519_v12, %v22693_v17  ;;  %v22949_v59 = vmul.f32 %v22519_v12, %v22697_v13  ;;  %v22953_v54 = vmul.f32 %v22519_v12, %v22701_v20 }
 0x6a1   :  { %v22957_v28 = vmul.f32 %v22519_v12, %v22705_v18  ;;  %v22961_v6 = vmul.f32 %v22519_v12, %v22709_v35  ;;  %v22965_v5 = vmul.f32 %v22519_v12, %v22713_v34  ;;  %v22969_v17 = vmul.f32 %v22519_v12, %v22717_v3  ;;  %v27462_v35 = vld [vmem:[#allocation108_spill] sm:$0xff] }
 0x6a2   :  { %v22973_v13 = vmul.f32 %v22519_v12, %v22721_v19  ;;  %v22977_v20 = vmul.f32 %v22519_v12, %v22725_v38  ;;  %v22981_v18 = vmul.f32 %v22519_v12, %v22729_v30  ;;  %v22985_v34 = vmul.f32 %v22519_v12, %v27462_v35 }
 0x6a3   :  { %27457 = vst [vmem:[#allocation114_spill] sm:$0xff] %v22965_v5  ;;  %27458 = vst [vmem:[#allocation115_spill] sm:$0xff] %v22969_v17  ;;  %v27463_v5 = vld [vmem:[#allocation109_spill] sm:$0xff]  ;;  %v27464_v17 = vld [vmem:[#allocation110_spill] sm:$0xff] }
 0x6a4   :  { %27459 = vst [vmem:[#allocation116_spill] sm:$0xff] %v22973_v13  ;;  %27460 = vst [vmem:[#allocation117_spill] sm:$0xff] %v22977_v20  ;;  %v22989_v3 = vmul.f32 %v22519_v12, %v27463_v5  ;;  %v22993_v19 = vmul.f32 %v22519_v12, %v27464_v17  ;;  %v27465_v13 = vld [vmem:[#allocation111_spill] sm:$0xff]  ;;  %v27466_v20 = vld [vmem:[#allocation112_spill] sm:$0xff]  ;;  %v23009_v5 = vmul.f32 %v22519_v12, %v22757_v60 }
 0x6a5   :  { %27461 = vst [vmem:[#allocation118_spill] sm:$0xff] %v22981_v18  ;;  %v22997_v38 = vmul.f32 %v22519_v12, %v27465_v13  ;;  %v23001_v30 = vmul.f32 %v22519_v12, %v27466_v20  ;;  %v27467_v18 = vld [vmem:[#allocation113_spill] sm:$0xff]  ;;  %v23013_v17 = vmul.f32 %v22519_v12, %v22761_v58  ;;  %v23017_v13 = vmul.f32 %v22519_v12, %v22765_v41 }
 0x6a6   :  { %v23005_v35 = vmul.f32 %v22519_v12, %v27467_v18  ;;  %v23021_v20 = vmul.f32 %v22519_v12, %v22769_v10  ;;  %v23025_v18 = vmul.f32 %v22519_v12, %v22773_v56  ;;  %v23029_v60 = vmul.f32 %v22519_v12, %v22777_v51 }
 0x6a7   :  { %27468 = vst [vmem:[#allocation119_spill] sm:$0xff] %v23013_v17  ;;  %v23033_v58 = vmul.f32 %v22519_v12, %v22781_v9  ;;  %v27469_v17 = vld [vmem:[#allocation107_spill] sm:$0xff] }
 0x6a8   :  { %v23037_v41 = vadd.f32 %v27469_v17, %v22785_v1  ;;  %v23041_v10 = vadd.f32 %v27469_v17, %v22789_v2  ;;  %v23045_v56 = vadd.f32 %v27469_v17, %v22793_v42  ;;  %v23049_v51 = vadd.f32 %v27469_v17, %v22797_v16 }
 0x6a9   :  { %v23053_v12 = vadd.f32 %v27469_v17, %v22801_v40  ;;  %v23057_v9 = vadd.f32 %v27469_v17, %v22805_v22  ;;  %v23061_v1 = vadd.f32 %v27469_v17, %v22809_v39  ;;  %v23065_v2 = vadd.f32 %v27469_v17, %v22813_v33 }
 0x6aa   :  { %v23069_v42 = vadd.f32 %v27469_v17, %v22817_v24  ;;  %v23073_v16 = vadd.f32 %v27469_v17, %v22821_v32  ;;  %v23077_v40 = vadd.f32 %v27469_v17, %v22825_v46  ;;  %v23081_v22 = vadd.f32 %v27469_v17, %v22829_v55 }
 0x6ab   :  { %v23085_v39 = vadd.f32 %v27469_v17, %v22833_v63  ;;  %v23089_v33 = vadd.f32 %v27469_v17, %v22837_v21  ;;  %v23093_v24 = vadd.f32 %v27469_v17, %v22841_v62  ;;  %v23097_v32 = vadd.f32 %v27469_v17, %v22845_v8 }
 0x6ac   :  { %v23101_v46 = vadd.f32 %v27469_v17, %v22849_v49  ;;  %v23105_v55 = vadd.f32 %v27469_v17, %v22853_v47  ;;  %v23109_v63 = vadd.f32 %v27469_v17, %v22857_v53  ;;  %v23113_v21 = vadd.f32 %v27469_v17, %v22861_v52 }
 0x6ad   :  { %v23117_v62 = vadd.f32 %v27469_v17, %v22865_v61  ;;  %v23121_v8 = vadd.f32 %v27469_v17, %v22869_v57  ;;  %v23125_v49 = vadd.f32 %v27469_v17, %v22873_v29  ;;  %v23129_v47 = vadd.f32 %v27469_v17, %v22877_v25 }
 0x6ae   :  { %v23133_v53 = vadd.f32 %v27469_v17, %v22881_v31  ;;  %v23137_v52 = vadd.f32 %v27469_v17, %v22885_v44  ;;  %v23141_v61 = vadd.f32 %v27469_v17, %v22889_v43  ;;  %v23145_v57 = vadd.f32 %v27469_v17, %v22893_v45 }
 0x6af   :  { %v23149_v29 = vadd.f32 %v27469_v17, %v22897_v4  ;;  %v23153_v25 = vadd.f32 %v27469_v17, %v22901_v7  ;;  %v23157_v31 = vadd.f32 %v27469_v17, %v22905_v23  ;;  %v23161_v44 = vadd.f32 %v27469_v17, %v22909_v15 }
 0x6b0   :  { %v23165_v43 = vadd.f32 %v27469_v17, %v22913_v11  ;;  %v23169_v45 = vadd.f32 %v27469_v17, %v22917_v14  ;;  %v23173_v4 = vadd.f32 %v27469_v17, %v22921_v27  ;;  %v23177_v7 = vadd.f32 %v27469_v17, %v22925_v26 }
 0x6b1   :  { %v23181_v23 = vadd.f32 %v27469_v17, %v22929_v37  ;;  %v23185_v15 = vadd.f32 %v27469_v17, %v22933_v36  ;;  %v23189_v11 = vadd.f32 %v27469_v17, %v22937_v50  ;;  %v23193_v14 = vadd.f32 %v27469_v17, %v22941_v48  ;;  %v27474_v48 = vld [vmem:[#allocation114_spill] sm:$0xff] }
 0x6b2   :  { %v23197_v27 = vadd.f32 %v27469_v17, %v22945_v0  ;;  %v23201_v26 = vadd.f32 %v27469_v17, %v22949_v59  ;;  %v23205_v37 = vadd.f32 %v27469_v17, %v22953_v54  ;;  %v23209_v36 = vadd.f32 %v27469_v17, %v22957_v28 }
 0x6b3   :  { %v23213_v50 = vadd.f32 %v27469_v17, %v22961_v6  ;;  %v23217_v0 = vadd.f32 %v27469_v17, %v27474_v48  ;;  %v23237_v48 = vadd.f32 %v27469_v17, %v22985_v34  ;;  %v23257_v34 = vadd.f32 %v27469_v17, %v23005_v35 }
 0x6b4   :  { %27470 = vst [vmem:[#allocation120_spill] sm:$0xff] %v23197_v27  ;;  %27471 = vst [vmem:[#allocation121_spill] sm:$0xff] %v23201_v26  ;;  %v27475_v27 = vld [vmem:[#allocation115_spill] sm:$0xff]  ;;  %v27476_v26 = vld [vmem:[#allocation116_spill] sm:$0xff]  ;;  %v23277_v35 = vadd.f32 %v27469_v17, %v23025_v18  ;;  %v7118_v18 = vmax.f32 %v23057_v9, 0.0  ;;  %v7129_v9 = vmax.f32 %v23101_v46, 0.0 }
 0x6b5   :  { %27472 = vst [vmem:[#allocation122_spill] sm:$0xff] %v23205_v37  ;;  %27473 = vst [vmem:[#allocation123_spill] sm:$0xff] %v23209_v36  ;;  %v23221_v59 = vadd.f32 %v27469_v17, %v27475_v27  ;;  %v23225_v54 = vadd.f32 %v27469_v17, %v27476_v26  ;;  %v27477_v37 = vld [vmem:[#allocation117_spill] sm:$0xff]  ;;  %v27478_v36 = vld [vmem:[#allocation118_spill] sm:$0xff]  ;;  %v23241_v27 = vadd.f32 %v27469_v17, %v22989_v3  ;;  %v7139_v46 = vmax.f32 %v23141_v61, 0.0 }
 0x6b6   :  { %v23229_v28 = vadd.f32 %v27469_v17, %v27477_v37  ;;  %v23233_v6 = vadd.f32 %v27469_v17, %v27478_v36  ;;  %v23245_v26 = vadd.f32 %v27469_v17, %v22993_v19  ;;  %v23249_v37 = vadd.f32 %v27469_v17, %v22997_v38  ;;  %27484 = vst [vmem:[#allocation126_spill] sm:$0xff] %v23277_v35 }
 0x6b7   :  { %27479 = vst [vmem:[#allocation64_spill] sm:$0xff] %v23241_v27  ;;  %v23253_v36 = vadd.f32 %v27469_v17, %v23001_v30  ;;  %v23261_v3 = vadd.f32 %v27469_v17, %v23009_v5  ;;  %v27480_v27 = vld [vmem:[#allocation119_spill] sm:$0xff]  ;;  %v23269_v38 = vadd.f32 %v27469_v17, %v23017_v13  ;;  %v23273_v30 = vadd.f32 %v27469_v17, %v23021_v20 }
 0x6b8   :  { %v23265_v19 = vadd.f32 %v27469_v17, %v27480_v27  ;;  %v23281_v5 = vadd.f32 %v27469_v17, %v23029_v60  ;;  %v23285_v27 = vadd.f32 %v27469_v17, %v23033_v58  ;;  %v7114_v13 = vmax.f32 %v23041_v10, 0.0  ;;  %7272 = vst.msk [vmem:[#allocation3 + $0x70] sm:$0xff] %vm90_vm1, %v7118_v18  ;;  %7283 = vst.msk [vmem:[#allocation3 + $0x128] sm:$0xff] %vm90_vm1, %v7129_v9 }
 0x6b9   :  { %27482 = vst [vmem:[#allocation66_spill] sm:$0xff] %v23269_v38  ;;  %27483 = vst [vmem:[#allocation67_spill] sm:$0xff] %v23273_v30  ;;  %v7115_v38 = vmax.f32 %v23045_v56, 0.0  ;;  %v7116_v20 = vmax.f32 %v23049_v51, 0.0  ;;  %v7117_v30 = vmax.f32 %v23053_v12, 0.0  ;;  %v7119_v35 = vmax.f32 %v23061_v1, 0.0 }
 0x6ba   :  { %27481 = vst [vmem:[#allocation65_spill] sm:$0xff] %v23265_v19  ;;  %27485 = vst [vmem:[#allocation127_spill] sm:$0xff] %v23281_v5  ;;  %v7113_v19 = vmax.f32 %v23037_v41, 0.0  ;;  %v7120_v60 = vmax.f32 %v23065_v2, 0.0  ;;  %v7121_v5 = vmax.f32 %v23069_v42, 0.0  ;;  %v7122_v17 = vmax.f32 %v23073_v16, 0.0 }
 0x6bb   :  { %v7123_v58 = vmax.f32 %v23077_v40, 0.0  ;;  %7268 = vst.msk [vmem:[#allocation3 + $0x30] sm:$0xff] %vm90_vm1, %v7114_v13  ;;  %7269 = vst.msk [vmem:[#allocation3 + $0x48] sm:$0xff] %vm90_vm1, %v7115_v38  ;;  %v7124_v41 = vmax.f32 %v23081_v22, 0.0  ;;  %v7125_v10 = vmax.f32 %v23085_v39, 0.0  ;;  %v7126_v56 = vmax.f32 %v23089_v33, 0.0 }
 0x6bc   :  { %7267 = vst.msk [vmem:[#allocation3 + $0x28] sm:$0xff] %vm90_vm1, %v7113_v19  ;;  %v7127_v51 = vmax.f32 %v23093_v24, 0.0  ;;  %7270 = vst.msk [vmem:[#allocation3 + $0x50] sm:$0xff] %vm90_vm1, %v7116_v20  ;;  %v7128_v12 = vmax.f32 %v23097_v32, 0.0  ;;  %v7130_v1 = vmax.f32 %v23105_v55, 0.0  ;;  %v7131_v2 = vmax.f32 %v23109_v63, 0.0 }
 0x6bd   :  { %7271 = vst.msk [vmem:[#allocation3 + $0x68] sm:$0xff] %vm90_vm1, %v7117_v30  ;;  %7273 = vst.msk [vmem:[#allocation3 + $0x88] sm:$0xff] %vm90_vm1, %v7119_v35  ;;  %v23320_v42 = vld [vmem:[%s26866_s4 + $0x8] sm:$0xf]  ;;  %v7132_v16 = vmax.f32 %v23113_v21, 0.0  ;;  %v7133_v40 = vmax.f32 %v23117_v62, 0.0 }
 0x6be   :  { %7274 = vst.msk [vmem:[#allocation3 + $0x90] sm:$0xff] %vm90_vm1, %v7120_v60  ;;  %7275 = vst.msk [vmem:[#allocation3 + $0xa8] sm:$0xff] %vm90_vm1, %v7121_v5  ;;  %v7134_v22 = vmax.f32 %v23121_v8, 0.0  ;;  %v7135_v39 = vmax.f32 %v23125_v49, 0.0  ;;  %17831 = vmatprep.subr.msk.mxu1 %vm569_vm0, %v23320_v42  ;;  %v7136_v33 = vmax.f32 %v23129_v47, 0.0  ;;  %v7137_v24 = vmax.f32 %v23133_v53, 0.0 }
 0x6bf   :  { %7276 = vst.msk [vmem:[#allocation3 + $0xb0] sm:$0xff] %vm90_vm1, %v7122_v17  ;;  %7277 = vst.msk [vmem:[#allocation3 + $0xc8] sm:$0xff] %vm90_vm1, %v7123_v58  ;;  %v7138_v32 = vmax.f32 %v23137_v52, 0.0  ;;  %v7140_v55 = vmax.f32 %v23145_v57, 0.0  ;;  %v7141_v63 = vmax.f32 %v23149_v29, 0.0  ;;  %v7142_v21 = vmax.f32 %v23153_v25, 0.0 }
 0x6c0   :  { %7278 = vst.msk [vmem:[#allocation3 + $0xd0] sm:$0xff] %vm90_vm1, %v7124_v41  ;;  %7279 = vst.msk [vmem:[#allocation3 + $0xe8] sm:$0xff] %vm90_vm1, %v7125_v10  ;;  %v7143_v62 = vmax.f32 %v23157_v31, 0.0  ;;  %v7144_v8 = vmax.f32 %v23161_v44, 0.0  ;;  %v7145_v49 = vmax.f32 %v23165_v43, 0.0  ;;  %v7146_v47 = vmax.f32 %v23169_v45, 0.0 }
 0x6c1   :  { %7280 = vst.msk [vmem:[#allocation3 + $0xf0] sm:$0xff] %vm90_vm1, %v7126_v56  ;;  %7281 = vst.msk [vmem:[#allocation3 + $0x108] sm:$0xff] %vm90_vm1, %v7127_v51  ;;  %v7147_v53 = vmax.f32 %v23173_v4, 0.0  ;;  %v7148_v52 = vmax.f32 %v23177_v7, 0.0  ;;  %v7149_v61 = vmax.f32 %v23181_v23, 0.0  ;;  %v7150_v57 = vmax.f32 %v23185_v15, 0.0 }
 0x6c2   :  { %7282 = vst.msk [vmem:[#allocation3 + $0x110] sm:$0xff] %vm90_vm1, %v7128_v12  ;;  %7284 = vst.msk [vmem:[#allocation3 + $0x130] sm:$0xff] %vm90_vm1, %v7130_v1  ;;  %v7151_v29 = vmax.f32 %v23189_v11, 0.0  ;;  %v7399_v31 = vld [vmem:[#allocation3 + $0x30] sm:$0xff]  ;;  %v7152_v44 = vmax.f32 %v23193_v14, 0.0  ;;  %v27486_v43 = vld [vmem:[#allocation120_spill] sm:$0xff] }
 0x6c3   :  { %7285 = vst.msk [vmem:[#allocation3 + $0x148] sm:$0xff] %vm90_vm1, %v7131_v2  ;;  %7286 = vst.msk [vmem:[#allocation3 + $0x150] sm:$0xff] %vm90_vm1, %v7132_v16  ;;  %v7398_v25 = vld [vmem:[#allocation3 + $0x28] sm:$0xff]  ;;  %v7153_v45 = vmax.f32 %v27486_v43, 0.0  ;;  %v27488_v23 = vld [vmem:[#allocation122_spill] sm:$0xff]  ;;  %v7157_v14 = vmax.f32 %v23213_v50, 0.0 }
 0x6c4   :  { %7287 = vst.msk [vmem:[#allocation3 + $0x168] sm:$0xff] %vm90_vm1, %v7133_v40  ;;  %7288 = vst.msk [vmem:[#allocation3 + $0x170] sm:$0xff] %vm90_vm1, %v7134_v22  ;;  %v27487_v4 = vld [vmem:[#allocation121_spill] sm:$0xff]  ;;  %v7155_v15 = vmax.f32 %v27488_v23, 0.0  ;;  %17640 = vmatprep.mubr.msk.f32.mxu1 %vm90_vm1, %v7398_v25  ;;  %v27489_v11 = vld [vmem:[#allocation123_spill] sm:$0xff]  ;;  %v7158_v38 = vmax.f32 %v23217_v0, 0.0 }
 0x6c5   :  { %7289 = vst.msk [vmem:[#allocation3 + $0x188] sm:$0xff] %vm90_vm1, %v7135_v39  ;;  %7290 = vst.msk [vmem:[#allocation3 + $0x190] sm:$0xff] %vm90_vm1, %v7136_v33  ;;  %v7154_v7 = vmax.f32 %v27487_v4, 0.0  ;;  %v7156_v19 = vmax.f32 %v27489_v11, 0.0  ;;  %v7159_v30 = vmax.f32 %v23221_v59, 0.0  ;;  %17641 = vmatmul.mubr.msk.f32.gmra.mrb[2].mxu1 %vm90_vm1, %v7399_v31  ;;  %v7400_v35 = vld [vmem:[#allocation3 + $0x48] sm:$0xff] }
 0x6c6   :  { %7291 = vst.msk [vmem:[#allocation3 + $0x1a8] sm:$0xff] %vm90_vm1, %v7137_v24  ;;  %7292 = vst.msk [vmem:[#allocation3 + $0x1b0] sm:$0xff] %vm90_vm1, %v7138_v32  ;;  %v7160_v5 = vmax.f32 %v23225_v54, 0.0  ;;  %v7161_v13 = vmax.f32 %v23229_v28, 0.0  ;;  %v7162_v50 = vmax.f32 %v23233_v6, 0.0  ;;  %v7163_v0 = vmax.f32 %v23237_v48, 0.0  ;;  %17643 = vmatprep.mubr.msk.f32.mxu1 %vm90_vm1, %v7400_v35 }
 0x6c7   :  { %7293 = vst.msk [vmem:[#allocation3 + $0x1c8] sm:$0xff] %vm90_vm1, %v7139_v46  ;;  %7294 = vst.msk [vmem:[#allocation3 + $0x1d0] sm:$0xff] %vm90_vm1, %v7140_v55  ;;  %v27490_v59 = vld [vmem:[#allocation64_spill] sm:$0xff]  ;;  %v7165_v54 = vmax.f32 %v23245_v26, 0.0  ;;  %v7166_v28 = vmax.f32 %v23249_v37, 0.0  ;;  %v7167_v6 = vmax.f32 %v23253_v36, 0.0 }
 0x6c8   :  { %7295 = vst.msk [vmem:[#allocation3 + $0x1e8] sm:$0xff] %vm90_vm1, %v7141_v63  ;;  %7296 = vst.msk [vmem:[#allocation3 + $0x1f0] sm:$0xff] %vm90_vm1, %v7142_v21  ;;  %v7164_v20 = vmax.f32 %v27490_v59, 0.0  ;;  %v7168_v48 = vmax.f32 %v23257_v34, 0.0  ;;  %v7169_v18 = vmax.f32 %v23261_v3, 0.0  ;;  %v27491_v60 = vld [vmem:[#allocation65_spill] sm:$0xff] }
 0x6c9   :  { %7297 = vst.msk [vmem:[#allocation3 + $0x208] sm:$0xff] %vm90_vm1, %v7143_v62  ;;  %7298 = vst.msk [vmem:[#allocation3 + $0x210] sm:$0xff] %vm90_vm1, %v7144_v8  ;;  %v7170_v17 = vmax.f32 %v27491_v60, 0.0  ;;  %v27492_v58 = vld [vmem:[#allocation66_spill] sm:$0xff]  ;;  %v27493_v36 = vld [vmem:[#allocation67_spill] sm:$0xff]  ;;  %v7176_v3 = vmax.f32 %v23285_v27, 0.0 }
 0x6ca   :  { %7299 = vst.msk [vmem:[#allocation3 + $0x268] sm:$0xff] %vm90_vm1, %v7145_v49  ;;  %7300 = vst.msk [vmem:[#allocation3 + $0x270] sm:$0xff] %vm90_vm1, %v7146_v47  ;;  %v7171_v26 = vmax.f32 %v27492_v58, 0.0  ;;  %v7401_v37 = vld [vmem:[#allocation3 + $0x50] sm:$0xff]  ;;  %v7172_v41 = vmax.f32 %v27493_v36, 0.0  ;;  %v27495_v34 = vld [vmem:[#allocation127_spill] sm:$0xff] }
 0x6cb   :  { %7301 = vst.msk [vmem:[#allocation3 + $0x288] sm:$0xff] %vm90_vm1, %v7147_v53  ;;  %7302 = vst.msk [vmem:[#allocation3 + $0x290] sm:$0xff] %vm90_vm1, %v7148_v52  ;;  %v27494_v10 = vld [vmem:[#allocation126_spill] sm:$0xff]  ;;  %v7174_v51 = vmax.f32 %v27495_v34, 0.0  ;;  %17644 = vmatmul.mubr.msk.f32.gmra.mrb[4].mxu1 %vm90_vm1, %v7401_v37  ;;  %v7402_v12 = vld [vmem:[#allocation3 + $0x68] sm:$0xff] }
 0x6cc   :  { %7303 = vst.msk [vmem:[#allocation3 + $0x2a8] sm:$0xff] %vm90_vm1, %v7149_v61  ;;  %7304 = vst.msk [vmem:[#allocation3 + $0x2b0] sm:$0xff] %vm90_vm1, %v7150_v57  ;;  %v7173_v56 = vmax.f32 %v27494_v10, 0.0  ;;  %17646 = vmatprep.mubr.msk.f32.mxu1 %vm90_vm1, %v7402_v12  ;;  %v7403_v27 = vld [vmem:[#allocation3 + $0x70] sm:$0xff]  ;;  %v7404_v9 = vld [vmem:[#allocation3 + $0x88] sm:$0xff] }
 0x6cd   :  { %7305 = vst.msk [vmem:[#allocation3 + $0x2c8] sm:$0xff] %vm90_vm1, %v7151_v29  ;;  %7306 = vst.msk [vmem:[#allocation3 + $0x2d0] sm:$0xff] %vm90_vm1, %v7152_v44  ;;  %v7405_v1 = vld [vmem:[#allocation3 + $0x90] sm:$0xff]  ;;  %v7406_v2 = vld [vmem:[#allocation3 + $0xa8] sm:$0xff] }
 0x6ce   :  { %7307 = vst.msk [vmem:[#allocation3 + $0x2e8] sm:$0xff] %vm90_vm1, %v7153_v45  ;;  %7308 = vst.msk [vmem:[#allocation3 + $0x2f0] sm:$0xff] %vm90_vm1, %v7154_v7  ;;  %v7407_v16 = vld [vmem:[#allocation3 + $0xb0] sm:$0xff]  ;;  %v7408_v40 = vld [vmem:[#allocation3 + $0xc8] sm:$0xff] }
 0x6cf   :  { %7309 = vst.msk [vmem:[#allocation3 + $0x308] sm:$0xff] %vm90_vm1, %v7155_v15  ;;  %7310 = vst.msk [vmem:[#allocation3 + $0x310] sm:$0xff] %vm90_vm1, %v7156_v19  ;;  %17647 = vmatmul.mubr.msk.f32.gmra.mrb[6].mxu1 %vm90_vm1, %v7403_v27  ;;  %v7409_v22 = vld [vmem:[#allocation3 + $0xd0] sm:$0xff]  ;;  %v7410_v39 = vld [vmem:[#allocation3 + $0xe8] sm:$0xff] }
 0x6d0   :  { %7311 = vst.msk [vmem:[#allocation3 + $0x328] sm:$0xff] %vm90_vm1, %v7157_v14  ;;  %7312 = vst.msk [vmem:[#allocation3 + $0x330] sm:$0xff] %vm90_vm1, %v7158_v38  ;;  %17649 = vmatprep.mubr.msk.f32.mxu1 %vm90_vm1, %v7404_v9  ;;  %v7411_v33 = vld [vmem:[#allocation3 + $0xf0] sm:$0xff]  ;;  %v7412_v24 = vld [vmem:[#allocation3 + $0x108] sm:$0xff] }
 0x6d1   :  { %7313 = vst.msk [vmem:[#allocation3 + $0x348] sm:$0xff] %vm90_vm1, %v7159_v30  ;;  %7314 = vst.msk [vmem:[#allocation3 + $0x350] sm:$0xff] %vm90_vm1, %v7160_v5  ;;  %v7413_v32 = vld [vmem:[#allocation3 + $0x110] sm:$0xff]  ;;  %v7414_v46 = vld [vmem:[#allocation3 + $0x128] sm:$0xff] }
 0x6d2   :  { %7315 = vst.msk [vmem:[#allocation3 + $0x368] sm:$0xff] %vm90_vm1, %v7161_v13  ;;  %7316 = vst.msk [vmem:[#allocation3 + $0x370] sm:$0xff] %vm90_vm1, %v7162_v50  ;;  %v7415_v55 = vld [vmem:[#allocation3 + $0x130] sm:$0xff]  ;;  %v7416_v63 = vld [vmem:[#allocation3 + $0x148] sm:$0xff] }
 0x6d3   :  { %7317 = vst.msk [vmem:[#allocation3 + $0x388] sm:$0xff] %vm90_vm1, %v7163_v0  ;;  %7318 = vst.msk [vmem:[#allocation3 + $0x390] sm:$0xff] %vm90_vm1, %v7164_v20  ;;  %17650 = vmatmul.mubr.msk.f32.gmra.mrb[8].mxu1 %vm90_vm1, %v7405_v1  ;;  %v7417_v21 = vld [vmem:[#allocation3 + $0x150] sm:$0xff]  ;;  %v7418_v62 = vld [vmem:[#allocation3 + $0x168] sm:$0xff] }
 0x6d4   :  { %7319 = vst.msk [vmem:[#allocation3 + $0x3a8] sm:$0xff] %vm90_vm1, %v7165_v54  ;;  %7320 = vst.msk [vmem:[#allocation3 + $0x3b0] sm:$0xff] %vm90_vm1, %v7166_v28  ;;  %17652 = vmatprep.mubr.msk.f32.mxu1 %vm90_vm1, %v7406_v2  ;;  %v7419_v8 = vld [vmem:[#allocation3 + $0x170] sm:$0xff]  ;;  %v7420_v49 = vld [vmem:[#allocation3 + $0x188] sm:$0xff] }
 0x6d5   :  { %7321 = vst.msk [vmem:[#allocation3 + $0x3c8] sm:$0xff] %vm90_vm1, %v7167_v6  ;;  %7322 = vst.msk [vmem:[#allocation3 + $0x3d0] sm:$0xff] %vm90_vm1, %v7168_v48  ;;  %v7421_v47 = vld [vmem:[#allocation3 + $0x190] sm:$0xff]  ;;  %v7422_v53 = vld [vmem:[#allocation3 + $0x1a8] sm:$0xff] }
 0x6d6   :  { %7323 = vst.msk [vmem:[#allocation3 + $0x3e8] sm:$0xff] %vm90_vm1, %v7169_v18  ;;  %7324 = vst.msk [vmem:[#allocation3 + $0x3f0] sm:$0xff] %vm90_vm1, %v7170_v17  ;;  %v7423_v52 = vld [vmem:[#allocation3 + $0x1b0] sm:$0xff]  ;;  %v7424_v61 = vld [vmem:[#allocation3 + $0x1c8] sm:$0xff] }
 0x6d7   :  { %7325 = vst.msk [vmem:[#allocation3 + $0x408] sm:$0xff] %vm90_vm1, %v7171_v26  ;;  %7326 = vst.msk [vmem:[#allocation3 + $0x410] sm:$0xff] %vm90_vm1, %v7172_v41  ;;  %17653 = vmatmul.mubr.msk.f32.gmra.mrb[10].mxu1 %vm90_vm1, %v7407_v16  ;;  %v7425_v57 = vld [vmem:[#allocation3 + $0x1d0] sm:$0xff]  ;;  %v7426_v29 = vld [vmem:[#allocation3 + $0x1e8] sm:$0xff] }
 0x6d8   :  { %7327 = vst.msk [vmem:[#allocation3 + $0x428] sm:$0xff] %vm90_vm1, %v7173_v56  ;;  %7328 = vst.msk [vmem:[#allocation3 + $0x430] sm:$0xff] %vm90_vm1, %v7174_v51  ;;  %17655 = vmatprep.mubr.msk.f32.mxu1 %vm90_vm1, %v7408_v40  ;;  %v7428_v25 = vld [vmem:[#allocation3 + $0x248] sm:$0xff]  ;;  %v7427_v31 = vld [vmem:[#allocation3 + $0x1f0] sm:$0xff] }
 0x6d9   :  { %7330 = vst.msk [vmem:[#allocation3 + $0x450] sm:$0xff] %vm90_vm1, %v7176_v3  ;;  %v7429_v44 = vld [vmem:[#allocation3 + $0x250] sm:$0xff]  ;;  %v7430_v43 = vld [vmem:[#allocation3 + $0x268] sm:$0xff] }
 0x6da   :  { %v7431_v45 = vld [vmem:[#allocation3 + $0x270] sm:$0xff]  ;;  %v7432_v4 = vld [vmem:[#allocation3 + $0x288] sm:$0xff] }
 0x6db   :  { %17656 = vmatmul.mubr.msk.f32.gmra.mrb[12].mxu1 %vm90_vm1, %v7409_v22  ;;  %v7433_v7 = vld [vmem:[#allocation3 + $0x290] sm:$0xff]  ;;  %v7434_v23 = vld [vmem:[#allocation3 + $0x2a8] sm:$0xff] }
 0x6dc   :  { %17658 = vmatprep.mubr.msk.f32.mxu1 %vm90_vm1, %v7410_v39  ;;  %v7435_v15 = vld [vmem:[#allocation3 + $0x2b0] sm:$0xff]  ;;  %v7436_v11 = vld [vmem:[#allocation3 + $0x2c8] sm:$0xff] }
 0x6dd   :  { %v7437_v19 = vld [vmem:[#allocation3 + $0x2d0] sm:$0xff]  ;;  %v7438_v14 = vld [vmem:[#allocation3 + $0x2e8] sm:$0xff] }
 0x6de   :  { %v7439_v38 = vld [vmem:[#allocation3 + $0x2f0] sm:$0xff]  ;;  %v7440_v30 = vld [vmem:[#allocation3 + $0x308] sm:$0xff] }
 0x6df   :  { %17659 = vmatmul.mubr.msk.f32.gmra.mrb[14].mxu1 %vm90_vm1, %v7411_v33  ;;  %v7441_v35 = vld [vmem:[#allocation3 + $0x310] sm:$0xff]  ;;  %v7442_v5 = vld [vmem:[#allocation3 + $0x328] sm:$0xff] }
 0x6e0   :  { %17661 = vmatprep.mubr.msk.f32.mxu1 %vm90_vm1, %v7412_v24  ;;  %v7443_v13 = vld [vmem:[#allocation3 + $0x330] sm:$0xff]  ;;  %v7444_v50 = vld [vmem:[#allocation3 + $0x348] sm:$0xff] }
 0x6e1   :  { %v7445_v0 = vld [vmem:[#allocation3 + $0x350] sm:$0xff]  ;;  %v7446_v59 = vld [vmem:[#allocation3 + $0x368] sm:$0xff] }
 0x6e2   :  { %v7447_v20 = vld [vmem:[#allocation3 + $0x370] sm:$0xff]  ;;  %v7448_v54 = vld [vmem:[#allocation3 + $0x388] sm:$0xff] }
 0x6e3   :  { %17662 = vmatmul.mubr.msk.f32.gmra.mrb[16].mxu1 %vm90_vm1, %v7413_v32  ;;  %v7449_v28 = vld [vmem:[#allocation3 + $0x390] sm:$0xff]  ;;  %v7450_v6 = vld [vmem:[#allocation3 + $0x3a8] sm:$0xff] }
 0x6e4   :  { %17664 = vmatprep.mubr.msk.f32.mxu1 %vm90_vm1, %v7414_v46  ;;  %v7451_v48 = vld [vmem:[#allocation3 + $0x3b0] sm:$0xff]  ;;  %v7452_v18 = vld [vmem:[#allocation3 + $0x3c8] sm:$0xff] }
 0x6e5   :  { %v7453_v60 = vld [vmem:[#allocation3 + $0x3d0] sm:$0xff]  ;;  %v7454_v17 = vld [vmem:[#allocation3 + $0x3e8] sm:$0xff] }
 0x6e6   :  { %v7455_v58 = vld [vmem:[#allocation3 + $0x3f0] sm:$0xff]  ;;  %v7456_v26 = vld [vmem:[#allocation3 + $0x408] sm:$0xff] }
 0x6e7   :  { %17665 = vmatmul.mubr.msk.f32.gmra.mrb[18].mxu1 %vm90_vm1, %v7415_v55  ;;  %v7457_v37 = vld [vmem:[#allocation3 + $0x410] sm:$0xff]  ;;  %v7458_v36 = vld [vmem:[#allocation3 + $0x428] sm:$0xff] }
 0x6e8   :  { %17667 = vmatprep.mubr.msk.f32.mxu1 %vm90_vm1, %v7416_v63  ;;  %v7331_v41 = vld [vmem:[#allocation3 + $0x7] sm:$0xff]  ;;  %v7459_v10 = vld [vmem:[#allocation3 + $0x430] sm:$0xff] }
 0x6e9   :  { %v7332_v56 = vld [vmem:[#allocation3 + $0xf] sm:$0xff]  ;;  %v23489_v51 = vld [vmem:[#allocation3 + $0x27] sm:$0xff] }
 0x6ea   :  { %v23486_v34 = vld [vmem:[%s26866_s4 + $0xc] sm:$0xf] }
 0x6eb   :  { %17668 = vmatmul.mubr.msk.f32.gmra.mrb[20].mxu1 %vm90_vm1, %v7417_v21  ;;  %v23497_v3 = vld [vmem:[#allocation3 + $0x2f] sm:$0xff]  ;;  %v23501_v12 = vld [vmem:[#allocation3 + $0x47] sm:$0xff] }
 0x6ec   :  { %17670 = vmatprep.mubr.msk.f32.mxu1 %vm90_vm1, %v7418_v62  ;;  %v23505_v27 = vld [vmem:[#allocation3 + $0x4f] sm:$0xff]  ;;  %v23517_v1 = vld [vmem:[#allocation3 + $0x87] sm:$0xff] }
 0x6ed   :  { %v23513_v9 = vld [vmem:[#allocation3 + $0x6f] sm:$0xff]  ;;  %v23525_v16 = vld [vmem:[#allocation3 + $0xa7] sm:$0xff] }
 0x6ee   :  { %v23521_v2 = vld [vmem:[#allocation3 + $0x8f] sm:$0xff]  ;;  %v23533_v22 = vld [vmem:[#allocation3 + $0xc7] sm:$0xff] }
 0x6ef   :  { %17671 = vmatmul.mubr.msk.f32.gmra.mrb[22].mxu1 %vm90_vm1, %v7419_v8  ;;  %v23529_v40 = vld [vmem:[#allocation3 + $0xaf] sm:$0xff]  ;;  %v23541_v33 = vld [vmem:[#allocation3 + $0xe7] sm:$0xff] }
 0x6f0   :  { %17673 = vmatprep.mubr.msk.f32.mxu1 %vm90_vm1, %v7420_v49  ;;  %v23537_v39 = vld [vmem:[#allocation3 + $0xcf] sm:$0xff]  ;;  %v23549_v32 = vld [vmem:[#allocation3 + $0x107] sm:$0xff] }
 0x6f1   :  { %v23545_v24 = vld [vmem:[#allocation3 + $0xef] sm:$0xff]  ;;  %v23557_v55 = vld [vmem:[#allocation3 + $0x127] sm:$0xff] }
 0x6f2   :  { %v23553_v46 = vld [vmem:[#allocation3 + $0x10f] sm:$0xff]  ;;  %v23565_v21 = vld [vmem:[#allocation3 + $0x147] sm:$0xff] }
 0x6f3   :  { %17674 = vmatmul.mubr.msk.f32.gmra.mrb[24].mxu1 %vm90_vm1, %v7421_v47  ;;  %v23561_v63 = vld [vmem:[#allocation3 + $0x12f] sm:$0xff]  ;;  %v23573_v8 = vld [vmem:[#allocation3 + $0x167] sm:$0xff] }
 0x6f4   :  { %17676 = vmatprep.mubr.msk.f32.mxu1 %vm90_vm1, %v7422_v53  ;;  %v23569_v62 = vld [vmem:[#allocation3 + $0x14f] sm:$0xff]  ;;  %v23581_v47 = vld [vmem:[#allocation3 + $0x187] sm:$0xff] }
 0x6f5   :  { %v23577_v49 = vld [vmem:[#allocation3 + $0x16f] sm:$0xff] }
 0x6f6   :  { %v23585_v53 = vld [vmem:[#allocation3 + $0x18f] sm:$0xff] }
 0x6f7   :  { %17677 = vmatmul.mubr.msk.f32.gmra.mrb[26].mxu1 %vm90_vm1, %v7423_v52  ;;  %v23589_v52 = vld [vmem:[#allocation3 + $0x1a7] sm:$0xff] }
 0x6f8   :  { %17679 = vmatprep.mubr.msk.f32.mxu1 %vm90_vm1, %v7424_v61  ;;  %v23593_v61 = vld [vmem:[#allocation3 + $0x1af] sm:$0xff] }
 0x6fb   :  { %17680 = vmatmul.mubr.msk.f32.gmra.mrb[28].mxu1 %vm90_vm1, %v7425_v57  ;;  %v23597_v57 = vld [vmem:[#allocation3 + $0x1c7] sm:$0xff] }
 0x6fc   :  { %17682 = vmatprep.mubr.msk.f32.mxu1 %vm90_vm1, %v7426_v29  ;;  %v23601_v29 = vld [vmem:[#allocation3 + $0x1cf] sm:$0xff] }
 0x6ff   :  { %17683 = vmatmul.mubr.msk.f32.gmra.mrb[30].mxu1 %vm90_vm1, %v7427_v31  ;;  %v7363_v31 = vld [vmem:[#allocation3 + $0x247] sm:$0xff] }
 0x700   :  { %17685 = vmatprep.mubr.msk.f32.mxu1 %vm90_vm1, %v7428_v25  ;;  %v23605_v25 = vld [vmem:[#allocation3 + $0x1e7] sm:$0xff] }
 0x703   :  { %17686 = vmatmul.mubr.msk.f32.gmra.mrb[32].mxu1 %vm90_vm1, %v7429_v44  ;;  %v23609_v44 = vld [vmem:[#allocation3 + $0x1ef] sm:$0xff] }
 0x704   :  { %17688 = vmatprep.mubr.msk.f32.mxu1 %vm90_vm1, %v7430_v43  ;;  %v7364_v43 = vld [vmem:[#allocation3 + $0x24f] sm:$0xff] }
 0x707   :  { %17689 = vmatmul.mubr.msk.f32.gmra.mrb[34].mxu1 %vm90_vm1, %v7431_v45  ;;  %v23615_v45 = vld [vmem:[#allocation3 + $0x267] sm:$0xff] }
 0x708   :  { %17691 = vmatprep.mubr.msk.f32.mxu1 %vm90_vm1, %v7432_v4  ;;  %v23619_v4 = vld [vmem:[#allocation3 + $0x26f] sm:$0xff] }
 0x70b   :  { %17692 = vmatmul.mubr.msk.f32.gmra.mrb[36].mxu1 %vm90_vm1, %v7433_v7  ;;  %v23623_v7 = vld [vmem:[#allocation3 + $0x287] sm:$0xff] }
 0x70c   :  { %17694 = vmatprep.mubr.msk.f32.mxu1 %vm90_vm1, %v7434_v23  ;;  %v23627_v23 = vld [vmem:[#allocation3 + $0x28f] sm:$0xff] }
 0x70f   :  { %17695 = vmatmul.mubr.msk.f32.gmra.mrb[38].mxu1 %vm90_vm1, %v7435_v15  ;;  %v23631_v15 = vld [vmem:[#allocation3 + $0x2a7] sm:$0xff] }
 0x710   :  { %17697 = vmatprep.mubr.msk.f32.mxu1 %vm90_vm1, %v7436_v11  ;;  %v23635_v11 = vld [vmem:[#allocation3 + $0x2af] sm:$0xff] }
 0x713   :  { %17698 = vmatmul.mubr.msk.f32.gmra.mrb[40].mxu1 %vm90_vm1, %v7437_v19  ;;  %v23639_v19 = vld [vmem:[#allocation3 + $0x2c7] sm:$0xff] }
 0x714   :  { %17700 = vmatprep.mubr.msk.f32.mxu1 %vm90_vm1, %v7438_v14  ;;  %v23643_v14 = vld [vmem:[#allocation3 + $0x2cf] sm:$0xff] }
 0x717   :  { %17701 = vmatmul.mubr.msk.f32.gmra.mrb[42].mxu1 %vm90_vm1, %v7439_v38  ;;  %v23647_v38 = vld [vmem:[#allocation3 + $0x2e7] sm:$0xff] }
 0x718   :  { %17703 = vmatprep.mubr.msk.f32.mxu1 %vm90_vm1, %v7440_v30  ;;  %v23651_v30 = vld [vmem:[#allocation3 + $0x2ef] sm:$0xff] }
 0x71b   :  { %17704 = vmatmul.mubr.msk.f32.gmra.mrb[44].mxu1 %vm90_vm1, %v7441_v35  ;;  %v23655_v35 = vld [vmem:[#allocation3 + $0x307] sm:$0xff] }
 0x71c   :  { %17706 = vmatprep.mubr.msk.f32.mxu1 %vm90_vm1, %v7442_v5  ;;  %v23659_v5 = vld [vmem:[#allocation3 + $0x30f] sm:$0xff] }
 0x71f   :  { %17707 = vmatmul.mubr.msk.f32.gmra.mrb[46].mxu1 %vm90_vm1, %v7443_v13  ;;  %v23663_v13 = vld [vmem:[#allocation3 + $0x327] sm:$0xff] }
 0x720   :  { %17709 = vmatprep.mubr.msk.f32.mxu1 %vm90_vm1, %v7444_v50  ;;  %v23667_v50 = vld [vmem:[#allocation3 + $0x32f] sm:$0xff] }
 0x723   :  { %17710 = vmatmul.mubr.msk.f32.gmra.mrb[48].mxu1 %vm90_vm1, %v7445_v0  ;;  %v23671_v0 = vld [vmem:[#allocation3 + $0x347] sm:$0xff] }
 0x724   :  { %17712 = vmatprep.mubr.msk.f32.mxu1 %vm90_vm1, %v7446_v59  ;;  %v23675_v59 = vld [vmem:[#allocation3 + $0x34f] sm:$0xff] }
 0x727   :  { %17713 = vmatmul.mubr.msk.f32.gmra.mrb[50].mxu1 %vm90_vm1, %v7447_v20  ;;  %v23679_v20 = vld [vmem:[#allocation3 + $0x367] sm:$0xff] }
 0x728   :  { %17715 = vmatprep.mubr.msk.f32.mxu1 %vm90_vm1, %v7448_v54  ;;  %v23683_v54 = vld [vmem:[#allocation3 + $0x36f] sm:$0xff] }
 0x72b   :  { %17716 = vmatmul.mubr.msk.f32.gmra.mrb[52].mxu1 %vm90_vm1, %v7449_v28  ;;  %v23687_v28 = vld [vmem:[#allocation3 + $0x387] sm:$0xff] }
 0x72c   :  { %17718 = vmatprep.mubr.msk.f32.mxu1 %vm90_vm1, %v7450_v6  ;;  %v23691_v6 = vld [vmem:[#allocation3 + $0x38f] sm:$0xff] }
 0x72f   :  { %17719 = vmatmul.mubr.msk.f32.gmra.mrb[54].mxu1 %vm90_vm1, %v7451_v48  ;;  %v23695_v48 = vld [vmem:[#allocation3 + $0x3a7] sm:$0xff] }
 0x730   :  { %17721 = vmatprep.mubr.msk.f32.mxu1 %vm90_vm1, %v7452_v18  ;;  %v23699_v18 = vld [vmem:[#allocation3 + $0x3af] sm:$0xff] }
 0x733   :  { %17722 = vmatmul.mubr.msk.f32.gmra.mrb[56].mxu1 %vm90_vm1, %v7453_v60  ;;  %v23703_v60 = vld [vmem:[#allocation3 + $0x3c7] sm:$0xff] }
 0x734   :  { %17724 = vmatprep.mubr.msk.f32.mxu1 %vm90_vm1, %v7454_v17  ;;  %v23707_v17 = vld [vmem:[#allocation3 + $0x3cf] sm:$0xff] }
 0x737   :  { %17725 = vmatmul.mubr.msk.f32.gmra.mrb[58].mxu1 %vm90_vm1, %v7455_v58  ;;  %v23711_v58 = vld [vmem:[#allocation3 + $0x3e7] sm:$0xff] }
 0x738   :  { %17727 = vmatprep.mubr.msk.f32.mxu1 %vm90_vm1, %v7456_v26  ;;  %v23715_v26 = vld [vmem:[#allocation3 + $0x3ef] sm:$0xff] }
 0x73b   :  { %17728 = vmatmul.mubr.msk.f32.gmra.mrb[60].mxu1 %vm90_vm1, %v7457_v37  ;;  %v23719_v37 = vld [vmem:[#allocation3 + $0x407] sm:$0xff] }
 0x73c   :  { %17730 = vmatprep.mubr.msk.f32.mxu1 %vm90_vm1, %v7458_v36  ;;  %v23723_v36 = vld [vmem:[#allocation3 + $0x40f] sm:$0xff] }
 0x73d   :  { %27496 = vst [vmem:[#allocation128_spill] sm:$0xff] %v23723_v36 }
 0x73f   :  { %17731 = vmatmul.mubr.msk.f32.gmra.mrb[62].mxu1 %vm90_vm1, %v7459_v10  ;;  %v8622_v10 = vld [vmem:[#allocation3 + $0x9] sm:$0xff] }
 0x740   :  { %17735 = vmatprep.mubr.msk.f32.mxu1 %vm90_vm1, %v7331_v41  ;;  %v23727_v41 = vld [vmem:[#allocation3 + $0x427] sm:$0xff] }
 0x741   :  { %27497 = vst [vmem:[#allocation129_spill] sm:$0xff] %v23727_v41 }
 0x743   :  { %17736 = vmatmul.mubr.msk.f32.vlgmr.msra.gmra.mrb[0].mxu1 %vm90_vm1, %v7332_v56  ;;  %v23731_v56 = vld [vmem:[#allocation3 + $0x42f] sm:$0xff] }
 0x744   :  { %17832 = vmatpush3.msk.msra.mxu1 %vm569_vm0, %v23320_v42  ;;  %17738 = vmatprep.mubr.msk.f32.mxu1 %vm90_vm1, %v23489_v51  ;;  %v23509_v42 = vld [vmem:[#allocation3 + $0x67] sm:$0xff]  ;;  %27498 = vst [vmem:[#allocation130_spill] sm:$0xff] %v23731_v56 }
 0x745   :  { %17929 = vmatprep.subr.msk.mxu1 %vm569_vm0, %v23486_v34 }
 0x747   :  { %17739 = vmatmul.mubr.msk.f32.gmra.mrb[2].mxu1 %vm90_vm1, %v23497_v3 }
 0x748   :  { %17741 = vmatprep.mubr.msk.f32.mxu1 %vm90_vm1, %v23501_v12 }
 0x74b   :  { %17742 = vmatmul.mubr.msk.f32.gmra.mrb[4].mxu1 %vm90_vm1, %v23505_v27 }
 0x74c   :  { %17744 = vmatprep.mubr.msk.f32.mxu1 %vm90_vm1, %v23509_v42 }
 0x74f   :  { %17745 = vmatmul.mubr.msk.f32.gmra.mrb[6].mxu1 %vm90_vm1, %v23513_v9 }
 0x750   :  { %17747 = vmatprep.mubr.msk.f32.mxu1 %vm90_vm1, %v23517_v1 }
 0x753   :  { %17748 = vmatmul.mubr.msk.f32.gmra.mrb[8].mxu1 %vm90_vm1, %v23521_v2 }
 0x754   :  { %17750 = vmatprep.mubr.msk.f32.mxu1 %vm90_vm1, %v23525_v16 }
 0x757   :  { %17751 = vmatmul.mubr.msk.f32.gmra.mrb[10].mxu1 %vm90_vm1, %v23529_v40 }
 0x758   :  { %17753 = vmatprep.mubr.msk.f32.mxu1 %vm90_vm1, %v23533_v22 }
 0x75b   :  { %17754 = vmatmul.mubr.msk.f32.gmra.mrb[12].mxu1 %vm90_vm1, %v23537_v39 }
 0x75c   :  { %17756 = vmatprep.mubr.msk.f32.mxu1 %vm90_vm1, %v23541_v33 }
 0x75f   :  { %17757 = vmatmul.mubr.msk.f32.gmra.mrb[14].mxu1 %vm90_vm1, %v23545_v24 }
 0x760   :  { %17759 = vmatprep.mubr.msk.f32.mxu1 %vm90_vm1, %v23549_v32 }
 0x763   :  { %17760 = vmatmul.mubr.msk.f32.gmra.mrb[16].mxu1 %vm90_vm1, %v23553_v46 }
 0x764   :  { %17762 = vmatprep.mubr.msk.f32.mxu1 %vm90_vm1, %v23557_v55 }
 0x767   :  { %17763 = vmatmul.mubr.msk.f32.gmra.mrb[18].mxu1 %vm90_vm1, %v23561_v63 }
 0x768   :  { %17765 = vmatprep.mubr.msk.f32.mxu1 %vm90_vm1, %v23565_v21 }
 0x76b   :  { %17766 = vmatmul.mubr.msk.f32.gmra.mrb[20].mxu1 %vm90_vm1, %v23569_v62 }
 0x76c   :  { %17768 = vmatprep.mubr.msk.f32.mxu1 %vm90_vm1, %v23573_v8 }
 0x76f   :  { %17769 = vmatmul.mubr.msk.f32.gmra.mrb[22].mxu1 %vm90_vm1, %v23577_v49 }
 0x770   :  { %17771 = vmatprep.mubr.msk.f32.mxu1 %vm90_vm1, %v23581_v47 }
 0x773   :  { %17772 = vmatmul.mubr.msk.f32.gmra.mrb[24].mxu1 %vm90_vm1, %v23585_v53 }
 0x774   :  { %17774 = vmatprep.mubr.msk.f32.mxu1 %vm90_vm1, %v23589_v52 }
 0x777   :  { %17775 = vmatmul.mubr.msk.f32.gmra.mrb[26].mxu1 %vm90_vm1, %v23593_v61 }
 0x778   :  { %17777 = vmatprep.mubr.msk.f32.mxu1 %vm90_vm1, %v23597_v57 }
 0x77b   :  { %17778 = vmatmul.mubr.msk.f32.gmra.mrb[28].mxu1 %vm90_vm1, %v23601_v29 }
 0x77c   :  { %17780 = vmatprep.mubr.msk.f32.mxu1 %vm90_vm1, %v23605_v25 }
 0x77f   :  { %17781 = vmatmul.mubr.msk.f32.gmra.mrb[30].mxu1 %vm90_vm1, %v23609_v44 }
 0x780   :  { %17783 = vmatprep.mubr.msk.f32.mxu1 %vm90_vm1, %v7363_v31  ;;  %v8623_v31 = vld [vmem:[#allocation3 + $0x11] sm:$0xff] }
 0x783   :  { %17784 = vmatmul.mubr.msk.f32.gmra.mrb[32].mxu1 %vm90_vm1, %v7364_v43  ;;  %v23739_v43 = vld [vmem:[%s26866_s4 + $0x10] sm:$0xf] }
 0x784   :  { %17786 = vmatprep.mubr.msk.f32.mxu1 %vm90_vm1, %v23615_v45 }
 0x787   :  { %17787 = vmatmul.mubr.msk.f32.gmra.mrb[34].mxu1 %vm90_vm1, %v23619_v4 }
 0x788   :  { %17789 = vmatprep.mubr.msk.f32.mxu1 %vm90_vm1, %v23623_v7 }
 0x78b   :  { %17790 = vmatmul.mubr.msk.f32.gmra.mrb[36].mxu1 %vm90_vm1, %v23627_v23 }
 0x78c   :  { %17792 = vmatprep.mubr.msk.f32.mxu1 %vm90_vm1, %v23631_v15 }
 0x78f   :  { %17793 = vmatmul.mubr.msk.f32.gmra.mrb[38].mxu1 %vm90_vm1, %v23635_v11 }
 0x790   :  { %17795 = vmatprep.mubr.msk.f32.mxu1 %vm90_vm1, %v23639_v19 }
 0x793   :  { %17796 = vmatmul.mubr.msk.f32.gmra.mrb[40].mxu1 %vm90_vm1, %v23643_v14 }
 0x794   :  { %17798 = vmatprep.mubr.msk.f32.mxu1 %vm90_vm1, %v23647_v38 }
 0x797   :  { %17799 = vmatmul.mubr.msk.f32.gmra.mrb[42].mxu1 %vm90_vm1, %v23651_v30 }
 0x798   :  { %17801 = vmatprep.mubr.msk.f32.mxu1 %vm90_vm1, %v23655_v35 }
 0x79b   :  { %17802 = vmatmul.mubr.msk.f32.gmra.mrb[44].mxu1 %vm90_vm1, %v23659_v5 }
 0x79c   :  { %17804 = vmatprep.mubr.msk.f32.mxu1 %vm90_vm1, %v23663_v13 }
 0x79f   :  { %17805 = vmatmul.mubr.msk.f32.gmra.mrb[46].mxu1 %vm90_vm1, %v23667_v50 }
 0x7a0   :  { %17807 = vmatprep.mubr.msk.f32.mxu1 %vm90_vm1, %v23671_v0 }
 0x7a3   :  { %17808 = vmatmul.mubr.msk.f32.gmra.mrb[48].mxu1 %vm90_vm1, %v23675_v59 }
 0x7a4   :  { %17810 = vmatprep.mubr.msk.f32.mxu1 %vm90_vm1, %v23679_v20 }
 0x7a7   :  { %17811 = vmatmul.mubr.msk.f32.gmra.mrb[50].mxu1 %vm90_vm1, %v23683_v54 }
 0x7a8   :  { %17813 = vmatprep.mubr.msk.f32.mxu1 %vm90_vm1, %v23687_v28 }
 0x7ab   :  { %17814 = vmatmul.mubr.msk.f32.gmra.mrb[52].mxu1 %vm90_vm1, %v23691_v6 }
 0x7ac   :  { %17816 = vmatprep.mubr.msk.f32.mxu1 %vm90_vm1, %v23695_v48 }
 0x7af   :  { %17817 = vmatmul.mubr.msk.f32.gmra.mrb[54].mxu1 %vm90_vm1, %v23699_v18 }
 0x7b0   :  { %17819 = vmatprep.mubr.msk.f32.mxu1 %vm90_vm1, %v23703_v60 }
 0x7b3   :  { %17820 = vmatmul.mubr.msk.f32.gmra.mrb[56].mxu1 %vm90_vm1, %v23707_v17 }
 0x7b4   :  { %17822 = vmatprep.mubr.msk.f32.mxu1 %vm90_vm1, %v23711_v58 }
 0x7b7   :  { %17823 = vmatmul.mubr.msk.f32.gmra.mrb[58].mxu1 %vm90_vm1, %v23715_v26 }
 0x7b8   :  { %17825 = vmatprep.mubr.msk.f32.mxu1 %vm90_vm1, %v23719_v37 }
 0x7bb   :  { %17826 = vmatmul.mubr.msk.f32.gmra.mrb[60].mxu1 %vm90_vm1, %v23723_v36  ;;  %v23742_v36 = vld [vmem:[#allocation3 + $0x29] sm:$0xff] }
 0x7bc   :  { %17828 = vmatprep.mubr.msk.f32.mxu1 %vm90_vm1, %v23727_v41  ;;  %27499 = vst [vmem:[#allocation131_spill] sm:$0xff] %v23742_v36  ;;  %v23862_v41 = vld [vmem:[#allocation3 + $0x1f1] sm:$0xff] }
 0x7bd   :  { %27528 = vst [vmem:[#allocation89_spill] sm:$0xff] %v23862_v41 }
 0x7bf   :  { %17829 = vmatmul.mubr.msk.f32.gmra.mrb[62].mxu1 %vm90_vm1, %v23731_v56  ;;  %v23754_v56 = vld [vmem:[#allocation3 + $0x49] sm:$0xff] }
 0x7c0   :  { %17833 = vmatprep.mubr.msk.f32.mxu1 %vm90_vm1, %v8622_v10  ;;  %v23750_v10 = vld [vmem:[#allocation3 + $0x31] sm:$0xff]  ;;  %27501 = vst [vmem:[#allocation133_spill] sm:$0xff] %v23754_v56 }
 0x7c1   :  { %27500 = vst [vmem:[#allocation132_spill] sm:$0xff] %v23750_v10 }
 0x7c3   :  { %17834 = vmatmul.mubr.msk.f32.vlgmr.msra.gmra.mrb[0].mxu1 %vm90_vm1, %v8623_v31  ;;  %v23758_v31 = vld [vmem:[#allocation3 + $0x51] sm:$0xff] }
 0x7c4   :  { %17930 = vmatpush3.msk.msra.mxu1 %vm569_vm0, %v23486_v34  ;;  %17836 = vmatprep.mubr.msk.f32.mxu1 %vm90_vm1, %v23742_v36  ;;  %27502 = vst [vmem:[#allocation134_spill] sm:$0xff] %v23758_v31  ;;  %v23762_v34 = vld [vmem:[#allocation3 + $0x69] sm:$0xff]  ;;  %v23766_v36 = vld [vmem:[#allocation3 + $0x71] sm:$0xff] }
 0x7c5   :  { %18027 = vmatprep.subr.msk.mxu1 %vm569_vm0, %v23739_v43  ;;  %27503 = vst [vmem:[#allocation135_spill] sm:$0xff] %v23762_v34  ;;  %27504 = vst [vmem:[#allocation136_spill] sm:$0xff] %v23766_v36 }
 0x7c7   :  { %17837 = vmatmul.mubr.msk.f32.gmra.mrb[2].mxu1 %vm90_vm1, %v23750_v10  ;;  %v23770_v10 = vld [vmem:[#allocation3 + $0x89] sm:$0xff] }
 0x7c8   :  { %17839 = vmatprep.mubr.msk.f32.mxu1 %vm90_vm1, %v23754_v56  ;;  %27505 = vst [vmem:[#allocation68_spill] sm:$0xff] %v23770_v10  ;;  %v23774_v56 = vld [vmem:[#allocation3 + $0x91] sm:$0xff] }
 0x7c9   :  { %27506 = vst [vmem:[#allocation69_spill] sm:$0xff] %v23774_v56 }
 0x7cb   :  { %17840 = vmatmul.mubr.msk.f32.gmra.mrb[4].mxu1 %vm90_vm1, %v23758_v31  ;;  %v23778_v31 = vld [vmem:[#allocation3 + $0xa9] sm:$0xff] }
 0x7cc   :  { %17842 = vmatprep.mubr.msk.f32.mxu1 %vm90_vm1, %v23762_v34  ;;  %27507 = vst [vmem:[#allocation71_spill] sm:$0xff] %v23778_v31  ;;  %v23782_v34 = vld [vmem:[#allocation3 + $0xb1] sm:$0xff] }
 0x7cd   :  { %27508 = vst [vmem:[#allocation70_spill] sm:$0xff] %v23782_v34 }
 0x7cf   :  { %17843 = vmatmul.mubr.msk.f32.gmra.mrb[6].mxu1 %vm90_vm1, %v23766_v36  ;;  %v23786_v36 = vld [vmem:[#allocation3 + $0xc9] sm:$0xff] }
 0x7d0   :  { %17845 = vmatprep.mubr.msk.f32.mxu1 %vm90_vm1, %v23770_v10  ;;  %27509 = vst [vmem:[#allocation73_spill] sm:$0xff] %v23786_v36  ;;  %v23790_v10 = vld [vmem:[#allocation3 + $0xd1] sm:$0xff] }
 0x7d1   :  { %27510 = vst [vmem:[#allocation72_spill] sm:$0xff] %v23790_v10 }
 0x7d3   :  { %17846 = vmatmul.mubr.msk.f32.gmra.mrb[8].mxu1 %vm90_vm1, %v23774_v56  ;;  %v23794_v56 = vld [vmem:[#allocation3 + $0xe9] sm:$0xff] }
 0x7d4   :  { %17848 = vmatprep.mubr.msk.f32.mxu1 %vm90_vm1, %v23778_v31  ;;  %27511 = vst [vmem:[#allocation75_spill] sm:$0xff] %v23794_v56  ;;  %v23798_v31 = vld [vmem:[#allocation3 + $0xf1] sm:$0xff] }
 0x7d5   :  { %27512 = vst [vmem:[#allocation74_spill] sm:$0xff] %v23798_v31 }
 0x7d7   :  { %17849 = vmatmul.mubr.msk.f32.gmra.mrb[10].mxu1 %vm90_vm1, %v23782_v34  ;;  %v23802_v34 = vld [vmem:[#allocation3 + $0x109] sm:$0xff] }
 0x7d8   :  { %17851 = vmatprep.mubr.msk.f32.mxu1 %vm90_vm1, %v23786_v36  ;;  %27513 = vst [vmem:[#allocation77_spill] sm:$0xff] %v23802_v34  ;;  %v23806_v36 = vld [vmem:[#allocation3 + $0x111] sm:$0xff] }
 0x7d9   :  { %27514 = vst [vmem:[#allocation76_spill] sm:$0xff] %v23806_v36 }
 0x7db   :  { %17852 = vmatmul.mubr.msk.f32.gmra.mrb[12].mxu1 %vm90_vm1, %v23790_v10  ;;  %v23810_v10 = vld [vmem:[#allocation3 + $0x129] sm:$0xff] }
 0x7dc   :  { %17854 = vmatprep.mubr.msk.f32.mxu1 %vm90_vm1, %v23794_v56  ;;  %27515 = vst [vmem:[#allocation79_spill] sm:$0xff] %v23810_v10  ;;  %v23814_v56 = vld [vmem:[#allocation3 + $0x131] sm:$0xff] }
 0x7dd   :  { %27516 = vst [vmem:[#allocation78_spill] sm:$0xff] %v23814_v56 }
 0x7df   :  { %17855 = vmatmul.mubr.msk.f32.gmra.mrb[14].mxu1 %vm90_vm1, %v23798_v31  ;;  %v23818_v31 = vld [vmem:[#allocation3 + $0x149] sm:$0xff] }
 0x7e0   :  { %17857 = vmatprep.mubr.msk.f32.mxu1 %vm90_vm1, %v23802_v34  ;;  %27517 = vst [vmem:[#allocation81_spill] sm:$0xff] %v23818_v31  ;;  %v23822_v34 = vld [vmem:[#allocation3 + $0x151] sm:$0xff] }
 0x7e1   :  { %27518 = vst [vmem:[#allocation80_spill] sm:$0xff] %v23822_v34 }
 0x7e3   :  { %17858 = vmatmul.mubr.msk.f32.gmra.mrb[16].mxu1 %vm90_vm1, %v23806_v36  ;;  %v23826_v36 = vld [vmem:[#allocation3 + $0x169] sm:$0xff] }
 0x7e4   :  { %17860 = vmatprep.mubr.msk.f32.mxu1 %vm90_vm1, %v23810_v10  ;;  %27519 = vst [vmem:[#allocation83_spill] sm:$0xff] %v23826_v36  ;;  %v23830_v10 = vld [vmem:[#allocation3 + $0x171] sm:$0xff] }
 0x7e5   :  { %27520 = vst [vmem:[#allocation82_spill] sm:$0xff] %v23830_v10 }
 0x7e7   :  { %17861 = vmatmul.mubr.msk.f32.gmra.mrb[18].mxu1 %vm90_vm1, %v23814_v56  ;;  %v23834_v56 = vld [vmem:[#allocation3 + $0x189] sm:$0xff] }
 0x7e8   :  { %17863 = vmatprep.mubr.msk.f32.mxu1 %vm90_vm1, %v23818_v31  ;;  %27521 = vst [vmem:[#allocation105_spill] sm:$0xff] %v23834_v56  ;;  %v23838_v31 = vld [vmem:[#allocation3 + $0x191] sm:$0xff] }
 0x7e9   :  { %27522 = vst [vmem:[#allocation106_spill] sm:$0xff] %v23838_v31 }
 0x7eb   :  { %17864 = vmatmul.mubr.msk.f32.gmra.mrb[20].mxu1 %vm90_vm1, %v23822_v34  ;;  %v23842_v34 = vld [vmem:[#allocation3 + $0x1a9] sm:$0xff] }
 0x7ec   :  { %17866 = vmatprep.mubr.msk.f32.mxu1 %vm90_vm1, %v23826_v36  ;;  %27523 = vst [vmem:[#allocation84_spill] sm:$0xff] %v23842_v34  ;;  %v23846_v36 = vld [vmem:[#allocation3 + $0x1b1] sm:$0xff] }
 0x7ed   :  { %27524 = vst [vmem:[#allocation85_spill] sm:$0xff] %v23846_v36 }
 0x7ef   :  { %17867 = vmatmul.mubr.msk.f32.gmra.mrb[22].mxu1 %vm90_vm1, %v23830_v10  ;;  %v23850_v10 = vld [vmem:[#allocation3 + $0x1c9] sm:$0xff] }
 0x7f0   :  { %17869 = vmatprep.mubr.msk.f32.mxu1 %vm90_vm1, %v23834_v56  ;;  %27525 = vst [vmem:[#allocation86_spill] sm:$0xff] %v23850_v10  ;;  %v23854_v56 = vld [vmem:[#allocation3 + $0x1d1] sm:$0xff] }
 0x7f1   :  { %27526 = vst [vmem:[#allocation87_spill] sm:$0xff] %v23854_v56 }
 0x7f3   :  { %17870 = vmatmul.mubr.msk.f32.gmra.mrb[24].mxu1 %vm90_vm1, %v23838_v31  ;;  %v23858_v31 = vld [vmem:[#allocation3 + $0x1e9] sm:$0xff] }
 0x7f4   :  { %17872 = vmatprep.mubr.msk.f32.mxu1 %vm90_vm1, %v23842_v34  ;;  %27527 = vst [vmem:[#allocation88_spill] sm:$0xff] %v23858_v31  ;;  %v8654_v34 = vld [vmem:[#allocation3 + $0x249] sm:$0xff] }
 0x7f7   :  { %17873 = vmatmul.mubr.msk.f32.gmra.mrb[26].mxu1 %vm90_vm1, %v23846_v36  ;;  %v8655_v36 = vld [vmem:[#allocation3 + $0x251] sm:$0xff] }
 0x7f8   :  { %17875 = vmatprep.mubr.msk.f32.mxu1 %vm90_vm1, %v23850_v10  ;;  %v23868_v10 = vld [vmem:[#allocation3 + $0x269] sm:$0xff] }
 0x7fb   :  { %17876 = vmatmul.mubr.msk.f32.gmra.mrb[28].mxu1 %vm90_vm1, %v23854_v56  ;;  %v23872_v56 = vld [vmem:[#allocation3 + $0x271] sm:$0xff] }
 0x7fc   :  { %17878 = vmatprep.mubr.msk.f32.mxu1 %vm90_vm1, %v23858_v31  ;;  %27529 = vst [vmem:[#allocation90_spill] sm:$0xff] %v23872_v56  ;;  %v23876_v31 = vld [vmem:[#allocation3 + $0x289] sm:$0xff] }
 0x7fd   :  { %27530 = vst [vmem:[#allocation91_spill] sm:$0xff] %v23876_v31 }
 0x7ff   :  { %17879 = vmatmul.mubr.msk.f32.gmra.mrb[30].mxu1 %vm90_vm1, %v23862_v41  ;;  %v23880_v41 = vld [vmem:[#allocation3 + $0x291] sm:$0xff] }
 0x800   :  { %17881 = vmatprep.mubr.msk.f32.mxu1 %vm90_vm1, %v8654_v34  ;;  %27531 = vst [vmem:[#allocation92_spill] sm:$0xff] %v23880_v41  ;;  %v23888_v34 = vld [vmem:[#allocation3 + $0x2b1] sm:$0xff] }
 0x801   :  { %27533 = vst [vmem:[#allocation94_spill] sm:$0xff] %v23888_v34 }
 0x803   :  { %17882 = vmatmul.mubr.msk.f32.gmra.mrb[32].mxu1 %vm90_vm1, %v8655_v36  ;;  %v23884_v36 = vld [vmem:[#allocation3 + $0x2a9] sm:$0xff] }
 0x804   :  { %17884 = vmatprep.mubr.msk.f32.mxu1 %vm90_vm1, %v23868_v10  ;;  %27532 = vst [vmem:[#allocation93_spill] sm:$0xff] %v23884_v36 }
 0x807   :  { %17885 = vmatmul.mubr.msk.f32.gmra.mrb[34].mxu1 %vm90_vm1, %v23872_v56  ;;  %v23892_v56 = vld [vmem:[#allocation3 + $0x2c9] sm:$0xff] }
 0x808   :  { %17887 = vmatprep.mubr.msk.f32.mxu1 %vm90_vm1, %v23876_v31  ;;  %27534 = vst [vmem:[#allocation97_spill] sm:$0xff] %v23892_v56  ;;  %v23896_v31 = vld [vmem:[#allocation3 + $0x2d1] sm:$0xff] }
 0x809   :  { %27535 = vst [vmem:[#allocation98_spill] sm:$0xff] %v23896_v31 }
 0x80b   :  { %17888 = vmatmul.mubr.msk.f32.gmra.mrb[36].mxu1 %vm90_vm1, %v23880_v41  ;;  %v23900_v41 = vld [vmem:[#allocation3 + $0x2e9] sm:$0xff] }
 0x80c   :  { %17890 = vmatprep.mubr.msk.f32.mxu1 %vm90_vm1, %v23884_v36  ;;  %27536 = vst [vmem:[#allocation99_spill] sm:$0xff] %v23900_v41  ;;  %v23904_v36 = vld [vmem:[#allocation3 + $0x2f1] sm:$0xff] }
 0x80d   :  { %27537 = vst [vmem:[#allocation100_spill] sm:$0xff] %v23904_v36 }
 0x80f   :  { %17891 = vmatmul.mubr.msk.f32.gmra.mrb[38].mxu1 %vm90_vm1, %v23888_v34  ;;  %v23908_v34 = vld [vmem:[#allocation3 + $0x309] sm:$0xff] }
 0x810   :  { %17893 = vmatprep.mubr.msk.f32.mxu1 %vm90_vm1, %v23892_v56  ;;  %27538 = vst [vmem:[#allocation101_spill] sm:$0xff] %v23908_v34  ;;  %v23912_v56 = vld [vmem:[#allocation3 + $0x311] sm:$0xff] }
 0x811   :  { %27539 = vst [vmem:[#allocation102_spill] sm:$0xff] %v23912_v56 }
 0x813   :  { %17894 = vmatmul.mubr.msk.f32.gmra.mrb[40].mxu1 %vm90_vm1, %v23896_v31  ;;  %v23916_v31 = vld [vmem:[#allocation3 + $0x329] sm:$0xff] }
 0x814   :  { %17896 = vmatprep.mubr.msk.f32.mxu1 %vm90_vm1, %v23900_v41  ;;  %27540 = vst [vmem:[#allocation103_spill] sm:$0xff] %v23916_v31  ;;  %v23920_v41 = vld [vmem:[#allocation3 + $0x331] sm:$0xff] }
 0x815   :  { %27541 = vst [vmem:[#allocation104_spill] sm:$0xff] %v23920_v41 }
 0x817   :  { %17897 = vmatmul.mubr.msk.f32.gmra.mrb[42].mxu1 %vm90_vm1, %v23904_v36  ;;  %v23924_v36 = vld [vmem:[#allocation3 + $0x349] sm:$0xff] }
 0x818   :  { %17899 = vmatprep.mubr.msk.f32.mxu1 %vm90_vm1, %v23908_v34  ;;  %27542 = vst [vmem:[#allocation108_spill] sm:$0xff] %v23924_v36  ;;  %v23928_v34 = vld [vmem:[#allocation3 + $0x351] sm:$0xff] }
 0x819   :  { %27543 = vst [vmem:[#allocation109_spill] sm:$0xff] %v23928_v34 }
 0x81b   :  { %17900 = vmatmul.mubr.msk.f32.gmra.mrb[44].mxu1 %vm90_vm1, %v23912_v56  ;;  %v23932_v56 = vld [vmem:[#allocation3 + $0x369] sm:$0xff] }
 0x81c   :  { %17902 = vmatprep.mubr.msk.f32.mxu1 %vm90_vm1, %v23916_v31  ;;  %27544 = vst [vmem:[#allocation110_spill] sm:$0xff] %v23932_v56  ;;  %v23936_v31 = vld [vmem:[#allocation3 + $0x371] sm:$0xff] }
 0x81d   :  { %27545 = vst [vmem:[#allocation111_spill] sm:$0xff] %v23936_v31 }
 0x81f   :  { %17903 = vmatmul.mubr.msk.f32.gmra.mrb[46].mxu1 %vm90_vm1, %v23920_v41  ;;  %v23940_v41 = vld [vmem:[#allocation3 + $0x389] sm:$0xff] }
 0x820   :  { %17905 = vmatprep.mubr.msk.f32.mxu1 %vm90_vm1, %v23924_v36  ;;  %27546 = vst [vmem:[#allocation112_spill] sm:$0xff] %v23940_v41  ;;  %v23944_v36 = vld [vmem:[#allocation3 + $0x391] sm:$0xff] }
 0x821   :  { %27547 = vst [vmem:[#allocation113_spill] sm:$0xff] %v23944_v36 }
 0x823   :  { %17906 = vmatmul.mubr.msk.f32.gmra.mrb[48].mxu1 %vm90_vm1, %v23928_v34  ;;  %v23948_v34 = vld [vmem:[#allocation3 + $0x3a9] sm:$0xff] }
 0x824   :  { %17908 = vmatprep.mubr.msk.f32.mxu1 %vm90_vm1, %v23932_v56  ;;  %27548 = vst [vmem:[#allocation107_spill] sm:$0xff] %v23948_v34  ;;  %v23952_v56 = vld [vmem:[#allocation3 + $0x3b1] sm:$0xff] }
 0x825   :  { %27549 = vst [vmem:[#allocation114_spill] sm:$0xff] %v23952_v56 }
 0x827   :  { %17909 = vmatmul.mubr.msk.f32.gmra.mrb[50].mxu1 %vm90_vm1, %v23936_v31  ;;  %v23956_v31 = vld [vmem:[#allocation3 + $0x3c9] sm:$0xff] }
 0x828   :  { %17911 = vmatprep.mubr.msk.f32.mxu1 %vm90_vm1, %v23940_v41  ;;  %27550 = vst [vmem:[#allocation115_spill] sm:$0xff] %v23956_v31  ;;  %v23960_v41 = vld [vmem:[#allocation3 + $0x3d1] sm:$0xff] }
 0x829   :  { %27551 = vst [vmem:[#allocation116_spill] sm:$0xff] %v23960_v41 }
 0x82b   :  { %17912 = vmatmul.mubr.msk.f32.gmra.mrb[52].mxu1 %vm90_vm1, %v23944_v36  ;;  %v23964_v36 = vld [vmem:[#allocation3 + $0x3e9] sm:$0xff] }
 0x82c   :  { %17914 = vmatprep.mubr.msk.f32.mxu1 %vm90_vm1, %v23948_v34  ;;  %27552 = vst [vmem:[#allocation117_spill] sm:$0xff] %v23964_v36  ;;  %v23968_v34 = vld [vmem:[#allocation3 + $0x3f1] sm:$0xff] }
 0x82f   :  { %17915 = vmatmul.mubr.msk.f32.gmra.mrb[54].mxu1 %vm90_vm1, %v23952_v56  ;;  %v23972_v56 = vld [vmem:[#allocation3 + $0x409] sm:$0xff] }
 0x830   :  { %17917 = vmatprep.mubr.msk.f32.mxu1 %vm90_vm1, %v23956_v31  ;;  %27553 = vst [vmem:[#allocation118_spill] sm:$0xff] %v23972_v56  ;;  %v23976_v31 = vld [vmem:[#allocation3 + $0x411] sm:$0xff] }
 0x833   :  { %17918 = vmatmul.mubr.msk.f32.gmra.mrb[56].mxu1 %vm90_vm1, %v23960_v41  ;;  %v23980_v41 = vld [vmem:[#allocation3 + $0x429] sm:$0xff] }
 0x834   :  { %17920 = vmatprep.mubr.msk.f32.mxu1 %vm90_vm1, %v23964_v36  ;;  %v23984_v36 = vld [vmem:[#allocation3 + $0x431] sm:$0xff] }
 0x837   :  { %17921 = vmatmul.mubr.msk.f32.gmra.mrb[58].mxu1 %vm90_vm1, %v23968_v34 }
 0x838   :  { %17923 = vmatprep.mubr.msk.f32.mxu1 %vm90_vm1, %v23972_v56  ;;  %v23993_v56 = vld [vmem:[%s26866_s4 + $0x14] sm:$0xf] }
 0x83b   :  { %17924 = vmatmul.mubr.msk.f32.gmra.mrb[60].mxu1 %vm90_vm1, %v23976_v31 }
 0x83c   :  { %17926 = vmatprep.mubr.msk.f32.mxu1 %vm90_vm1, %v23980_v41 }
 0x83f   :  { %17927 = vmatmul.mubr.msk.f32.gmra.mrb[62].mxu1 %vm90_vm1, %v23984_v36 }
 0x840   :  { %17931 = vmatprep.mubr.msk.f32.mxu1 %vm90_vm1, %v23489_v51  ;;  %v24057_v51 = vld [vmem:[#allocation3 + $0x207] sm:$0xff] }
 0x843   :  { %17932 = vmatmul.mubr.msk.f32.vlgmr.msra.gmra.mrb[0].mxu1 %vm90_vm1, %v23497_v3  ;;  %v24061_v3 = vld [vmem:[#allocation3 + $0x20f] sm:$0xff] }
 0x844   :  { %18028 = vmatpush3.msk.msra.mxu1 %vm569_vm0, %v23739_v43  ;;  %17934 = vmatprep.mubr.msk.f32.mxu1 %vm90_vm1, %v23501_v12  ;;  %v27554_v12 = vld [vmem:[#allocation128_spill] sm:$0xff]  ;;  %v24330_v43 = vld [vmem:[#allocation3 + $0x388] sm:$0xff] }
 0x845   :  { %18125 = vmatprep.subr.msk.mxu1 %vm569_vm0, %v23993_v56  ;;  %27557 = vst [vmem:[#allocation119_spill] sm:$0xff] %v24330_v43 }
 0x847   :  { %17935 = vmatmul.mubr.msk.f32.gmra.mrb[2].mxu1 %vm90_vm1, %v23505_v27  ;;  %v27555_v27 = vld [vmem:[#allocation129_spill] sm:$0xff] }
 0x848   :  { %17937 = vmatprep.mubr.msk.f32.mxu1 %vm90_vm1, %v23509_v42  ;;  %v27556_v42 = vld [vmem:[#allocation130_spill] sm:$0xff] }
 0x84b   :  { %17938 = vmatmul.mubr.msk.f32.gmra.mrb[4].mxu1 %vm90_vm1, %v23513_v9  ;;  %v24125_v9 = vld [vmem:[#allocation3 + $0x447] sm:$0xff] }
 0x84c   :  { %17940 = vmatprep.mubr.msk.f32.mxu1 %vm90_vm1, %v23517_v1  ;;  %v24129_v1 = vld [vmem:[#allocation3 + $0x44f] sm:$0xff] }
 0x84f   :  { %17941 = vmatmul.mubr.msk.f32.gmra.mrb[6].mxu1 %vm90_vm1, %v23521_v2  ;;  %v10042_v2 = vld [vmem:[#allocation3 + $0x28] sm:$0xff] }
 0x850   :  { %17943 = vmatprep.mubr.msk.f32.mxu1 %vm90_vm1, %v23525_v16  ;;  %v10043_v16 = vld [vmem:[#allocation3 + $0x30] sm:$0xff] }
 0x853   :  { %17944 = vmatmul.mubr.msk.f32.gmra.mrb[8].mxu1 %vm90_vm1, %v23529_v40  ;;  %v24137_v40 = vld [vmem:[%s26866_s4 + $0x18] sm:$0xf] }
 0x854   :  { %17946 = vmatprep.mubr.msk.f32.mxu1 %vm90_vm1, %v23533_v22  ;;  %v24140_v22 = vld [vmem:[#allocation3 + $0x48] sm:$0xff] }
 0x857   :  { %17947 = vmatmul.mubr.msk.f32.gmra.mrb[10].mxu1 %vm90_vm1, %v23537_v39  ;;  %v24148_v39 = vld [vmem:[#allocation3 + $0x50] sm:$0xff] }
 0x858   :  { %17949 = vmatprep.mubr.msk.f32.mxu1 %vm90_vm1, %v23541_v33  ;;  %v24152_v33 = vld [vmem:[#allocation3 + $0x68] sm:$0xff] }
 0x85b   :  { %17950 = vmatmul.mubr.msk.f32.gmra.mrb[12].mxu1 %vm90_vm1, %v23545_v24  ;;  %v24156_v24 = vld [vmem:[#allocation3 + $0x70] sm:$0xff] }
 0x85c   :  { %17952 = vmatprep.mubr.msk.f32.mxu1 %vm90_vm1, %v23549_v32  ;;  %v24160_v32 = vld [vmem:[#allocation3 + $0x88] sm:$0xff] }
 0x85f   :  { %17953 = vmatmul.mubr.msk.f32.gmra.mrb[14].mxu1 %vm90_vm1, %v23553_v46  ;;  %v24164_v46 = vld [vmem:[#allocation3 + $0x90] sm:$0xff] }
 0x860   :  { %17955 = vmatprep.mubr.msk.f32.mxu1 %vm90_vm1, %v23557_v55  ;;  %v24168_v55 = vld [vmem:[#allocation3 + $0xa8] sm:$0xff] }
 0x863   :  { %17956 = vmatmul.mubr.msk.f32.gmra.mrb[16].mxu1 %vm90_vm1, %v23561_v63  ;;  %v24172_v63 = vld [vmem:[#allocation3 + $0xb0] sm:$0xff] }
 0x864   :  { %17958 = vmatprep.mubr.msk.f32.mxu1 %vm90_vm1, %v23565_v21  ;;  %v24176_v21 = vld [vmem:[#allocation3 + $0xc8] sm:$0xff] }
 0x867   :  { %17959 = vmatmul.mubr.msk.f32.gmra.mrb[18].mxu1 %vm90_vm1, %v23569_v62  ;;  %v24180_v62 = vld [vmem:[#allocation3 + $0xd0] sm:$0xff] }
 0x868   :  { %17961 = vmatprep.mubr.msk.f32.mxu1 %vm90_vm1, %v23573_v8  ;;  %v24184_v8 = vld [vmem:[#allocation3 + $0xe8] sm:$0xff] }
 0x86b   :  { %17962 = vmatmul.mubr.msk.f32.gmra.mrb[20].mxu1 %vm90_vm1, %v23577_v49  ;;  %v24188_v49 = vld [vmem:[#allocation3 + $0xf0] sm:$0xff] }
 0x86c   :  { %17964 = vmatprep.mubr.msk.f32.mxu1 %vm90_vm1, %v23581_v47  ;;  %v24192_v47 = vld [vmem:[#allocation3 + $0x108] sm:$0xff] }
 0x86f   :  { %17965 = vmatmul.mubr.msk.f32.gmra.mrb[22].mxu1 %vm90_vm1, %v23585_v53  ;;  %v24196_v53 = vld [vmem:[#allocation3 + $0x110] sm:$0xff] }
 0x870   :  { %17967 = vmatprep.mubr.msk.f32.mxu1 %vm90_vm1, %v23589_v52  ;;  %v24200_v52 = vld [vmem:[#allocation3 + $0x128] sm:$0xff] }
 0x873   :  { %17968 = vmatmul.mubr.msk.f32.gmra.mrb[24].mxu1 %vm90_vm1, %v23593_v61  ;;  %v24204_v61 = vld [vmem:[#allocation3 + $0x130] sm:$0xff] }
 0x874   :  { %17970 = vmatprep.mubr.msk.f32.mxu1 %vm90_vm1, %v23597_v57  ;;  %v24208_v57 = vld [vmem:[#allocation3 + $0x148] sm:$0xff] }
 0x877   :  { %17971 = vmatmul.mubr.msk.f32.gmra.mrb[26].mxu1 %vm90_vm1, %v23601_v29  ;;  %v24212_v29 = vld [vmem:[#allocation3 + $0x150] sm:$0xff] }
 0x878   :  { %17973 = vmatprep.mubr.msk.f32.mxu1 %vm90_vm1, %v23605_v25  ;;  %v24216_v25 = vld [vmem:[#allocation3 + $0x168] sm:$0xff] }
 0x87b   :  { %17974 = vmatmul.mubr.msk.f32.gmra.mrb[28].mxu1 %vm90_vm1, %v23609_v44  ;;  %v24220_v44 = vld [vmem:[#allocation3 + $0x170] sm:$0xff] }
 0x87c   :  { %17976 = vmatprep.mubr.msk.f32.mxu1 %vm90_vm1, %v24057_v51 }
 0x87f   :  { %17977 = vmatmul.mubr.msk.f32.gmra.mrb[30].mxu1 %vm90_vm1, %v24061_v3 }
 0x880   :  { %17979 = vmatprep.mubr.msk.f32.mxu1 %vm90_vm1, %v23615_v45  ;;  %v24224_v45 = vld [vmem:[#allocation3 + $0x188] sm:$0xff] }
 0x883   :  { %17980 = vmatmul.mubr.msk.f32.gmra.mrb[32].mxu1 %vm90_vm1, %v23619_v4  ;;  %v24228_v4 = vld [vmem:[#allocation3 + $0x190] sm:$0xff] }
 0x884   :  { %17982 = vmatprep.mubr.msk.f32.mxu1 %vm90_vm1, %v23623_v7  ;;  %v24232_v7 = vld [vmem:[#allocation3 + $0x1a8] sm:$0xff] }
 0x887   :  { %17983 = vmatmul.mubr.msk.f32.gmra.mrb[34].mxu1 %vm90_vm1, %v23627_v23  ;;  %v24236_v23 = vld [vmem:[#allocation3 + $0x1b0] sm:$0xff] }
 0x888   :  { %17985 = vmatprep.mubr.msk.f32.mxu1 %vm90_vm1, %v23631_v15  ;;  %v24240_v15 = vld [vmem:[#allocation3 + $0x1c8] sm:$0xff] }
 0x88b   :  { %17986 = vmatmul.mubr.msk.f32.gmra.mrb[36].mxu1 %vm90_vm1, %v23635_v11  ;;  %v24244_v11 = vld [vmem:[#allocation3 + $0x1d0] sm:$0xff] }
 0x88c   :  { %17988 = vmatprep.mubr.msk.f32.mxu1 %vm90_vm1, %v23639_v19  ;;  %v24248_v19 = vld [vmem:[#allocation3 + $0x1e8] sm:$0xff] }
 0x88f   :  { %17989 = vmatmul.mubr.msk.f32.gmra.mrb[38].mxu1 %vm90_vm1, %v23643_v14  ;;  %v24252_v14 = vld [vmem:[#allocation3 + $0x1f0] sm:$0xff] }
 0x890   :  { %17991 = vmatprep.mubr.msk.f32.mxu1 %vm90_vm1, %v23647_v38  ;;  %v24256_v38 = vld [vmem:[#allocation3 + $0x208] sm:$0xff] }
 0x893   :  { %17992 = vmatmul.mubr.msk.f32.gmra.mrb[40].mxu1 %vm90_vm1, %v23651_v30  ;;  %v24260_v30 = vld [vmem:[#allocation3 + $0x210] sm:$0xff] }
 0x894   :  { %17994 = vmatprep.mubr.msk.f32.mxu1 %vm90_vm1, %v23655_v35  ;;  %v10074_v35 = vld [vmem:[#allocation3 + $0x268] sm:$0xff] }
 0x897   :  { %17995 = vmatmul.mubr.msk.f32.gmra.mrb[42].mxu1 %vm90_vm1, %v23659_v5  ;;  %v10075_v5 = vld [vmem:[#allocation3 + $0x270] sm:$0xff] }
 0x898   :  { %17997 = vmatprep.mubr.msk.f32.mxu1 %vm90_vm1, %v23663_v13  ;;  %v24266_v13 = vld [vmem:[#allocation3 + $0x288] sm:$0xff] }
 0x89b   :  { %17998 = vmatmul.mubr.msk.f32.gmra.mrb[44].mxu1 %vm90_vm1, %v23667_v50  ;;  %v24270_v50 = vld [vmem:[#allocation3 + $0x290] sm:$0xff] }
 0x89c   :  { %18000 = vmatprep.mubr.msk.f32.mxu1 %vm90_vm1, %v23671_v0  ;;  %v24274_v0 = vld [vmem:[#allocation3 + $0x2a8] sm:$0xff] }
 0x89f   :  { %18001 = vmatmul.mubr.msk.f32.gmra.mrb[46].mxu1 %vm90_vm1, %v23675_v59  ;;  %v24278_v59 = vld [vmem:[#allocation3 + $0x2b0] sm:$0xff] }
 0x8a0   :  { %18003 = vmatprep.mubr.msk.f32.mxu1 %vm90_vm1, %v23679_v20  ;;  %v24282_v20 = vld [vmem:[#allocation3 + $0x2c8] sm:$0xff] }
 0x8a3   :  { %18004 = vmatmul.mubr.msk.f32.gmra.mrb[48].mxu1 %vm90_vm1, %v23683_v54  ;;  %v24286_v54 = vld [vmem:[#allocation3 + $0x2d0] sm:$0xff] }
 0x8a4   :  { %18006 = vmatprep.mubr.msk.f32.mxu1 %vm90_vm1, %v23687_v28  ;;  %v24290_v28 = vld [vmem:[#allocation3 + $0x2e8] sm:$0xff] }
 0x8a7   :  { %18007 = vmatmul.mubr.msk.f32.gmra.mrb[50].mxu1 %vm90_vm1, %v23691_v6  ;;  %v24294_v6 = vld [vmem:[#allocation3 + $0x2f0] sm:$0xff] }
 0x8a8   :  { %18009 = vmatprep.mubr.msk.f32.mxu1 %vm90_vm1, %v23695_v48  ;;  %v24298_v48 = vld [vmem:[#allocation3 + $0x308] sm:$0xff] }
 0x8ab   :  { %18010 = vmatmul.mubr.msk.f32.gmra.mrb[52].mxu1 %vm90_vm1, %v23699_v18  ;;  %v24302_v18 = vld [vmem:[#allocation3 + $0x310] sm:$0xff] }
 0x8ac   :  { %18012 = vmatprep.mubr.msk.f32.mxu1 %vm90_vm1, %v23703_v60  ;;  %v24306_v60 = vld [vmem:[#allocation3 + $0x328] sm:$0xff] }
 0x8af   :  { %18013 = vmatmul.mubr.msk.f32.gmra.mrb[54].mxu1 %vm90_vm1, %v23707_v17  ;;  %v24310_v17 = vld [vmem:[#allocation3 + $0x330] sm:$0xff] }
 0x8b0   :  { %18015 = vmatprep.mubr.msk.f32.mxu1 %vm90_vm1, %v23711_v58  ;;  %v24314_v58 = vld [vmem:[#allocation3 + $0x348] sm:$0xff] }
 0x8b3   :  { %18016 = vmatmul.mubr.msk.f32.gmra.mrb[56].mxu1 %vm90_vm1, %v23715_v26  ;;  %v24318_v26 = vld [vmem:[#allocation3 + $0x350] sm:$0xff] }
 0x8b4   :  { %18018 = vmatprep.mubr.msk.f32.mxu1 %vm90_vm1, %v23719_v37  ;;  %v24322_v37 = vld [vmem:[#allocation3 + $0x368] sm:$0xff] }
 0x8b7   :  { %18019 = vmatmul.mubr.msk.f32.gmra.mrb[58].mxu1 %vm90_vm1, %v27554_v12  ;;  %v24334_v12 = vld [vmem:[#allocation3 + $0x390] sm:$0xff] }
 0x8b8   :  { %18021 = vmatprep.mubr.msk.f32.mxu1 %vm90_vm1, %v27555_v27  ;;  %27558 = vst [vmem:[#allocation120_spill] sm:$0xff] %v24334_v12  ;;  %v24338_v27 = vld [vmem:[#allocation3 + $0x3a8] sm:$0xff] }
 0x8b9   :  { %27559 = vst [vmem:[#allocation121_spill] sm:$0xff] %v24338_v27 }
 0x8bb   :  { %18022 = vmatmul.mubr.msk.f32.gmra.mrb[60].mxu1 %vm90_vm1, %v27556_v42  ;;  %v24342_v42 = vld [vmem:[#allocation3 + $0x3b0] sm:$0xff] }
 0x8bc   :  { %18024 = vmatprep.mubr.msk.f32.mxu1 %vm90_vm1, %v24125_v9  ;;  %27560 = vst [vmem:[#allocation122_spill] sm:$0xff] %v24342_v42 }
 0x8bf   :  { %18025 = vmatmul.mubr.msk.f32.gmra.mrb[62].mxu1 %vm90_vm1, %v24129_v1 }
 0x8c0   :  { %18029 = vmatprep.mubr.msk.f32.mxu1 %vm90_vm1, %v10042_v2  ;;  %v24346_v2 = vld [vmem:[#allocation3 + $0x3c8] sm:$0xff] }
 0x8c1   :  { %27561 = vst [vmem:[#allocation123_spill] sm:$0xff] %v24346_v2 }
 0x8c3   :  { %18030 = vmatmul.mubr.msk.f32.vlgmr.msra.gmra.mrb[0].mxu1 %vm90_vm1, %v10043_v16  ;;  %v24350_v16 = vld [vmem:[#allocation3 + $0x3d0] sm:$0xff] }
 0x8c4   :  { %18126 = vmatpush3.msk.msra.mxu1 %vm569_vm0, %v23993_v56  ;;  %18032 = vmatprep.mubr.msk.f32.mxu1 %vm90_vm1, %v24140_v22  ;;  %v24326_v56 = vld [vmem:[#allocation3 + $0x370] sm:$0xff]  ;;  %27562 = vst [vmem:[#allocation64_spill] sm:$0xff] %v24350_v16 }
 0x8c5   :  { %18223 = vmatprep.subr.msk.mxu1 %vm569_vm0, %v24137_v40 }
 0x8c7   :  { %18033 = vmatmul.mubr.msk.f32.gmra.mrb[2].mxu1 %vm90_vm1, %v24148_v39 }
 0x8c8   :  { %18035 = vmatprep.mubr.msk.f32.mxu1 %vm90_vm1, %v24152_v33 }
 0x8cb   :  { %18036 = vmatmul.mubr.msk.f32.gmra.mrb[4].mxu1 %vm90_vm1, %v24156_v24 }
 0x8cc   :  { %18038 = vmatprep.mubr.msk.f32.mxu1 %vm90_vm1, %v24160_v32 }
 0x8cf   :  { %18039 = vmatmul.mubr.msk.f32.gmra.mrb[6].mxu1 %vm90_vm1, %v24164_v46 }
 0x8d0   :  { %18041 = vmatprep.mubr.msk.f32.mxu1 %vm90_vm1, %v24168_v55 }
 0x8d3   :  { %18042 = vmatmul.mubr.msk.f32.gmra.mrb[8].mxu1 %vm90_vm1, %v24172_v63 }
 0x8d4   :  { %18044 = vmatprep.mubr.msk.f32.mxu1 %vm90_vm1, %v24176_v21 }
 0x8d7   :  { %18045 = vmatmul.mubr.msk.f32.gmra.mrb[10].mxu1 %vm90_vm1, %v24180_v62 }
 0x8d8   :  { %18047 = vmatprep.mubr.msk.f32.mxu1 %vm90_vm1, %v24184_v8 }
 0x8db   :  { %18048 = vmatmul.mubr.msk.f32.gmra.mrb[12].mxu1 %vm90_vm1, %v24188_v49 }
 0x8dc   :  { %18050 = vmatprep.mubr.msk.f32.mxu1 %vm90_vm1, %v24192_v47 }
 0x8df   :  { %18051 = vmatmul.mubr.msk.f32.gmra.mrb[14].mxu1 %vm90_vm1, %v24196_v53 }
 0x8e0   :  { %18053 = vmatprep.mubr.msk.f32.mxu1 %vm90_vm1, %v24200_v52 }
 0x8e3   :  { %18054 = vmatmul.mubr.msk.f32.gmra.mrb[16].mxu1 %vm90_vm1, %v24204_v61 }
 0x8e4   :  { %18056 = vmatprep.mubr.msk.f32.mxu1 %vm90_vm1, %v24208_v57 }
 0x8e7   :  { %18057 = vmatmul.mubr.msk.f32.gmra.mrb[18].mxu1 %vm90_vm1, %v24212_v29 }
 0x8e8   :  { %18059 = vmatprep.mubr.msk.f32.mxu1 %vm90_vm1, %v24216_v25 }
 0x8eb   :  { %18060 = vmatmul.mubr.msk.f32.gmra.mrb[20].mxu1 %vm90_vm1, %v24220_v44 }
 0x8ec   :  { %18062 = vmatprep.mubr.msk.f32.mxu1 %vm90_vm1, %v24224_v45 }
 0x8ef   :  { %18063 = vmatmul.mubr.msk.f32.gmra.mrb[22].mxu1 %vm90_vm1, %v24228_v4 }
 0x8f0   :  { %18065 = vmatprep.mubr.msk.f32.mxu1 %vm90_vm1, %v24232_v7 }
 0x8f3   :  { %18066 = vmatmul.mubr.msk.f32.gmra.mrb[24].mxu1 %vm90_vm1, %v24236_v23 }
 0x8f4   :  { %18068 = vmatprep.mubr.msk.f32.mxu1 %vm90_vm1, %v24240_v15 }
 0x8f7   :  { %18069 = vmatmul.mubr.msk.f32.gmra.mrb[26].mxu1 %vm90_vm1, %v24244_v11 }
 0x8f8   :  { %18071 = vmatprep.mubr.msk.f32.mxu1 %vm90_vm1, %v24248_v19 }
 0x8fb   :  { %18072 = vmatmul.mubr.msk.f32.gmra.mrb[28].mxu1 %vm90_vm1, %v24252_v14 }
 0x8fc   :  { %18074 = vmatprep.mubr.msk.f32.mxu1 %vm90_vm1, %v24256_v38 }
 0x8ff   :  { %18075 = vmatmul.mubr.msk.f32.gmra.mrb[30].mxu1 %vm90_vm1, %v24260_v30 }
 0x900   :  { %18077 = vmatprep.mubr.msk.f32.mxu1 %vm90_vm1, %v10074_v35  ;;  %v24354_v35 = vld [vmem:[#allocation3 + $0x3e8] sm:$0xff] }
 0x901   :  { %27563 = vst [vmem:[#allocation65_spill] sm:$0xff] %v24354_v35 }
 0x903   :  { %18078 = vmatmul.mubr.msk.f32.gmra.mrb[32].mxu1 %vm90_vm1, %v10075_v5  ;;  %v24358_v5 = vld [vmem:[#allocation3 + $0x3f0] sm:$0xff] }
 0x904   :  { %18080 = vmatprep.mubr.msk.f32.mxu1 %vm90_vm1, %v24266_v13  ;;  %27564 = vst [vmem:[#allocation66_spill] sm:$0xff] %v24358_v5 }
 0x907   :  { %18081 = vmatmul.mubr.msk.f32.gmra.mrb[34].mxu1 %vm90_vm1, %v24270_v50 }
 0x908   :  { %18083 = vmatprep.mubr.msk.f32.mxu1 %vm90_vm1, %v24274_v0 }
 0x90b   :  { %18084 = vmatmul.mubr.msk.f32.gmra.mrb[36].mxu1 %vm90_vm1, %v24278_v59 }
 0x90c   :  { %18086 = vmatprep.mubr.msk.f32.mxu1 %vm90_vm1, %v24282_v20 }
 0x90f   :  { %18087 = vmatmul.mubr.msk.f32.gmra.mrb[38].mxu1 %vm90_vm1, %v24286_v54 }
 0x910   :  { %18089 = vmatprep.mubr.msk.f32.mxu1 %vm90_vm1, %v24290_v28 }
 0x913   :  { %18090 = vmatmul.mubr.msk.f32.gmra.mrb[40].mxu1 %vm90_vm1, %v24294_v6 }
 0x914   :  { %18092 = vmatprep.mubr.msk.f32.mxu1 %vm90_vm1, %v24298_v48 }
 0x917   :  { %18093 = vmatmul.mubr.msk.f32.gmra.mrb[42].mxu1 %vm90_vm1, %v24302_v18 }
 0x918   :  { %18095 = vmatprep.mubr.msk.f32.mxu1 %vm90_vm1, %v24306_v60 }
 0x91b   :  { %18096 = vmatmul.mubr.msk.f32.gmra.mrb[44].mxu1 %vm90_vm1, %v24310_v17 }
 0x91c   :  { %18098 = vmatprep.mubr.msk.f32.mxu1 %vm90_vm1, %v24314_v58 }
 0x91f   :  { %18099 = vmatmul.mubr.msk.f32.gmra.mrb[46].mxu1 %vm90_vm1, %v24318_v26 }
 0x920   :  { %18101 = vmatprep.mubr.msk.f32.mxu1 %vm90_vm1, %v24322_v37 }
 0x923   :  { %18102 = vmatmul.mubr.msk.f32.gmra.mrb[48].mxu1 %vm90_vm1, %v24326_v56 }
 0x924   :  { %18104 = vmatprep.mubr.msk.f32.mxu1 %vm90_vm1, %v24330_v43  ;;  %v27581_v43 = vld [vmem:[#allocation73_spill] sm:$0xff] }
 0x927   :  { %18105 = vmatmul.mubr.msk.f32.gmra.mrb[50].mxu1 %vm90_vm1, %v24334_v12  ;;  %v27577_v12 = vld [vmem:[#allocation68_spill] sm:$0xff] }
 0x928   :  { %18107 = vmatprep.mubr.msk.f32.mxu1 %vm90_vm1, %v24338_v27  ;;  %v27572_v27 = vld [vmem:[#allocation132_spill] sm:$0xff] }
 0x92b   :  { %18108 = vmatmul.mubr.msk.f32.gmra.mrb[52].mxu1 %vm90_vm1, %v24342_v42  ;;  %v24362_v42 = vld [vmem:[#allocation3 + $0x408] sm:$0xff] }
 0x92c   :  { %18110 = vmatprep.mubr.msk.f32.mxu1 %vm90_vm1, %v24346_v2  ;;  %27565 = vst [vmem:[#allocation67_spill] sm:$0xff] %v24362_v42  ;;  %v24366_v2 = vld [vmem:[#allocation3 + $0x410] sm:$0xff] }
 0x92d   :  { %27566 = vst [vmem:[#allocation126_spill] sm:$0xff] %v24366_v2 }
 0x92f   :  { %18111 = vmatmul.mubr.msk.f32.gmra.mrb[54].mxu1 %vm90_vm1, %v24350_v16  ;;  %v24370_v16 = vld [vmem:[#allocation3 + $0x428] sm:$0xff] }
 0x930   :  { %18113 = vmatprep.mubr.msk.f32.mxu1 %vm90_vm1, %v24354_v35  ;;  %27567 = vst [vmem:[#allocation127_spill] sm:$0xff] %v24370_v16  ;;  %v24374_v35 = vld [vmem:[#allocation3 + $0x430] sm:$0xff] }
 0x931   :  { %27568 = vst [vmem:[#allocation128_spill] sm:$0xff] %v24374_v35 }
 0x933   :  { %18114 = vmatmul.mubr.msk.f32.gmra.mrb[56].mxu1 %vm90_vm1, %v24358_v5  ;;  %v24378_v5 = vld [vmem:[#allocation3 + $0x448] sm:$0xff] }
 0x934   :  { %18116 = vmatprep.mubr.msk.f32.mxu1 %vm90_vm1, %v24362_v42  ;;  %27569 = vst [vmem:[#allocation129_spill] sm:$0xff] %v24378_v5  ;;  %v24382_v42 = vld [vmem:[#allocation3 + $0x450] sm:$0xff] }
 0x935   :  { %27570 = vst [vmem:[#allocation130_spill] sm:$0xff] %v24382_v42 }
 0x937   :  { %18117 = vmatmul.mubr.msk.f32.gmra.mrb[58].mxu1 %vm90_vm1, %v24366_v2  ;;  %v27571_v2 = vld [vmem:[#allocation131_spill] sm:$0xff] }
 0x938   :  { %18119 = vmatprep.mubr.msk.f32.mxu1 %vm90_vm1, %v24370_v16  ;;  %v24391_v16 = vld [vmem:[%s26866_s4 + $0x1c] sm:$0xf] }
 0x93b   :  { %18120 = vmatmul.mubr.msk.f32.gmra.mrb[60].mxu1 %vm90_vm1, %v24374_v35  ;;  %v27576_v35 = vld [vmem:[#allocation136_spill] sm:$0xff] }
 0x93c   :  { %18122 = vmatprep.mubr.msk.f32.mxu1 %vm90_vm1, %v24378_v5  ;;  %v27573_v5 = vld [vmem:[#allocation133_spill] sm:$0xff] }
 0x93f   :  { %18123 = vmatmul.mubr.msk.f32.gmra.mrb[62].mxu1 %vm90_vm1, %v24382_v42  ;;  %v27574_v42 = vld [vmem:[#allocation134_spill] sm:$0xff] }
 0x940   :  { %18127 = vmatprep.mubr.msk.f32.mxu1 %vm90_vm1, %v27571_v2  ;;  %v27575_v2 = vld [vmem:[#allocation135_spill] sm:$0xff] }
 0x943   :  { %18128 = vmatmul.mubr.msk.f32.vlgmr.msra.gmra.mrb[0].mxu1 %vm90_vm1, %v27572_v27  ;;  %v27578_v27 = vld [vmem:[#allocation69_spill] sm:$0xff] }
 0x944   :  { %18224 = vmatpush3.msk.msra.mxu1 %vm569_vm0, %v24137_v40  ;;  %18130 = vmatprep.mubr.msk.f32.mxu1 %vm90_vm1, %v27573_v5  ;;  %v27579_v40 = vld [vmem:[#allocation71_spill] sm:$0xff]  ;;  %v27580_v5 = vld [vmem:[#allocation70_spill] sm:$0xff] }
 0x945   :  { %18321 = vmatprep.subr.msk.mxu1 %vm569_vm0, %v24391_v16 }
 0x947   :  { %18131 = vmatmul.mubr.msk.f32.gmra.mrb[2].mxu1 %vm90_vm1, %v27574_v42  ;;  %v27582_v42 = vld [vmem:[#allocation72_spill] sm:$0xff] }
 0x948   :  { %18133 = vmatprep.mubr.msk.f32.mxu1 %vm90_vm1, %v27575_v2  ;;  %v27583_v2 = vld [vmem:[#allocation75_spill] sm:$0xff] }
 0x94b   :  { %18134 = vmatmul.mubr.msk.f32.gmra.mrb[4].mxu1 %vm90_vm1, %v27576_v35  ;;  %v27584_v35 = vld [vmem:[#allocation74_spill] sm:$0xff] }
 0x94c   :  { %18136 = vmatprep.mubr.msk.f32.mxu1 %vm90_vm1, %v27577_v12  ;;  %v27585_v12 = vld [vmem:[#allocation77_spill] sm:$0xff] }
 0x94f   :  { %18137 = vmatmul.mubr.msk.f32.gmra.mrb[6].mxu1 %vm90_vm1, %v27578_v27  ;;  %v27586_v27 = vld [vmem:[#allocation76_spill] sm:$0xff] }
 0x950   :  { %18139 = vmatprep.mubr.msk.f32.mxu1 %vm90_vm1, %v27579_v40  ;;  %v27587_v40 = vld [vmem:[#allocation79_spill] sm:$0xff] }
 0x953   :  { %18140 = vmatmul.mubr.msk.f32.gmra.mrb[8].mxu1 %vm90_vm1, %v27580_v5  ;;  %v27588_v5 = vld [vmem:[#allocation78_spill] sm:$0xff] }
 0x954   :  { %18142 = vmatprep.mubr.msk.f32.mxu1 %vm90_vm1, %v27581_v43  ;;  %v27589_v43 = vld [vmem:[#allocation81_spill] sm:$0xff] }
 0x957   :  { %18143 = vmatmul.mubr.msk.f32.gmra.mrb[10].mxu1 %vm90_vm1, %v27582_v42  ;;  %v27590_v42 = vld [vmem:[#allocation80_spill] sm:$0xff] }
 0x958   :  { %18145 = vmatprep.mubr.msk.f32.mxu1 %vm90_vm1, %v27583_v2  ;;  %v27591_v2 = vld [vmem:[#allocation83_spill] sm:$0xff] }
 0x95b   :  { %18146 = vmatmul.mubr.msk.f32.gmra.mrb[12].mxu1 %vm90_vm1, %v27584_v35  ;;  %v27592_v35 = vld [vmem:[#allocation82_spill] sm:$0xff] }
 0x95c   :  { %18148 = vmatprep.mubr.msk.f32.mxu1 %vm90_vm1, %v27585_v12  ;;  %v27593_v12 = vld [vmem:[#allocation105_spill] sm:$0xff] }
 0x95f   :  { %18149 = vmatmul.mubr.msk.f32.gmra.mrb[14].mxu1 %vm90_vm1, %v27586_v27  ;;  %v27594_v27 = vld [vmem:[#allocation106_spill] sm:$0xff] }
 0x960   :  { %18151 = vmatprep.mubr.msk.f32.mxu1 %vm90_vm1, %v27587_v40  ;;  %v27595_v40 = vld [vmem:[#allocation84_spill] sm:$0xff] }
 0x963   :  { %18152 = vmatmul.mubr.msk.f32.gmra.mrb[16].mxu1 %vm90_vm1, %v27588_v5  ;;  %v27596_v5 = vld [vmem:[#allocation85_spill] sm:$0xff] }
 0x964   :  { %18154 = vmatprep.mubr.msk.f32.mxu1 %vm90_vm1, %v27589_v43  ;;  %v27597_v43 = vld [vmem:[#allocation86_spill] sm:$0xff] }
 0x967   :  { %18155 = vmatmul.mubr.msk.f32.gmra.mrb[18].mxu1 %vm90_vm1, %v27590_v42  ;;  %v27598_v42 = vld [vmem:[#allocation87_spill] sm:$0xff] }
 0x968   :  { %18157 = vmatprep.mubr.msk.f32.mxu1 %vm90_vm1, %v27591_v2  ;;  %v27599_v2 = vld [vmem:[#allocation88_spill] sm:$0xff] }
 0x96b   :  { %18158 = vmatmul.mubr.msk.f32.gmra.mrb[20].mxu1 %vm90_vm1, %v27592_v35  ;;  %v27600_v35 = vld [vmem:[#allocation89_spill] sm:$0xff] }
 0x96c   :  { %18160 = vmatprep.mubr.msk.f32.mxu1 %vm90_vm1, %v27593_v12  ;;  %v24455_v12 = vld [vmem:[#allocation3 + $0x209] sm:$0xff] }
 0x96f   :  { %18161 = vmatmul.mubr.msk.f32.gmra.mrb[22].mxu1 %vm90_vm1, %v27594_v27  ;;  %v24459_v27 = vld [vmem:[#allocation3 + $0x211] sm:$0xff] }
 0x970   :  { %18163 = vmatprep.mubr.msk.f32.mxu1 %vm90_vm1, %v27595_v40  ;;  %27601 = vst [vmem:[#allocation131_spill] sm:$0xff] %v24459_v27  ;;  %v27602_v40 = vld [vmem:[#allocation90_spill] sm:$0xff] }
 0x973   :  { %18164 = vmatmul.mubr.msk.f32.gmra.mrb[24].mxu1 %vm90_vm1, %v27596_v5  ;;  %v27603_v5 = vld [vmem:[#allocation91_spill] sm:$0xff] }
 0x974   :  { %18166 = vmatprep.mubr.msk.f32.mxu1 %vm90_vm1, %v27597_v43  ;;  %v27604_v43 = vld [vmem:[#allocation92_spill] sm:$0xff] }
 0x977   :  { %18167 = vmatmul.mubr.msk.f32.gmra.mrb[26].mxu1 %vm90_vm1, %v27598_v42  ;;  %v27605_v42 = vld [vmem:[#allocation93_spill] sm:$0xff] }
 0x978   :  { %18169 = vmatprep.mubr.msk.f32.mxu1 %vm90_vm1, %v27599_v2  ;;  %v27606_v2 = vld [vmem:[#allocation94_spill] sm:$0xff] }
 0x97b   :  { %18170 = vmatmul.mubr.msk.f32.gmra.mrb[28].mxu1 %vm90_vm1, %v27600_v35  ;;  %v27607_v35 = vld [vmem:[#allocation97_spill] sm:$0xff] }
 0x97c   :  { %18172 = vmatprep.mubr.msk.f32.mxu1 %vm90_vm1, %v24455_v12 }
 0x97f   :  { %18173 = vmatmul.mubr.msk.f32.gmra.mrb[30].mxu1 %vm90_vm1, %v24459_v27  ;;  %v27608_v27 = vld [vmem:[#allocation98_spill] sm:$0xff] }
 0x980   :  { %18175 = vmatprep.mubr.msk.f32.mxu1 %vm90_vm1, %v23868_v10  ;;  %v27609_v10 = vld [vmem:[#allocation99_spill] sm:$0xff] }
 0x983   :  { %18176 = vmatmul.mubr.msk.f32.gmra.mrb[32].mxu1 %vm90_vm1, %v27602_v40  ;;  %v27610_v40 = vld [vmem:[#allocation100_spill] sm:$0xff] }
 0x984   :  { %18178 = vmatprep.mubr.msk.f32.mxu1 %vm90_vm1, %v27603_v5  ;;  %v27611_v5 = vld [vmem:[#allocation101_spill] sm:$0xff] }
 0x987   :  { %18179 = vmatmul.mubr.msk.f32.gmra.mrb[34].mxu1 %vm90_vm1, %v27604_v43  ;;  %v27612_v43 = vld [vmem:[#allocation102_spill] sm:$0xff] }
 0x988   :  { %18181 = vmatprep.mubr.msk.f32.mxu1 %vm90_vm1, %v27605_v42  ;;  %v27613_v42 = vld [vmem:[#allocation103_spill] sm:$0xff] }
 0x98b   :  { %18182 = vmatmul.mubr.msk.f32.gmra.mrb[36].mxu1 %vm90_vm1, %v27606_v2  ;;  %v27614_v2 = vld [vmem:[#allocation104_spill] sm:$0xff] }
 0x98c   :  { %18184 = vmatprep.mubr.msk.f32.mxu1 %vm90_vm1, %v27607_v35  ;;  %v27615_v35 = vld [vmem:[#allocation108_spill] sm:$0xff] }
 0x98f   :  { %18185 = vmatmul.mubr.msk.f32.gmra.mrb[38].mxu1 %vm90_vm1, %v27608_v27  ;;  %v27616_v27 = vld [vmem:[#allocation109_spill] sm:$0xff] }
 0x990   :  { %18187 = vmatprep.mubr.msk.f32.mxu1 %vm90_vm1, %v27609_v10  ;;  %v27617_v10 = vld [vmem:[#allocation110_spill] sm:$0xff] }
 0x993   :  { %18188 = vmatmul.mubr.msk.f32.gmra.mrb[40].mxu1 %vm90_vm1, %v27610_v40  ;;  %v27618_v40 = vld [vmem:[#allocation111_spill] sm:$0xff] }
 0x994   :  { %18190 = vmatprep.mubr.msk.f32.mxu1 %vm90_vm1, %v27611_v5  ;;  %v27619_v5 = vld [vmem:[#allocation112_spill] sm:$0xff] }
 0x997   :  { %18191 = vmatmul.mubr.msk.f32.gmra.mrb[42].mxu1 %vm90_vm1, %v27612_v43  ;;  %v27620_v43 = vld [vmem:[#allocation113_spill] sm:$0xff] }
 0x998   :  { %18193 = vmatprep.mubr.msk.f32.mxu1 %vm90_vm1, %v27613_v42  ;;  %v27621_v42 = vld [vmem:[#allocation107_spill] sm:$0xff] }
 0x99b   :  { %18194 = vmatmul.mubr.msk.f32.gmra.mrb[44].mxu1 %vm90_vm1, %v27614_v2  ;;  %v27622_v2 = vld [vmem:[#allocation114_spill] sm:$0xff] }
 0x99c   :  { %18196 = vmatprep.mubr.msk.f32.mxu1 %vm90_vm1, %v27615_v35  ;;  %v27623_v35 = vld [vmem:[#allocation115_spill] sm:$0xff] }
 0x99f   :  { %18197 = vmatmul.mubr.msk.f32.gmra.mrb[46].mxu1 %vm90_vm1, %v27616_v27  ;;  %v27624_v27 = vld [vmem:[#allocation116_spill] sm:$0xff] }
 0x9a0   :  { %18199 = vmatprep.mubr.msk.f32.mxu1 %vm90_vm1, %v27617_v10  ;;  %v27625_v10 = vld [vmem:[#allocation117_spill] sm:$0xff] }
 0x9a3   :  { %18200 = vmatmul.mubr.msk.f32.gmra.mrb[48].mxu1 %vm90_vm1, %v27618_v40  ;;  %v27626_v40 = vld [vmem:[#allocation118_spill] sm:$0xff] }
 0x9a4   :  { %18202 = vmatprep.mubr.msk.f32.mxu1 %vm90_vm1, %v27619_v5  ;;  %v24523_v5 = vld [vmem:[#allocation3 + $0x449] sm:$0xff] }
 0x9a7   :  { %18203 = vmatmul.mubr.msk.f32.gmra.mrb[50].mxu1 %vm90_vm1, %v27620_v43  ;;  %v24527_v43 = vld [vmem:[#allocation3 + $0x451] sm:$0xff] }
 0x9a8   :  { %18205 = vmatprep.mubr.msk.f32.mxu1 %vm90_vm1, %v27621_v42  ;;  %v11466_v42 = vld [vmem:[#allocation3 + $0x6f] sm:$0xff] }
 0x9ab   :  { %18206 = vmatmul.mubr.msk.f32.gmra.mrb[52].mxu1 %vm90_vm1, %v27622_v2  ;;  %v11467_v2 = vld [vmem:[#allocation3 + $0x87] sm:$0xff] }
 0x9ac   :  { %18208 = vmatprep.mubr.msk.f32.mxu1 %vm90_vm1, %v27623_v35  ;;  %v11468_v35 = vld [vmem:[#allocation3 + $0x8f] sm:$0xff] }
 0x9af   :  { %18209 = vmatmul.mubr.msk.f32.gmra.mrb[54].mxu1 %vm90_vm1, %v27624_v27  ;;  %v11469_v27 = vld [vmem:[#allocation3 + $0xa7] sm:$0xff] }
 0x9b0   :  { %18211 = vmatprep.mubr.msk.f32.mxu1 %vm90_vm1, %v27625_v10  ;;  %v11470_v10 = vld [vmem:[#allocation3 + $0xaf] sm:$0xff] }
 0x9b3   :  { %18212 = vmatmul.mubr.msk.f32.gmra.mrb[56].mxu1 %vm90_vm1, %v23968_v34  ;;  %v11463_v34 = vld [vmem:[#allocation3 + $0x47] sm:$0xff] }
 0x9b4   :  { %18214 = vmatprep.mubr.msk.f32.mxu1 %vm90_vm1, %v27626_v40  ;;  %v11472_v40 = vld [vmem:[#allocation3 + $0xcf] sm:$0xff] }
 0x9b7   :  { %18215 = vmatmul.mubr.msk.f32.gmra.mrb[58].mxu1 %vm90_vm1, %v23976_v31  ;;  %v11464_v31 = vld [vmem:[#allocation3 + $0x4f] sm:$0xff] }
 0x9b8   :  { %18217 = vmatprep.mubr.msk.f32.mxu1 %vm90_vm1, %v23980_v41  ;;  %v24535_v41 = vld [vmem:[%s26866_s4 + $0x20] sm:$0xf] }
 0x9bb   :  { %18218 = vmatmul.mubr.msk.f32.gmra.mrb[60].mxu1 %vm90_vm1, %v23984_v36  ;;  %v11465_v36 = vld [vmem:[#allocation3 + $0x67] sm:$0xff] }
 0x9bc   :  { %18220 = vmatprep.mubr.msk.f32.mxu1 %vm90_vm1, %v24523_v5 }
 0x9bf   :  { %18221 = vmatmul.mubr.msk.f32.gmra.mrb[62].mxu1 %vm90_vm1, %v24527_v43 }
 0x9c0   :  { %18225 = vmatprep.mubr.msk.f32.mxu1 %vm90_vm1, %v11463_v34  ;;  %v11473_v34 = vld [vmem:[#allocation3 + $0xe7] sm:$0xff] }
 0x9c3   :  { %18226 = vmatmul.mubr.msk.f32.vlgmr.msra.gmra.mrb[0].mxu1 %vm90_vm1, %v11464_v31  ;;  %v11474_v31 = vld [vmem:[#allocation3 + $0xef] sm:$0xff] }
 0x9c4   :  { %18322 = vmatpush3.msk.msra.mxu1 %vm569_vm0, %v24391_v16  ;;  %18228 = vmatprep.mubr.msk.f32.mxu1 %vm90_vm1, %v11465_v36  ;;  %v11471_v16 = vld [vmem:[#allocation3 + $0xc7] sm:$0xff] }
 0x9c5   :  { %18419 = vmatprep.subr.msk.mxu1 %vm569_vm0, %v24535_v41  ;;  %v11475_v36 = vld [vmem:[#allocation3 + $0x107] sm:$0xff] }
 0x9c7   :  { %18229 = vmatmul.mubr.msk.f32.gmra.mrb[2].mxu1 %vm90_vm1, %v11466_v42  ;;  %v11476_v42 = vld [vmem:[#allocation3 + $0x10f] sm:$0xff] }
 0x9c8   :  { %18231 = vmatprep.mubr.msk.f32.mxu1 %vm90_vm1, %v11467_v2  ;;  %v11477_v2 = vld [vmem:[#allocation3 + $0x127] sm:$0xff] }
 0x9cb   :  { %18232 = vmatmul.mubr.msk.f32.gmra.mrb[4].mxu1 %vm90_vm1, %v11468_v35  ;;  %v11478_v35 = vld [vmem:[#allocation3 + $0x12f] sm:$0xff] }
 0x9cc   :  { %18234 = vmatprep.mubr.msk.f32.mxu1 %vm90_vm1, %v11469_v27  ;;  %v11479_v27 = vld [vmem:[#allocation3 + $0x147] sm:$0xff] }
 0x9cf   :  { %18235 = vmatmul.mubr.msk.f32.gmra.mrb[6].mxu1 %vm90_vm1, %v11470_v10  ;;  %v11480_v10 = vld [vmem:[#allocation3 + $0x14f] sm:$0xff] }
 0x9d0   :  { %18237 = vmatprep.mubr.msk.f32.mxu1 %vm90_vm1, %v11471_v16  ;;  %v11481_v16 = vld [vmem:[#allocation3 + $0x167] sm:$0xff] }
 0x9d3   :  { %18238 = vmatmul.mubr.msk.f32.gmra.mrb[8].mxu1 %vm90_vm1, %v11472_v40  ;;  %v11482_v40 = vld [vmem:[#allocation3 + $0x16f] sm:$0xff] }
 0x9d4   :  { %18240 = vmatprep.mubr.msk.f32.mxu1 %vm90_vm1, %v11473_v34  ;;  %v11483_v34 = vld [vmem:[#allocation3 + $0x187] sm:$0xff] }
 0x9d7   :  { %18241 = vmatmul.mubr.msk.f32.gmra.mrb[10].mxu1 %vm90_vm1, %v11474_v31  ;;  %v11484_v31 = vld [vmem:[#allocation3 + $0x18f] sm:$0xff] }
 0x9d8   :  { %18243 = vmatprep.mubr.msk.f32.mxu1 %vm90_vm1, %v11475_v36  ;;  %v11485_v36 = vld [vmem:[#allocation3 + $0x1a7] sm:$0xff] }
 0x9db   :  { %18244 = vmatmul.mubr.msk.f32.gmra.mrb[12].mxu1 %vm90_vm1, %v11476_v42  ;;  %v11486_v42 = vld [vmem:[#allocation3 + $0x1af] sm:$0xff] }
 0x9dc   :  { %18246 = vmatprep.mubr.msk.f32.mxu1 %vm90_vm1, %v11477_v2  ;;  %v11487_v2 = vld [vmem:[#allocation3 + $0x1c7] sm:$0xff] }
 0x9df   :  { %18247 = vmatmul.mubr.msk.f32.gmra.mrb[14].mxu1 %vm90_vm1, %v11478_v35  ;;  %v11488_v35 = vld [vmem:[#allocation3 + $0x1cf] sm:$0xff] }
 0x9e0   :  { %18249 = vmatprep.mubr.msk.f32.mxu1 %vm90_vm1, %v11479_v27  ;;  %v11489_v27 = vld [vmem:[#allocation3 + $0x1e7] sm:$0xff] }
 0x9e3   :  { %18250 = vmatmul.mubr.msk.f32.gmra.mrb[16].mxu1 %vm90_vm1, %v11480_v10  ;;  %v11490_v10 = vld [vmem:[#allocation3 + $0x1ef] sm:$0xff] }
 0x9e4   :  { %18252 = vmatprep.mubr.msk.f32.mxu1 %vm90_vm1, %v11481_v16  ;;  %v11493_v16 = vld [vmem:[#allocation3 + $0x227] sm:$0xff] }
 0x9e7   :  { %18253 = vmatmul.mubr.msk.f32.gmra.mrb[18].mxu1 %vm90_vm1, %v11482_v40  ;;  %v11494_v40 = vld [vmem:[#allocation3 + $0x22f] sm:$0xff] }
 0x9e8   :  { %18255 = vmatprep.mubr.msk.f32.mxu1 %vm90_vm1, %v11483_v34  ;;  %v11495_v34 = vld [vmem:[#allocation3 + $0x287] sm:$0xff] }
 0x9eb   :  { %18256 = vmatmul.mubr.msk.f32.gmra.mrb[20].mxu1 %vm90_vm1, %v11484_v31  ;;  %v11496_v31 = vld [vmem:[#allocation3 + $0x28f] sm:$0xff] }
 0x9ec   :  { %18258 = vmatprep.mubr.msk.f32.mxu1 %vm90_vm1, %v11485_v36  ;;  %v11497_v36 = vld [vmem:[#allocation3 + $0x2a7] sm:$0xff] }
 0x9ef   :  { %18259 = vmatmul.mubr.msk.f32.gmra.mrb[22].mxu1 %vm90_vm1, %v11486_v42  ;;  %v11498_v42 = vld [vmem:[#allocation3 + $0x2af] sm:$0xff] }
 0x9f0   :  { %18261 = vmatprep.mubr.msk.f32.mxu1 %vm90_vm1, %v11487_v2  ;;  %v11501_v2 = vld [vmem:[#allocation3 + $0x2e7] sm:$0xff] }
 0x9f3   :  { %18262 = vmatmul.mubr.msk.f32.gmra.mrb[24].mxu1 %vm90_vm1, %v11488_v35  ;;  %v11502_v35 = vld [vmem:[#allocation3 + $0x2ef] sm:$0xff] }
 0x9f4   :  { %18264 = vmatprep.mubr.msk.f32.mxu1 %vm90_vm1, %v11489_v27  ;;  %v11503_v27 = vld [vmem:[#allocation3 + $0x307] sm:$0xff] }
 0x9f7   :  { %18265 = vmatmul.mubr.msk.f32.gmra.mrb[26].mxu1 %vm90_vm1, %v11490_v10  ;;  %v11504_v10 = vld [vmem:[#allocation3 + $0x30f] sm:$0xff] }
 0x9f8   :  { %18267 = vmatprep.mubr.msk.f32.mxu1 %vm90_vm1, %v24057_v51  ;;  %v11499_v51 = vld [vmem:[#allocation3 + $0x2c7] sm:$0xff] }
 0x9fb   :  { %18268 = vmatmul.mubr.msk.f32.gmra.mrb[28].mxu1 %vm90_vm1, %v24061_v3  ;;  %v11500_v3 = vld [vmem:[#allocation3 + $0x2cf] sm:$0xff] }
 0x9fc   :  { %18270 = vmatprep.mubr.msk.f32.mxu1 %vm90_vm1, %v11493_v16  ;;  %v11505_v16 = vld [vmem:[#allocation3 + $0x327] sm:$0xff] }
 0x9ff   :  { %18271 = vmatmul.mubr.msk.f32.gmra.mrb[30].mxu1 %vm90_vm1, %v11494_v40  ;;  %v11506_v40 = vld [vmem:[#allocation3 + $0x32f] sm:$0xff] }
 0xa00   :  { %18273 = vmatprep.mubr.msk.f32.mxu1 %vm90_vm1, %v11495_v34  ;;  %v11507_v34 = vld [vmem:[#allocation3 + $0x347] sm:$0xff] }
 0xa03   :  { %18274 = vmatmul.mubr.msk.f32.gmra.mrb[32].mxu1 %vm90_vm1, %v11496_v31  ;;  %v11508_v31 = vld [vmem:[#allocation3 + $0x34f] sm:$0xff] }
 0xa04   :  { %18276 = vmatprep.mubr.msk.f32.mxu1 %vm90_vm1, %v11497_v36  ;;  %v11509_v36 = vld [vmem:[#allocation3 + $0x367] sm:$0xff] }
 0xa07   :  { %18277 = vmatmul.mubr.msk.f32.gmra.mrb[34].mxu1 %vm90_vm1, %v11498_v42  ;;  %v11510_v42 = vld [vmem:[#allocation3 + $0x36f] sm:$0xff] }
 0xa08   :  { %18279 = vmatprep.mubr.msk.f32.mxu1 %vm90_vm1, %v11499_v51  ;;  %v11511_v51 = vld [vmem:[#allocation3 + $0x387] sm:$0xff] }
 0xa0b   :  { %18280 = vmatmul.mubr.msk.f32.gmra.mrb[36].mxu1 %vm90_vm1, %v11500_v3  ;;  %v11512_v3 = vld [vmem:[#allocation3 + $0x38f] sm:$0xff] }
 0xa0c   :  { %18282 = vmatprep.mubr.msk.f32.mxu1 %vm90_vm1, %v11501_v2  ;;  %v11513_v2 = vld [vmem:[#allocation3 + $0x3a7] sm:$0xff] }
 0xa0f   :  { %18283 = vmatmul.mubr.msk.f32.gmra.mrb[38].mxu1 %vm90_vm1, %v11502_v35  ;;  %v11514_v35 = vld [vmem:[#allocation3 + $0x3af] sm:$0xff] }
 0xa10   :  { %18285 = vmatprep.mubr.msk.f32.mxu1 %vm90_vm1, %v11503_v27  ;;  %v11515_v27 = vld [vmem:[#allocation3 + $0x3c7] sm:$0xff] }
 0xa13   :  { %18286 = vmatmul.mubr.msk.f32.gmra.mrb[40].mxu1 %vm90_vm1, %v11504_v10  ;;  %v11516_v10 = vld [vmem:[#allocation3 + $0x3cf] sm:$0xff] }
 0xa14   :  { %18288 = vmatprep.mubr.msk.f32.mxu1 %vm90_vm1, %v11505_v16  ;;  %v11517_v16 = vld [vmem:[#allocation3 + $0x3e7] sm:$0xff] }
 0xa17   :  { %18289 = vmatmul.mubr.msk.f32.gmra.mrb[42].mxu1 %vm90_vm1, %v11506_v40  ;;  %v11518_v40 = vld [vmem:[#allocation3 + $0x3ef] sm:$0xff] }
 0xa18   :  { %18291 = vmatprep.mubr.msk.f32.mxu1 %vm90_vm1, %v11507_v34  ;;  %v11519_v34 = vld [vmem:[#allocation3 + $0x407] sm:$0xff] }
 0xa1b   :  { %18292 = vmatmul.mubr.msk.f32.gmra.mrb[44].mxu1 %vm90_vm1, %v11508_v31  ;;  %v11520_v31 = vld [vmem:[#allocation3 + $0x40f] sm:$0xff] }
 0xa1c   :  { %18294 = vmatprep.mubr.msk.f32.mxu1 %vm90_vm1, %v11509_v36  ;;  %v11521_v36 = vld [vmem:[#allocation3 + $0x427] sm:$0xff] }
 0xa1f   :  { %18295 = vmatmul.mubr.msk.f32.gmra.mrb[46].mxu1 %vm90_vm1, %v11510_v42  ;;  %v11522_v42 = vld [vmem:[#allocation3 + $0x42f] sm:$0xff] }
 0xa20   :  { %18297 = vmatprep.mubr.msk.f32.mxu1 %vm90_vm1, %v11511_v51  ;;  %v11525_v51 = vld [vmem:[#allocation3 + $0x467] sm:$0xff] }
 0xa23   :  { %18298 = vmatmul.mubr.msk.f32.gmra.mrb[48].mxu1 %vm90_vm1, %v11512_v3  ;;  %v11526_v3 = vld [vmem:[#allocation3 + $0x46f] sm:$0xff] }
 0xa24   :  { %18300 = vmatprep.mubr.msk.f32.mxu1 %vm90_vm1, %v11513_v2  ;;  %v12915_v2 = vld [vmem:[#allocation3 + $0x289] sm:$0xff] }
 0xa27   :  { %18301 = vmatmul.mubr.msk.f32.gmra.mrb[50].mxu1 %vm90_vm1, %v11514_v35  ;;  %v12916_v35 = vld [vmem:[#allocation3 + $0x291] sm:$0xff] }
 0xa28   :  { %18303 = vmatprep.mubr.msk.f32.mxu1 %vm90_vm1, %v11515_v27  ;;  %v12917_v27 = vld [vmem:[#allocation3 + $0x2a9] sm:$0xff] }
 0xa2b   :  { %18304 = vmatmul.mubr.msk.f32.gmra.mrb[52].mxu1 %vm90_vm1, %v11516_v10  ;;  %v12918_v10 = vld [vmem:[#allocation3 + $0x2b1] sm:$0xff] }
 0xa2c   :  { %18306 = vmatprep.mubr.msk.f32.mxu1 %vm90_vm1, %v11517_v16  ;;  %v12920_v16 = vld [vmem:[#allocation3 + $0x2d1] sm:$0xff] }
 0xa2f   :  { %18307 = vmatmul.mubr.msk.f32.gmra.mrb[54].mxu1 %vm90_vm1, %v11518_v40  ;;  %v12921_v40 = vld [vmem:[#allocation3 + $0x2e9] sm:$0xff] }
 0xa30   :  { %18309 = vmatprep.mubr.msk.f32.mxu1 %vm90_vm1, %v11519_v34  ;;  %v12922_v34 = vld [vmem:[#allocation3 + $0x2f1] sm:$0xff] }
 0xa33   :  { %18310 = vmatmul.mubr.msk.f32.gmra.mrb[56].mxu1 %vm90_vm1, %v11520_v31  ;;  %v12923_v31 = vld [vmem:[#allocation3 + $0x309] sm:$0xff] }
 0xa34   :  { %18312 = vmatprep.mubr.msk.f32.mxu1 %vm90_vm1, %v11521_v36  ;;  %v12924_v36 = vld [vmem:[#allocation3 + $0x311] sm:$0xff] }
 0xa37   :  { %18313 = vmatmul.mubr.msk.f32.gmra.mrb[58].mxu1 %vm90_vm1, %v11522_v42  ;;  %v12925_v42 = vld [vmem:[#allocation3 + $0x329] sm:$0xff] }
 0xa38   :  { %18315 = vmatprep.mubr.msk.f32.mxu1 %vm90_vm1, %v24125_v9  ;;  %v12203_v9 = vld [vmem:[#allocation3 + $0x228] sm:$0xff] }
 0xa3b   :  { %18316 = vmatmul.mubr.msk.f32.gmra.mrb[60].mxu1 %vm90_vm1, %v24129_v1  ;;  %v12204_v1 = vld [vmem:[#allocation3 + $0x230] sm:$0xff] }
 0xa3c   :  { %18318 = vmatprep.mubr.msk.f32.mxu1 %vm90_vm1, %v11525_v51  ;;  %v12926_v51 = vld [vmem:[#allocation3 + $0x331] sm:$0xff] }
 0xa3f   :  { %18319 = vmatmul.mubr.msk.f32.gmra.mrb[62].mxu1 %vm90_vm1, %v11526_v3  ;;  %v12927_v3 = vld [vmem:[#allocation3 + $0x349] sm:$0xff] }
 0xa40   :  { %18323 = vmatprep.mubr.msk.f32.mxu1 %vm90_vm1, %v24140_v22  ;;  %v27627_v22 = vld [vmem:[#allocation119_spill] sm:$0xff] }
 0xa43   :  { %18324 = vmatmul.mubr.msk.f32.vlgmr.msra.gmra.mrb[0].mxu1 %vm90_vm1, %v24148_v39  ;;  %v27628_v39 = vld [vmem:[#allocation120_spill] sm:$0xff] }
 0xa44   :  { %18420 = vmatpush3.msk.msra.mxu1 %vm569_vm0, %v24535_v41  ;;  %18326 = vmatprep.mubr.msk.f32.mxu1 %vm90_vm1, %v24152_v33  ;;  %v27629_v33 = vld [vmem:[#allocation121_spill] sm:$0xff]  ;;  %v12914_v41 = vld [vmem:[#allocation3 + $0x231] sm:$0xff] }
 0xa47   :  { %18327 = vmatmul.mubr.msk.f32.gmra.mrb[2].mxu1 %vm90_vm1, %v24156_v24  ;;  %v27630_v24 = vld [vmem:[#allocation122_spill] sm:$0xff] }
 0xa48   :  { %18329 = vmatprep.mubr.msk.f32.mxu1 %vm90_vm1, %v24160_v32  ;;  %v27631_v32 = vld [vmem:[#allocation123_spill] sm:$0xff] }
 0xa4b   :  { %18330 = vmatmul.mubr.msk.f32.gmra.mrb[4].mxu1 %vm90_vm1, %v24164_v46  ;;  %v27632_v46 = vld [vmem:[#allocation64_spill] sm:$0xff] }
 0xa4c   :  { %18332 = vmatprep.mubr.msk.f32.mxu1 %vm90_vm1, %v24168_v55  ;;  %v27633_v55 = vld [vmem:[#allocation65_spill] sm:$0xff] }
 0xa4f   :  { %18333 = vmatmul.mubr.msk.f32.gmra.mrb[6].mxu1 %vm90_vm1, %v24172_v63  ;;  %v27634_v63 = vld [vmem:[#allocation66_spill] sm:$0xff] }
 0xa50   :  { %18335 = vmatprep.mubr.msk.f32.mxu1 %vm90_vm1, %v24176_v21  ;;  %v27635_v21 = vld [vmem:[#allocation67_spill] sm:$0xff] }
 0xa53   :  { %18336 = vmatmul.mubr.msk.f32.gmra.mrb[8].mxu1 %vm90_vm1, %v24180_v62  ;;  %v27636_v62 = vld [vmem:[#allocation126_spill] sm:$0xff] }
 0xa54   :  { %18338 = vmatprep.mubr.msk.f32.mxu1 %vm90_vm1, %v24184_v8  ;;  %v27637_v8 = vld [vmem:[#allocation127_spill] sm:$0xff] }
 0xa57   :  { %18339 = vmatmul.mubr.msk.f32.gmra.mrb[10].mxu1 %vm90_vm1, %v24188_v49  ;;  %v27638_v49 = vld [vmem:[#allocation128_spill] sm:$0xff] }
 0xa58   :  { %18341 = vmatprep.mubr.msk.f32.mxu1 %vm90_vm1, %v24192_v47  ;;  %v27639_v47 = vld [vmem:[#allocation129_spill] sm:$0xff] }
 0xa5b   :  { %18342 = vmatmul.mubr.msk.f32.gmra.mrb[12].mxu1 %vm90_vm1, %v24196_v53  ;;  %v12235_v53 = vld [vmem:[#allocation3 + $0x468] sm:$0xff] }
 0xa5c   :  { %18344 = vmatprep.mubr.msk.f32.mxu1 %vm90_vm1, %v24200_v52  ;;  %v27640_v52 = vld [vmem:[#allocation130_spill] sm:$0xff] }
 0xa5f   :  { %18345 = vmatmul.mubr.msk.f32.gmra.mrb[14].mxu1 %vm90_vm1, %v24204_v61  ;;  %v12236_v61 = vld [vmem:[#allocation3 + $0x470] sm:$0xff] }
 0xa60   :  { %18347 = vmatprep.mubr.msk.f32.mxu1 %vm90_vm1, %v24208_v57  ;;  %v12883_v57 = vld [vmem:[#allocation3 + $0x49] sm:$0xff] }
 0xa63   :  { %18348 = vmatmul.mubr.msk.f32.gmra.mrb[16].mxu1 %vm90_vm1, %v24212_v29  ;;  %v12884_v29 = vld [vmem:[#allocation3 + $0x51] sm:$0xff] }
 0xa64   :  { %18350 = vmatprep.mubr.msk.f32.mxu1 %vm90_vm1, %v24216_v25  ;;  %v12885_v25 = vld [vmem:[#allocation3 + $0x69] sm:$0xff] }
 0xa67   :  { %18351 = vmatmul.mubr.msk.f32.gmra.mrb[18].mxu1 %vm90_vm1, %v24220_v44  ;;  %v12886_v44 = vld [vmem:[#allocation3 + $0x71] sm:$0xff] }
 0xa68   :  { %18353 = vmatprep.mubr.msk.f32.mxu1 %vm90_vm1, %v24224_v45  ;;  %v12887_v45 = vld [vmem:[#allocation3 + $0x89] sm:$0xff] }
 0xa6b   :  { %18354 = vmatmul.mubr.msk.f32.gmra.mrb[20].mxu1 %vm90_vm1, %v24228_v4  ;;  %v12888_v4 = vld [vmem:[#allocation3 + $0x91] sm:$0xff] }
 0xa6c   :  { %18356 = vmatprep.mubr.msk.f32.mxu1 %vm90_vm1, %v24232_v7  ;;  %v12889_v7 = vld [vmem:[#allocation3 + $0xa9] sm:$0xff] }
 0xa6f   :  { %18357 = vmatmul.mubr.msk.f32.gmra.mrb[22].mxu1 %vm90_vm1, %v24236_v23  ;;  %v12890_v23 = vld [vmem:[#allocation3 + $0xb1] sm:$0xff] }
 0xa70   :  { %18359 = vmatprep.mubr.msk.f32.mxu1 %vm90_vm1, %v24240_v15  ;;  %v12891_v15 = vld [vmem:[#allocation3 + $0xc9] sm:$0xff] }
 0xa73   :  { %18360 = vmatmul.mubr.msk.f32.gmra.mrb[24].mxu1 %vm90_vm1, %v24244_v11  ;;  %v12892_v11 = vld [vmem:[#allocation3 + $0xd1] sm:$0xff] }
 0xa74   :  { %18362 = vmatprep.mubr.msk.f32.mxu1 %vm90_vm1, %v24248_v19  ;;  %v12893_v19 = vld [vmem:[#allocation3 + $0xe9] sm:$0xff] }
 0xa77   :  { %18363 = vmatmul.mubr.msk.f32.gmra.mrb[26].mxu1 %vm90_vm1, %v24252_v14  ;;  %v12894_v14 = vld [vmem:[#allocation3 + $0xf1] sm:$0xff] }
 0xa78   :  { %18365 = vmatprep.mubr.msk.f32.mxu1 %vm90_vm1, %v24256_v38  ;;  %v12895_v38 = vld [vmem:[#allocation3 + $0x109] sm:$0xff] }
 0xa7b   :  { %18366 = vmatmul.mubr.msk.f32.gmra.mrb[28].mxu1 %vm90_vm1, %v24260_v30  ;;  %v12896_v30 = vld [vmem:[#allocation3 + $0x111] sm:$0xff] }
 0xa7c   :  { %18368 = vmatprep.mubr.msk.f32.mxu1 %vm90_vm1, %v12203_v9  ;;  %v12928_v9 = vld [vmem:[#allocation3 + $0x351] sm:$0xff] }
 0xa7f   :  { %18369 = vmatmul.mubr.msk.f32.gmra.mrb[30].mxu1 %vm90_vm1, %v12204_v1  ;;  %v12929_v1 = vld [vmem:[#allocation3 + $0x369] sm:$0xff] }
 0xa80   :  { %18371 = vmatprep.mubr.msk.f32.mxu1 %vm90_vm1, %v24266_v13  ;;  %v12897_v13 = vld [vmem:[#allocation3 + $0x129] sm:$0xff] }
 0xa83   :  { %18372 = vmatmul.mubr.msk.f32.gmra.mrb[32].mxu1 %vm90_vm1, %v24270_v50  ;;  %v12898_v50 = vld [vmem:[#allocation3 + $0x131] sm:$0xff] }
 0xa84   :  { %18374 = vmatprep.mubr.msk.f32.mxu1 %vm90_vm1, %v24274_v0  ;;  %v12899_v0 = vld [vmem:[#allocation3 + $0x149] sm:$0xff] }
 0xa87   :  { %18375 = vmatmul.mubr.msk.f32.gmra.mrb[34].mxu1 %vm90_vm1, %v24278_v59  ;;  %v12900_v59 = vld [vmem:[#allocation3 + $0x151] sm:$0xff] }
 0xa88   :  { %18377 = vmatprep.mubr.msk.f32.mxu1 %vm90_vm1, %v24282_v20  ;;  %v12901_v20 = vld [vmem:[#allocation3 + $0x169] sm:$0xff] }
 0xa8b   :  { %18378 = vmatmul.mubr.msk.f32.gmra.mrb[36].mxu1 %vm90_vm1, %v24286_v54  ;;  %v12902_v54 = vld [vmem:[#allocation3 + $0x171] sm:$0xff] }
 0xa8c   :  { %18380 = vmatprep.mubr.msk.f32.mxu1 %vm90_vm1, %v24290_v28  ;;  %v12903_v28 = vld [vmem:[#allocation3 + $0x189] sm:$0xff] }
 0xa8f   :  { %18381 = vmatmul.mubr.msk.f32.gmra.mrb[38].mxu1 %vm90_vm1, %v24294_v6  ;;  %v12904_v6 = vld [vmem:[#allocation3 + $0x191] sm:$0xff] }
 0xa90   :  { %18383 = vmatprep.mubr.msk.f32.mxu1 %vm90_vm1, %v24298_v48  ;;  %v12905_v48 = vld [vmem:[#allocation3 + $0x1a9] sm:$0xff] }
 0xa93   :  { %18384 = vmatmul.mubr.msk.f32.gmra.mrb[40].mxu1 %vm90_vm1, %v24302_v18  ;;  %v12906_v18 = vld [vmem:[#allocation3 + $0x1b1] sm:$0xff] }
 0xa94   :  { %18386 = vmatprep.mubr.msk.f32.mxu1 %vm90_vm1, %v24306_v60  ;;  %v12907_v60 = vld [vmem:[#allocation3 + $0x1c9] sm:$0xff] }
 0xa97   :  { %18387 = vmatmul.mubr.msk.f32.gmra.mrb[42].mxu1 %vm90_vm1, %v24310_v17  ;;  %v12908_v17 = vld [vmem:[#allocation3 + $0x1d1] sm:$0xff] }
 0xa98   :  { %18389 = vmatprep.mubr.msk.f32.mxu1 %vm90_vm1, %v24314_v58  ;;  %v12909_v58 = vld [vmem:[#allocation3 + $0x1e9] sm:$0xff] }
 0xa9b   :  { %18390 = vmatmul.mubr.msk.f32.gmra.mrb[44].mxu1 %vm90_vm1, %v24318_v26  ;;  %v12910_v26 = vld [vmem:[#allocation3 + $0x1f1] sm:$0xff] }
 0xa9c   :  { %18392 = vmatprep.mubr.msk.f32.mxu1 %vm90_vm1, %v24322_v37  ;;  %v12913_v37 = vld [vmem:[#allocation3 + $0x229] sm:$0xff] }
 0xa9f   :  { %18393 = vmatmul.mubr.msk.f32.gmra.mrb[46].mxu1 %vm90_vm1, %v24326_v56  ;;  %v27641_v56 = vld [vmem:[#allocation131_spill] sm:$0xff] }
 0xaa0   :  { %18395 = vmatprep.mubr.msk.f32.mxu1 %vm90_vm1, %v27627_v22  ;;  %v12930_v22 = vld [vmem:[#allocation3 + $0x371] sm:$0xff] }
 0xaa3   :  { %18396 = vmatmul.mubr.msk.f32.gmra.mrb[48].mxu1 %vm90_vm1, %v27628_v39  ;;  %v12931_v39 = vld [vmem:[#allocation3 + $0x389] sm:$0xff] }
 0xaa4   :  { %18398 = vmatprep.mubr.msk.f32.mxu1 %vm90_vm1, %v27629_v33  ;;  %v12932_v33 = vld [vmem:[#allocation3 + $0x391] sm:$0xff] }
 0xaa7   :  { %18399 = vmatmul.mubr.msk.f32.gmra.mrb[50].mxu1 %vm90_vm1, %v27630_v24  ;;  %v12933_v24 = vld [vmem:[#allocation3 + $0x3a9] sm:$0xff] }
 0xaa8   :  { %18401 = vmatprep.mubr.msk.f32.mxu1 %vm90_vm1, %v27631_v32  ;;  %v12934_v32 = vld [vmem:[#allocation3 + $0x3b1] sm:$0xff] }
 0xaab   :  { %18402 = vmatmul.mubr.msk.f32.gmra.mrb[52].mxu1 %vm90_vm1, %v27632_v46  ;;  %v12935_v46 = vld [vmem:[#allocation3 + $0x3c9] sm:$0xff] }
 0xaac   :  { %18404 = vmatprep.mubr.msk.f32.mxu1 %vm90_vm1, %v27633_v55  ;;  %v12936_v55 = vld [vmem:[#allocation3 + $0x3d1] sm:$0xff] }
 0xaaf   :  { %18405 = vmatmul.mubr.msk.f32.gmra.mrb[54].mxu1 %vm90_vm1, %v27634_v63  ;;  %v12937_v63 = vld [vmem:[#allocation3 + $0x3e9] sm:$0xff] }
 0xab0   :  { %18407 = vmatprep.mubr.msk.f32.mxu1 %vm90_vm1, %v27635_v21  ;;  %v12938_v21 = vld [vmem:[#allocation3 + $0x3f1] sm:$0xff] }
 0xab3   :  { %18408 = vmatmul.mubr.msk.f32.gmra.mrb[56].mxu1 %vm90_vm1, %v27636_v62  ;;  %v12939_v62 = vld [vmem:[#allocation3 + $0x409] sm:$0xff] }
 0xab4   :  { %18410 = vmatprep.mubr.msk.f32.mxu1 %vm90_vm1, %v27637_v8  ;;  %v12940_v8 = vld [vmem:[#allocation3 + $0x411] sm:$0xff] }
 0xab7   :  { %18411 = vmatmul.mubr.msk.f32.gmra.mrb[58].mxu1 %vm90_vm1, %v27638_v49  ;;  %v12941_v49 = vld [vmem:[#allocation3 + $0x429] sm:$0xff] }
 0xab8   :  { %18413 = vmatprep.mubr.msk.f32.mxu1 %vm90_vm1, %v27639_v47  ;;  %v12942_v47 = vld [vmem:[#allocation3 + $0x431] sm:$0xff] }
 0xabb   :  { %18414 = vmatmul.mubr.msk.f32.gmra.mrb[60].mxu1 %vm90_vm1, %v27640_v52  ;;  %v12946_v52 = vld [vmem:[#allocation3 + $0x471] sm:$0xff] }
 0xabc   :  { %18416 = vmatprep.mubr.msk.f32.mxu1 %vm90_vm1, %v12235_v53  ;;  %v12945_v53 = vld [vmem:[#allocation3 + $0x469] sm:$0xff] }
 0xabf   :  { %18417 = vmatmul.mubr.msk.f32.gmra.mrb[62].mxu1 %vm90_vm1, %v12236_v61 }
 0xac0   :  { %18421 = vmatprep.mubr.msk.f32.mxu1 %vm90_vm1, %v12883_v57 }
 0xac3   :  { %18422 = vmatmul.mubr.msk.f32.vlgmr.msra.gmra.mrb[0].mxu1 %vm90_vm1, %v12884_v29 }
 0xac4   :  { %18424 = vmatprep.mubr.msk.f32.mxu1 %vm90_vm1, %v12885_v25 }
 0xac7   :  { %18425 = vmatmul.mubr.msk.f32.gmra.mrb[2].mxu1 %vm90_vm1, %v12886_v44 }
 0xac8   :  { %18427 = vmatprep.mubr.msk.f32.mxu1 %vm90_vm1, %v12887_v45 }
 0xacb   :  { %18428 = vmatmul.mubr.msk.f32.gmra.mrb[4].mxu1 %vm90_vm1, %v12888_v4 }
 0xacc   :  { %18430 = vmatprep.mubr.msk.f32.mxu1 %vm90_vm1, %v12889_v7 }
 0xacf   :  { %18431 = vmatmul.mubr.msk.f32.gmra.mrb[6].mxu1 %vm90_vm1, %v12890_v23 }
 0xad0   :  { %18433 = vmatprep.mubr.msk.f32.mxu1 %vm90_vm1, %v12891_v15 }
 0xad3   :  { %18434 = vmatmul.mubr.msk.f32.gmra.mrb[8].mxu1 %vm90_vm1, %v12892_v11 }
 0xad4   :  { %18436 = vmatprep.mubr.msk.f32.mxu1 %vm90_vm1, %v12893_v19 }
 0xad7   :  { %18437 = vmatmul.mubr.msk.f32.gmra.mrb[10].mxu1 %vm90_vm1, %v12894_v14 }
 0xad8   :  { %18439 = vmatprep.mubr.msk.f32.mxu1 %vm90_vm1, %v12895_v38 }
 0xadb   :  { %18440 = vmatmul.mubr.msk.f32.gmra.mrb[12].mxu1 %vm90_vm1, %v12896_v30 }
 0xadc   :  { %18442 = vmatprep.mubr.msk.f32.mxu1 %vm90_vm1, %v12897_v13 }
 0xadf   :  { %18443 = vmatmul.mubr.msk.f32.gmra.mrb[14].mxu1 %vm90_vm1, %v12898_v50 }
 0xae0   :  { %18445 = vmatprep.mubr.msk.f32.mxu1 %vm90_vm1, %v12899_v0 }
 0xae3   :  { %18446 = vmatmul.mubr.msk.f32.gmra.mrb[16].mxu1 %vm90_vm1, %v12900_v59 }
 0xae4   :  { %18448 = vmatprep.mubr.msk.f32.mxu1 %vm90_vm1, %v12901_v20 }
 0xae7   :  { %18449 = vmatmul.mubr.msk.f32.gmra.mrb[18].mxu1 %vm90_vm1, %v12902_v54 }
 0xae8   :  { %18451 = vmatprep.mubr.msk.f32.mxu1 %vm90_vm1, %v12903_v28 }
 0xaeb   :  { %18452 = vmatmul.mubr.msk.f32.gmra.mrb[20].mxu1 %vm90_vm1, %v12904_v6 }
 0xaec   :  { %18454 = vmatprep.mubr.msk.f32.mxu1 %vm90_vm1, %v12905_v48 }
 0xaef   :  { %18455 = vmatmul.mubr.msk.f32.gmra.mrb[22].mxu1 %vm90_vm1, %v12906_v18 }
 0xaf0   :  { %18457 = vmatprep.mubr.msk.f32.mxu1 %vm90_vm1, %v12907_v60 }
 0xaf3   :  { %18458 = vmatmul.mubr.msk.f32.gmra.mrb[24].mxu1 %vm90_vm1, %v12908_v17 }
 0xaf4   :  { %18460 = vmatprep.mubr.msk.f32.mxu1 %vm90_vm1, %v12909_v58 }
 0xaf7   :  { %18461 = vmatmul.mubr.msk.f32.gmra.mrb[26].mxu1 %vm90_vm1, %v12910_v26 }
 0xaf8   :  { %18463 = vmatprep.mubr.msk.f32.mxu1 %vm90_vm1, %v24455_v12  ;;  %v12919_v12 = vld [vmem:[#allocation3 + $0x2c9] sm:$0xff] }
 0xafb   :  { %18464 = vmatmul.mubr.msk.f32.gmra.mrb[28].mxu1 %vm90_vm1, %v27641_v56 }
 0xafc   :  { %18466 = vmatprep.mubr.msk.f32.mxu1 %vm90_vm1, %v12913_v37 }
 0xaff   :  { %18467 = vmatmul.mubr.msk.f32.gmra.mrb[30].mxu1 %vm90_vm1, %v12914_v41 }
 0xb00   :  { %18469 = vmatprep.mubr.msk.f32.mxu1 %vm90_vm1, %v12915_v2 }
 0xb03   :  { %18470 = vmatmul.mubr.msk.f32.gmra.mrb[32].mxu1 %vm90_vm1, %v12916_v35 }
 0xb04   :  { %18472 = vmatprep.mubr.msk.f32.mxu1 %vm90_vm1, %v12917_v27 }
 0xb07   :  { %18473 = vmatmul.mubr.msk.f32.gmra.mrb[34].mxu1 %vm90_vm1, %v12918_v10 }
 0xb08   :  { %18475 = vmatprep.mubr.msk.f32.mxu1 %vm90_vm1, %v12919_v12 }
 0xb0b   :  { %18476 = vmatmul.mubr.msk.f32.gmra.mrb[36].mxu1 %vm90_vm1, %v12920_v16 }
 0xb0c   :  { %18478 = vmatprep.mubr.msk.f32.mxu1 %vm90_vm1, %v12921_v40 }
 0xb0f   :  { %18479 = vmatmul.mubr.msk.f32.gmra.mrb[38].mxu1 %vm90_vm1, %v12922_v34 }
 0xb10   :  { %18481 = vmatprep.mubr.msk.f32.mxu1 %vm90_vm1, %v12923_v31 }
 0xb13   :  { %18482 = vmatmul.mubr.msk.f32.gmra.mrb[40].mxu1 %vm90_vm1, %v12924_v36 }
 0xb14   :  { %18484 = vmatprep.mubr.msk.f32.mxu1 %vm90_vm1, %v12925_v42 }
 0xb17   :  { %18485 = vmatmul.mubr.msk.f32.gmra.mrb[42].mxu1 %vm90_vm1, %v12926_v51 }
 0xb18   :  { %18487 = vmatprep.mubr.msk.f32.mxu1 %vm90_vm1, %v12927_v3 }
 0xb1b   :  { %18488 = vmatmul.mubr.msk.f32.gmra.mrb[44].mxu1 %vm90_vm1, %v12928_v9 }
 0xb1c   :  { %18490 = vmatprep.mubr.msk.f32.mxu1 %vm90_vm1, %v12929_v1 }
 0xb1f   :  { %18491 = vmatmul.mubr.msk.f32.gmra.mrb[46].mxu1 %vm90_vm1, %v12930_v22 }
 0xb20   :  { %18493 = vmatprep.mubr.msk.f32.mxu1 %vm90_vm1, %v12931_v39 }
 0xb23   :  { %18494 = vmatmul.mubr.msk.f32.gmra.mrb[48].mxu1 %vm90_vm1, %v12932_v33 }
 0xb24   :  { %18496 = vmatprep.mubr.msk.f32.mxu1 %vm90_vm1, %v12933_v24 }
 0xb27   :  { %18497 = vmatmul.mubr.msk.f32.gmra.mrb[50].mxu1 %vm90_vm1, %v12934_v32 }
 0xb28   :  { %18499 = vmatprep.mubr.msk.f32.mxu1 %vm90_vm1, %v12935_v46 }
 0xb2b   :  { %18500 = vmatmul.mubr.msk.f32.gmra.mrb[52].mxu1 %vm90_vm1, %v12936_v55 }
 0xb2c   :  { %18502 = vmatprep.mubr.msk.f32.mxu1 %vm90_vm1, %v12937_v63 }
 0xb2f   :  { %18503 = vmatmul.mubr.msk.f32.gmra.mrb[54].mxu1 %vm90_vm1, %v12938_v21 }
 0xb30   :  { %18505 = vmatprep.mubr.msk.f32.mxu1 %vm90_vm1, %v12939_v62 }
 0xb33   :  { %18506 = vmatmul.mubr.msk.f32.gmra.mrb[56].mxu1 %vm90_vm1, %v12940_v8 }
 0xb34   :  { %18508 = vmatprep.mubr.msk.f32.mxu1 %vm90_vm1, %v12941_v49 }
 0xb37   :  { %18509 = vmatmul.mubr.msk.f32.gmra.mrb[58].mxu1 %vm90_vm1, %v12942_v47 }
 0xb38   :  { %18511 = vmatprep.mubr.msk.f32.mxu1 %vm90_vm1, %v24523_v5 }
 0xb3b   :  { %18512 = vmatmul.mubr.msk.f32.gmra.mrb[60].mxu1 %vm90_vm1, %v24527_v43 }
 0xb3c   :  { %18514 = vmatprep.mubr.msk.f32.mxu1 %vm90_vm1, %v12945_v53 }
 0xb3f   :  { %18515 = vmatmul.mubr.msk.f32.gmra.mrb[62].mxu1 %vm90_vm1, %v12946_v52 }
 0xb96   :  { %v24802_v61 = vpop.f32.mrb[0].mxu1 }
 0xb97   :  { %v13594_v57 = vsel %vm90_vm1, %v24802_v61, 0.0  ;;  %v24806_v29 = vpop.f32.mrb[1].mxu1 }
 0xb98   :  { %v13593_v25 = vsel %vm90_vm1, %v24806_v29, 0.0 }
 0xb99   :  { %v13595_v5 = vadd.f32 %v13594_v57, %v13593_v25 }
 0xb9a   :  { %v24810_v44 = vpop.f32.mrb[2].mxu1 }
 0xb9b   :  { %v24812_v45 = vpop.f32.mrb[3].mxu1  ;;  %v13598_v7 = vsel %vm90_vm1, %v24810_v44, 0.0 }
 0xb9c   :  { %v13596_v43 = vsel %vm90_vm1, %v24812_v45, 0.0 }
 0xb9d   :  { %v13597_v4 = vadd.f32 %v13596_v43, %v13595_v5 }
 0xb9e   :  { %v24818_v23 = vpop.f32.mrb[4].mxu1 }
 0xb9f   :  { %v13599_v15 = vadd.f32 %v13598_v7, %v13597_v4  ;;  %v24820_v11 = vpop.f32.mrb[5].mxu1  ;;  %v13602_v38 = vsel %vm90_vm1, %v24818_v23, 0.0 }
 0xba0   :  { %v13600_v19 = vsel %vm90_vm1, %v24820_v11, 0.0 }
 0xba1   :  { %v13601_v14 = vadd.f32 %v13600_v19, %v13599_v15 }
 0xba2   :  { %v24826_v30 = vpop.f32.mrb[6].mxu1 }
 0xba3   :  { %v24828_v13 = vpop.f32.mrb[7].mxu1  ;;  %v13603_v50 = vadd.f32 %v13602_v38, %v13601_v14  ;;  %v13606_v20 = vsel %vm90_vm1, %v24826_v30, 0.0 }
 0xba4   :  { %v13604_v0 = vsel %vm90_vm1, %v24828_v13, 0.0 }
 0xba5   :  { %v13605_v59 = vadd.f32 %v13604_v0, %v13603_v50 }
 0xba6   :  { %v24834_v54 = vpop.f32.mrb[8].mxu1 }
 0xba7   :  { %v24836_v28 = vpop.f32.mrb[9].mxu1  ;;  %v13607_v6 = vadd.f32 %v13606_v20, %v13605_v59  ;;  %v13610_v60 = vsel %vm90_vm1, %v24834_v54, 0.0 }
 0xba8   :  { %v13608_v48 = vsel %vm90_vm1, %v24836_v28, 0.0 }
 0xba9   :  { %v13609_v18 = vadd.f32 %v13608_v48, %v13607_v6 }
 0xbaa   :  { %v24842_v17 = vpop.f32.mrb[10].mxu1 }
 0xbab   :  { %v24844_v58 = vpop.f32.mrb[11].mxu1  ;;  %v13611_v26 = vadd.f32 %v13610_v60, %v13609_v18  ;;  %v13614_v41 = vsel %vm90_vm1, %v24842_v17, 0.0 }
 0xbac   :  { %v13612_v37 = vsel %vm90_vm1, %v24844_v58, 0.0 }
 0xbad   :  { %v13613_v56 = vadd.f32 %v13612_v37, %v13611_v26 }
 0xbae   :  { %v24850_v2 = vpop.f32.mrb[12].mxu1 }
 0xbaf   :  { %v24852_v35 = vpop.f32.mrb[13].mxu1  ;;  %v13615_v27 = vadd.f32 %v13614_v41, %v13613_v56  ;;  %v13618_v16 = vsel %vm90_vm1, %v24850_v2, 0.0 }
 0xbb0   :  { %v13616_v10 = vsel %vm90_vm1, %v24852_v35, 0.0 }
 0xbb1   :  { %v13617_v12 = vadd.f32 %v13616_v10, %v13615_v27 }
 0xbb2   :  { %v24858_v40 = vpop.f32.mrb[14].mxu1 }
 0xbb3   :  { %v24860_v34 = vpop.f32.mrb[15].mxu1  ;;  %v13619_v31 = vadd.f32 %v13618_v16, %v13617_v12  ;;  %v13622_v51 = vsel %vm90_vm1, %v24858_v40, 0.0 }
 0xbb4   :  { %v13620_v36 = vsel %vm90_vm1, %v24860_v34, 0.0 }
 0xbb5   :  { %v13621_v42 = vadd.f32 %v13620_v36, %v13619_v31 }
 0xbb6   :  { %v24866_v3 = vpop.f32.mrb[16].mxu1 }
 0xbb7   :  { %v24868_v9 = vpop.f32.mrb[17].mxu1  ;;  %v13623_v1 = vadd.f32 %v13622_v51, %v13621_v42  ;;  %v13626_v33 = vsel %vm90_vm1, %v24866_v3, 0.0 }
 0xbb8   :  { %v13624_v22 = vsel %vm90_vm1, %v24868_v9, 0.0 }
 0xbb9   :  { %v13625_v39 = vadd.f32 %v13624_v22, %v13623_v1 }
 0xbba   :  { %v24874_v24 = vpop.f32.mrb[18].mxu1 }
 0xbbb   :  { %v24876_v32 = vpop.f32.mrb[19].mxu1  ;;  %v13627_v46 = vadd.f32 %v13626_v33, %v13625_v39  ;;  %v13630_v21 = vsel %vm90_vm1, %v24874_v24, 0.0 }
 0xbbc   :  { %v13628_v55 = vsel %vm90_vm1, %v24876_v32, 0.0 }
 0xbbd   :  { %v13629_v63 = vadd.f32 %v13628_v55, %v13627_v46 }
 0xbbe   :  { %v24882_v62 = vpop.f32.mrb[20].mxu1 }
 0xbbf   :  { %v24884_v8 = vpop.f32.mrb[21].mxu1  ;;  %v13631_v49 = vadd.f32 %v13630_v21, %v13629_v63  ;;  %v13634_v52 = vsel %vm90_vm1, %v24882_v62, 0.0 }
 0xbc0   :  { %v13632_v47 = vsel %vm90_vm1, %v24884_v8, 0.0 }
 0xbc1   :  { %v13633_v53 = vadd.f32 %v13632_v47, %v13631_v49 }
 0xbc2   :  { %v24890_v57 = vpop.f32.mrb[22].mxu1 }
 0xbc3   :  { %v24892_v25 = vpop.f32.mrb[23].mxu1  ;;  %v13635_v5 = vadd.f32 %v13634_v52, %v13633_v53  ;;  %v13638_v7 = vsel %vm90_vm1, %v24890_v57, 0.0 }
 0xbc4   :  { %v13636_v43 = vsel %vm90_vm1, %v24892_v25, 0.0 }
 0xbc5   :  { %v13637_v4 = vadd.f32 %v13636_v43, %v13635_v5 }
 0xbc6   :  { %v24898_v15 = vpop.f32.mrb[24].mxu1 }
 0xbc7   :  { %v24900_v19 = vpop.f32.mrb[25].mxu1  ;;  %v13639_v14 = vadd.f32 %v13638_v7, %v13637_v4  ;;  %v13642_v0 = vsel %vm90_vm1, %v24898_v15, 0.0 }
 0xbc8   :  { %v13640_v38 = vsel %vm90_vm1, %v24900_v19, 0.0 }
 0xbc9   :  { %v13641_v50 = vadd.f32 %v13640_v38, %v13639_v14 }
 0xbca   :  { %v24906_v59 = vpop.f32.mrb[26].mxu1 }
 0xbcb   :  { %v24908_v20 = vpop.f32.mrb[27].mxu1  ;;  %v13643_v6 = vadd.f32 %v13642_v0, %v13641_v50  ;;  %v13646_v60 = vsel %vm90_vm1, %v24906_v59, 0.0 }
 0xbcc   :  { %v13644_v48 = vsel %vm90_vm1, %v24908_v20, 0.0 }
 0xbcd   :  { %v13645_v18 = vadd.f32 %v13644_v48, %v13643_v6 }
 0xbce   :  { %v24914_v26 = vpop.f32.mrb[28].mxu1 }
 0xbcf   :  { %v24916_v37 = vpop.f32.mrb[29].mxu1  ;;  %v13647_v56 = vadd.f32 %v13646_v60, %v13645_v18  ;;  %v13650_v10 = vsel %vm90_vm1, %v24914_v26, 0.0 }
 0xbd0   :  { %v13648_v41 = vsel %vm90_vm1, %v24916_v37, 0.0 }
 0xbd1   :  { %v13649_v27 = vadd.f32 %v13648_v41, %v13647_v56 }
 0xbd2   :  { %v24922_v12 = vpop.f32.mrb[30].mxu1 }
 0xbd3   :  { %v24924_v16 = vpop.f32.mrb[31].mxu1  ;;  %v13651_v31 = vadd.f32 %v13650_v10, %v13649_v27  ;;  %v13654_v51 = vsel %vm90_vm1, %v24922_v12, 0.0 }
 0xbd4   :  { %v13652_v36 = vsel %vm90_vm1, %v24924_v16, 0.0 }
 0xbd5   :  { %v13653_v42 = vadd.f32 %v13652_v36, %v13651_v31 }
 0xbd6   :  { %v24930_v1 = vpop.f32.mrb[32].mxu1 }
 0xbd7   :  { %v24932_v22 = vpop.f32.mrb[33].mxu1  ;;  %v13655_v39 = vadd.f32 %v13654_v51, %v13653_v42  ;;  %v13658_v55 = vsel %vm90_vm1, %v24930_v1, 0.0 }
 0xbd8   :  { %v13656_v33 = vsel %vm90_vm1, %v24932_v22, 0.0 }
 0xbd9   :  { %v13657_v46 = vadd.f32 %v13656_v33, %v13655_v39 }
 0xbda   :  { %v24938_v63 = vpop.f32.mrb[34].mxu1 }
 0xbdb   :  { %v24940_v21 = vpop.f32.mrb[35].mxu1  ;;  %v13659_v49 = vadd.f32 %v13658_v55, %v13657_v46  ;;  %v13662_v52 = vsel %vm90_vm1, %v24938_v63, 0.0 }
 0xbdc   :  { %v13660_v47 = vsel %vm90_vm1, %v24940_v21, 0.0 }
 0xbdd   :  { %v13661_v53 = vadd.f32 %v13660_v47, %v13659_v49 }
 0xbde   :  { %v24946_v5 = vpop.f32.mrb[36].mxu1 }
 0xbdf   :  { %v24948_v43 = vpop.f32.mrb[37].mxu1  ;;  %v13663_v4 = vadd.f32 %v13662_v52, %v13661_v53  ;;  %v13666_v38 = vsel %vm90_vm1, %v24946_v5, 0.0 }
 0xbe0   :  { %v13664_v7 = vsel %vm90_vm1, %v24948_v43, 0.0 }
 0xbe1   :  { %v13665_v14 = vadd.f32 %v13664_v7, %v13663_v4 }
 0xbe2   :  { %v24954_v50 = vpop.f32.mrb[38].mxu1 }
 0xbe3   :  { %v24956_v0 = vpop.f32.mrb[39].mxu1  ;;  %v13667_v6 = vadd.f32 %v13666_v38, %v13665_v14  ;;  %v13670_v60 = vsel %vm90_vm1, %v24954_v50, 0.0 }
 0xbe4   :  { %v13668_v48 = vsel %vm90_vm1, %v24956_v0, 0.0 }
 0xbe5   :  { %v13669_v18 = vadd.f32 %v13668_v48, %v13667_v6 }
 0xbe6   :  { %v24962_v56 = vpop.f32.mrb[40].mxu1 }
 0xbe7   :  { %v24964_v41 = vpop.f32.mrb[41].mxu1  ;;  %v13671_v27 = vadd.f32 %v13670_v60, %v13669_v18  ;;  %v13674_v36 = vsel %vm90_vm1, %v24962_v56, 0.0 }
 0xbe8   :  { %v13672_v10 = vsel %vm90_vm1, %v24964_v41, 0.0 }
 0xbe9   :  { %v13673_v31 = vadd.f32 %v13672_v10, %v13671_v27 }
 0xbea   :  { %v24970_v42 = vpop.f32.mrb[42].mxu1 }
 0xbeb   :  { %v24972_v51 = vpop.f32.mrb[43].mxu1  ;;  %v13675_v39 = vadd.f32 %v13674_v36, %v13673_v31  ;;  %v13678_v55 = vsel %vm90_vm1, %v24970_v42, 0.0 }
 0xbec   :  { %v13676_v33 = vsel %vm90_vm1, %v24972_v51, 0.0 }
 0xbed   :  { %v13677_v46 = vadd.f32 %v13676_v33, %v13675_v39 }
 0xbee   :  { %v24978_v49 = vpop.f32.mrb[44].mxu1 }
 0xbef   :  { %v24980_v47 = vpop.f32.mrb[45].mxu1  ;;  %v13679_v53 = vadd.f32 %v13678_v55, %v13677_v46  ;;  %v13682_v7 = vsel %vm90_vm1, %v24978_v49, 0.0 }
 0xbf0   :  { %v13680_v52 = vsel %vm90_vm1, %v24980_v47, 0.0 }
 0xbf1   :  { %v13681_v4 = vadd.f32 %v13680_v52, %v13679_v53 }
 0xbf2   :  { %v24986_v14 = vpop.f32.mrb[46].mxu1 }
 0xbf3   :  { %27642 = vst [vmem:[#allocation132_spill] sm:$0xff] %v24986_v14  ;;  %v24988_v38 = vpop.f32.mrb[47].mxu1  ;;  %v13683_v6 = vadd.f32 %v13682_v7, %v13681_v4  ;;  %v13686_v60 = vsel %vm90_vm1, %v24986_v14, 0.0 }
 0xbf4   :  { %v13684_v48 = vsel %vm90_vm1, %v24988_v38, 0.0 }
 0xbf5   :  { %v13685_v18 = vadd.f32 %v13684_v48, %v13683_v6 }
 0xbf6   :  { %v24994_v27 = vpop.f32.mrb[48].mxu1 }
 0xbf7   :  { %27643 = vst [vmem:[#allocation133_spill] sm:$0xff] %v24994_v27  ;;  %v24996_v10 = vpop.f32.mrb[49].mxu1  ;;  %v13687_v31 = vadd.f32 %v13686_v60, %v13685_v18  ;;  %v13690_v33 = vsel %vm90_vm1, %v24994_v27, 0.0 }
 0xbf8   :  { %27644 = vst [vmem:[#allocation134_spill] sm:$0xff] %v24996_v10  ;;  %v13688_v36 = vsel %vm90_vm1, %v24996_v10, 0.0 }
 0xbf9   :  { %v13689_v39 = vadd.f32 %v13688_v36, %v13687_v31 }
 0xbfa   :  { %v25002_v46 = vpop.f32.mrb[50].mxu1 }
 0xbfb   :  { %27645 = vst [vmem:[#allocation135_spill] sm:$0xff] %v25002_v46  ;;  %v25004_v55 = vpop.f32.mrb[51].mxu1  ;;  %v13691_v53 = vadd.f32 %v13690_v33, %v13689_v39  ;;  %v13694_v7 = vsel %vm90_vm1, %v25002_v46, 0.0 }
 0xbfc   :  { %27646 = vst [vmem:[#allocation136_spill] sm:$0xff] %v25004_v55  ;;  %v13692_v52 = vsel %vm90_vm1, %v25004_v55, 0.0 }
 0xbfd   :  { %v13693_v4 = vadd.f32 %v13692_v52, %v13691_v53 }
 0xbfe   :  { %v25010_v6 = vpop.f32.mrb[52].mxu1 }
 0xbff   :  { %27647 = vst [vmem:[#allocation68_spill] sm:$0xff] %v25010_v6  ;;  %v25012_v48 = vpop.f32.mrb[53].mxu1  ;;  %v13695_v18 = vadd.f32 %v13694_v7, %v13693_v4  ;;  %v13698_v36 = vsel %vm90_vm1, %v25010_v6, 0.0 }
 0xc00   :  { %27648 = vst [vmem:[#allocation69_spill] sm:$0xff] %v25012_v48  ;;  %v13696_v60 = vsel %vm90_vm1, %v25012_v48, 0.0 }
 0xc01   :  { %v13697_v31 = vadd.f32 %v13696_v60, %v13695_v18 }
 0xc02   :  { %v25018_v39 = vpop.f32.mrb[54].mxu1 }
 0xc03   :  { %27649 = vst [vmem:[#allocation71_spill] sm:$0xff] %v25018_v39  ;;  %v25020_v33 = vpop.f32.mrb[55].mxu1  ;;  %v13699_v53 = vadd.f32 %v13698_v36, %v13697_v31  ;;  %v13702_v55 = vsel %vm90_vm1, %v25018_v39, 0.0 }
 0xc04   :  { %27650 = vst [vmem:[#allocation70_spill] sm:$0xff] %v25020_v33  ;;  %v13700_v52 = vsel %vm90_vm1, %v25020_v33, 0.0 }
 0xc05   :  { %v13701_v46 = vadd.f32 %v13700_v52, %v13699_v53 }
 0xc06   :  { %v25026_v4 = vpop.f32.mrb[56].mxu1 }
 0xc07   :  { %27651 = vst [vmem:[#allocation73_spill] sm:$0xff] %v25026_v4  ;;  %v25028_v7 = vpop.f32.mrb[57].mxu1  ;;  %v13703_v18 = vadd.f32 %v13702_v55, %v13701_v46  ;;  %v13706_v48 = vsel %vm90_vm1, %v25026_v4, 0.0 }
 0xc08   :  { %27652 = vst [vmem:[#allocation72_spill] sm:$0xff] %v25028_v7  ;;  %v13704_v60 = vsel %vm90_vm1, %v25028_v7, 0.0 }
 0xc09   :  { %v13705_v6 = vadd.f32 %v13704_v60, %v13703_v18 }
 0xc0a   :  { %v25034_v31 = vpop.f32.mrb[58].mxu1 }
 0xc0b   :  { %27653 = vst [vmem:[#allocation75_spill] sm:$0xff] %v25034_v31  ;;  %v25036_v36 = vpop.f32.mrb[59].mxu1  ;;  %v13707_v53 = vadd.f32 %v13706_v48, %v13705_v6  ;;  %v13710_v33 = vsel %vm90_vm1, %v25034_v31, 0.0 }
 0xc0c   :  { %27654 = vst [vmem:[#allocation74_spill] sm:$0xff] %v25036_v36  ;;  %v13708_v52 = vsel %vm90_vm1, %v25036_v36, 0.0 }
 0xc0d   :  { %v13709_v39 = vadd.f32 %v13708_v52, %v13707_v53 }
 0xc0e   :  { %v25042_v46 = vpop.f32.mrb[60].mxu1 }
 0xc0f   :  { %27655 = vst [vmem:[#allocation77_spill] sm:$0xff] %v25042_v46  ;;  %v25044_v55 = vpop.f32.mrb[61].mxu1  ;;  %v13711_v18 = vadd.f32 %v13710_v33, %v13709_v39  ;;  %v13714_v7 = vsel %vm90_vm1, %v25042_v46, 0.0 }
 0xc10   :  { %27656 = vst [vmem:[#allocation76_spill] sm:$0xff] %v25044_v55  ;;  %v13712_v60 = vsel %vm90_vm1, %v25044_v55, 0.0 }
 0xc11   :  { %v13713_v4 = vadd.f32 %v13712_v60, %v13711_v18 }
 0xc12   :  { %v25050_v6 = vpop.f32.mrb[62].mxu1 }
 0xc13   :  { %v25052_v48 = vpop.f32.mrb[63].mxu1  ;;  %v13715_v53 = vadd.f32 %v13714_v7, %v13713_v4  ;;  %v13718_v36 = vsel %vm90_vm1, %v25050_v6, 0.0 }
 0xc14   :  { %v13716_v52 = vsel %vm90_vm1, %v25052_v48, 0.0 }
 0xc15   :  { %v13717_v31 = vadd.f32 %v13716_v52, %v13715_v53  ;;  %v27667_v53 = vld [vmem:[#allocation136_spill] sm:$0xff]  ;;  %v27669_v52 = vld [vmem:[#allocation135_spill] sm:$0xff] }
 0xc17   :  { %v13719_v39 = vadd.f32 %v13718_v36, %v13717_v31  ;;  %v27663_v36 = vld [vmem:[#allocation134_spill] sm:$0xff] }
 0xc19   :  { %v13720_v33 = vrot.slane %v13719_v39, 4 }
 0xc1b   :  { %v13721_v27 = vadd.f32 %v13720_v33, %v13719_v39  ;;  %v27671_v39 = vld [vmem:[#allocation69_spill] sm:$0xff] }
 0xc1d   :  { %v13722_v55 = vrot.slane %v13721_v27, 2 }
 0xc1f   :  { %v13723_v18 = vadd.f32 %v13722_v55, %v13721_v27  ;;  %v27665_v55 = vld [vmem:[#allocation133_spill] sm:$0xff] }
 0xc21   :  { %v13724_v60 = vrot.slane %v13723_v18, 1 }
 0xc23   :  { %v13725_v10 = vadd.f32 %v13724_v60, %v13723_v18  ;;  %v27673_v18 = vld [vmem:[#allocation68_spill] sm:$0xff] }
 0xc25   :  { %v25058_v46 = vmul.f32 0.001953125, %v13725_v10  ;;  %v27661_v10 = vld [vmem:[#allocation132_spill] sm:$0xff] }
 0xc27   :  { %v25062_v14 = vsub.f32 %v24806_v29, %v25058_v46  ;;  %v25066_v4 = vsub.f32 %v24802_v61, %v25058_v46  ;;  %v25070_v7 = vsub.f32 %v24812_v45, %v25058_v46  ;;  %v25074_v31 = vsub.f32 %v24810_v44, %v25058_v46 }
 0xc28   :  { %v25078_v27 = vsub.f32 %v24820_v11, %v25058_v46  ;;  %v25082_v29 = vsub.f32 %v24818_v23, %v25058_v46  ;;  %v25086_v61 = vsub.f32 %v24828_v13, %v25058_v46  ;;  %v25090_v45 = vsub.f32 %v24826_v30, %v25058_v46 }
 0xc29   :  { %27657 = vst [vmem:[#allocation79_spill] sm:$0xff] %v25062_v14  ;;  %27658 = vst [vmem:[#allocation78_spill] sm:$0xff] %v25066_v4  ;;  %v25094_v44 = vsub.f32 %v24836_v28, %v25058_v46  ;;  %v25098_v11 = vsub.f32 %v24834_v54, %v25058_v46  ;;  %v25102_v23 = vsub.f32 %v24844_v58, %v25058_v46 }
 0xc2a   :  { %27659 = vst [vmem:[#allocation81_spill] sm:$0xff] %v25070_v7  ;;  %27660 = vst [vmem:[#allocation80_spill] sm:$0xff] %v25074_v31  ;;  %v25106_v13 = vsub.f32 %v24842_v17, %v25058_v46  ;;  %v25110_v30 = vsub.f32 %v24852_v35, %v25058_v46  ;;  %v25114_v28 = vsub.f32 %v24850_v2, %v25058_v46 }
 0xc2b   :  { %v25118_v54 = vsub.f32 %v24860_v34, %v25058_v46  ;;  %v25122_v58 = vsub.f32 %v24858_v40, %v25058_v46  ;;  %v25126_v17 = vsub.f32 %v24868_v9, %v25058_v46  ;;  %v25130_v35 = vsub.f32 %v24866_v3, %v25058_v46 }
 0xc2c   :  { %v25134_v2 = vsub.f32 %v24876_v32, %v25058_v46  ;;  %v25138_v34 = vsub.f32 %v24874_v24, %v25058_v46  ;;  %v25142_v40 = vsub.f32 %v24884_v8, %v25058_v46  ;;  %v25146_v9 = vsub.f32 %v24882_v62, %v25058_v46 }
 0xc2d   :  { %v25150_v3 = vsub.f32 %v24892_v25, %v25058_v46  ;;  %v25154_v32 = vsub.f32 %v24890_v57, %v25058_v46  ;;  %v25158_v24 = vsub.f32 %v24900_v19, %v25058_v46  ;;  %v25162_v8 = vsub.f32 %v24898_v15, %v25058_v46 }
 0xc2e   :  { %v25166_v62 = vsub.f32 %v24908_v20, %v25058_v46  ;;  %v25170_v25 = vsub.f32 %v24906_v59, %v25058_v46  ;;  %v25174_v57 = vsub.f32 %v24916_v37, %v25058_v46  ;;  %v25178_v19 = vsub.f32 %v24914_v26, %v25058_v46 }
 0xc2f   :  { %v25182_v15 = vsub.f32 %v24924_v16, %v25058_v46  ;;  %v25186_v20 = vsub.f32 %v24922_v12, %v25058_v46  ;;  %v25190_v59 = vsub.f32 %v24932_v22, %v25058_v46  ;;  %v25194_v37 = vsub.f32 %v24930_v1, %v25058_v46 }
 0xc30   :  { %v25198_v26 = vsub.f32 %v24940_v21, %v25058_v46  ;;  %v25202_v16 = vsub.f32 %v24938_v63, %v25058_v46  ;;  %v25206_v12 = vsub.f32 %v24948_v43, %v25058_v46  ;;  %v25210_v22 = vsub.f32 %v24946_v5, %v25058_v46 }
 0xc31   :  { %v25214_v1 = vsub.f32 %v24956_v0, %v25058_v46  ;;  %v25218_v21 = vsub.f32 %v24954_v50, %v25058_v46  ;;  %v25222_v63 = vsub.f32 %v24964_v41, %v25058_v46  ;;  %v25226_v43 = vsub.f32 %v24962_v56, %v25058_v46 }
 0xc32   :  { %v25230_v5 = vsub.f32 %v24972_v51, %v25058_v46  ;;  %v25234_v0 = vsub.f32 %v24970_v42, %v25058_v46  ;;  %v25238_v50 = vsub.f32 %v24980_v47, %v25058_v46  ;;  %v25242_v41 = vsub.f32 %v24978_v49, %v25058_v46 }
 0xc33   :  { %v25246_v56 = vsub.f32 %v24988_v38, %v25058_v46  ;;  %v25250_v51 = vsub.f32 %v27661_v10, %v25058_v46  ;;  %v25254_v42 = vsub.f32 %v27663_v36, %v25058_v46  ;;  %v25258_v47 = vsub.f32 %v27665_v55, %v25058_v46  ;;  %v27675_v10 = vld [vmem:[#allocation70_spill] sm:$0xff]  ;;  %v27677_v55 = vld [vmem:[#allocation71_spill] sm:$0xff] }
 0xc34   :  { %v25262_v49 = vsub.f32 %v27667_v53, %v25058_v46  ;;  %v25266_v38 = vsub.f32 %v27669_v52, %v25058_v46  ;;  %v25270_v33 = vsub.f32 %v27671_v39, %v25058_v46  ;;  %v25274_v60 = vsub.f32 %v27673_v18, %v25058_v46 }
 0xc35   :  { %27662 = vst [vmem:[#allocation83_spill] sm:$0xff] %v25250_v51  ;;  %27664 = vst [vmem:[#allocation82_spill] sm:$0xff] %v25254_v42  ;;  %v25278_v36 = vsub.f32 %v27675_v10, %v25058_v46  ;;  %v25282_v53 = vsub.f32 %v27677_v55, %v25058_v46 }
 0xc36   :  { %27666 = vst [vmem:[#allocation105_spill] sm:$0xff] %v25258_v47  ;;  %27668 = vst [vmem:[#allocation106_spill] sm:$0xff] %v25262_v49  ;;  %v27679_v49 = vld [vmem:[#allocation72_spill] sm:$0xff] }
 0xc37   :  { %27670 = vst [vmem:[#allocation84_spill] sm:$0xff] %v25266_v38  ;;  %27672 = vst [vmem:[#allocation85_spill] sm:$0xff] %v25270_v33  ;;  %v25286_v52 = vsub.f32 %v27679_v49, %v25058_v46  ;;  %v27681_v38 = vld [vmem:[#allocation73_spill] sm:$0xff]  ;;  %v27683_v33 = vld [vmem:[#allocation74_spill] sm:$0xff] }
 0xc38   :  { %27674 = vst [vmem:[#allocation86_spill] sm:$0xff] %v25274_v60  ;;  %27676 = vst [vmem:[#allocation87_spill] sm:$0xff] %v25278_v36  ;;  %v25290_v39 = vsub.f32 %v27681_v38, %v25058_v46  ;;  %v25294_v18 = vsub.f32 %v27683_v33, %v25058_v46  ;;  %v27685_v60 = vld [vmem:[#allocation75_spill] sm:$0xff]  ;;  %v27687_v36 = vld [vmem:[#allocation76_spill] sm:$0xff]  ;;  %v25310_v38 = vsub.f32 %v25052_v48, %v25058_v46 }
 0xc39   :  { %27678 = vst [vmem:[#allocation88_spill] sm:$0xff] %v25282_v53  ;;  %27680 = vst [vmem:[#allocation89_spill] sm:$0xff] %v25286_v52  ;;  %v25298_v10 = vsub.f32 %v27685_v60, %v25058_v46  ;;  %v25302_v55 = vsub.f32 %v27687_v36, %v25058_v46  ;;  %v27689_v53 = vld [vmem:[#allocation77_spill] sm:$0xff]  ;;  %v25314_v33 = vsub.f32 %v25050_v6, %v25058_v46 }
 0xc3a   :  { %27682 = vst [vmem:[#allocation90_spill] sm:$0xff] %v25290_v39  ;;  %27684 = vst [vmem:[#allocation91_spill] sm:$0xff] %v25294_v18  ;;  %v25306_v49 = vsub.f32 %v27689_v53, %v25058_v46  ;;  %v13791_v60 = vmul.f32 %v25062_v14, %v25062_v14  ;;  %v13793_v36 = vmul.f32 %v25070_v7, %v25070_v7 }
 0xc3b   :  { %27686 = vst [vmem:[#allocation92_spill] sm:$0xff] %v25298_v10  ;;  %27688 = vst [vmem:[#allocation93_spill] sm:$0xff] %v25302_v55  ;;  %v13792_v10 = vmul.f32 %v25066_v4, %v25066_v4  ;;  %v13794_v53 = vmul.f32 %v25074_v31, %v25074_v31  ;;  %v13795_v46 = vmul.f32 %v25078_v27, %v25078_v27 }
 0xc3c   :  { %27690 = vst [vmem:[#allocation94_spill] sm:$0xff] %v25306_v49  ;;  %27691 = vst [vmem:[#allocation97_spill] sm:$0xff] %v25310_v38  ;;  %v13855_v49 = vsel %vm90_vm1, %v13791_v60, 0.0  ;;  %v13858_v6 = vsel %vm90_vm1, %v13793_v36, 0.0  ;;  %v13796_v4 = vmul.f32 %v25082_v29, %v25082_v29  ;;  %v13797_v31 = vmul.f32 %v25086_v61, %v25086_v61 }
 0xc3d   :  { %27692 = vst [vmem:[#allocation98_spill] sm:$0xff] %v25314_v33  ;;  %v13856_v48 = vsel %vm90_vm1, %v13792_v10, 0.0  ;;  %v13860_v33 = vsel %vm90_vm1, %v13794_v53, 0.0  ;;  %v13862_v60 = vsel %vm90_vm1, %v13795_v46, 0.0  ;;  %v13798_v10 = vmul.f32 %v25090_v45, %v25090_v45 }
 0xc3e   :  { %v13857_v38 = vadd.f32 %v13856_v48, %v13855_v49  ;;  %v13864_v49 = vsel %vm90_vm1, %v13796_v4, 0.0  ;;  %v13866_v36 = vsel %vm90_vm1, %v13797_v31, 0.0  ;;  %v13802_v4 = vmul.f32 %v25106_v13, %v25106_v13 }
 0xc3f   :  { %v13803_v31 = vmul.f32 %v25110_v30, %v25110_v30 }
 0xc40   :  { %v13859_v14 = vadd.f32 %v13858_v6, %v13857_v38  ;;  %v13799_v38 = vmul.f32 %v25094_v44, %v25094_v44 }
 0xc42   :  { %v13861_v7 = vadd.f32 %v13860_v33, %v13859_v14  ;;  %v13800_v14 = vmul.f32 %v25098_v11, %v25098_v11  ;;  %v13868_v33 = vsel %vm90_vm1, %v13798_v10, 0.0  ;;  %v13870_v46 = vsel %vm90_vm1, %v13799_v38, 0.0 }
 0xc43   :  { %v13804_v10 = vmul.f32 %v25114_v28, %v25114_v28  ;;  %v13805_v38 = vmul.f32 %v25118_v54, %v25118_v54 }
 0xc44   :  { %v13863_v55 = vadd.f32 %v13862_v60, %v13861_v7  ;;  %v13801_v7 = vmul.f32 %v25102_v23, %v25102_v23 }
 0xc46   :  { %v13865_v48 = vadd.f32 %v13864_v49, %v13863_v55  ;;  %v13872_v55 = vsel %vm90_vm1, %v13800_v14, 0.0  ;;  %v13806_v14 = vmul.f32 %v25122_v58, %v25122_v58 }
 0xc48   :  { %v13867_v6 = vadd.f32 %v13866_v36, %v13865_v48  ;;  %v13874_v48 = vsel %vm90_vm1, %v13801_v7, 0.0  ;;  %v13807_v7 = vmul.f32 %v25126_v17, %v25126_v17 }
 0xc4a   :  { %v13869_v53 = vadd.f32 %v13868_v33, %v13867_v6  ;;  %v13876_v6 = vsel %vm90_vm1, %v13802_v4, 0.0  ;;  %v13808_v4 = vmul.f32 %v25130_v35, %v25130_v35 }
 0xc4c   :  { %v13871_v60 = vadd.f32 %v13870_v46, %v13869_v53  ;;  %v13878_v53 = vsel %vm90_vm1, %v13803_v31, 0.0  ;;  %v13809_v31 = vmul.f32 %v25134_v2, %v25134_v2 }
 0xc4e   :  { %v13873_v49 = vadd.f32 %v13872_v55, %v13871_v60  ;;  %v13880_v60 = vsel %vm90_vm1, %v13804_v10, 0.0  ;;  %v13810_v10 = vmul.f32 %v25138_v34, %v25138_v34 }
 0xc50   :  { %v13875_v36 = vadd.f32 %v13874_v48, %v13873_v49  ;;  %v13882_v49 = vsel %vm90_vm1, %v13805_v38, 0.0  ;;  %v13811_v38 = vmul.f32 %v25142_v40, %v25142_v40 }
 0xc52   :  { %v13877_v33 = vadd.f32 %v13876_v6, %v13875_v36  ;;  %v13884_v36 = vsel %vm90_vm1, %v13806_v14, 0.0  ;;  %v13812_v14 = vmul.f32 %v25146_v9, %v25146_v9 }
 0xc54   :  { %v13879_v46 = vadd.f32 %v13878_v53, %v13877_v33  ;;  %v13886_v33 = vsel %vm90_vm1, %v13807_v7, 0.0  ;;  %v13813_v7 = vmul.f32 %v25150_v3, %v25150_v3 }
 0xc56   :  { %v13881_v55 = vadd.f32 %v13880_v60, %v13879_v46  ;;  %v13888_v46 = vsel %vm90_vm1, %v13808_v4, 0.0  ;;  %v13814_v4 = vmul.f32 %v25154_v32, %v25154_v32 }
 0xc58   :  { %v13883_v48 = vadd.f32 %v13882_v49, %v13881_v55  ;;  %v13890_v55 = vsel %vm90_vm1, %v13809_v31, 0.0  ;;  %v13815_v31 = vmul.f32 %v25158_v24, %v25158_v24 }
 0xc5a   :  { %v13885_v6 = vadd.f32 %v13884_v36, %v13883_v48  ;;  %v13892_v48 = vsel %vm90_vm1, %v13810_v10, 0.0  ;;  %v13816_v10 = vmul.f32 %v25162_v8, %v25162_v8 }
 0xc5c   :  { %v13887_v53 = vadd.f32 %v13886_v33, %v13885_v6  ;;  %v13894_v6 = vsel %vm90_vm1, %v13811_v38, 0.0  ;;  %v13817_v38 = vmul.f32 %v25166_v62, %v25166_v62 }
 0xc5e   :  { %v13889_v60 = vadd.f32 %v13888_v46, %v13887_v53  ;;  %v13896_v53 = vsel %vm90_vm1, %v13812_v14, 0.0  ;;  %v13818_v14 = vmul.f32 %v25170_v25, %v25170_v25 }
 0xc60   :  { %v13891_v49 = vadd.f32 %v13890_v55, %v13889_v60  ;;  %v13898_v60 = vsel %vm90_vm1, %v13813_v7, 0.0  ;;  %v13819_v7 = vmul.f32 %v25174_v57, %v25174_v57 }
 0xc62   :  { %v13893_v36 = vadd.f32 %v13892_v48, %v13891_v49  ;;  %v13900_v49 = vsel %vm90_vm1, %v13814_v4, 0.0  ;;  %v13820_v4 = vmul.f32 %v25178_v19, %v25178_v19 }
 0xc64   :  { %v13895_v33 = vadd.f32 %v13894_v6, %v13893_v36  ;;  %v13902_v36 = vsel %vm90_vm1, %v13815_v31, 0.0  ;;  %v13821_v31 = vmul.f32 %v25182_v15, %v25182_v15 }
 0xc66   :  { %v13897_v46 = vadd.f32 %v13896_v53, %v13895_v33  ;;  %v13904_v33 = vsel %vm90_vm1, %v13816_v10, 0.0  ;;  %v13822_v10 = vmul.f32 %v25186_v20, %v25186_v20 }
 0xc68   :  { %v13899_v55 = vadd.f32 %v13898_v60, %v13897_v46  ;;  %v13906_v46 = vsel %vm90_vm1, %v13817_v38, 0.0  ;;  %v13823_v38 = vmul.f32 %v25190_v59, %v25190_v59 }
 0xc6a   :  { %v13901_v48 = vadd.f32 %v13900_v49, %v13899_v55  ;;  %v13908_v55 = vsel %vm90_vm1, %v13818_v14, 0.0  ;;  %v13824_v14 = vmul.f32 %v25194_v37, %v25194_v37 }
 0xc6c   :  { %v13903_v6 = vadd.f32 %v13902_v36, %v13901_v48  ;;  %v13910_v48 = vsel %vm90_vm1, %v13819_v7, 0.0  ;;  %v13825_v7 = vmul.f32 %v25198_v26, %v25198_v26 }
 0xc6e   :  { %v13905_v53 = vadd.f32 %v13904_v33, %v13903_v6  ;;  %v13912_v6 = vsel %vm90_vm1, %v13820_v4, 0.0  ;;  %v13826_v4 = vmul.f32 %v25202_v16, %v25202_v16 }
 0xc70   :  { %v13907_v60 = vadd.f32 %v13906_v46, %v13905_v53  ;;  %v13914_v53 = vsel %vm90_vm1, %v13821_v31, 0.0  ;;  %v13827_v31 = vmul.f32 %v25206_v12, %v25206_v12 }
 0xc72   :  { %v13909_v49 = vadd.f32 %v13908_v55, %v13907_v60  ;;  %v13916_v60 = vsel %vm90_vm1, %v13822_v10, 0.0  ;;  %v13828_v10 = vmul.f32 %v25210_v22, %v25210_v22 }
 0xc74   :  { %v13911_v36 = vadd.f32 %v13910_v48, %v13909_v49  ;;  %v13918_v49 = vsel %vm90_vm1, %v13823_v38, 0.0  ;;  %v13829_v38 = vmul.f32 %v25214_v1, %v25214_v1 }
 0xc76   :  { %v13913_v33 = vadd.f32 %v13912_v6, %v13911_v36  ;;  %v13920_v36 = vsel %vm90_vm1, %v13824_v14, 0.0  ;;  %v13830_v14 = vmul.f32 %v25218_v21, %v25218_v21 }
 0xc78   :  { %v13915_v46 = vadd.f32 %v13914_v53, %v13913_v33  ;;  %v13922_v33 = vsel %vm90_vm1, %v13825_v7, 0.0  ;;  %v13831_v7 = vmul.f32 %v25222_v63, %v25222_v63 }
 0xc7a   :  { %v13917_v55 = vadd.f32 %v13916_v60, %v13915_v46  ;;  %v13924_v46 = vsel %vm90_vm1, %v13826_v4, 0.0  ;;  %v13832_v4 = vmul.f32 %v25226_v43, %v25226_v43 }
 0xc7c   :  { %v13919_v48 = vadd.f32 %v13918_v49, %v13917_v55  ;;  %v13926_v55 = vsel %vm90_vm1, %v13827_v31, 0.0  ;;  %v13833_v31 = vmul.f32 %v25230_v5, %v25230_v5 }
 0xc7e   :  { %v13921_v6 = vadd.f32 %v13920_v36, %v13919_v48  ;;  %v13928_v48 = vsel %vm90_vm1, %v13828_v10, 0.0  ;;  %v13834_v10 = vmul.f32 %v25234_v0, %v25234_v0 }
 0xc80   :  { %v13923_v53 = vadd.f32 %v13922_v33, %v13921_v6  ;;  %v13930_v6 = vsel %vm90_vm1, %v13829_v38, 0.0  ;;  %v13835_v38 = vmul.f32 %v25238_v50, %v25238_v50 }
 0xc82   :  { %v13925_v60 = vadd.f32 %v13924_v46, %v13923_v53  ;;  %v13932_v53 = vsel %vm90_vm1, %v13830_v14, 0.0  ;;  %v13836_v14 = vmul.f32 %v25242_v41, %v25242_v41 }
 0xc84   :  { %v13927_v49 = vadd.f32 %v13926_v55, %v13925_v60  ;;  %v13934_v60 = vsel %vm90_vm1, %v13831_v7, 0.0  ;;  %v13837_v7 = vmul.f32 %v25246_v56, %v25246_v56 }
 0xc86   :  { %v13929_v36 = vadd.f32 %v13928_v48, %v13927_v49  ;;  %v13936_v49 = vsel %vm90_vm1, %v13832_v4, 0.0  ;;  %v13838_v4 = vmul.f32 %v25250_v51, %v25250_v51 }
 0xc88   :  { %v13931_v33 = vadd.f32 %v13930_v6, %v13929_v36  ;;  %v13938_v36 = vsel %vm90_vm1, %v13833_v31, 0.0  ;;  %v13839_v31 = vmul.f32 %v25254_v42, %v25254_v42 }
 0xc8a   :  { %v13933_v46 = vadd.f32 %v13932_v53, %v13931_v33  ;;  %v13940_v33 = vsel %vm90_vm1, %v13834_v10, 0.0  ;;  %v13840_v10 = vmul.f32 %v25258_v47, %v25258_v47 }
 0xc8c   :  { %v13935_v55 = vadd.f32 %v13934_v60, %v13933_v46  ;;  %v13942_v46 = vsel %vm90_vm1, %v13835_v38, 0.0  ;;  %v27693_v38 = vld [vmem:[#allocation106_spill] sm:$0xff] }
 0xc8e   :  { %v13937_v48 = vadd.f32 %v13936_v49, %v13935_v55  ;;  %v13944_v55 = vsel %vm90_vm1, %v13836_v14, 0.0  ;;  %v27694_v14 = vld [vmem:[#allocation84_spill] sm:$0xff] }
 0xc90   :  { %v13939_v6 = vadd.f32 %v13938_v36, %v13937_v48  ;;  %v13946_v48 = vsel %vm90_vm1, %v13837_v7, 0.0  ;;  %v27695_v7 = vld [vmem:[#allocation85_spill] sm:$0xff] }
 0xc92   :  { %v13941_v53 = vadd.f32 %v13940_v33, %v13939_v6  ;;  %v13948_v6 = vsel %vm90_vm1, %v13838_v4, 0.0  ;;  %v27696_v4 = vld [vmem:[#allocation86_spill] sm:$0xff] }
 0xc94   :  { %v13943_v60 = vadd.f32 %v13942_v46, %v13941_v53  ;;  %v13841_v53 = vmul.f32 %v27693_v38, %v27693_v38  ;;  %v13950_v46 = vsel %vm90_vm1, %v13839_v31, 0.0  ;;  %v27697_v31 = vld [vmem:[#allocation87_spill] sm:$0xff] }
 0xc96   :  { %v13945_v49 = vadd.f32 %v13944_v55, %v13943_v60  ;;  %v13842_v60 = vmul.f32 %v27694_v14, %v27694_v14  ;;  %v13952_v55 = vsel %vm90_vm1, %v13840_v10, 0.0  ;;  %v27698_v10 = vld [vmem:[#allocation88_spill] sm:$0xff] }
 0xc98   :  { %v13947_v36 = vadd.f32 %v13946_v48, %v13945_v49  ;;  %v13843_v49 = vmul.f32 %v27695_v7, %v27695_v7  ;;  %v13954_v48 = vsel %vm90_vm1, %v13841_v53, 0.0 }
 0xc9a   :  { %v13949_v33 = vadd.f32 %v13948_v6, %v13947_v36  ;;  %v13844_v36 = vmul.f32 %v27696_v4, %v27696_v4  ;;  %v13956_v6 = vsel %vm90_vm1, %v13842_v60, 0.0 }
 0xc9c   :  { %v13951_v51 = vadd.f32 %v13950_v46, %v13949_v33  ;;  %v13845_v33 = vmul.f32 %v27697_v31, %v27697_v31  ;;  %v13958_v46 = vsel %vm90_vm1, %v13843_v49, 0.0 }
 0xc9e   :  { %v13953_v42 = vadd.f32 %v13952_v55, %v13951_v51  ;;  %v13846_v51 = vmul.f32 %v27698_v10, %v27698_v10  ;;  %v13960_v55 = vsel %vm90_vm1, %v13844_v36, 0.0  ;;  %v13962_v53 = vsel %vm90_vm1, %v13845_v33, 0.0  ;;  %v27699_v36 = vld [vmem:[#allocation92_spill] sm:$0xff]  ;;  %v27700_v33 = vld [vmem:[#allocation93_spill] sm:$0xff] }
 0xca0   :  { %v13955_v47 = vadd.f32 %v13954_v48, %v13953_v42  ;;  %v13847_v42 = vmul.f32 %v25286_v52, %v25286_v52  ;;  %v13964_v60 = vsel %vm90_vm1, %v13846_v51, 0.0  ;;  %v27701_v51 = vld [vmem:[#allocation94_spill] sm:$0xff] }
 0xca2   :  { %v13957_v38 = vadd.f32 %v13956_v6, %v13955_v47  ;;  %v13848_v47 = vmul.f32 %v25290_v39, %v25290_v39  ;;  %v13966_v49 = vsel %vm90_vm1, %v13847_v42, 0.0  ;;  %v27702_v42 = vld [vmem:[#allocation97_spill] sm:$0xff] }
 0xca4   :  { %v13959_v14 = vadd.f32 %v13958_v46, %v13957_v38  ;;  %v13849_v38 = vmul.f32 %v25294_v18, %v25294_v18 }
 0xca6   :  { %v13961_v7 = vadd.f32 %v13960_v55, %v13959_v14  ;;  %v13850_v14 = vmul.f32 %v27699_v36, %v27699_v36  ;;  %v13968_v55 = vsel %vm90_vm1, %v13848_v47, 0.0  ;;  %v27703_v47 = vld [vmem:[#allocation98_spill] sm:$0xff] }
 0xca8   :  { %v13963_v48 = vadd.f32 %v13962_v53, %v13961_v7  ;;  %v13851_v7 = vmul.f32 %v27700_v33, %v27700_v33  ;;  %v13970_v53 = vsel %vm90_vm1, %v13849_v38, 0.0 }
 0xcaa   :  { %v13965_v6 = vadd.f32 %v13964_v60, %v13963_v48  ;;  %v13852_v48 = vmul.f32 %v27701_v51, %v27701_v51  ;;  %v13972_v60 = vsel %vm90_vm1, %v13850_v14, 0.0 }
 0xcac   :  { %v13967_v46 = vadd.f32 %v13966_v49, %v13965_v6  ;;  %v13853_v6 = vmul.f32 %v27702_v42, %v27702_v42  ;;  %v13974_v49 = vsel %vm90_vm1, %v13851_v7, 0.0 }
 0xcae   :  { %v13969_v52 = vadd.f32 %v13968_v55, %v13967_v46  ;;  %v13854_v46 = vmul.f32 %v27703_v47, %v27703_v47  ;;  %v13976_v55 = vsel %vm90_vm1, %v13852_v48, 0.0  ;;  %v27704_v47 = vld [vmem:[#allocation79_spill] sm:$0xff]  ;;  %v27705_v48 = vld [vmem:[#allocation78_spill] sm:$0xff] }
 0xcb0   :  { %v13971_v39 = vadd.f32 %v13970_v53, %v13969_v52  ;;  %v13978_v52 = vsel %vm90_vm1, %v13853_v6, 0.0  ;;  %v13980_v53 = vsel %vm90_vm1, %v13854_v46, 0.0  ;;  %v27706_v6 = vld [vmem:[#allocation81_spill] sm:$0xff]  ;;  %v27707_v46 = vld [vmem:[#allocation80_spill] sm:$0xff] }
 0xcb2   :  { %v13973_v18 = vadd.f32 %v13972_v60, %v13971_v39 }
 0xcb4   :  { %v13975_v36 = vadd.f32 %v13974_v49, %v13973_v18 }
 0xcb6   :  { %v13977_v33 = vadd.f32 %v13976_v55, %v13975_v36 }
 0xcb8   :  { %v13979_v38 = vadd.f32 %v13978_v52, %v13977_v33 }
 0xcba   :  { %v13981_v51 = vadd.f32 %v13980_v53, %v13979_v38  ;;  %v27708_v38 = vld [vmem:[#allocation83_spill] sm:$0xff]  ;;  %v27709_v53 = vld [vmem:[#allocation82_spill] sm:$0xff] }
 0xcbc   :  { %v13982_v14 = vrot.slane %v13981_v51, 4 }
 0xcbe   :  { %v13983_v39 = vadd.f32 %v13982_v14, %v13981_v51  ;;  %v27710_v14 = vld [vmem:[#allocation105_spill] sm:$0xff] }
 0xcc0   :  { %v13984_v60 = vrot.slane %v13983_v39, 2 }
 0xcc2   :  { %v13985_v10 = vadd.f32 %v13984_v60, %v13983_v39  ;;  %v27711_v39 = vld [vmem:[#allocation106_spill] sm:$0xff]  ;;  %v27712_v60 = vld [vmem:[#allocation84_spill] sm:$0xff] }
 0xcc4   :  { %v13986_v42 = vrot.slane %v13985_v10, 1 }
 0xcc6   :  { %v13987_v31 = vadd.f32 %v13986_v42, %v13985_v10 }
 0xcc8   :  { %v13988_v7 = vmul.f32 0.001953125, %v13987_v31 }
 0xcca   :  { %v13989_v18 = vadd.f32 1e-05, %v13988_v7  ;;  %v27714_v7 = vld [vmem:[#allocation85_spill] sm:$0xff] }
 0xccc   :  { %19544 = vrsqrt.f32 %v13989_v18 }
 0xcd6   :  { %v25508_v49 = vpop.eup %19544 }
 0xcd7   :  { %v25512_v36 = vmul.f32 %v25508_v49, %v27704_v47  ;;  %v25516_v33 = vmul.f32 %v25508_v49, %v27705_v48  ;;  %v25520_v51 = vmul.f32 %v25508_v49, %v27706_v6  ;;  %v25524_v10 = vmul.f32 %v25508_v49, %v27707_v46  ;;  %v27717_v6 = vld [vmem:[#allocation87_spill] sm:$0xff] }
 0xcd8   :  { %v25528_v31 = vmul.f32 %v25508_v49, %v25078_v27  ;;  %v25532_v42 = vmul.f32 %v25508_v49, %v25082_v29  ;;  %v25536_v47 = vmul.f32 %v25508_v49, %v25086_v61  ;;  %v25540_v55 = vmul.f32 %v25508_v49, %v25090_v45 }
 0xcd9   :  { %v25544_v52 = vmul.f32 %v25508_v49, %v25094_v44  ;;  %v25548_v27 = vmul.f32 %v25508_v49, %v25098_v11  ;;  %v25552_v29 = vmul.f32 %v25508_v49, %v25102_v23  ;;  %v25556_v61 = vmul.f32 %v25508_v49, %v25106_v13 }
 0xcda   :  { %v25560_v45 = vmul.f32 %v25508_v49, %v25110_v30  ;;  %v25564_v44 = vmul.f32 %v25508_v49, %v25114_v28  ;;  %v25568_v11 = vmul.f32 %v25508_v49, %v25118_v54  ;;  %v25572_v23 = vmul.f32 %v25508_v49, %v25122_v58 }
 0xcdb   :  { %v25576_v13 = vmul.f32 %v25508_v49, %v25126_v17  ;;  %v25580_v30 = vmul.f32 %v25508_v49, %v25130_v35  ;;  %v25584_v28 = vmul.f32 %v25508_v49, %v25134_v2  ;;  %v25588_v54 = vmul.f32 %v25508_v49, %v25138_v34 }
 0xcdc   :  { %v25592_v58 = vmul.f32 %v25508_v49, %v25142_v40  ;;  %v25596_v17 = vmul.f32 %v25508_v49, %v25146_v9  ;;  %v25600_v35 = vmul.f32 %v25508_v49, %v25150_v3  ;;  %v25604_v2 = vmul.f32 %v25508_v49, %v25154_v32 }
 0xcdd   :  { %v25608_v34 = vmul.f32 %v25508_v49, %v25158_v24  ;;  %v25612_v40 = vmul.f32 %v25508_v49, %v25162_v8  ;;  %v25616_v9 = vmul.f32 %v25508_v49, %v25166_v62  ;;  %v25620_v3 = vmul.f32 %v25508_v49, %v25170_v25 }
 0xcde   :  { %v25624_v32 = vmul.f32 %v25508_v49, %v25174_v57  ;;  %v25628_v24 = vmul.f32 %v25508_v49, %v25178_v19  ;;  %v25632_v8 = vmul.f32 %v25508_v49, %v25182_v15  ;;  %v25636_v62 = vmul.f32 %v25508_v49, %v25186_v20 }
 0xcdf   :  { %v25640_v25 = vmul.f32 %v25508_v49, %v25190_v59  ;;  %v25644_v57 = vmul.f32 %v25508_v49, %v25194_v37  ;;  %v25648_v19 = vmul.f32 %v25508_v49, %v25198_v26  ;;  %v25652_v15 = vmul.f32 %v25508_v49, %v25202_v16 }
 0xce0   :  { %v25656_v20 = vmul.f32 %v25508_v49, %v25206_v12  ;;  %v25660_v59 = vmul.f32 %v25508_v49, %v25210_v22  ;;  %v25664_v37 = vmul.f32 %v25508_v49, %v25214_v1  ;;  %v25668_v26 = vmul.f32 %v25508_v49, %v25218_v21 }
 0xce1   :  { %v25672_v16 = vmul.f32 %v25508_v49, %v25222_v63  ;;  %v25676_v12 = vmul.f32 %v25508_v49, %v25226_v43  ;;  %v25680_v22 = vmul.f32 %v25508_v49, %v25230_v5  ;;  %v25684_v1 = vmul.f32 %v25508_v49, %v25234_v0 }
 0xce2   :  { %v25688_v21 = vmul.f32 %v25508_v49, %v25238_v50  ;;  %v25692_v63 = vmul.f32 %v25508_v49, %v25242_v41  ;;  %v25696_v43 = vmul.f32 %v25508_v49, %v25246_v56  ;;  %v25700_v5 = vmul.f32 %v25508_v49, %v27708_v38  ;;  %v27719_v38 = vld [vmem:[#allocation88_spill] sm:$0xff] }
 0xce3   :  { %v25704_v0 = vmul.f32 %v25508_v49, %v27709_v53  ;;  %v25708_v50 = vmul.f32 %v25508_v49, %v27710_v14  ;;  %v25712_v41 = vmul.f32 %v25508_v49, %v27711_v39  ;;  %v25716_v56 = vmul.f32 %v25508_v49, %v27712_v60  ;;  %v25737_v14 = vld [vmem:[%s26869_s5] ss:$0 sm:$0xff]  ;;  %v27721_v39 = vld [vmem:[#allocation89_spill] sm:$0xff] }
 0xce4   :  { %v25720_v18 = vmul.f32 %v25508_v49, %v27714_v7  ;;  %v25724_v48 = vmul.f32 %v25508_v49, %v27696_v4  ;;  %v25728_v46 = vmul.f32 %v25508_v49, %v27717_v6  ;;  %v25732_v53 = vmul.f32 %v25508_v49, %v27719_v38  ;;  %v27723_v7 = vld [vmem:[#allocation90_spill] sm:$0xff] }
 0xce5   :  { %27713 = vst [vmem:[#allocation99_spill] sm:$0xff] %v25716_v56  ;;  %v25741_v60 = vmul.f32 %v25508_v49, %v27721_v39  ;;  %v25745_v4 = vmul.f32 %v25508_v49, %v27723_v7  ;;  %v27728_v56 = vld [vmem:[#allocation94_spill] sm:$0xff] }
 0xce6   :  { %27715 = vst [vmem:[#allocation100_spill] sm:$0xff] %v25720_v18  ;;  %27716 = vst [vmem:[#allocation101_spill] sm:$0xff] %v25724_v48  ;;  %v27725_v48 = vld [vmem:[#allocation91_spill] sm:$0xff]  ;;  %v25761_v39 = vmul.f32 %v25508_v49, %v27728_v56  ;;  %v25781_v56 = vmul.f32 %v25737_v14, %v25520_v51  ;;  %v25801_v51 = vmul.f32 %v25737_v14, %v25540_v55 }
 0xce7   :  { %27718 = vst [vmem:[#allocation102_spill] sm:$0xff] %v25728_v46  ;;  %27720 = vst [vmem:[#allocation103_spill] sm:$0xff] %v25732_v53  ;;  %v25749_v6 = vmul.f32 %v25508_v49, %v27725_v48  ;;  %v27726_v46 = vld [vmem:[#allocation92_spill] sm:$0xff]  ;;  %v27727_v53 = vld [vmem:[#allocation93_spill] sm:$0xff]  ;;  %v25821_v55 = vmul.f32 %v25737_v14, %v25560_v45  ;;  %v25841_v45 = vmul.f32 %v25737_v14, %v25580_v30 }
 0xce8   :  { %27722 = vst [vmem:[#allocation104_spill] sm:$0xff] %v25741_v60  ;;  %27724 = vst [vmem:[#allocation108_spill] sm:$0xff] %v25745_v4  ;;  %v25753_v38 = vmul.f32 %v25508_v49, %v27726_v46  ;;  %v25757_v18 = vmul.f32 %v25508_v49, %v27727_v53  ;;  %v27729_v60 = vld [vmem:[#allocation97_spill] sm:$0xff]  ;;  %v27730_v4 = vld [vmem:[#allocation98_spill] sm:$0xff]  ;;  %v25773_v46 = vmul.f32 %v25737_v14, %v25512_v36 }
 0xce9   :  { %v25765_v7 = vmul.f32 %v25508_v49, %v27729_v60  ;;  %v25769_v48 = vmul.f32 %v25508_v49, %v27730_v4  ;;  %v25777_v53 = vmul.f32 %v25737_v14, %v25516_v33  ;;  %v25785_v60 = vmul.f32 %v25737_v14, %v25524_v10 }
 0xcea   :  { %v25789_v49 = vmul.f32 %v25737_v14, %v25528_v31  ;;  %v25793_v36 = vmul.f32 %v25737_v14, %v25532_v42  ;;  %v25797_v33 = vmul.f32 %v25737_v14, %v25536_v47  ;;  %v25805_v10 = vmul.f32 %v25737_v14, %v25544_v52 }
 0xceb   :  { %v25809_v31 = vmul.f32 %v25737_v14, %v25548_v27  ;;  %v25813_v42 = vmul.f32 %v25737_v14, %v25552_v29  ;;  %v25817_v47 = vmul.f32 %v25737_v14, %v25556_v61  ;;  %v25825_v52 = vmul.f32 %v25737_v14, %v25564_v44 }
 0xcec   :  { %v25829_v27 = vmul.f32 %v25737_v14, %v25568_v11  ;;  %v25833_v29 = vmul.f32 %v25737_v14, %v25572_v23  ;;  %v25837_v61 = vmul.f32 %v25737_v14, %v25576_v13  ;;  %v25845_v44 = vmul.f32 %v25737_v14, %v25584_v28  ;;  %v27735_v4 = vld [vmem:[#allocation99_spill] sm:$0xff] }
 0xced   :  { %v25849_v11 = vmul.f32 %v25737_v14, %v25588_v54  ;;  %v25853_v23 = vmul.f32 %v25737_v14, %v25592_v58  ;;  %v25857_v13 = vmul.f32 %v25737_v14, %v25596_v17  ;;  %v25861_v30 = vmul.f32 %v25737_v14, %v25600_v35 }
 0xcee   :  { %v25865_v28 = vmul.f32 %v25737_v14, %v25604_v2  ;;  %v25869_v54 = vmul.f32 %v25737_v14, %v25608_v34  ;;  %v25873_v58 = vmul.f32 %v25737_v14, %v25612_v40  ;;  %v25877_v17 = vmul.f32 %v25737_v14, %v25616_v9 }
 0xcef   :  { %v25881_v35 = vmul.f32 %v25737_v14, %v25620_v3  ;;  %v25885_v2 = vmul.f32 %v25737_v14, %v25624_v32  ;;  %v25889_v34 = vmul.f32 %v25737_v14, %v25628_v24  ;;  %v25893_v40 = vmul.f32 %v25737_v14, %v25632_v8 }
 0xcf0   :  { %v25897_v9 = vmul.f32 %v25737_v14, %v25636_v62  ;;  %v25901_v3 = vmul.f32 %v25737_v14, %v25640_v25  ;;  %v25905_v32 = vmul.f32 %v25737_v14, %v25644_v57  ;;  %v25909_v24 = vmul.f32 %v25737_v14, %v25648_v19 }
 0xcf1   :  { %v25913_v8 = vmul.f32 %v25737_v14, %v25652_v15  ;;  %v25917_v62 = vmul.f32 %v25737_v14, %v25656_v20  ;;  %v25921_v25 = vmul.f32 %v25737_v14, %v25660_v59  ;;  %v25925_v57 = vmul.f32 %v25737_v14, %v25664_v37 }
 0xcf2   :  { %v25929_v19 = vmul.f32 %v25737_v14, %v25668_v26  ;;  %v25933_v15 = vmul.f32 %v25737_v14, %v25672_v16  ;;  %v25937_v20 = vmul.f32 %v25737_v14, %v25676_v12  ;;  %v25941_v59 = vmul.f32 %v25737_v14, %v25680_v22 }
 0xcf3   :  { %v25945_v37 = vmul.f32 %v25737_v14, %v25684_v1  ;;  %v25949_v26 = vmul.f32 %v25737_v14, %v25688_v21  ;;  %v25953_v16 = vmul.f32 %v25737_v14, %v25692_v63  ;;  %v25957_v12 = vmul.f32 %v25737_v14, %v25696_v43 }
 0xcf4   :  { %v25961_v22 = vmul.f32 %v25737_v14, %v25700_v5  ;;  %v25965_v1 = vmul.f32 %v25737_v14, %v25704_v0  ;;  %v25969_v21 = vmul.f32 %v25737_v14, %v25708_v50  ;;  %v25973_v63 = vmul.f32 %v25737_v14, %v25712_v41 }
 0xcf5   :  { %27731 = vst [vmem:[#allocation109_spill] sm:$0xff] %v25957_v12  ;;  %v25977_v43 = vmul.f32 %v25737_v14, %v27735_v4  ;;  %v27737_v12 = vld [vmem:[#allocation100_spill] sm:$0xff] }
 0xcf6   :  { %27732 = vst [vmem:[#allocation110_spill] sm:$0xff] %v25961_v22  ;;  %27733 = vst [vmem:[#allocation111_spill] sm:$0xff] %v25965_v1  ;;  %v25981_v5 = vmul.f32 %v25737_v14, %v27737_v12  ;;  %v27739_v22 = vld [vmem:[#allocation101_spill] sm:$0xff]  ;;  %v27740_v1 = vld [vmem:[#allocation102_spill] sm:$0xff] }
 0xcf7   :  { %27734 = vst [vmem:[#allocation112_spill] sm:$0xff] %v25969_v21  ;;  %27736 = vst [vmem:[#allocation113_spill] sm:$0xff] %v25977_v43  ;;  %v25985_v0 = vmul.f32 %v25737_v14, %v27739_v22  ;;  %v25989_v50 = vmul.f32 %v25737_v14, %v27740_v1  ;;  %v27741_v21 = vld [vmem:[#allocation103_spill] sm:$0xff]  ;;  %v25998_v4 = vld [vmem:[%s26870_s6] ss:$0 sm:$0xff]  ;;  %v26010_v1 = vmul.f32 %v25737_v14, %v25749_v6 }
 0xcf8   :  { %27738 = vst [vmem:[#allocation107_spill] sm:$0xff] %v25981_v5  ;;  %v25993_v41 = vmul.f32 %v25737_v14, %v27741_v21  ;;  %v27743_v43 = vld [vmem:[#allocation104_spill] sm:$0xff]  ;;  %v26014_v21 = vmul.f32 %v25737_v14, %v25753_v38  ;;  %v26030_v6 = vmul.f32 %v25737_v14, %v25769_v48  ;;  %v26034_v38 = vadd.f32 %v25998_v4, %v25773_v46 }
 0xcf9   :  { %v26002_v12 = vmul.f32 %v25737_v14, %v27743_v43  ;;  %v27744_v5 = vld [vmem:[#allocation108_spill] sm:$0xff]  ;;  %v26022_v43 = vmul.f32 %v25737_v14, %v25761_v39  ;;  %v26042_v39 = vadd.f32 %v25998_v4, %v25781_v56  ;;  %v26054_v48 = vadd.f32 %v25998_v4, %v25793_v36 }
 0xcfa   :  { %27742 = vst [vmem:[#allocation114_spill] sm:$0xff] %v25993_v41  ;;  %v26006_v22 = vmul.f32 %v25737_v14, %v27744_v5  ;;  %v26018_v41 = vmul.f32 %v25737_v14, %v25757_v18  ;;  %v26026_v5 = vmul.f32 %v25737_v14, %v25765_v7  ;;  %v26038_v18 = vadd.f32 %v25998_v4, %v25777_v53 }
 0xcfb   :  { %v26046_v7 = vadd.f32 %v25998_v4, %v25785_v60  ;;  %v26050_v14 = vadd.f32 %v25998_v4, %v25789_v49  ;;  %v26058_v46 = vadd.f32 %v25998_v4, %v25797_v33  ;;  %v26062_v53 = vadd.f32 %v25998_v4, %v25801_v51 }
 0xcfc   :  { %v26066_v56 = vadd.f32 %v25998_v4, %v25805_v10  ;;  %v26070_v60 = vadd.f32 %v25998_v4, %v25809_v31  ;;  %v26074_v49 = vadd.f32 %v25998_v4, %v25813_v42  ;;  %v26078_v36 = vadd.f32 %v25998_v4, %v25817_v47 }
 0xcfd   :  { %v26082_v33 = vadd.f32 %v25998_v4, %v25821_v55  ;;  %v26086_v51 = vadd.f32 %v25998_v4, %v25825_v52  ;;  %v26090_v10 = vadd.f32 %v25998_v4, %v25829_v27  ;;  %v26094_v31 = vadd.f32 %v25998_v4, %v25833_v29 }
 0xcfe   :  { %v26098_v42 = vadd.f32 %v25998_v4, %v25837_v61  ;;  %v26102_v47 = vadd.f32 %v25998_v4, %v25841_v45  ;;  %v26106_v55 = vadd.f32 %v25998_v4, %v25845_v44  ;;  %v26110_v52 = vadd.f32 %v25998_v4, %v25849_v11 }
 0xcff   :  { %v26114_v27 = vadd.f32 %v25998_v4, %v25853_v23  ;;  %v26118_v29 = vadd.f32 %v25998_v4, %v25857_v13  ;;  %v26122_v61 = vadd.f32 %v25998_v4, %v25861_v30  ;;  %v26126_v45 = vadd.f32 %v25998_v4, %v25865_v28 }
 0xd00   :  { %v26130_v44 = vadd.f32 %v25998_v4, %v25869_v54  ;;  %v26134_v11 = vadd.f32 %v25998_v4, %v25873_v58  ;;  %v26138_v23 = vadd.f32 %v25998_v4, %v25877_v17  ;;  %v26142_v13 = vadd.f32 %v25998_v4, %v25881_v35 }
 0xd01   :  { %v26146_v30 = vadd.f32 %v25998_v4, %v25885_v2  ;;  %v26150_v28 = vadd.f32 %v25998_v4, %v25889_v34  ;;  %v26154_v54 = vadd.f32 %v25998_v4, %v25893_v40  ;;  %v26158_v58 = vadd.f32 %v25998_v4, %v25897_v9 }
 0xd02   :  { %v26162_v17 = vadd.f32 %v25998_v4, %v25901_v3  ;;  %v26166_v35 = vadd.f32 %v25998_v4, %v25905_v32  ;;  %v26170_v2 = vadd.f32 %v25998_v4, %v25909_v24  ;;  %v26174_v34 = vadd.f32 %v25998_v4, %v25913_v8 }
 0xd03   :  { %v26178_v40 = vadd.f32 %v25998_v4, %v25917_v62  ;;  %v26182_v9 = vadd.f32 %v25998_v4, %v25921_v25  ;;  %v26186_v3 = vadd.f32 %v25998_v4, %v25925_v57  ;;  %v26190_v32 = vadd.f32 %v25998_v4, %v25929_v19 }
 0xd04   :  { %v26194_v24 = vadd.f32 %v25998_v4, %v25933_v15  ;;  %v26198_v8 = vadd.f32 %v25998_v4, %v25937_v20  ;;  %v26202_v62 = vadd.f32 %v25998_v4, %v25941_v59  ;;  %v26206_v25 = vadd.f32 %v25998_v4, %v25945_v37  ;;  %v27749_v15 = vld [vmem:[#allocation109_spill] sm:$0xff] }
 0xd05   :  { %v26210_v57 = vadd.f32 %v25998_v4, %v25949_v26  ;;  %v26214_v19 = vadd.f32 %v25998_v4, %v25953_v16  ;;  %v26218_v20 = vadd.f32 %v25998_v4, %v27749_v15  ;;  %v26234_v16 = vadd.f32 %v25998_v4, %v25973_v63 }
 0xd06   :  { %27745 = vst [vmem:[#allocation115_spill] sm:$0xff] %v26198_v8  ;;  %27746 = vst [vmem:[#allocation116_spill] sm:$0xff] %v26202_v62  ;;  %v27751_v8 = vld [vmem:[#allocation110_spill] sm:$0xff]  ;;  %v27752_v62 = vld [vmem:[#allocation111_spill] sm:$0xff] }
 0xd07   :  { %27747 = vst [vmem:[#allocation117_spill] sm:$0xff] %v26206_v25  ;;  %27748 = vst [vmem:[#allocation118_spill] sm:$0xff] %v26214_v19  ;;  %v26222_v59 = vadd.f32 %v25998_v4, %v27751_v8  ;;  %v26226_v37 = vadd.f32 %v25998_v4, %v27752_v62  ;;  %v27753_v25 = vld [vmem:[#allocation112_spill] sm:$0xff]  ;;  %v27755_v19 = vld [vmem:[#allocation113_spill] sm:$0xff]  ;;  %v26246_v62 = vadd.f32 %v25998_v4, %v25985_v0 }
 0xd08   :  { %27750 = vst [vmem:[#allocation119_spill] sm:$0xff] %v26218_v20  ;;  %v26230_v26 = vadd.f32 %v25998_v4, %v27753_v25  ;;  %v26238_v15 = vadd.f32 %v25998_v4, %v27755_v19  ;;  %v27756_v20 = vld [vmem:[#allocation107_spill] sm:$0xff]  ;;  %v26250_v25 = vadd.f32 %v25998_v4, %v25989_v50  ;;  %v26258_v19 = vadd.f32 %v25998_v4, %v26002_v12 }
 0xd09   :  { %v26242_v8 = vadd.f32 %v25998_v4, %v27756_v20  ;;  %v26262_v20 = vadd.f32 %v25998_v4, %v26006_v22  ;;  %v26266_v0 = vadd.f32 %v25998_v4, %v26010_v1  ;;  %v26270_v50 = vadd.f32 %v25998_v4, %v26014_v21 }
 0xd0a   :  { %27754 = vst [vmem:[#allocation120_spill] sm:$0xff] %v26230_v26  ;;  %v27757_v26 = vld [vmem:[#allocation114_spill] sm:$0xff]  ;;  %v26278_v12 = vadd.f32 %v25998_v4, %v26022_v43  ;;  %v26282_v22 = vadd.f32 %v25998_v4, %v26026_v5  ;;  %v26286_v1 = vadd.f32 %v25998_v4, %v26030_v6  ;;  %v27768_v6 = vld [vmem:[#allocation9_spill] sm:$0xff] }
 0xd0b   :  { %v26254_v63 = vadd.f32 %v25998_v4, %v27757_v26  ;;  %27758 = vst [vmem:[#allocation121_spill] sm:$0xff] %v26266_v0  ;;  %27759 = vst [vmem:[#allocation122_spill] sm:$0xff] %v26270_v50  ;;  %v26274_v26 = vadd.f32 %v25998_v4, %v26018_v41  ;;  %v27763_v0 = vld [vmem:[#allocation4_spill] sm:$0xff]  ;;  %v27764_v50 = vld [vmem:[#allocation5_spill] sm:$0xff] }
 0xd0c   :  { %27761 = vst [vmem:[#allocation64_spill] sm:$0xff] %v26278_v12  ;;  %27762 = vst [vmem:[#allocation65_spill] sm:$0xff] %v26282_v22  ;;  %v26290_v21 = vadd.f32 %v26034_v38, %v27763_v0  ;;  %v26294_v41 = vadd.f32 %v26038_v18, %v27764_v50  ;;  %v27766_v12 = vld [vmem:[#allocation7_spill] sm:$0xff]  ;;  %v27767_v22 = vld [vmem:[#allocation8_spill] sm:$0xff]  ;;  %v26310_v38 = vadd.f32 %v26054_v48, %v27768_v6 }
 0xd0d   :  { %27760 = vst [vmem:[#allocation123_spill] sm:$0xff] %v26274_v26  ;;  %v27765_v26 = vld [vmem:[#allocation6_spill] sm:$0xff]  ;;  %v26302_v5 = vadd.f32 %v26046_v7, %v27766_v12  ;;  %v26306_v4 = vadd.f32 %v26050_v14, %v27767_v22  ;;  %v27770_v50 = vld [vmem:[#allocation11_spill] sm:$0xff]  ;;  %v27772_v12 = vld [vmem:[#allocation13_spill] sm:$0xff] }
 0xd0e   :  { %v26298_v43 = vadd.f32 %v26042_v39, %v27765_v26  ;;  %v27769_v0 = vld [vmem:[#allocation10_spill] sm:$0xff]  ;;  %v26318_v39 = vadd.f32 %v26062_v53, %v27770_v50  ;;  %v27771_v26 = vld [vmem:[#allocation12_spill] sm:$0xff]  ;;  %v26326_v14 = vadd.f32 %v26070_v60, %v27772_v12  ;;  %v27774_v6 = vld [vmem:[#allocation15_spill] sm:$0xff] }
 0xd0f   :  { %v26314_v18 = vadd.f32 %v26058_v46, %v27769_v0  ;;  %v26322_v7 = vadd.f32 %v26066_v56, %v27771_v26  ;;  %v27773_v22 = vld [vmem:[#allocation14_spill] sm:$0xff]  ;;  %v26334_v46 = vadd.f32 %v26078_v36, %v27774_v6  ;;  %v27775_v0 = vld [vmem:[#allocation16_spill] sm:$0xff]  ;;  %v27776_v50 = vld [vmem:[#allocation17_spill] sm:$0xff] }
 0xd10   :  { %v26330_v48 = vadd.f32 %v26074_v49, %v27773_v22  ;;  %v26338_v53 = vadd.f32 %v26082_v33, %v27775_v0  ;;  %v26342_v56 = vadd.f32 %v26086_v51, %v27776_v50  ;;  %v27777_v26 = vld [vmem:[#allocation18_spill] sm:$0xff]  ;;  %v27778_v12 = vld [vmem:[#allocation19_spill] sm:$0xff]  ;;  %v27779_v22 = vld [vmem:[#allocation20_spill] sm:$0xff] }
 0xd11   :  { %v26346_v60 = vadd.f32 %v26090_v10, %v27777_v26  ;;  %v26350_v49 = vadd.f32 %v26094_v31, %v27778_v12  ;;  %v26354_v36 = vadd.f32 %v26098_v42, %v27779_v22  ;;  %v27780_v6 = vld [vmem:[#allocation21_spill] sm:$0xff]  ;;  %v27781_v0 = vld [vmem:[#allocation22_spill] sm:$0xff]  ;;  %v27782_v50 = vld [vmem:[#allocation23_spill] sm:$0xff] }
 0xd12   :  { %v26358_v33 = vadd.f32 %v26102_v47, %v27780_v6  ;;  %v26362_v51 = vadd.f32 %v26106_v55, %v27781_v0  ;;  %v26366_v10 = vadd.f32 %v26110_v52, %v27782_v50  ;;  %v27783_v26 = vld [vmem:[#allocation24_spill] sm:$0xff]  ;;  %v27784_v12 = vld [vmem:[#allocation25_spill] sm:$0xff]  ;;  %v27785_v22 = vld [vmem:[#allocation26_spill] sm:$0xff] }
 0xd13   :  { %v26370_v31 = vadd.f32 %v26114_v27, %v27783_v26  ;;  %v26374_v42 = vadd.f32 %v26118_v29, %v27784_v12  ;;  %v26378_v47 = vadd.f32 %v26122_v61, %v27785_v22  ;;  %v27786_v6 = vld [vmem:[#allocation27_spill] sm:$0xff]  ;;  %v27787_v0 = vld [vmem:[#allocation28_spill] sm:$0xff]  ;;  %v27788_v50 = vld [vmem:[#allocation29_spill] sm:$0xff] }
 0xd14   :  { %v26382_v55 = vadd.f32 %v26126_v45, %v27786_v6  ;;  %v26386_v52 = vadd.f32 %v26130_v44, %v27787_v0  ;;  %v26390_v27 = vadd.f32 %v26134_v11, %v27788_v50  ;;  %v27789_v26 = vld [vmem:[#allocation30_spill] sm:$0xff]  ;;  %v27790_v12 = vld [vmem:[#allocation31_spill] sm:$0xff]  ;;  %v27791_v22 = vld [vmem:[#allocation32_spill] sm:$0xff] }
 0xd15   :  { %v26394_v29 = vadd.f32 %v26138_v23, %v27789_v26  ;;  %v26398_v61 = vadd.f32 %v26142_v13, %v27790_v12  ;;  %v26402_v45 = vadd.f32 %v26146_v30, %v27791_v22  ;;  %v27792_v6 = vld [vmem:[#allocation33_spill] sm:$0xff]  ;;  %v27793_v0 = vld [vmem:[#allocation95_spill] sm:$0xff]  ;;  %v27794_v50 = vld [vmem:[#allocation96_spill] sm:$0xff] }
 0xd16   :  { %v26406_v44 = vadd.f32 %v26150_v28, %v27792_v6  ;;  %v26410_v11 = vadd.f32 %v26154_v54, %v27793_v0  ;;  %v26414_v23 = vadd.f32 %v26158_v58, %v27794_v50  ;;  %v27795_v26 = vld [vmem:[#allocation34_spill] sm:$0xff]  ;;  %v27796_v12 = vld [vmem:[#allocation35_spill] sm:$0xff]  ;;  %v27797_v22 = vld [vmem:[#allocation36_spill] sm:$0xff] }
 0xd17   :  { %v26418_v13 = vadd.f32 %v26162_v17, %v27795_v26  ;;  %v26422_v30 = vadd.f32 %v26166_v35, %v27796_v12  ;;  %v26426_v28 = vadd.f32 %v26170_v2, %v27797_v22  ;;  %v27798_v6 = vld [vmem:[#allocation37_spill] sm:$0xff]  ;;  %v27800_v0 = vld [vmem:[#allocation38_spill] sm:$0xff]  ;;  %v27802_v50 = vld [vmem:[#allocation39_spill] sm:$0xff] }
 0xd18   :  { %v26430_v54 = vadd.f32 %v26174_v34, %v27798_v6  ;;  %v26434_v58 = vadd.f32 %v26178_v40, %v27800_v0  ;;  %v26438_v17 = vadd.f32 %v26182_v9, %v27802_v50  ;;  %v27804_v26 = vld [vmem:[#allocation40_spill] sm:$0xff]  ;;  %v27805_v12 = vld [vmem:[#allocation41_spill] sm:$0xff]  ;;  %v27807_v22 = vld [vmem:[#allocation42_spill] sm:$0xff] }
 0xd19   :  { %v26442_v35 = vadd.f32 %v26186_v3, %v27804_v26  ;;  %v26446_v2 = vadd.f32 %v26190_v32, %v27805_v12  ;;  %v26450_v34 = vadd.f32 %v26194_v24, %v27807_v22  ;;  %v27809_v6 = vld [vmem:[#allocation43_spill] sm:$0xff]  ;;  %v27811_v0 = vld [vmem:[#allocation44_spill] sm:$0xff]  ;;  %v27813_v50 = vld [vmem:[#allocation45_spill] sm:$0xff] }
 0xd1a   :  { %27799 = vst [vmem:[#allocation66_spill] sm:$0xff] %v26430_v54  ;;  %27801 = vst [vmem:[#allocation67_spill] sm:$0xff] %v26434_v58  ;;  %v27810_v54 = vld [vmem:[#allocation115_spill] sm:$0xff]  ;;  %v27812_v58 = vld [vmem:[#allocation116_spill] sm:$0xff] }
 0xd1b   :  { %27803 = vst [vmem:[#allocation126_spill] sm:$0xff] %v26438_v17  ;;  %27806 = vst [vmem:[#allocation127_spill] sm:$0xff] %v26446_v2  ;;  %v26454_v40 = vadd.f32 %v27810_v54, %v27809_v6  ;;  %v26458_v9 = vadd.f32 %v27812_v58, %v27811_v0  ;;  %v27814_v17 = vld [vmem:[#allocation117_spill] sm:$0xff]  ;;  %v27816_v26 = vld [vmem:[#allocation46_spill] sm:$0xff] }
 0xd1c   :  { %27808 = vst [vmem:[#allocation128_spill] sm:$0xff] %v26450_v34  ;;  %v26462_v3 = vadd.f32 %v27814_v17, %v27813_v50  ;;  %v26466_v32 = vadd.f32 %v26210_v57, %v27816_v26  ;;  %v27817_v12 = vld [vmem:[#allocation47_spill] sm:$0xff]  ;;  %v27818_v2 = vld [vmem:[#allocation118_spill] sm:$0xff]  ;;  %v27819_v22 = vld [vmem:[#allocation48_spill] sm:$0xff] }
 0xd1d   :  { %v26470_v24 = vadd.f32 %v27818_v2, %v27817_v12  ;;  %v27820_v34 = vld [vmem:[#allocation119_spill] sm:$0xff]  ;;  %v27821_v6 = vld [vmem:[#allocation49_spill] sm:$0xff]  ;;  %v27822_v0 = vld [vmem:[#allocation50_spill] sm:$0xff] }
 0xd1e   :  { %27815 = vst [vmem:[#allocation129_spill] sm:$0xff] %v26462_v3  ;;  %v26474_v54 = vadd.f32 %v27820_v34, %v27819_v22  ;;  %v26478_v58 = vadd.f32 %v26222_v59, %v27821_v6  ;;  %v26482_v17 = vadd.f32 %v26226_v37, %v27822_v0  ;;  %v27823_v50 = vld [vmem:[#allocation51_spill] sm:$0xff]  ;;  %v27824_v3 = vld [vmem:[#allocation120_spill] sm:$0xff]  ;;  %v27826_v12 = vld [vmem:[#allocation53_spill] sm:$0xff] }
 0xd1f   :  { %v26486_v57 = vadd.f32 %v27824_v3, %v27823_v50  ;;  %v27825_v26 = vld [vmem:[#allocation52_spill] sm:$0xff]  ;;  %v26494_v34 = vadd.f32 %v26238_v15, %v27826_v12  ;;  %v27827_v22 = vld [vmem:[#allocation54_spill] sm:$0xff]  ;;  %v27829_v6 = vld [vmem:[#allocation55_spill] sm:$0xff] }
 0xd20   :  { %v26490_v2 = vadd.f32 %v26234_v16, %v27825_v26  ;;  %v26498_v59 = vadd.f32 %v26242_v8, %v27827_v22  ;;  %v26502_v37 = vadd.f32 %v26246_v62, %v27829_v6  ;;  %v27831_v0 = vld [vmem:[#allocation56_spill] sm:$0xff]  ;;  %v27833_v50 = vld [vmem:[#allocation57_spill] sm:$0xff]  ;;  %v27835_v26 = vld [vmem:[#allocation58_spill] sm:$0xff] }
 0xd21   :  { %v26506_v3 = vadd.f32 %v26250_v25, %v27831_v0  ;;  %v26510_v16 = vadd.f32 %v26254_v63, %v27833_v50  ;;  %v26514_v15 = vadd.f32 %v26258_v19, %v27835_v26  ;;  %v27837_v12 = vld [vmem:[#allocation59_spill] sm:$0xff]  ;;  %v27838_v22 = vld [vmem:[#allocation60_spill] sm:$0xff]  ;;  %v27840_v6 = vld [vmem:[#allocation61_spill] sm:$0xff] }
 0xd22   :  { %27828 = vst [vmem:[#allocation130_spill] sm:$0xff] %v26498_v59  ;;  %27830 = vst [vmem:[#allocation131_spill] sm:$0xff] %v26502_v37  ;;  %v26518_v8 = vadd.f32 %v26262_v20, %v27837_v12  ;;  %v27839_v59 = vld [vmem:[#allocation121_spill] sm:$0xff]  ;;  %v27841_v37 = vld [vmem:[#allocation122_spill] sm:$0xff] }
 0xd23   :  { %27832 = vst [vmem:[#allocation132_spill] sm:$0xff] %v26506_v3  ;;  %27834 = vst [vmem:[#allocation134_spill] sm:$0xff] %v26510_v16  ;;  %v26522_v62 = vadd.f32 %v27839_v59, %v27838_v22  ;;  %v26526_v25 = vadd.f32 %v27841_v37, %v27840_v6  ;;  %v27842_v0 = vld [vmem:[#allocation62_spill] sm:$0xff]  ;;  %v27843_v3 = vld [vmem:[#allocation123_spill] sm:$0xff]  ;;  %v14261_v22 = vmax.f32 %v26290_v21, 0.0  ;;  %v14262_v37 = vmax.f32 %v26294_v41, 0.0 }
 0xd24   :  { %27836 = vst [vmem:[#allocation133_spill] sm:$0xff] %v26514_v15  ;;  %v26530_v63 = vadd.f32 %v27843_v3, %v27842_v0  ;;  %v27844_v50 = vld [vmem:[#allocation63_spill] sm:$0xff]  ;;  %v27845_v16 = vld [vmem:[#allocation64_spill] sm:$0xff]  ;;  %v27847_v15 = vld [vmem:[#allocation65_spill] sm:$0xff]  ;;  %v14263_v6 = vmax.f32 %v26298_v43, 0.0  ;;  %v14264_v3 = vmax.f32 %v26302_v5, 0.0 }
 0xd25   :  { %v26534_v19 = vadd.f32 %v27845_v16, %v27844_v50  ;;  %v27846_v26 = vld [vmem:[#allocation124_spill] sm:$0xff]  ;;  %v27848_v12 = vld [vmem:[#allocation125_spill] sm:$0xff]  ;;  %v14265_v0 = vmax.f32 %v26306_v4, 0.0  ;;  %v14266_v16 = vmax.f32 %v26310_v38, 0.0  ;;  %v14267_v50 = vmax.f32 %v26314_v18, 0.0  ;;  %14325 = vst.msk [vmem:[%s26871_s7] sm:$0xff] %vm90_vm1, %v14261_v22 }
 0xd26   :  { %v26538_v20 = vadd.f32 %v27847_v15, %v27846_v26  ;;  %v26542_v59 = vadd.f32 %v26286_v1, %v27848_v12  ;;  %v14268_v15 = vmax.f32 %v26318_v39, 0.0  ;;  %v14269_v26 = vmax.f32 %v26322_v7, 0.0  ;;  %14326 = vst.msk [vmem:[%s26871_s7 + $0x8] sm:$0xff] %vm90_vm1, %v14262_v37  ;;  %14327 = vst.msk [vmem:[%s26871_s7 + $0x10] sm:$0xff] %vm90_vm1, %v14263_v6  ;;  %v27854_v37 = vld [vmem:[#allocation129_spill] sm:$0xff] }
 0xd27   :  { %v14270_v1 = vmax.f32 %v26326_v14, 0.0  ;;  %v14271_v21 = vmax.f32 %v26330_v48, 0.0  ;;  %v14272_v41 = vmax.f32 %v26334_v46, 0.0  ;;  %14328 = vst.msk [vmem:[%s26871_s7 + $0x18] sm:$0xff] %vm90_vm1, %v14264_v3  ;;  %v14273_v43 = vmax.f32 %v26338_v53, 0.0  ;;  %14329 = vst.msk [vmem:[%s26871_s7 + $0x20] sm:$0xff] %vm90_vm1, %v14265_v0 }
 0xd28   :  { %v14274_v5 = vmax.f32 %v26342_v56, 0.0  ;;  %v14275_v4 = vmax.f32 %v26346_v60, 0.0  ;;  %v14276_v38 = vmax.f32 %v26350_v49, 0.0  ;;  %14330 = vst.msk [vmem:[%s26871_s7 + $0x28] sm:$0xff] %vm90_vm1, %v14266_v16  ;;  %14331 = vst.msk [vmem:[%s26871_s7 + $0x30] sm:$0xff] %vm90_vm1, %v14267_v50  ;;  %v14277_v18 = vmax.f32 %v26354_v36, 0.0 }
 0xd29   :  { %14332 = vst.msk [vmem:[%s26871_s7 + $0x38] sm:$0xff] %vm90_vm1, %v14268_v15  ;;  %v14278_v39 = vmax.f32 %v26358_v33, 0.0  ;;  %v14279_v7 = vmax.f32 %v26362_v51, 0.0  ;;  %v14280_v14 = vmax.f32 %v26366_v10, 0.0  ;;  %14333 = vst.msk [vmem:[%s26871_s7 + $0x40] sm:$0xff] %vm90_vm1, %v14269_v26  ;;  %v14281_v48 = vmax.f32 %v26370_v31, 0.0 }
 0xd2a   :  { %14334 = vst.msk [vmem:[%s26871_s7 + $0x48] sm:$0xff] %vm90_vm1, %v14270_v1  ;;  %14335 = vst.msk [vmem:[%s26871_s7 + $0x50] sm:$0xff] %vm90_vm1, %v14271_v21  ;;  %v14282_v46 = vmax.f32 %v26374_v42, 0.0  ;;  %v14283_v53 = vmax.f32 %v26378_v47, 0.0  ;;  %v14284_v56 = vmax.f32 %v26382_v55, 0.0  ;;  %v14285_v60 = vmax.f32 %v26386_v52, 0.0 }
 0xd2b   :  { %14336 = vst.msk [vmem:[%s26871_s7 + $0x58] sm:$0xff] %vm90_vm1, %v14272_v41  ;;  %14337 = vst.msk [vmem:[%s26871_s7 + $0x60] sm:$0xff] %vm90_vm1, %v14273_v43  ;;  %v14286_v49 = vmax.f32 %v26390_v27, 0.0  ;;  %v14287_v36 = vmax.f32 %v26394_v29, 0.0  ;;  %v14288_v33 = vmax.f32 %v26398_v61, 0.0  ;;  %v14289_v51 = vmax.f32 %v26402_v45, 0.0 }
 0xd2c   :  { %14338 = vst.msk [vmem:[%s26871_s7 + $0x68] sm:$0xff] %vm90_vm1, %v14274_v5  ;;  %14339 = vst.msk [vmem:[%s26871_s7 + $0x70] sm:$0xff] %vm90_vm1, %v14275_v4  ;;  %v14290_v10 = vmax.f32 %v26406_v44, 0.0  ;;  %v14291_v31 = vmax.f32 %v26410_v11, 0.0  ;;  %v14292_v42 = vmax.f32 %v26414_v23, 0.0  ;;  %v14293_v47 = vmax.f32 %v26418_v13, 0.0 }
 0xd2d   :  { %14340 = vst.msk [vmem:[%s26871_s7 + $0x78] sm:$0xff] %vm90_vm1, %v14276_v38  ;;  %14341 = vst.msk [vmem:[%s26871_s7 + $0x80] sm:$0xff] %vm90_vm1, %v14277_v18  ;;  %v14294_v55 = vmax.f32 %v26422_v30, 0.0  ;;  %v14295_v52 = vmax.f32 %v26426_v28, 0.0  ;;  %v27849_v27 = vld [vmem:[#allocation66_spill] sm:$0xff]  ;;  %v27850_v61 = vld [vmem:[#allocation67_spill] sm:$0xff] }
 0xd2e   :  { %14342 = vst.msk [vmem:[%s26871_s7 + $0x88] sm:$0xff] %vm90_vm1, %v14278_v39  ;;  %14343 = vst.msk [vmem:[%s26871_s7 + $0x90] sm:$0xff] %vm90_vm1, %v14279_v7  ;;  %v14296_v29 = vmax.f32 %v27849_v27, 0.0  ;;  %v14297_v45 = vmax.f32 %v27850_v61, 0.0  ;;  %v27851_v44 = vld [vmem:[#allocation126_spill] sm:$0xff]  ;;  %v14299_v23 = vmax.f32 %v26442_v35, 0.0 }
 0xd2f   :  { %14344 = vst.msk [vmem:[%s26871_s7 + $0x98] sm:$0xff] %vm90_vm1, %v14280_v14  ;;  %14345 = vst.msk [vmem:[%s26871_s7 + $0xa0] sm:$0xff] %vm90_vm1, %v14281_v48  ;;  %v14298_v11 = vmax.f32 %v27851_v44, 0.0  ;;  %v27852_v13 = vld [vmem:[#allocation127_spill] sm:$0xff]  ;;  %v27853_v28 = vld [vmem:[#allocation128_spill] sm:$0xff]  ;;  %v14302_v12 = vmax.f32 %v26454_v40, 0.0 }
 0xd30   :  { %14346 = vst.msk [vmem:[%s26871_s7 + $0xa8] sm:$0xff] %vm90_vm1, %v14282_v46  ;;  %14347 = vst.msk [vmem:[%s26871_s7 + $0xb0] sm:$0xff] %vm90_vm1, %v14283_v53  ;;  %v14300_v30 = vmax.f32 %v27852_v13, 0.0  ;;  %v14301_v35 = vmax.f32 %v27853_v28, 0.0  ;;  %v14303_v22 = vmax.f32 %v26458_v9, 0.0  ;;  %v14304_v6 = vmax.f32 %v27854_v37, 0.0 }
 0xd31   :  { %14348 = vst.msk [vmem:[%s26871_s7 + $0xb8] sm:$0xff] %vm90_vm1, %v14284_v56  ;;  %14349 = vst.msk [vmem:[%s26871_s7 + $0xc0] sm:$0xff] %vm90_vm1, %v14285_v60  ;;  %v14305_v40 = vmax.f32 %v26466_v32, 0.0  ;;  %v14306_v9 = vmax.f32 %v26470_v24, 0.0  ;;  %v14307_v3 = vmax.f32 %v26474_v54, 0.0  ;;  %v14308_v0 = vmax.f32 %v26478_v58, 0.0 }
 0xd32   :  { %14350 = vst.msk [vmem:[%s26871_s7 + $0xc8] sm:$0xff] %vm90_vm1, %v14286_v49  ;;  %14351 = vst.msk [vmem:[%s26871_s7 + $0xd0] sm:$0xff] %vm90_vm1, %v14287_v36  ;;  %v14309_v32 = vmax.f32 %v26482_v17, 0.0  ;;  %v14310_v24 = vmax.f32 %v26486_v57, 0.0  ;;  %v14311_v54 = vmax.f32 %v26490_v2, 0.0  ;;  %v14312_v58 = vmax.f32 %v26494_v34, 0.0 }
 0xd33   :  { %14352 = vst.msk [vmem:[%s26871_s7 + $0xd8] sm:$0xff] %vm90_vm1, %v14288_v33  ;;  %14353 = vst.msk [vmem:[%s26871_s7 + $0xe0] sm:$0xff] %vm90_vm1, %v14289_v51  ;;  %v27855_v17 = vld [vmem:[#allocation130_spill] sm:$0xff]  ;;  %v27856_v2 = vld [vmem:[#allocation131_spill] sm:$0xff]  ;;  %v14318_v41 = vmax.f32 %v26518_v8, 0.0  ;;  %v14319_v43 = vmax.f32 %v26522_v62, 0.0 }
 0xd34   :  { %14354 = vst.msk [vmem:[%s26871_s7 + $0xe8] sm:$0xff] %vm90_vm1, %v14290_v10  ;;  %14355 = vst.msk [vmem:[%s26871_s7 + $0xf0] sm:$0xff] %vm90_vm1, %v14291_v31  ;;  %v14313_v57 = vmax.f32 %v27855_v17, 0.0  ;;  %v14314_v34 = vmax.f32 %v27856_v2, 0.0  ;;  %v27857_v16 = vld [vmem:[#allocation132_spill] sm:$0xff]  ;;  %v27858_v15 = vld [vmem:[#allocation134_spill] sm:$0xff] }
 0xd35   :  { %14356 = vst.msk [vmem:[%s26871_s7 + $0xf8] sm:$0xff] %vm90_vm1, %v14292_v42  ;;  %14357 = vst.msk [vmem:[%s26871_s7 + $0x100] sm:$0xff] %vm90_vm1, %v14293_v47  ;;  %v14315_v50 = vmax.f32 %v27857_v16, 0.0  ;;  %v14316_v26 = vmax.f32 %v27858_v15, 0.0  ;;  %v27859_v1 = vld [vmem:[#allocation133_spill] sm:$0xff]  ;;  %v14320_v5 = vmax.f32 %v26526_v25, 0.0 }
 0xd36   :  { %14358 = vst.msk [vmem:[%s26871_s7 + $0x108] sm:$0xff] %vm90_vm1, %v14294_v55  ;;  %14359 = vst.msk [vmem:[%s26871_s7 + $0x110] sm:$0xff] %vm90_vm1, %v14295_v52  ;;  %v14317_v21 = vmax.f32 %v27859_v1, 0.0  ;;  %v14321_v8 = vmax.f32 %v26530_v63, 0.0  ;;  %v14322_v62 = vmax.f32 %v26534_v19, 0.0  ;;  %v14323_v25 = vmax.f32 %v26538_v20, 0.0 }
 0xd37   :  { %14360 = vst.msk [vmem:[%s26871_s7 + $0x118] sm:$0xff] %vm90_vm1, %v14296_v29  ;;  %14361 = vst.msk [vmem:[%s26871_s7 + $0x120] sm:$0xff] %vm90_vm1, %v14297_v45  ;;  %v14324_v4 = vmax.f32 %v26542_v59, 0.0 }
 0xd38   :  { %14362 = vst.msk [vmem:[%s26871_s7 + $0x128] sm:$0xff] %vm90_vm1, %v14298_v11  ;;  %14363 = vst.msk [vmem:[%s26871_s7 + $0x130] sm:$0xff] %vm90_vm1, %v14299_v23 }
 0xd39   :  { %14364 = vst.msk [vmem:[%s26871_s7 + $0x138] sm:$0xff] %vm90_vm1, %v14300_v30  ;;  %14365 = vst.msk [vmem:[%s26871_s7 + $0x140] sm:$0xff] %vm90_vm1, %v14301_v35 }
 0xd3a   :  { %14366 = vst.msk [vmem:[%s26871_s7 + $0x148] sm:$0xff] %vm90_vm1, %v14302_v12  ;;  %14367 = vst.msk [vmem:[%s26871_s7 + $0x150] sm:$0xff] %vm90_vm1, %v14303_v22 }
 0xd3b   :  { %14368 = vst.msk [vmem:[%s26871_s7 + $0x158] sm:$0xff] %vm90_vm1, %v14304_v6  ;;  %14369 = vst.msk [vmem:[%s26871_s7 + $0x160] sm:$0xff] %vm90_vm1, %v14305_v40 }
 0xd3c   :  { %14370 = vst.msk [vmem:[%s26871_s7 + $0x168] sm:$0xff] %vm90_vm1, %v14306_v9  ;;  %14371 = vst.msk [vmem:[%s26871_s7 + $0x170] sm:$0xff] %vm90_vm1, %v14307_v3 }
 0xd3d   :  { %14372 = vst.msk [vmem:[%s26871_s7 + $0x178] sm:$0xff] %vm90_vm1, %v14308_v0  ;;  %14373 = vst.msk [vmem:[%s26871_s7 + $0x180] sm:$0xff] %vm90_vm1, %v14309_v32 }
 0xd3e   :  { %14374 = vst.msk [vmem:[%s26871_s7 + $0x188] sm:$0xff] %vm90_vm1, %v14310_v24  ;;  %14375 = vst.msk [vmem:[%s26871_s7 + $0x190] sm:$0xff] %vm90_vm1, %v14311_v54 }
 0xd3f   :  { %14376 = vst.msk [vmem:[%s26871_s7 + $0x198] sm:$0xff] %vm90_vm1, %v14312_v58  ;;  %14377 = vst.msk [vmem:[%s26871_s7 + $0x1a0] sm:$0xff] %vm90_vm1, %v14313_v57 }
 0xd40   :  { %14378 = vst.msk [vmem:[%s26871_s7 + $0x1a8] sm:$0xff] %vm90_vm1, %v14314_v34  ;;  %14379 = vst.msk [vmem:[%s26871_s7 + $0x1b0] sm:$0xff] %vm90_vm1, %v14315_v50 }
 0xd41   :  { %14380 = vst.msk [vmem:[%s26871_s7 + $0x1b8] sm:$0xff] %vm90_vm1, %v14316_v26  ;;  %14381 = vst.msk [vmem:[%s26871_s7 + $0x1c0] sm:$0xff] %vm90_vm1, %v14317_v21 }
 0xd42   :  { %14382 = vst.msk [vmem:[%s26871_s7 + $0x1c8] sm:$0xff] %vm90_vm1, %v14318_v41  ;;  %14383 = vst.msk [vmem:[%s26871_s7 + $0x1d0] sm:$0xff] %vm90_vm1, %v14319_v43 }
 0xd43   :  { %14384 = vst.msk [vmem:[%s26871_s7 + $0x1d8] sm:$0xff] %vm90_vm1, %v14320_v5  ;;  %14385 = vst.msk [vmem:[%s26871_s7 + $0x1e0] sm:$0xff] %vm90_vm1, %v14321_v8 }
 0xd44   :  { %14386 = vst.msk [vmem:[%s26871_s7 + $0x1e8] sm:$0xff] %vm90_vm1, %v14322_v62  ;;  %14387 = vst.msk [vmem:[%s26871_s7 + $0x1f0] sm:$0xff] %vm90_vm1, %v14323_v25 }
 0xd45   :  { %14388 = vst.msk [vmem:[%s26871_s7 + $0x1f8] sm:$0xff] %vm90_vm1, %v14324_v4 }

</bundles_post_ra>
